<compile_context>
chip_gen: v5e
topology: v5e:2x2
jax: 0.10.0
libtpu: 0.0.40
codegen_flags: <defaults>
</compile_context>

<pallas_src>
import jax
import jax.numpy as jnp
from jax.experimental import pallas as pl
from jax.experimental.pallas import tpu as pltpu

LN_EPS = 1e-5             # torch.nn.LayerNorm default
MXU_DTYPE = jnp.bfloat16  # matmul-input dtype (f32 accumulation)
LANE = 128                # lane width: pad feature / minor dims to this


def _round_up(v, m):
    return ((v + m - 1) // m) * m


def _packs(n_parts, latent, lat_pad):
    """Can the n_parts concat-inputs of one MLP be lane-packed into one tile?"""
    return n_parts == 1 or n_parts * latent <= lat_pad


# ----------------------------- fused Pallas kernel ---------------------------

def make_graphnet_kernel(num_blocks, latent_real, lat_pad, e_pad, max_parts):
    """Single fused GraphNet forward kernel.

    Weight operands (stacked over the 7 MLPs, order:
      node_enc, edge_enc, (edge_mlp, node_mlp)*num_blocks, decoder):
        w1_ref : (n_mlp*max_parts, Lp, Lp) bf16  -- packed / per-part layer-1 weights
        wsq_ref: (n_mlp*3,        Lp, Lp) bf16  -- w2, w3, w4
        vec_ref: (n_mlp*6,        Lp)     f32   -- b1,b2,b3,b4,gamma,beta (zeros if no LN)
    """
    inv_l = 1.0 / float(latent_real)

    def dot_f32(a, b):
        return jnp.dot(a.astype(MXU_DTYPE), b, preferred_element_type=jnp.float32)

    def kernel(x0_ref, e0_ref, g_ref, s_ref, w1_ref, wsq_ref, vec_ref, o_ref):
        def w1(idx, p):
            return w1_ref[idx * max_parts + p]

        def wsq(idx, k):
            return wsq_ref[idx * 3 + k]

        def vec(idx, k):
            return vec_ref[idx * 6 + k: idx * 6 + k + 1, :]

        def mlp(parts, idx, use_ln):
            n_parts = len(parts)
            if _packs(n_parts, latent_real, lat_pad):
                # Lane-pack the concat parts into one 128-lane operand.  Every
                # part has exact zeros in lanes >= latent_real, so the XLU rolls
                # plus adds are a pure, lossless re-layout.
                op = parts[0]
                for p in range(1, n_parts):
                    op = op + pltpu.roll(parts[p], shift=p * latent_real, axis=1)
                h = dot_f32(op, w1(idx, 0))
            else:
                h = dot_f32(parts[0], w1(idx, 0))
                for p in range(1, n_parts):
                    h = h + dot_f32(parts[p], w1(idx, p))
            h = jnp.maximum(h + vec(idx, 0), 0.0)
            h = jnp.maximum(dot_f32(h, wsq(idx, 0)) + vec(idx, 1), 0.0)
            h = jnp.maximum(dot_f32(h, wsq(idx, 1)) + vec(idx, 2), 0.0)
            y = dot_f32(h, wsq(idx, 2)) + vec(idx, 3)
            if use_ln:
                # Maskless LayerNorm over the real latent lanes only: pad lanes
                # of y are exactly 0 and pad gamma/beta columns are 0, so the
                # output pad lanes stay exactly 0.
                mu = jnp.sum(y, axis=-1, keepdims=True) * inv_l
                ex2 = jnp.sum(y * y, axis=-1, keepdims=True) * inv_l
                y = (y - mu) * jax.lax.rsqrt(ex2 - mu * mu + LN_EPS)
                y = y * vec(idx, 4) + vec(idx, 5)
            return y

        # ---- Encoder ----
        x = mlp([x0_ref[...]], 0, True)     # (N_pad, Lp)
        e = mlp([e0_ref[...]], 1, True)     # (E_pad, Lp)

        g_both = g_ref[...]                 # (2*E_pad, N_pad): [dst one-hot ; src one-hot]
        sdst = s_ref[...]                   # (N_pad, E_pad): scatter-add operator (aggr='add')

        # ---- Processor (unrolled; weights are static per block) ----
        for b in range(num_blocks):
            # fused gather: one matmul instead of two, split at a sublane boundary
            xij = jnp.dot(g_both, x.astype(MXU_DTYPE),
                          preferred_element_type=jnp.float32)   # (2*E_pad, Lp)
            x_i = xij[:e_pad]                                   # x[dst] (centers)
            x_j = xij[e_pad:]                                   # x[src] (neighbors)
            msg = mlp([x_i, x_j, e], 2 + 2 * b, True)
            agg = jnp.dot(sdst, msg.astype(MXU_DTYPE),
                          preferred_element_type=jnp.float32)   # scatter-add
            upd = mlp([x, agg], 3 + 2 * b, True)
            e = e + msg   # edge residual
            x = x + upd   # node residual

        # ---- Decoder (no LayerNorm); lane-dense (N_pad, Lp) store ----
        o_ref[...] = mlp([x], 2 + 2 * num_blocks, False)

    return kernel


# ------------------------------ packing / wrapper -----------------------------

def _pad2(a, rows, cols):
    return jnp.pad(a, ((0, rows - a.shape[0]), (0, cols - a.shape[1])))


def pack_graphnet_weights(params, latent, lat_pad):
    """Pad + stack all 7 MLPs into 3 kernel operands."""
    mlps = [(params["node_enc"], True), (params["edge_enc"], True)]
    for blk in params["blocks"]:
        mlps += [(blk["edge_mlp"], True), (blk["node_mlp"], True)]
    mlps.append((params["decoder"], False))

    part_counts = [len(p["w1s"]) for p, _ in mlps]
    max_parts = max(1 if _packs(c, latent, lat_pad) else c for c in part_counts)

    zero_sq = jnp.zeros((lat_pad, lat_pad), jnp.float32)
    w1_list, wsq_list, vec_list = [], [], []
    for (p, use_ln), cnt in zip(mlps, part_counts):
        slots = [zero_sq] * max_parts
        if _packs(cnt, latent, lat_pad):
            # row-stacked packed W1 matching the lane-packed operand layout
            slots[0] = _pad2(jnp.concatenate(list(p["w1s"]), axis=0), lat_pad, lat_pad)
        else:
            for i, w in enumerate(p["w1s"]):
                slots[i] = _pad2(w, lat_pad, lat_pad)
        w1_list += slots
        wsq_list += [_pad2(p["w2"], lat_pad, lat_pad),
                     _pad2(p["w3"], lat_pad, lat_pad),
                     _pad2(p["w4"], lat_pad, lat_pad)]
        out_w = p["w4"].shape[1]
        gamma = p["gamma"] if use_ln else jnp.zeros((1, out_w), jnp.float32)
        beta = p["beta"] if use_ln else jnp.zeros((1, out_w), jnp.float32)
        vec_list += [_pad2(v, 1, lat_pad)
                     for v in (p["b1"], p["b2"], p["b3"], p["b4"], gamma, beta)]

    w1_all = jnp.stack(w1_list, axis=0).astype(MXU_DTYPE)      # (n_mlp*max_parts, Lp, Lp)
    wsq_all = jnp.stack(wsq_list, axis=0).astype(MXU_DTYPE)    # (n_mlp*3, Lp, Lp)
    vec_all = jnp.concatenate(vec_list, axis=0).astype(jnp.float32)  # (n_mlp*6, Lp)
    return w1_all, wsq_all, vec_all, max_parts


def _flops_estimate(n_pad, e_pad, lat_pad, num_blocks):
    per_mlp = lambda rows: 2 * rows * lat_pad * lat_pad * 4
    fl = per_mlp(n_pad) + per_mlp(e_pad)                       # encoders
    for _ in range(num_blocks):
        fl += 2 * (2 * e_pad) * n_pad * lat_pad                # fused gather
        fl += per_mlp(e_pad)                                   # edge MLP
        fl += 2 * n_pad * e_pad * lat_pad                      # scatter-add
        fl += per_mlp(n_pad)                                   # node MLP
    fl += per_mlp(n_pad)                                       # decoder
    return fl


def graphnet_forward(params, x, edge_attr, edge_index):
    latent = params["node_enc"]["w2"].shape[0]
    n_out = params["decoder"]["w4"].shape[1]
    num_blocks = len(params["blocks"])
    lat_pad = max(LANE, _round_up(latent, LANE), _round_up(n_out, LANE))

    n, nf = x.shape
    e_cnt, ef = edge_attr.shape
    assert nf <= lat_pad and ef <= lat_pad, "raw feature width > lat_pad unsupported"

    # Lane-dense padding: N and E are the minor (contraction) dims of the
    # one-hot gather/scatter operators, so pad them to 128 to avoid narrow minors.
    n_pad = _round_up(n, LANE)
    e_pad = _round_up(e_cnt, LANE)

    # zero-padded inputs (pad lanes and pad rows are exactly 0)
    x0 = jnp.zeros((n_pad, lat_pad), jnp.float32).at[:n, :nf].set(x.astype(jnp.float32))
    e0 = jnp.zeros((e_pad, lat_pad), jnp.float32).at[:e_cnt, :ef].set(
        edge_attr.astype(jnp.float32))

    src = edge_index[0].astype(jnp.int32)   # x_j (source / neighbor nodes)
    dst = edge_index[1].astype(jnp.int32)   # x_i (target nodes); aggr='add' at targets
    pad_ids = -jnp.ones((e_pad - e_cnt,), jnp.int32)   # pad edges match nothing
    dst_p = jnp.concatenate([dst, pad_ids])
    src_p = jnp.concatenate([src, pad_ids])
    node_ids = jnp.arange(n_pad, dtype=jnp.int32)
    gdst = (dst_p[:, None] == node_ids[None, :]).astype(MXU_DTYPE)   # (E_pad, N_pad)
    gsrc = (src_p[:, None] == node_ids[None, :]).astype(MXU_DTYPE)   # (E_pad, N_pad)
    g_both = jnp.concatenate([gdst, gsrc], axis=0)                    # (2*E_pad, N_pad)
    sdst = (node_ids[:, None] == dst_p[None, :]).astype(MXU_DTYPE)    # (N_pad, E_pad)

    w1_all, wsq_all, vec_all, max_parts = pack_graphnet_weights(params, latent, lat_pad)

    args = [x0, e0, g_both, sdst, w1_all, wsq_all, vec_all]

    total_bytes = sum(int(a.size) * a.dtype.itemsize for a in args) + n_pad * lat_pad * 4
    flops = _flops_estimate(n_pad, e_pad, lat_pad, num_blocks)
    ln_rows = (1 + num_blocks) * (n_pad + e_pad)
    vmem_limit = int(min(64 * 2 ** 20, max(16 * 2 ** 20, 4 * total_bytes)))

    out = pl.pallas_call(
        make_graphnet_kernel(num_blocks, latent, lat_pad, e_pad, max_parts),
        out_shape=jax.ShapeDtypeStruct((n_pad, lat_pad), jnp.float32),
        in_specs=[pl.BlockSpec(memory_space=pltpu.MemorySpace.VMEM)] * len(args),
        out_specs=pl.BlockSpec(memory_space=pltpu.MemorySpace.VMEM),
        compiler_params=pltpu.CompilerParams(vmem_limit_bytes=vmem_limit),
        cost_estimate=pl.CostEstimate(flops=int(flops),
                                      transcendentals=int(ln_rows),
                                      bytes_accessed=int(total_bytes)),
    )(*args)
    return out[:n, :n_out]


# ------------------------------ parameter init --------------------------------

def init_mlp(key, in_sizes, latent, out_size, use_ln):
    ks = jax.random.split(key, 8 + len(in_sizes))

    def lin(k, fan_in, fan_out):
        scale = 1.0 / jnp.sqrt(jnp.float32(fan_in))
        return jax.random.normal(k, (fan_in, fan_out), jnp.float32) * scale

    params = {
        "w1s": tuple(lin(ks[i], s, latent) for i, s in enumerate(in_sizes)),
        "b1": jnp.zeros((1, latent), jnp.float32),
        "w2": lin(ks[-6], latent, latent), "b2": jnp.zeros((1, latent), jnp.float32),
        "w3": lin(ks[-5], latent, latent), "b3": jnp.zeros((1, latent), jnp.float32),
        "w4": lin(ks[-4], latent, out_size), "b4": jnp.zeros((1, out_size), jnp.float32),
    }
    if use_ln:
        params["gamma"] = jnp.ones((1, out_size), jnp.float32)
        params["beta"] = jnp.zeros((1, out_size), jnp.float32)
    return params


def init_graphnet(key, num_node_features, num_edge_features, latent_size,
                  num_node_outputs, num_message_passing_steps):
    keys = jax.random.split(key, 3 + 2 * num_message_passing_steps)
    params = {
        "node_enc": init_mlp(keys[0], [num_node_features], latent_size, latent_size, True),
        "edge_enc": init_mlp(keys[1], [num_edge_features], latent_size, latent_size, True),
        "decoder": init_mlp(keys[2], [latent_size], latent_size, num_node_outputs, False),
        "blocks": [],
    }
    for s in range(num_message_passing_steps):
        params["blocks"].append({
            "edge_mlp": init_mlp(keys[3 + 2 * s], [latent_size] * 3,
                                 latent_size, latent_size, True),
            "node_mlp": init_mlp(keys[4 + 2 * s], [latent_size] * 2,
                                 latent_size, latent_size, True),
        })
    return params


# --------------------------- pure-JAX reference -------------------------------
# Mirrors the kernel's bf16 matmul-input / f32-accumulation numerics.

def _ref_mm(a, w):
    return jnp.dot(a.astype(jnp.bfloat16), w.astype(jnp.bfloat16),
                   preferred_element_type=jnp.float32)


def _ref_mlp(parts, p, use_ln):
    xcat = jnp.concatenate(parts, axis=-1)
    w1 = jnp.concatenate(p["w1s"], axis=0)
    h = jax.nn.relu(_ref_mm(xcat, w1) + p["b1"])
    h = jax.nn.relu(_ref_mm(h, p["w2"]) + p["b2"])
    h = jax.nn.relu(_ref_mm(h, p["w3"]) + p["b3"])
    y = _ref_mm(h, p["w4"]) + p["b4"]
    if use_ln:
        mu = jnp.mean(y, axis=-1, keepdims=True)
        var = jnp.mean((y - mu) ** 2, axis=-1, keepdims=True)
        y = (y - mu) * jax.lax.rsqrt(var + LN_EPS) * p["gamma"] + p["beta"]
    return y


def graphnet_reference(params, x, edge_attr, edge_index):
    x = _ref_mlp([x], params["node_enc"], True)
    e = _ref_mlp([edge_attr], params["edge_enc"], True)
    src, dst = edge_index[0], edge_index[1]
    n = x.shape[0]
    for block in params["blocks"]:
        msg = _ref_mlp([x[dst], x[src], e], block["edge_mlp"], True)
        msg_q = msg.astype(jnp.bfloat16).astype(jnp.float32)   # mirror bf16 scatter inputs
        agg = jax.ops.segment_sum(msg_q, dst, num_segments=n)
        upd = _ref_mlp([x, agg], block["node_mlp"], True)
        e = e + msg
        x = x + upd
    return _ref_mlp([x], params["decoder"], False)


# ----------------------------------- main --------------------------------------

if __name__ == "__main__":
    NUM_NODES = 16
    NUM_EDGES = 32
    NUM_NODE_FEATURES = 8
    NUM_EDGE_FEATURES = 4
    LATENT_SIZE = 32
    NUM_NODE_OUTPUTS = 3
    NUM_MP_STEPS = 2

    key = jax.random.PRNGKey(0)
    k_param, k_x, k_e, k_idx = jax.random.split(key, 4)

    params = init_graphnet(k_param, NUM_NODE_FEATURES, NUM_EDGE_FEATURES,
                           LATENT_SIZE, NUM_NODE_OUTPUTS, NUM_MP_STEPS)

    x = jax.random.normal(k_x, (NUM_NODES, NUM_NODE_FEATURES), jnp.float32)
    edge_attr = jax.random.normal(k_e, (NUM_EDGES, NUM_EDGE_FEATURES), jnp.float32)
    edge_index = jax.random.randint(k_idx, (2, NUM_EDGES), 0, NUM_NODES, jnp.int32)

    y = graphnet_forward(params, x, edge_attr, edge_index)
    y = jax.block_until_ready(y)

    y_ref = graphnet_reference(params, x, edge_attr, edge_index)
    assert y.shape == (NUM_NODES, NUM_NODE_OUTPUTS), y.shape
    assert jnp.allclose(y, y_ref, atol=1e-2, rtol=1e-2), "mismatch vs JAX reference"

    print("KERNEL_OK")
</pallas_src>

<mosaic_0001>
module attributes {stable_mosaic.version = 11 : i64} {
  func.func @kernel(%arg0: memref<128x128xf32, #tpu.memory_space<vmem>>, %arg1: memref<128x128xf32, #tpu.memory_space<vmem>>, %arg2: memref<256x128xbf16, #tpu.memory_space<vmem>>, %arg3: memref<128x128xbf16, #tpu.memory_space<vmem>>, %arg4: memref<7x128x128xbf16, #tpu.memory_space<vmem>>, %arg5: memref<21x128x128xbf16, #tpu.memory_space<vmem>>, %arg6: memref<42x128xf32, #tpu.memory_space<vmem>>, %arg7: memref<128x128xf32, #tpu.memory_space<vmem>>) attributes {dimension_semantics = [], scalar_prefetch = 0 : i64, scratch_operands = 0 : i64, tpu.core_type = #tpu.core_type<tc>} {
    %c0 = arith.constant 0 : index
    %c0_0 = arith.constant 0 : index
    %0 = vector.load %arg0[%c0, %c0_0] : memref<128x128xf32, #tpu.memory_space<vmem>>, vector<128x128xf32>
    %c0_1 = arith.constant 0 : index
    %c0_2 = arith.constant 0 : index
    %c0_3 = arith.constant 0 : index
    %1 = vector.load %arg4[%c0_1, %c0_2, %c0_3] : memref<7x128x128xbf16, #tpu.memory_space<vmem>>, vector<1x128x128xbf16>
    %2 = vector.shape_cast %1 : vector<1x128x128xbf16> to vector<128x128xbf16>
    %3 = arith.truncf %0 : vector<128x128xf32> to vector<128x128xbf16>
    %cst = arith.constant dense<0.000000e+00> : vector<128x128xf32>
    %4 = tpu.matmul %3, %2, %cst {dimension_numbers = #tpu.dot_dimension_numbers<[1], [0], [0], [1], [0, 0, 1, 1], [], []>} : vector<128x128xbf16>, vector<128x128xbf16>, vector<128x128xf32> -> vector<128x128xf32>
    %c0_4 = arith.constant 0 : index
    %c0_5 = arith.constant 0 : index
    %5 = vector.load %arg6[%c0_4, %c0_5] : memref<42x128xf32, #tpu.memory_space<vmem>>, vector<1x128xf32>
    %6 = vector.broadcast %5 : vector<1x128xf32> to vector<128x128xf32>
    %7 = arith.addf %4, %6 : vector<128x128xf32>
    %cst_6 = arith.constant 0.000000e+00 : f32
    %8 = vector.broadcast %cst_6 : f32 to vector<128x128xf32>
    %9 = arith.maximumf %7, %8 : vector<128x128xf32>
    %c0_7 = arith.constant 0 : index
    %c0_8 = arith.constant 0 : index
    %c0_9 = arith.constant 0 : index
    %10 = vector.load %arg5[%c0_7, %c0_8, %c0_9] : memref<21x128x128xbf16, #tpu.memory_space<vmem>>, vector<1x128x128xbf16>
    %11 = vector.shape_cast %10 : vector<1x128x128xbf16> to vector<128x128xbf16>
    %12 = arith.truncf %9 : vector<128x128xf32> to vector<128x128xbf16>
    %cst_10 = arith.constant dense<0.000000e+00> : vector<128x128xf32>
    %13 = tpu.matmul %12, %11, %cst_10 {dimension_numbers = #tpu.dot_dimension_numbers<[1], [0], [0], [1], [0, 0, 1, 1], [], []>} : vector<128x128xbf16>, vector<128x128xbf16>, vector<128x128xf32> -> vector<128x128xf32>
    %c1 = arith.constant 1 : index
    %c0_11 = arith.constant 0 : index
    %14 = vector.load %arg6[%c1, %c0_11] : memref<42x128xf32, #tpu.memory_space<vmem>>, vector<1x128xf32>
    %15 = vector.broadcast %14 : vector<1x128xf32> to vector<128x128xf32>
    %16 = arith.addf %13, %15 : vector<128x128xf32>
    %cst_12 = arith.constant 0.000000e+00 : f32
    %17 = vector.broadcast %cst_12 : f32 to vector<128x128xf32>
    %18 = arith.maximumf %16, %17 : vector<128x128xf32>
    %c1_13 = arith.constant 1 : index
    %c0_14 = arith.constant 0 : index
    %c0_15 = arith.constant 0 : index
    %19 = vector.load %arg5[%c1_13, %c0_14, %c0_15] : memref<21x128x128xbf16, #tpu.memory_space<vmem>>, vector<1x128x128xbf16>
    %20 = vector.shape_cast %19 : vector<1x128x128xbf16> to vector<128x128xbf16>
    %21 = arith.truncf %18 : vector<128x128xf32> to vector<128x128xbf16>
    %cst_16 = arith.constant dense<0.000000e+00> : vector<128x128xf32>
    %22 = tpu.matmul %21, %20, %cst_16 {dimension_numbers = #tpu.dot_dimension_numbers<[1], [0], [0], [1], [0, 0, 1, 1], [], []>} : vector<128x128xbf16>, vector<128x128xbf16>, vector<128x128xf32> -> vector<128x128xf32>
    %c2 = arith.constant 2 : index
    %c0_17 = arith.constant 0 : index
    %23 = vector.load %arg6[%c2, %c0_17] : memref<42x128xf32, #tpu.memory_space<vmem>>, vector<1x128xf32>
    %24 = vector.broadcast %23 : vector<1x128xf32> to vector<128x128xf32>
    %25 = arith.addf %22, %24 : vector<128x128xf32>
    %cst_18 = arith.constant 0.000000e+00 : f32
    %26 = vector.broadcast %cst_18 : f32 to vector<128x128xf32>
    %27 = arith.maximumf %25, %26 : vector<128x128xf32>
    %c2_19 = arith.constant 2 : index
    %c0_20 = arith.constant 0 : index
    %c0_21 = arith.constant 0 : index
    %28 = vector.load %arg5[%c2_19, %c0_20, %c0_21] : memref<21x128x128xbf16, #tpu.memory_space<vmem>>, vector<1x128x128xbf16>
    %29 = vector.shape_cast %28 : vector<1x128x128xbf16> to vector<128x128xbf16>
    %30 = arith.truncf %27 : vector<128x128xf32> to vector<128x128xbf16>
    %cst_22 = arith.constant dense<0.000000e+00> : vector<128x128xf32>
    %31 = tpu.matmul %30, %29, %cst_22 {dimension_numbers = #tpu.dot_dimension_numbers<[1], [0], [0], [1], [0, 0, 1, 1], [], []>} : vector<128x128xbf16>, vector<128x128xbf16>, vector<128x128xf32> -> vector<128x128xf32>
    %c3 = arith.constant 3 : index
    %c0_23 = arith.constant 0 : index
    %32 = vector.load %arg6[%c3, %c0_23] : memref<42x128xf32, #tpu.memory_space<vmem>>, vector<1x128xf32>
    %33 = vector.broadcast %32 : vector<1x128xf32> to vector<128x128xf32>
    %34 = arith.addf %31, %33 : vector<128x128xf32>
    %cst_24 = arith.constant dense<0.000000e+00> : vector<128xf32>
    %35 = vector.multi_reduction <add>, %34, %cst_24 [1] : vector<128x128xf32> to vector<128xf32>
    %36 = vector.shape_cast %35 : vector<128xf32> to vector<128x1xf32>
    %cst_25 = arith.constant 3.125000e-02 : f32
    %37 = vector.broadcast %cst_25 : f32 to vector<128x1xf32>
    %38 = arith.mulf %36, %37 : vector<128x1xf32>
    %39 = arith.mulf %34, %34 : vector<128x128xf32>
    %cst_26 = arith.constant dense<0.000000e+00> : vector<128xf32>
    %40 = vector.multi_reduction <add>, %39, %cst_26 [1] : vector<128x128xf32> to vector<128xf32>
    %41 = vector.shape_cast %40 : vector<128xf32> to vector<128x1xf32>
    %cst_27 = arith.constant 3.125000e-02 : f32
    %42 = vector.broadcast %cst_27 : f32 to vector<128x1xf32>
    %43 = arith.mulf %41, %42 : vector<128x1xf32>
    %44 = vector.broadcast %38 : vector<128x1xf32> to vector<128x128xf32>
    %45 = arith.subf %34, %44 : vector<128x128xf32>
    %46 = arith.mulf %38, %38 : vector<128x1xf32>
    %47 = arith.subf %43, %46 : vector<128x1xf32>
    %cst_28 = arith.constant 9.99999974E-6 : f32
    %48 = vector.broadcast %cst_28 : f32 to vector<128x1xf32>
    %49 = arith.addf %47, %48 : vector<128x1xf32>
    %50 = math.rsqrt %49 : vector<128x1xf32>
    %51 = vector.broadcast %50 : vector<128x1xf32> to vector<128x128xf32>
    %52 = arith.mulf %45, %51 : vector<128x128xf32>
    %c4 = arith.constant 4 : index
    %c0_29 = arith.constant 0 : index
    %53 = vector.load %arg6[%c4, %c0_29] : memref<42x128xf32, #tpu.memory_space<vmem>>, vector<1x128xf32>
    %54 = vector.broadcast %53 : vector<1x128xf32> to vector<128x128xf32>
    %55 = arith.mulf %52, %54 : vector<128x128xf32>
    %c5 = arith.constant 5 : index
    %c0_30 = arith.constant 0 : index
    %56 = vector.load %arg6[%c5, %c0_30] : memref<42x128xf32, #tpu.memory_space<vmem>>, vector<1x128xf32>
    %57 = vector.broadcast %56 : vector<1x128xf32> to vector<128x128xf32>
    %58 = arith.addf %55, %57 : vector<128x128xf32>
    %c0_31 = arith.constant 0 : index
    %c0_32 = arith.constant 0 : index
    %59 = vector.load %arg1[%c0_31, %c0_32] : memref<128x128xf32, #tpu.memory_space<vmem>>, vector<128x128xf32>
    %c1_33 = arith.constant 1 : index
    %c0_34 = arith.constant 0 : index
    %c0_35 = arith.constant 0 : index
    %60 = vector.load %arg4[%c1_33, %c0_34, %c0_35] : memref<7x128x128xbf16, #tpu.memory_space<vmem>>, vector<1x128x128xbf16>
    %61 = vector.shape_cast %60 : vector<1x128x128xbf16> to vector<128x128xbf16>
    %62 = arith.truncf %59 : vector<128x128xf32> to vector<128x128xbf16>
    %cst_36 = arith.constant dense<0.000000e+00> : vector<128x128xf32>
    %63 = tpu.matmul %62, %61, %cst_36 {dimension_numbers = #tpu.dot_dimension_numbers<[1], [0], [0], [1], [0, 0, 1, 1], [], []>} : vector<128x128xbf16>, vector<128x128xbf16>, vector<128x128xf32> -> vector<128x128xf32>
    %c6 = arith.constant 6 : index
    %c0_37 = arith.constant 0 : index
    %64 = vector.load %arg6[%c6, %c0_37] : memref<42x128xf32, #tpu.memory_space<vmem>>, vector<1x128xf32>
    %65 = vector.broadcast %64 : vector<1x128xf32> to vector<128x128xf32>
    %66 = arith.addf %63, %65 : vector<128x128xf32>
    %cst_38 = arith.constant 0.000000e+00 : f32
    %67 = vector.broadcast %cst_38 : f32 to vector<128x128xf32>
    %68 = arith.maximumf %66, %67 : vector<128x128xf32>
    %c3_39 = arith.constant 3 : index
    %c0_40 = arith.constant 0 : index
    %c0_41 = arith.constant 0 : index
    %69 = vector.load %arg5[%c3_39, %c0_40, %c0_41] : memref<21x128x128xbf16, #tpu.memory_space<vmem>>, vector<1x128x128xbf16>
    %70 = vector.shape_cast %69 : vector<1x128x128xbf16> to vector<128x128xbf16>
    %71 = arith.truncf %68 : vector<128x128xf32> to vector<128x128xbf16>
    %cst_42 = arith.constant dense<0.000000e+00> : vector<128x128xf32>
    %72 = tpu.matmul %71, %70, %cst_42 {dimension_numbers = #tpu.dot_dimension_numbers<[1], [0], [0], [1], [0, 0, 1, 1], [], []>} : vector<128x128xbf16>, vector<128x128xbf16>, vector<128x128xf32> -> vector<128x128xf32>
    %c7 = arith.constant 7 : index
    %c0_43 = arith.constant 0 : index
    %73 = vector.load %arg6[%c7, %c0_43] : memref<42x128xf32, #tpu.memory_space<vmem>>, vector<1x128xf32>
    %74 = vector.broadcast %73 : vector<1x128xf32> to vector<128x128xf32>
    %75 = arith.addf %72, %74 : vector<128x128xf32>
    %cst_44 = arith.constant 0.000000e+00 : f32
    %76 = vector.broadcast %cst_44 : f32 to vector<128x128xf32>
    %77 = arith.maximumf %75, %76 : vector<128x128xf32>
    %c4_45 = arith.constant 4 : index
    %c0_46 = arith.constant 0 : index
    %c0_47 = arith.constant 0 : index
    %78 = vector.load %arg5[%c4_45, %c0_46, %c0_47] : memref<21x128x128xbf16, #tpu.memory_space<vmem>>, vector<1x128x128xbf16>
    %79 = vector.shape_cast %78 : vector<1x128x128xbf16> to vector<128x128xbf16>
    %80 = arith.truncf %77 : vector<128x128xf32> to vector<128x128xbf16>
    %cst_48 = arith.constant dense<0.000000e+00> : vector<128x128xf32>
    %81 = tpu.matmul %80, %79, %cst_48 {dimension_numbers = #tpu.dot_dimension_numbers<[1], [0], [0], [1], [0, 0, 1, 1], [], []>} : vector<128x128xbf16>, vector<128x128xbf16>, vector<128x128xf32> -> vector<128x128xf32>
    %c8 = arith.constant 8 : index
    %c0_49 = arith.constant 0 : index
    %82 = vector.load %arg6[%c8, %c0_49] : memref<42x128xf32, #tpu.memory_space<vmem>>, vector<1x128xf32>
    %83 = vector.broadcast %82 : vector<1x128xf32> to vector<128x128xf32>
    %84 = arith.addf %81, %83 : vector<128x128xf32>
    %cst_50 = arith.constant 0.000000e+00 : f32
    %85 = vector.broadcast %cst_50 : f32 to vector<128x128xf32>
    %86 = arith.maximumf %84, %85 : vector<128x128xf32>
    %c5_51 = arith.constant 5 : index
    %c0_52 = arith.constant 0 : index
    %c0_53 = arith.constant 0 : index
    %87 = vector.load %arg5[%c5_51, %c0_52, %c0_53] : memref<21x128x128xbf16, #tpu.memory_space<vmem>>, vector<1x128x128xbf16>
    %88 = vector.shape_cast %87 : vector<1x128x128xbf16> to vector<128x128xbf16>
    %89 = arith.truncf %86 : vector<128x128xf32> to vector<128x128xbf16>
    %cst_54 = arith.constant dense<0.000000e+00> : vector<128x128xf32>
    %90 = tpu.matmul %89, %88, %cst_54 {dimension_numbers = #tpu.dot_dimension_numbers<[1], [0], [0], [1], [0, 0, 1, 1], [], []>} : vector<128x128xbf16>, vector<128x128xbf16>, vector<128x128xf32> -> vector<128x128xf32>
    %c9 = arith.constant 9 : index
    %c0_55 = arith.constant 0 : index
    %91 = vector.load %arg6[%c9, %c0_55] : memref<42x128xf32, #tpu.memory_space<vmem>>, vector<1x128xf32>
    %92 = vector.broadcast %91 : vector<1x128xf32> to vector<128x128xf32>
    %93 = arith.addf %90, %92 : vector<128x128xf32>
    %cst_56 = arith.constant dense<0.000000e+00> : vector<128xf32>
    %94 = vector.multi_reduction <add>, %93, %cst_56 [1] : vector<128x128xf32> to vector<128xf32>
    %95 = vector.shape_cast %94 : vector<128xf32> to vector<128x1xf32>
    %cst_57 = arith.constant 3.125000e-02 : f32
    %96 = vector.broadcast %cst_57 : f32 to vector<128x1xf32>
    %97 = arith.mulf %95, %96 : vector<128x1xf32>
    %98 = arith.mulf %93, %93 : vector<128x128xf32>
    %cst_58 = arith.constant dense<0.000000e+00> : vector<128xf32>
    %99 = vector.multi_reduction <add>, %98, %cst_58 [1] : vector<128x128xf32> to vector<128xf32>
    %100 = vector.shape_cast %99 : vector<128xf32> to vector<128x1xf32>
    %cst_59 = arith.constant 3.125000e-02 : f32
    %101 = vector.broadcast %cst_59 : f32 to vector<128x1xf32>
    %102 = arith.mulf %100, %101 : vector<128x1xf32>
    %103 = vector.broadcast %97 : vector<128x1xf32> to vector<128x128xf32>
    %104 = arith.subf %93, %103 : vector<128x128xf32>
    %105 = arith.mulf %97, %97 : vector<128x1xf32>
    %106 = arith.subf %102, %105 : vector<128x1xf32>
    %cst_60 = arith.constant 9.99999974E-6 : f32
    %107 = vector.broadcast %cst_60 : f32 to vector<128x1xf32>
    %108 = arith.addf %106, %107 : vector<128x1xf32>
    %109 = math.rsqrt %108 : vector<128x1xf32>
    %110 = vector.broadcast %109 : vector<128x1xf32> to vector<128x128xf32>
    %111 = arith.mulf %104, %110 : vector<128x128xf32>
    %c10 = arith.constant 10 : index
    %c0_61 = arith.constant 0 : index
    %112 = vector.load %arg6[%c10, %c0_61] : memref<42x128xf32, #tpu.memory_space<vmem>>, vector<1x128xf32>
    %113 = vector.broadcast %112 : vector<1x128xf32> to vector<128x128xf32>
    %114 = arith.mulf %111, %113 : vector<128x128xf32>
    %c11 = arith.constant 11 : index
    %c0_62 = arith.constant 0 : index
    %115 = vector.load %arg6[%c11, %c0_62] : memref<42x128xf32, #tpu.memory_space<vmem>>, vector<1x128xf32>
    %116 = vector.broadcast %115 : vector<1x128xf32> to vector<128x128xf32>
    %117 = arith.addf %114, %116 : vector<128x128xf32>
    %c0_63 = arith.constant 0 : index
    %c0_64 = arith.constant 0 : index
    %118 = vector.load %arg2[%c0_63, %c0_64] : memref<256x128xbf16, #tpu.memory_space<vmem>>, vector<256x128xbf16>
    %c0_65 = arith.constant 0 : index
    %c0_66 = arith.constant 0 : index
    %119 = vector.load %arg3[%c0_65, %c0_66] : memref<128x128xbf16, #tpu.memory_space<vmem>>, vector<128x128xbf16>
    %120 = arith.truncf %58 : vector<128x128xf32> to vector<128x128xbf16>
    %cst_67 = arith.constant dense<0.000000e+00> : vector<256x128xf32>
    %121 = tpu.matmul %118, %120, %cst_67 {dimension_numbers = #tpu.dot_dimension_numbers<[1], [0], [0], [1], [0, 0, 1, 1], [], []>} : vector<256x128xbf16>, vector<128x128xbf16>, vector<256x128xf32> -> vector<256x128xf32>
    %122 = vector.extract_strided_slice %121 {offsets = [0, 0], sizes = [128, 128], strides = [1, 1]} : vector<256x128xf32> to vector<128x128xf32>
    %123 = vector.extract_strided_slice %121 {offsets = [128, 0], sizes = [128, 128], strides = [1, 1]} : vector<256x128xf32> to vector<128x128xf32>
    %c32_i32 = arith.constant 32 : i32
    %124 = tpu.dynamic_rotate %123 by %c32_i32 dim 1 : vector<128x128xf32>, i32 -> vector<128x128xf32>
    %125 = arith.addf %122, %124 : vector<128x128xf32>
    %c64_i32 = arith.constant 64 : i32
    %126 = tpu.dynamic_rotate %117 by %c64_i32 dim 1 : vector<128x128xf32>, i32 -> vector<128x128xf32>
    %127 = arith.addf %125, %126 : vector<128x128xf32>
    %c2_68 = arith.constant 2 : index
    %c0_69 = arith.constant 0 : index
    %c0_70 = arith.constant 0 : index
    %128 = vector.load %arg4[%c2_68, %c0_69, %c0_70] : memref<7x128x128xbf16, #tpu.memory_space<vmem>>, vector<1x128x128xbf16>
    %129 = vector.shape_cast %128 : vector<1x128x128xbf16> to vector<128x128xbf16>
    %130 = arith.truncf %127 : vector<128x128xf32> to vector<128x128xbf16>
    %cst_71 = arith.constant dense<0.000000e+00> : vector<128x128xf32>
    %131 = tpu.matmul %130, %129, %cst_71 {dimension_numbers = #tpu.dot_dimension_numbers<[1], [0], [0], [1], [0, 0, 1, 1], [], []>} : vector<128x128xbf16>, vector<128x128xbf16>, vector<128x128xf32> -> vector<128x128xf32>
    %c12 = arith.constant 12 : index
    %c0_72 = arith.constant 0 : index
    %132 = vector.load %arg6[%c12, %c0_72] : memref<42x128xf32, #tpu.memory_space<vmem>>, vector<1x128xf32>
    %133 = vector.broadcast %132 : vector<1x128xf32> to vector<128x128xf32>
    %134 = arith.addf %131, %133 : vector<128x128xf32>
    %cst_73 = arith.constant 0.000000e+00 : f32
    %135 = vector.broadcast %cst_73 : f32 to vector<128x128xf32>
    %136 = arith.maximumf %134, %135 : vector<128x128xf32>
    %c6_74 = arith.constant 6 : index
    %c0_75 = arith.constant 0 : index
    %c0_76 = arith.constant 0 : index
    %137 = vector.load %arg5[%c6_74, %c0_75, %c0_76] : memref<21x128x128xbf16, #tpu.memory_space<vmem>>, vector<1x128x128xbf16>
    %138 = vector.shape_cast %137 : vector<1x128x128xbf16> to vector<128x128xbf16>
    %139 = arith.truncf %136 : vector<128x128xf32> to vector<128x128xbf16>
    %cst_77 = arith.constant dense<0.000000e+00> : vector<128x128xf32>
    %140 = tpu.matmul %139, %138, %cst_77 {dimension_numbers = #tpu.dot_dimension_numbers<[1], [0], [0], [1], [0, 0, 1, 1], [], []>} : vector<128x128xbf16>, vector<128x128xbf16>, vector<128x128xf32> -> vector<128x128xf32>
    %c13 = arith.constant 13 : index
    %c0_78 = arith.constant 0 : index
    %141 = vector.load %arg6[%c13, %c0_78] : memref<42x128xf32, #tpu.memory_space<vmem>>, vector<1x128xf32>
    %142 = vector.broadcast %141 : vector<1x128xf32> to vector<128x128xf32>
    %143 = arith.addf %140, %142 : vector<128x128xf32>
    %cst_79 = arith.constant 0.000000e+00 : f32
    %144 = vector.broadcast %cst_79 : f32 to vector<128x128xf32>
    %145 = arith.maximumf %143, %144 : vector<128x128xf32>
    %c7_80 = arith.constant 7 : index
    %c0_81 = arith.constant 0 : index
    %c0_82 = arith.constant 0 : index
    %146 = vector.load %arg5[%c7_80, %c0_81, %c0_82] : memref<21x128x128xbf16, #tpu.memory_space<vmem>>, vector<1x128x128xbf16>
    %147 = vector.shape_cast %146 : vector<1x128x128xbf16> to vector<128x128xbf16>
    %148 = arith.truncf %145 : vector<128x128xf32> to vector<128x128xbf16>
    %cst_83 = arith.constant dense<0.000000e+00> : vector<128x128xf32>
    %149 = tpu.matmul %148, %147, %cst_83 {dimension_numbers = #tpu.dot_dimension_numbers<[1], [0], [0], [1], [0, 0, 1, 1], [], []>} : vector<128x128xbf16>, vector<128x128xbf16>, vector<128x128xf32> -> vector<128x128xf32>
    %c14 = arith.constant 14 : index
    %c0_84 = arith.constant 0 : index
    %150 = vector.load %arg6[%c14, %c0_84] : memref<42x128xf32, #tpu.memory_space<vmem>>, vector<1x128xf32>
    %151 = vector.broadcast %150 : vector<1x128xf32> to vector<128x128xf32>
    %152 = arith.addf %149, %151 : vector<128x128xf32>
    %cst_85 = arith.constant 0.000000e+00 : f32
    %153 = vector.broadcast %cst_85 : f32 to vector<128x128xf32>
    %154 = arith.maximumf %152, %153 : vector<128x128xf32>
    %c8_86 = arith.constant 8 : index
    %c0_87 = arith.constant 0 : index
    %c0_88 = arith.constant 0 : index
    %155 = vector.load %arg5[%c8_86, %c0_87, %c0_88] : memref<21x128x128xbf16, #tpu.memory_space<vmem>>, vector<1x128x128xbf16>
    %156 = vector.shape_cast %155 : vector<1x128x128xbf16> to vector<128x128xbf16>
    %157 = arith.truncf %154 : vector<128x128xf32> to vector<128x128xbf16>
    %cst_89 = arith.constant dense<0.000000e+00> : vector<128x128xf32>
    %158 = tpu.matmul %157, %156, %cst_89 {dimension_numbers = #tpu.dot_dimension_numbers<[1], [0], [0], [1], [0, 0, 1, 1], [], []>} : vector<128x128xbf16>, vector<128x128xbf16>, vector<128x128xf32> -> vector<128x128xf32>
    %c15 = arith.constant 15 : index
    %c0_90 = arith.constant 0 : index
    %159 = vector.load %arg6[%c15, %c0_90] : memref<42x128xf32, #tpu.memory_space<vmem>>, vector<1x128xf32>
    %160 = vector.broadcast %159 : vector<1x128xf32> to vector<128x128xf32>
    %161 = arith.addf %158, %160 : vector<128x128xf32>
    %cst_91 = arith.constant dense<0.000000e+00> : vector<128xf32>
    %162 = vector.multi_reduction <add>, %161, %cst_91 [1] : vector<128x128xf32> to vector<128xf32>
    %163 = vector.shape_cast %162 : vector<128xf32> to vector<128x1xf32>
    %cst_92 = arith.constant 3.125000e-02 : f32
    %164 = vector.broadcast %cst_92 : f32 to vector<128x1xf32>
    %165 = arith.mulf %163, %164 : vector<128x1xf32>
    %166 = arith.mulf %161, %161 : vector<128x128xf32>
    %cst_93 = arith.constant dense<0.000000e+00> : vector<128xf32>
    %167 = vector.multi_reduction <add>, %166, %cst_93 [1] : vector<128x128xf32> to vector<128xf32>
    %168 = vector.shape_cast %167 : vector<128xf32> to vector<128x1xf32>
    %cst_94 = arith.constant 3.125000e-02 : f32
    %169 = vector.broadcast %cst_94 : f32 to vector<128x1xf32>
    %170 = arith.mulf %168, %169 : vector<128x1xf32>
    %171 = vector.broadcast %165 : vector<128x1xf32> to vector<128x128xf32>
    %172 = arith.subf %161, %171 : vector<128x128xf32>
    %173 = arith.mulf %165, %165 : vector<128x1xf32>
    %174 = arith.subf %170, %173 : vector<128x1xf32>
    %cst_95 = arith.constant 9.99999974E-6 : f32
    %175 = vector.broadcast %cst_95 : f32 to vector<128x1xf32>
    %176 = arith.addf %174, %175 : vector<128x1xf32>
    %177 = math.rsqrt %176 : vector<128x1xf32>
    %178 = vector.broadcast %177 : vector<128x1xf32> to vector<128x128xf32>
    %179 = arith.mulf %172, %178 : vector<128x128xf32>
    %c16 = arith.constant 16 : index
    %c0_96 = arith.constant 0 : index
    %180 = vector.load %arg6[%c16, %c0_96] : memref<42x128xf32, #tpu.memory_space<vmem>>, vector<1x128xf32>
    %181 = vector.broadcast %180 : vector<1x128xf32> to vector<128x128xf32>
    %182 = arith.mulf %179, %181 : vector<128x128xf32>
    %c17 = arith.constant 17 : index
    %c0_97 = arith.constant 0 : index
    %183 = vector.load %arg6[%c17, %c0_97] : memref<42x128xf32, #tpu.memory_space<vmem>>, vector<1x128xf32>
    %184 = vector.broadcast %183 : vector<1x128xf32> to vector<128x128xf32>
    %185 = arith.addf %182, %184 : vector<128x128xf32>
    %186 = arith.truncf %185 : vector<128x128xf32> to vector<128x128xbf16>
    %cst_98 = arith.constant dense<0.000000e+00> : vector<128x128xf32>
    %187 = tpu.matmul %119, %186, %cst_98 {dimension_numbers = #tpu.dot_dimension_numbers<[1], [0], [0], [1], [0, 0, 1, 1], [], []>} : vector<128x128xbf16>, vector<128x128xbf16>, vector<128x128xf32> -> vector<128x128xf32>
    %c32_i32_99 = arith.constant 32 : i32
    %188 = tpu.dynamic_rotate %187 by %c32_i32_99 dim 1 : vector<128x128xf32>, i32 -> vector<128x128xf32>
    %189 = arith.addf %58, %188 : vector<128x128xf32>
    %c3_100 = arith.constant 3 : index
    %c0_101 = arith.constant 0 : index
    %c0_102 = arith.constant 0 : index
    %190 = vector.load %arg4[%c3_100, %c0_101, %c0_102] : memref<7x128x128xbf16, #tpu.memory_space<vmem>>, vector<1x128x128xbf16>
    %191 = vector.shape_cast %190 : vector<1x128x128xbf16> to vector<128x128xbf16>
    %192 = arith.truncf %189 : vector<128x128xf32> to vector<128x128xbf16>
    %cst_103 = arith.constant dense<0.000000e+00> : vector<128x128xf32>
    %193 = tpu.matmul %192, %191, %cst_103 {dimension_numbers = #tpu.dot_dimension_numbers<[1], [0], [0], [1], [0, 0, 1, 1], [], []>} : vector<128x128xbf16>, vector<128x128xbf16>, vector<128x128xf32> -> vector<128x128xf32>
    %c18 = arith.constant 18 : index
    %c0_104 = arith.constant 0 : index
    %194 = vector.load %arg6[%c18, %c0_104] : memref<42x128xf32, #tpu.memory_space<vmem>>, vector<1x128xf32>
    %195 = vector.broadcast %194 : vector<1x128xf32> to vector<128x128xf32>
    %196 = arith.addf %193, %195 : vector<128x128xf32>
    %cst_105 = arith.constant 0.000000e+00 : f32
    %197 = vector.broadcast %cst_105 : f32 to vector<128x128xf32>
    %198 = arith.maximumf %196, %197 : vector<128x128xf32>
    %c9_106 = arith.constant 9 : index
    %c0_107 = arith.constant 0 : index
    %c0_108 = arith.constant 0 : index
    %199 = vector.load %arg5[%c9_106, %c0_107, %c0_108] : memref<21x128x128xbf16, #tpu.memory_space<vmem>>, vector<1x128x128xbf16>
    %200 = vector.shape_cast %199 : vector<1x128x128xbf16> to vector<128x128xbf16>
    %201 = arith.truncf %198 : vector<128x128xf32> to vector<128x128xbf16>
    %cst_109 = arith.constant dense<0.000000e+00> : vector<128x128xf32>
    %202 = tpu.matmul %201, %200, %cst_109 {dimension_numbers = #tpu.dot_dimension_numbers<[1], [0], [0], [1], [0, 0, 1, 1], [], []>} : vector<128x128xbf16>, vector<128x128xbf16>, vector<128x128xf32> -> vector<128x128xf32>
    %c19 = arith.constant 19 : index
    %c0_110 = arith.constant 0 : index
    %203 = vector.load %arg6[%c19, %c0_110] : memref<42x128xf32, #tpu.memory_space<vmem>>, vector<1x128xf32>
    %204 = vector.broadcast %203 : vector<1x128xf32> to vector<128x128xf32>
    %205 = arith.addf %202, %204 : vector<128x128xf32>
    %cst_111 = arith.constant 0.000000e+00 : f32
    %206 = vector.broadcast %cst_111 : f32 to vector<128x128xf32>
    %207 = arith.maximumf %205, %206 : vector<128x128xf32>
    %c10_112 = arith.constant 10 : index
    %c0_113 = arith.constant 0 : index
    %c0_114 = arith.constant 0 : index
    %208 = vector.load %arg5[%c10_112, %c0_113, %c0_114] : memref<21x128x128xbf16, #tpu.memory_space<vmem>>, vector<1x128x128xbf16>
    %209 = vector.shape_cast %208 : vector<1x128x128xbf16> to vector<128x128xbf16>
    %210 = arith.truncf %207 : vector<128x128xf32> to vector<128x128xbf16>
    %cst_115 = arith.constant dense<0.000000e+00> : vector<128x128xf32>
    %211 = tpu.matmul %210, %209, %cst_115 {dimension_numbers = #tpu.dot_dimension_numbers<[1], [0], [0], [1], [0, 0, 1, 1], [], []>} : vector<128x128xbf16>, vector<128x128xbf16>, vector<128x128xf32> -> vector<128x128xf32>
    %c20 = arith.constant 20 : index
    %c0_116 = arith.constant 0 : index
    %212 = vector.load %arg6[%c20, %c0_116] : memref<42x128xf32, #tpu.memory_space<vmem>>, vector<1x128xf32>
    %213 = vector.broadcast %212 : vector<1x128xf32> to vector<128x128xf32>
    %214 = arith.addf %211, %213 : vector<128x128xf32>
    %cst_117 = arith.constant 0.000000e+00 : f32
    %215 = vector.broadcast %cst_117 : f32 to vector<128x128xf32>
    %216 = arith.maximumf %214, %215 : vector<128x128xf32>
    %c11_118 = arith.constant 11 : index
    %c0_119 = arith.constant 0 : index
    %c0_120 = arith.constant 0 : index
    %217 = vector.load %arg5[%c11_118, %c0_119, %c0_120] : memref<21x128x128xbf16, #tpu.memory_space<vmem>>, vector<1x128x128xbf16>
    %218 = vector.shape_cast %217 : vector<1x128x128xbf16> to vector<128x128xbf16>
    %219 = arith.truncf %216 : vector<128x128xf32> to vector<128x128xbf16>
    %cst_121 = arith.constant dense<0.000000e+00> : vector<128x128xf32>
    %220 = tpu.matmul %219, %218, %cst_121 {dimension_numbers = #tpu.dot_dimension_numbers<[1], [0], [0], [1], [0, 0, 1, 1], [], []>} : vector<128x128xbf16>, vector<128x128xbf16>, vector<128x128xf32> -> vector<128x128xf32>
    %c21 = arith.constant 21 : index
    %c0_122 = arith.constant 0 : index
    %221 = vector.load %arg6[%c21, %c0_122] : memref<42x128xf32, #tpu.memory_space<vmem>>, vector<1x128xf32>
    %222 = vector.broadcast %221 : vector<1x128xf32> to vector<128x128xf32>
    %223 = arith.addf %220, %222 : vector<128x128xf32>
    %cst_123 = arith.constant dense<0.000000e+00> : vector<128xf32>
    %224 = vector.multi_reduction <add>, %223, %cst_123 [1] : vector<128x128xf32> to vector<128xf32>
    %225 = vector.shape_cast %224 : vector<128xf32> to vector<128x1xf32>
    %cst_124 = arith.constant 3.125000e-02 : f32
    %226 = vector.broadcast %cst_124 : f32 to vector<128x1xf32>
    %227 = arith.mulf %225, %226 : vector<128x1xf32>
    %228 = arith.mulf %223, %223 : vector<128x128xf32>
    %cst_125 = arith.constant dense<0.000000e+00> : vector<128xf32>
    %229 = vector.multi_reduction <add>, %228, %cst_125 [1] : vector<128x128xf32> to vector<128xf32>
    %230 = vector.shape_cast %229 : vector<128xf32> to vector<128x1xf32>
    %cst_126 = arith.constant 3.125000e-02 : f32
    %231 = vector.broadcast %cst_126 : f32 to vector<128x1xf32>
    %232 = arith.mulf %230, %231 : vector<128x1xf32>
    %233 = vector.broadcast %227 : vector<128x1xf32> to vector<128x128xf32>
    %234 = arith.subf %223, %233 : vector<128x128xf32>
    %235 = arith.mulf %227, %227 : vector<128x1xf32>
    %236 = arith.subf %232, %235 : vector<128x1xf32>
    %cst_127 = arith.constant 9.99999974E-6 : f32
    %237 = vector.broadcast %cst_127 : f32 to vector<128x1xf32>
    %238 = arith.addf %236, %237 : vector<128x1xf32>
    %239 = math.rsqrt %238 : vector<128x1xf32>
    %240 = vector.broadcast %239 : vector<128x1xf32> to vector<128x128xf32>
    %241 = arith.mulf %234, %240 : vector<128x128xf32>
    %c22 = arith.constant 22 : index
    %c0_128 = arith.constant 0 : index
    %242 = vector.load %arg6[%c22, %c0_128] : memref<42x128xf32, #tpu.memory_space<vmem>>, vector<1x128xf32>
    %243 = vector.broadcast %242 : vector<1x128xf32> to vector<128x128xf32>
    %244 = arith.mulf %241, %243 : vector<128x128xf32>
    %c23 = arith.constant 23 : index
    %c0_129 = arith.constant 0 : index
    %245 = vector.load %arg6[%c23, %c0_129] : memref<42x128xf32, #tpu.memory_space<vmem>>, vector<1x128xf32>
    %246 = vector.broadcast %245 : vector<1x128xf32> to vector<128x128xf32>
    %247 = arith.addf %244, %246 : vector<128x128xf32>
    %248 = arith.addf %117, %185 : vector<128x128xf32>
    %249 = arith.addf %58, %247 : vector<128x128xf32>
    %250 = arith.truncf %249 : vector<128x128xf32> to vector<128x128xbf16>
    %cst_130 = arith.constant dense<0.000000e+00> : vector<256x128xf32>
    %251 = tpu.matmul %118, %250, %cst_130 {dimension_numbers = #tpu.dot_dimension_numbers<[1], [0], [0], [1], [0, 0, 1, 1], [], []>} : vector<256x128xbf16>, vector<128x128xbf16>, vector<256x128xf32> -> vector<256x128xf32>
    %252 = vector.extract_strided_slice %251 {offsets = [0, 0], sizes = [128, 128], strides = [1, 1]} : vector<256x128xf32> to vector<128x128xf32>
    %253 = vector.extract_strided_slice %251 {offsets = [128, 0], sizes = [128, 128], strides = [1, 1]} : vector<256x128xf32> to vector<128x128xf32>
    %c32_i32_131 = arith.constant 32 : i32
    %254 = tpu.dynamic_rotate %253 by %c32_i32_131 dim 1 : vector<128x128xf32>, i32 -> vector<128x128xf32>
    %255 = arith.addf %252, %254 : vector<128x128xf32>
    %c64_i32_132 = arith.constant 64 : i32
    %256 = tpu.dynamic_rotate %248 by %c64_i32_132 dim 1 : vector<128x128xf32>, i32 -> vector<128x128xf32>
    %257 = arith.addf %255, %256 : vector<128x128xf32>
    %c4_133 = arith.constant 4 : index
    %c0_134 = arith.constant 0 : index
    %c0_135 = arith.constant 0 : index
    %258 = vector.load %arg4[%c4_133, %c0_134, %c0_135] : memref<7x128x128xbf16, #tpu.memory_space<vmem>>, vector<1x128x128xbf16>
    %259 = vector.shape_cast %258 : vector<1x128x128xbf16> to vector<128x128xbf16>
    %260 = arith.truncf %257 : vector<128x128xf32> to vector<128x128xbf16>
    %cst_136 = arith.constant dense<0.000000e+00> : vector<128x128xf32>
    %261 = tpu.matmul %260, %259, %cst_136 {dimension_numbers = #tpu.dot_dimension_numbers<[1], [0], [0], [1], [0, 0, 1, 1], [], []>} : vector<128x128xbf16>, vector<128x128xbf16>, vector<128x128xf32> -> vector<128x128xf32>
    %c24 = arith.constant 24 : index
    %c0_137 = arith.constant 0 : index
    %262 = vector.load %arg6[%c24, %c0_137] : memref<42x128xf32, #tpu.memory_space<vmem>>, vector<1x128xf32>
    %263 = vector.broadcast %262 : vector<1x128xf32> to vector<128x128xf32>
    %264 = arith.addf %261, %263 : vector<128x128xf32>
    %cst_138 = arith.constant 0.000000e+00 : f32
    %265 = vector.broadcast %cst_138 : f32 to vector<128x128xf32>
    %266 = arith.maximumf %264, %265 : vector<128x128xf32>
    %c12_139 = arith.constant 12 : index
    %c0_140 = arith.constant 0 : index
    %c0_141 = arith.constant 0 : index
    %267 = vector.load %arg5[%c12_139, %c0_140, %c0_141] : memref<21x128x128xbf16, #tpu.memory_space<vmem>>, vector<1x128x128xbf16>
    %268 = vector.shape_cast %267 : vector<1x128x128xbf16> to vector<128x128xbf16>
    %269 = arith.truncf %266 : vector<128x128xf32> to vector<128x128xbf16>
    %cst_142 = arith.constant dense<0.000000e+00> : vector<128x128xf32>
    %270 = tpu.matmul %269, %268, %cst_142 {dimension_numbers = #tpu.dot_dimension_numbers<[1], [0], [0], [1], [0, 0, 1, 1], [], []>} : vector<128x128xbf16>, vector<128x128xbf16>, vector<128x128xf32> -> vector<128x128xf32>
    %c25 = arith.constant 25 : index
    %c0_143 = arith.constant 0 : index
    %271 = vector.load %arg6[%c25, %c0_143] : memref<42x128xf32, #tpu.memory_space<vmem>>, vector<1x128xf32>
    %272 = vector.broadcast %271 : vector<1x128xf32> to vector<128x128xf32>
    %273 = arith.addf %270, %272 : vector<128x128xf32>
    %cst_144 = arith.constant 0.000000e+00 : f32
    %274 = vector.broadcast %cst_144 : f32 to vector<128x128xf32>
    %275 = arith.maximumf %273, %274 : vector<128x128xf32>
    %c13_145 = arith.constant 13 : index
    %c0_146 = arith.constant 0 : index
    %c0_147 = arith.constant 0 : index
    %276 = vector.load %arg5[%c13_145, %c0_146, %c0_147] : memref<21x128x128xbf16, #tpu.memory_space<vmem>>, vector<1x128x128xbf16>
    %277 = vector.shape_cast %276 : vector<1x128x128xbf16> to vector<128x128xbf16>
    %278 = arith.truncf %275 : vector<128x128xf32> to vector<128x128xbf16>
    %cst_148 = arith.constant dense<0.000000e+00> : vector<128x128xf32>
    %279 = tpu.matmul %278, %277, %cst_148 {dimension_numbers = #tpu.dot_dimension_numbers<[1], [0], [0], [1], [0, 0, 1, 1], [], []>} : vector<128x128xbf16>, vector<128x128xbf16>, vector<128x128xf32> -> vector<128x128xf32>
    %c26 = arith.constant 26 : index
    %c0_149 = arith.constant 0 : index
    %280 = vector.load %arg6[%c26, %c0_149] : memref<42x128xf32, #tpu.memory_space<vmem>>, vector<1x128xf32>
    %281 = vector.broadcast %280 : vector<1x128xf32> to vector<128x128xf32>
    %282 = arith.addf %279, %281 : vector<128x128xf32>
    %cst_150 = arith.constant 0.000000e+00 : f32
    %283 = vector.broadcast %cst_150 : f32 to vector<128x128xf32>
    %284 = arith.maximumf %282, %283 : vector<128x128xf32>
    %c14_151 = arith.constant 14 : index
    %c0_152 = arith.constant 0 : index
    %c0_153 = arith.constant 0 : index
    %285 = vector.load %arg5[%c14_151, %c0_152, %c0_153] : memref<21x128x128xbf16, #tpu.memory_space<vmem>>, vector<1x128x128xbf16>
    %286 = vector.shape_cast %285 : vector<1x128x128xbf16> to vector<128x128xbf16>
    %287 = arith.truncf %284 : vector<128x128xf32> to vector<128x128xbf16>
    %cst_154 = arith.constant dense<0.000000e+00> : vector<128x128xf32>
    %288 = tpu.matmul %287, %286, %cst_154 {dimension_numbers = #tpu.dot_dimension_numbers<[1], [0], [0], [1], [0, 0, 1, 1], [], []>} : vector<128x128xbf16>, vector<128x128xbf16>, vector<128x128xf32> -> vector<128x128xf32>
    %c27 = arith.constant 27 : index
    %c0_155 = arith.constant 0 : index
    %289 = vector.load %arg6[%c27, %c0_155] : memref<42x128xf32, #tpu.memory_space<vmem>>, vector<1x128xf32>
    %290 = vector.broadcast %289 : vector<1x128xf32> to vector<128x128xf32>
    %291 = arith.addf %288, %290 : vector<128x128xf32>
    %cst_156 = arith.constant dense<0.000000e+00> : vector<128xf32>
    %292 = vector.multi_reduction <add>, %291, %cst_156 [1] : vector<128x128xf32> to vector<128xf32>
    %293 = vector.shape_cast %292 : vector<128xf32> to vector<128x1xf32>
    %cst_157 = arith.constant 3.125000e-02 : f32
    %294 = vector.broadcast %cst_157 : f32 to vector<128x1xf32>
    %295 = arith.mulf %293, %294 : vector<128x1xf32>
    %296 = arith.mulf %291, %291 : vector<128x128xf32>
    %cst_158 = arith.constant dense<0.000000e+00> : vector<128xf32>
    %297 = vector.multi_reduction <add>, %296, %cst_158 [1] : vector<128x128xf32> to vector<128xf32>
    %298 = vector.shape_cast %297 : vector<128xf32> to vector<128x1xf32>
    %cst_159 = arith.constant 3.125000e-02 : f32
    %299 = vector.broadcast %cst_159 : f32 to vector<128x1xf32>
    %300 = arith.mulf %298, %299 : vector<128x1xf32>
    %301 = vector.broadcast %295 : vector<128x1xf32> to vector<128x128xf32>
    %302 = arith.subf %291, %301 : vector<128x128xf32>
    %303 = arith.mulf %295, %295 : vector<128x1xf32>
    %304 = arith.subf %300, %303 : vector<128x1xf32>
    %cst_160 = arith.constant 9.99999974E-6 : f32
    %305 = vector.broadcast %cst_160 : f32 to vector<128x1xf32>
    %306 = arith.addf %304, %305 : vector<128x1xf32>
    %307 = math.rsqrt %306 : vector<128x1xf32>
    %308 = vector.broadcast %307 : vector<128x1xf32> to vector<128x128xf32>
    %309 = arith.mulf %302, %308 : vector<128x128xf32>
    %c28 = arith.constant 28 : index
    %c0_161 = arith.constant 0 : index
    %310 = vector.load %arg6[%c28, %c0_161] : memref<42x128xf32, #tpu.memory_space<vmem>>, vector<1x128xf32>
    %311 = vector.broadcast %310 : vector<1x128xf32> to vector<128x128xf32>
    %312 = arith.mulf %309, %311 : vector<128x128xf32>
    %c29 = arith.constant 29 : index
    %c0_162 = arith.constant 0 : index
    %313 = vector.load %arg6[%c29, %c0_162] : memref<42x128xf32, #tpu.memory_space<vmem>>, vector<1x128xf32>
    %314 = vector.broadcast %313 : vector<1x128xf32> to vector<128x128xf32>
    %315 = arith.addf %312, %314 : vector<128x128xf32>
    %316 = arith.truncf %315 : vector<128x128xf32> to vector<128x128xbf16>
    %cst_163 = arith.constant dense<0.000000e+00> : vector<128x128xf32>
    %317 = tpu.matmul %119, %316, %cst_163 {dimension_numbers = #tpu.dot_dimension_numbers<[1], [0], [0], [1], [0, 0, 1, 1], [], []>} : vector<128x128xbf16>, vector<128x128xbf16>, vector<128x128xf32> -> vector<128x128xf32>
    %c32_i32_164 = arith.constant 32 : i32
    %318 = tpu.dynamic_rotate %317 by %c32_i32_164 dim 1 : vector<128x128xf32>, i32 -> vector<128x128xf32>
    %319 = arith.addf %249, %318 : vector<128x128xf32>
    %c5_165 = arith.constant 5 : index
    %c0_166 = arith.constant 0 : index
    %c0_167 = arith.constant 0 : index
    %320 = vector.load %arg4[%c5_165, %c0_166, %c0_167] : memref<7x128x128xbf16, #tpu.memory_space<vmem>>, vector<1x128x128xbf16>
    %321 = vector.shape_cast %320 : vector<1x128x128xbf16> to vector<128x128xbf16>
    %322 = arith.truncf %319 : vector<128x128xf32> to vector<128x128xbf16>
    %cst_168 = arith.constant dense<0.000000e+00> : vector<128x128xf32>
    %323 = tpu.matmul %322, %321, %cst_168 {dimension_numbers = #tpu.dot_dimension_numbers<[1], [0], [0], [1], [0, 0, 1, 1], [], []>} : vector<128x128xbf16>, vector<128x128xbf16>, vector<128x128xf32> -> vector<128x128xf32>
    %c30 = arith.constant 30 : index
    %c0_169 = arith.constant 0 : index
    %324 = vector.load %arg6[%c30, %c0_169] : memref<42x128xf32, #tpu.memory_space<vmem>>, vector<1x128xf32>
    %325 = vector.broadcast %324 : vector<1x128xf32> to vector<128x128xf32>
    %326 = arith.addf %323, %325 : vector<128x128xf32>
    %cst_170 = arith.constant 0.000000e+00 : f32
    %327 = vector.broadcast %cst_170 : f32 to vector<128x128xf32>
    %328 = arith.maximumf %326, %327 : vector<128x128xf32>
    %c15_171 = arith.constant 15 : index
    %c0_172 = arith.constant 0 : index
    %c0_173 = arith.constant 0 : index
    %329 = vector.load %arg5[%c15_171, %c0_172, %c0_173] : memref<21x128x128xbf16, #tpu.memory_space<vmem>>, vector<1x128x128xbf16>
    %330 = vector.shape_cast %329 : vector<1x128x128xbf16> to vector<128x128xbf16>
    %331 = arith.truncf %328 : vector<128x128xf32> to vector<128x128xbf16>
    %cst_174 = arith.constant dense<0.000000e+00> : vector<128x128xf32>
    %332 = tpu.matmul %331, %330, %cst_174 {dimension_numbers = #tpu.dot_dimension_numbers<[1], [0], [0], [1], [0, 0, 1, 1], [], []>} : vector<128x128xbf16>, vector<128x128xbf16>, vector<128x128xf32> -> vector<128x128xf32>
    %c31 = arith.constant 31 : index
    %c0_175 = arith.constant 0 : index
    %333 = vector.load %arg6[%c31, %c0_175] : memref<42x128xf32, #tpu.memory_space<vmem>>, vector<1x128xf32>
    %334 = vector.broadcast %333 : vector<1x128xf32> to vector<128x128xf32>
    %335 = arith.addf %332, %334 : vector<128x128xf32>
    %cst_176 = arith.constant 0.000000e+00 : f32
    %336 = vector.broadcast %cst_176 : f32 to vector<128x128xf32>
    %337 = arith.maximumf %335, %336 : vector<128x128xf32>
    %c16_177 = arith.constant 16 : index
    %c0_178 = arith.constant 0 : index
    %c0_179 = arith.constant 0 : index
    %338 = vector.load %arg5[%c16_177, %c0_178, %c0_179] : memref<21x128x128xbf16, #tpu.memory_space<vmem>>, vector<1x128x128xbf16>
    %339 = vector.shape_cast %338 : vector<1x128x128xbf16> to vector<128x128xbf16>
    %340 = arith.truncf %337 : vector<128x128xf32> to vector<128x128xbf16>
    %cst_180 = arith.constant dense<0.000000e+00> : vector<128x128xf32>
    %341 = tpu.matmul %340, %339, %cst_180 {dimension_numbers = #tpu.dot_dimension_numbers<[1], [0], [0], [1], [0, 0, 1, 1], [], []>} : vector<128x128xbf16>, vector<128x128xbf16>, vector<128x128xf32> -> vector<128x128xf32>
    %c32 = arith.constant 32 : index
    %c0_181 = arith.constant 0 : index
    %342 = vector.load %arg6[%c32, %c0_181] : memref<42x128xf32, #tpu.memory_space<vmem>>, vector<1x128xf32>
    %343 = vector.broadcast %342 : vector<1x128xf32> to vector<128x128xf32>
    %344 = arith.addf %341, %343 : vector<128x128xf32>
    %cst_182 = arith.constant 0.000000e+00 : f32
    %345 = vector.broadcast %cst_182 : f32 to vector<128x128xf32>
    %346 = arith.maximumf %344, %345 : vector<128x128xf32>
    %c17_183 = arith.constant 17 : index
    %c0_184 = arith.constant 0 : index
    %c0_185 = arith.constant 0 : index
    %347 = vector.load %arg5[%c17_183, %c0_184, %c0_185] : memref<21x128x128xbf16, #tpu.memory_space<vmem>>, vector<1x128x128xbf16>
    %348 = vector.shape_cast %347 : vector<1x128x128xbf16> to vector<128x128xbf16>
    %349 = arith.truncf %346 : vector<128x128xf32> to vector<128x128xbf16>
    %cst_186 = arith.constant dense<0.000000e+00> : vector<128x128xf32>
    %350 = tpu.matmul %349, %348, %cst_186 {dimension_numbers = #tpu.dot_dimension_numbers<[1], [0], [0], [1], [0, 0, 1, 1], [], []>} : vector<128x128xbf16>, vector<128x128xbf16>, vector<128x128xf32> -> vector<128x128xf32>
    %c33 = arith.constant 33 : index
    %c0_187 = arith.constant 0 : index
    %351 = vector.load %arg6[%c33, %c0_187] : memref<42x128xf32, #tpu.memory_space<vmem>>, vector<1x128xf32>
    %352 = vector.broadcast %351 : vector<1x128xf32> to vector<128x128xf32>
    %353 = arith.addf %350, %352 : vector<128x128xf32>
    %cst_188 = arith.constant dense<0.000000e+00> : vector<128xf32>
    %354 = vector.multi_reduction <add>, %353, %cst_188 [1] : vector<128x128xf32> to vector<128xf32>
    %355 = vector.shape_cast %354 : vector<128xf32> to vector<128x1xf32>
    %cst_189 = arith.constant 3.125000e-02 : f32
    %356 = vector.broadcast %cst_189 : f32 to vector<128x1xf32>
    %357 = arith.mulf %355, %356 : vector<128x1xf32>
    %358 = arith.mulf %353, %353 : vector<128x128xf32>
    %cst_190 = arith.constant dense<0.000000e+00> : vector<128xf32>
    %359 = vector.multi_reduction <add>, %358, %cst_190 [1] : vector<128x128xf32> to vector<128xf32>
    %360 = vector.shape_cast %359 : vector<128xf32> to vector<128x1xf32>
    %cst_191 = arith.constant 3.125000e-02 : f32
    %361 = vector.broadcast %cst_191 : f32 to vector<128x1xf32>
    %362 = arith.mulf %360, %361 : vector<128x1xf32>
    %363 = vector.broadcast %357 : vector<128x1xf32> to vector<128x128xf32>
    %364 = arith.subf %353, %363 : vector<128x128xf32>
    %365 = arith.mulf %357, %357 : vector<128x1xf32>
    %366 = arith.subf %362, %365 : vector<128x1xf32>
    %cst_192 = arith.constant 9.99999974E-6 : f32
    %367 = vector.broadcast %cst_192 : f32 to vector<128x1xf32>
    %368 = arith.addf %366, %367 : vector<128x1xf32>
    %369 = math.rsqrt %368 : vector<128x1xf32>
    %370 = vector.broadcast %369 : vector<128x1xf32> to vector<128x128xf32>
    %371 = arith.mulf %364, %370 : vector<128x128xf32>
    %c34 = arith.constant 34 : index
    %c0_193 = arith.constant 0 : index
    %372 = vector.load %arg6[%c34, %c0_193] : memref<42x128xf32, #tpu.memory_space<vmem>>, vector<1x128xf32>
    %373 = vector.broadcast %372 : vector<1x128xf32> to vector<128x128xf32>
    %374 = arith.mulf %371, %373 : vector<128x128xf32>
    %c35 = arith.constant 35 : index
    %c0_194 = arith.constant 0 : index
    %375 = vector.load %arg6[%c35, %c0_194] : memref<42x128xf32, #tpu.memory_space<vmem>>, vector<1x128xf32>
    %376 = vector.broadcast %375 : vector<1x128xf32> to vector<128x128xf32>
    %377 = arith.addf %374, %376 : vector<128x128xf32>
    %378 = arith.addf %249, %377 : vector<128x128xf32>
    %c6_195 = arith.constant 6 : index
    %c0_196 = arith.constant 0 : index
    %c0_197 = arith.constant 0 : index
    %379 = vector.load %arg4[%c6_195, %c0_196, %c0_197] : memref<7x128x128xbf16, #tpu.memory_space<vmem>>, vector<1x128x128xbf16>
    %380 = vector.shape_cast %379 : vector<1x128x128xbf16> to vector<128x128xbf16>
    %381 = arith.truncf %378 : vector<128x128xf32> to vector<128x128xbf16>
    %cst_198 = arith.constant dense<0.000000e+00> : vector<128x128xf32>
    %382 = tpu.matmul %381, %380, %cst_198 {dimension_numbers = #tpu.dot_dimension_numbers<[1], [0], [0], [1], [0, 0, 1, 1], [], []>} : vector<128x128xbf16>, vector<128x128xbf16>, vector<128x128xf32> -> vector<128x128xf32>
    %c36 = arith.constant 36 : index
    %c0_199 = arith.constant 0 : index
    %383 = vector.load %arg6[%c36, %c0_199] : memref<42x128xf32, #tpu.memory_space<vmem>>, vector<1x128xf32>
    %384 = vector.broadcast %383 : vector<1x128xf32> to vector<128x128xf32>
    %385 = arith.addf %382, %384 : vector<128x128xf32>
    %cst_200 = arith.constant 0.000000e+00 : f32
    %386 = vector.broadcast %cst_200 : f32 to vector<128x128xf32>
    %387 = arith.maximumf %385, %386 : vector<128x128xf32>
    %c18_201 = arith.constant 18 : index
    %c0_202 = arith.constant 0 : index
    %c0_203 = arith.constant 0 : index
    %388 = vector.load %arg5[%c18_201, %c0_202, %c0_203] : memref<21x128x128xbf16, #tpu.memory_space<vmem>>, vector<1x128x128xbf16>
    %389 = vector.shape_cast %388 : vector<1x128x128xbf16> to vector<128x128xbf16>
    %390 = arith.truncf %387 : vector<128x128xf32> to vector<128x128xbf16>
    %cst_204 = arith.constant dense<0.000000e+00> : vector<128x128xf32>
    %391 = tpu.matmul %390, %389, %cst_204 {dimension_numbers = #tpu.dot_dimension_numbers<[1], [0], [0], [1], [0, 0, 1, 1], [], []>} : vector<128x128xbf16>, vector<128x128xbf16>, vector<128x128xf32> -> vector<128x128xf32>
    %c37 = arith.constant 37 : index
    %c0_205 = arith.constant 0 : index
    %392 = vector.load %arg6[%c37, %c0_205] : memref<42x128xf32, #tpu.memory_space<vmem>>, vector<1x128xf32>
    %393 = vector.broadcast %392 : vector<1x128xf32> to vector<128x128xf32>
    %394 = arith.addf %391, %393 : vector<128x128xf32>
    %cst_206 = arith.constant 0.000000e+00 : f32
    %395 = vector.broadcast %cst_206 : f32 to vector<128x128xf32>
    %396 = arith.maximumf %394, %395 : vector<128x128xf32>
    %c19_207 = arith.constant 19 : index
    %c0_208 = arith.constant 0 : index
    %c0_209 = arith.constant 0 : index
    %397 = vector.load %arg5[%c19_207, %c0_208, %c0_209] : memref<21x128x128xbf16, #tpu.memory_space<vmem>>, vector<1x128x128xbf16>
    %398 = vector.shape_cast %397 : vector<1x128x128xbf16> to vector<128x128xbf16>
    %399 = arith.truncf %396 : vector<128x128xf32> to vector<128x128xbf16>
    %cst_210 = arith.constant dense<0.000000e+00> : vector<128x128xf32>
    %400 = tpu.matmul %399, %398, %cst_210 {dimension_numbers = #tpu.dot_dimension_numbers<[1], [0], [0], [1], [0, 0, 1, 1], [], []>} : vector<128x128xbf16>, vector<128x128xbf16>, vector<128x128xf32> -> vector<128x128xf32>
    %c38 = arith.constant 38 : index
    %c0_211 = arith.constant 0 : index
    %401 = vector.load %arg6[%c38, %c0_211] : memref<42x128xf32, #tpu.memory_space<vmem>>, vector<1x128xf32>
    %402 = vector.broadcast %401 : vector<1x128xf32> to vector<128x128xf32>
    %403 = arith.addf %400, %402 : vector<128x128xf32>
    %cst_212 = arith.constant 0.000000e+00 : f32
    %404 = vector.broadcast %cst_212 : f32 to vector<128x128xf32>
    %405 = arith.maximumf %403, %404 : vector<128x128xf32>
    %c20_213 = arith.constant 20 : index
    %c0_214 = arith.constant 0 : index
    %c0_215 = arith.constant 0 : index
    %406 = vector.load %arg5[%c20_213, %c0_214, %c0_215] : memref<21x128x128xbf16, #tpu.memory_space<vmem>>, vector<1x128x128xbf16>
    %407 = vector.shape_cast %406 : vector<1x128x128xbf16> to vector<128x128xbf16>
    %408 = arith.truncf %405 : vector<128x128xf32> to vector<128x128xbf16>
    %cst_216 = arith.constant dense<0.000000e+00> : vector<128x128xf32>
    %409 = tpu.matmul %408, %407, %cst_216 {dimension_numbers = #tpu.dot_dimension_numbers<[1], [0], [0], [1], [0, 0, 1, 1], [], []>} : vector<128x128xbf16>, vector<128x128xbf16>, vector<128x128xf32> -> vector<128x128xf32>
    %c39 = arith.constant 39 : index
    %c0_217 = arith.constant 0 : index
    %410 = vector.load %arg6[%c39, %c0_217] : memref<42x128xf32, #tpu.memory_space<vmem>>, vector<1x128xf32>
    %411 = vector.broadcast %410 : vector<1x128xf32> to vector<128x128xf32>
    %412 = arith.addf %409, %411 : vector<128x128xf32>
    %c0_218 = arith.constant 0 : index
    %c0_219 = arith.constant 0 : index
    %413 = vector.load %arg7[%c0_218, %c0_219] : memref<128x128xf32, #tpu.memory_space<vmem>>, vector<128x128xf32>
    tpu.vector_store %arg7[%c0_218, %c0_219], %412 {strides = array<i32>} : memref<128x128xf32, #tpu.memory_space<vmem>>, vector<128x128xf32>,
    return
  }
}

</mosaic_0001>

<bundles_post_ra>
// kernel: tpu_custom_call.1
= control target key start
LH: loop header
LB: loop body
LE: loop exit
PB: predicated region body
PF: predicated region fallthrough
CT: control target
= control target key end

     0   :  { %12 = vsyncpa [#allocation3], 0  ;;  %s12407_s0 = inlined_call_operand.hbm [shape: f32[128,128], index: 0, kind: input, shape index: {}]   ;;  %s12408_s1 = inlined_call_operand.hbm [shape: f32[128,128], index: 1, kind: input, shape index: {}]   ;;  %s12409_s2 = inlined_call_operand.hbm [shape: bf16[256,128], index: 2, kind: input, shape index: {}]   ;;  %s12410_s3 = inlined_call_operand.hbm [shape: bf16[128,128], index: 3, kind: input, shape index: {}]   ;;  %s12411_s4 = inlined_call_operand.hbm [shape: bf16[7,128,128], index: 4, kind: input, shape index: {}]   ;;  %s12412_s5 = inlined_call_operand.hbm [shape: bf16[21,128,128], index: 5, kind: input, shape index: {}]   ;;  %s12413_s6 = inlined_call_operand.hbm [shape: f32[42,128], index: 6, kind: input, shape index: {}]   ;;  %s12414_s7 = inlined_call_operand.hbm [shape: f32[128,128], index: 7, kind: output, shape index: {}]  }
   0x1   :  { %13 = vsyncpa [#allocation6], 0 }
   0x2   :  { %14 = vsyncpa [#allocation9], 0 }
   0x3   :  { %15 = vsyncpa [#allocation12], 0 }
   0x4   :  { %16 = vsyncpa [#allocation4], 0  ;;  %s34_s26 = sshll.u32 %s12408_s1, 4  ;;  %s8904_s27 = smov [#allocation5]   ;;  %s35_s26 = int_to_ptr.hbm [resolvable:$true] %s34_s26 }
   0x5   :  { %s36_s28 = sshll.u32 %s8904_s27, 4  ;;  %s8905_s29 = smov 128   ;;  %s37_s28 = int_to_ptr.vmem [resolvable:$true] %s36_s28 }
   0x6   :  { %s8906_s30 = smov 8   ;;  %s60_s10 = sshll.u32 %s12410_s3, 4  ;;  %s61_s10 = int_to_ptr.hbm [resolvable:$true] %s60_s10 }
   0x7   :  { %42 = dma.hbm_to_vmem [thread:$0]  %s35_s26, 2048, %s37_s28, [#allocation6], %s8905_s29, %s8905_s29, %s8906_s30  }
   0x8   :  { %s8907_s11 = smov [#allocation8]   ;;  %s86_s1 = sshll.u32 %s12412_s5, 4  ;;  %s87_s1 = int_to_ptr.hbm [resolvable:$true] %s86_s1 }
   0x9   :  { %s62_s12 = sshll.u32 %s8907_s11, 4  ;;  %s8908_s15 = smov 64   ;;  %s63_s12 = int_to_ptr.vmem [resolvable:$true] %s62_s12 }
   0xa   :  { %s8909_s16 = smov 4   ;;  %s21_s19 = sshll.u32 %s12407_s0, 4  ;;  %s22_s19 = int_to_ptr.hbm [resolvable:$true] %s21_s19 }
   0xb   :  { %68 = dma.hbm_to_vmem [thread:$0]  %s61_s10, 1024, %s63_s12, [#allocation9], %s8908_s15, %s8908_s15, %s8909_s16  }
   0xc   :  { %s8910_s20 = smov [#allocation11]   ;;  %s8911_s21 = smov [#allocation2]  }
   0xd   :  { %s88_s3 = sshll.u32 %s8910_s20, 4  ;;  %s23_s5 = sshll.u32 %s8911_s21, 4  ;;  %s89_s3 = int_to_ptr.vmem [resolvable:$true] %s88_s3  ;;  %s24_s5 = int_to_ptr.vmem [resolvable:$true] %s23_s5 }
   0xe   :  { %94 = dma.hbm_to_vmem [thread:$0]  %s87_s1, 21504, %s89_s3, [#allocation12], %s8908_s15, %s8908_s15, %s8909_s16  }
   0xf   :  { %s47_s24 = sshll.u32 %s12409_s2, 4  ;;  %s73_s26 = sshll.u32 %s12411_s4, 4  ;;  %s48_s24 = int_to_ptr.hbm [resolvable:$true] %s47_s24  ;;  %s74_s26 = int_to_ptr.hbm [resolvable:$true] %s73_s26 }
  0x10   :  { %29 = dma.hbm_to_vmem [thread:$0]  %s22_s19, 2048, %s24_s5, [#allocation3], %s8905_s29, %s8905_s29, %s8906_s30  }
  0x11   :  { %s8912_s27 = smov [#allocation7]   ;;  %s8913_s8 = smov [#allocation10]  }
  0x12   :  { %s49_s28 = sshll.u32 %s8912_s27, 4  ;;  %s75_s9 = sshll.u32 %s8913_s8, 4  ;;  %s50_s28 = int_to_ptr.vmem [resolvable:$true] %s49_s28  ;;  %s76_s9 = int_to_ptr.vmem [resolvable:$true] %s75_s9 }
  0x13   :  { %55 = dma.hbm_to_vmem [thread:$0]  %s48_s24, 2048, %s50_s28, [#allocation6], %s8908_s15, %s8908_s15, %s8909_s16  }
  0x14   :  { %s99_s11 = sshll.u32 %s12413_s6, 4  ;;  %s8914_s12 = smov [#allocation13]   ;;  %s100_s11 = int_to_ptr.hbm [resolvable:$true] %s99_s11 }
  0x15   :  { %81 = dma.hbm_to_vmem [thread:$0]  %s74_s26, 7168, %s76_s9, [#allocation9], %s8908_s15, %s8908_s15, %s8909_s16  }
  0x16   :  { %s101_s4 = sshll.u32 %s8914_s12, 4  ;;  %s102_s4 = int_to_ptr.vmem [resolvable:$true] %s101_s4 }
  0x17   :  { %107 = dma.hbm_to_vmem [thread:$0]  %s100_s11, 768, %s102_s4, [#allocation12], %s8905_s29, %s8905_s29, %s8906_s30  }
  0x18   :  { %8894 = dma.done.wait [#allocation3], 2048  }
  0x19   :  { %8895 = vsyncadd [#allocation3], 4294965248 }
  0x1a   :  { %8896 = dma.done.wait [#allocation6], 4096  }
  0x1b   :  { %8897 = vsyncadd [#allocation6], 4294963200 }
  0x1c   :  { %8898 = dma.done.wait [#allocation9], 8192  }
  0x1d   :  { %8899 = vsyncadd [#allocation9], 4294959104 }
  0x1e   :  { %8900 = dma.done.wait [#allocation12], 22272  }
  0x1f   :  { %8901 = vsyncadd [#allocation12], 4294945024  ;;  %v8175_v0 = vld [vmem:[#allocation10 + $0x38] sm:$0xff]  ;;  %v8174_v1 = vld [vmem:[#allocation10 + $0x30] sm:$0xff]  ;;  %s8915_s6 = smov 32   ;;  %s8916_s13 = smov [#allocation14]  }
  0x20   :  { %226 = vmatpush.bf16.msra.mxu0 %v8175_v0  ;;  %8416 = vmatpush.bf16.msra.mxu2 %v8175_v0  ;;  %v8173_v2 = vld [vmem:[#allocation10 + $0x28] sm:$0xff]  ;;  %v8172_v3 = vld [vmem:[#allocation10 + $0x20] sm:$0xff]  ;;  %v8171_v4 = vld [vmem:[#allocation10 + $0x18] sm:$0xff]  ;;  %s7158_s14 = sshll.u32 %s8916_s13, 4  ;;  %s7160_s16 = sshll.u32 %s12414_s7, 4  ;;  %s7159_s14 = int_to_ptr.vmem [resolvable:$true] %s7158_s14  ;;  %s7161_s16 = int_to_ptr.hbm [resolvable:$true] %s7160_s16 }
  0x21   :  { %v8170_v5 = vld [vmem:[#allocation10 + $0x10] sm:$0xff]  ;;  %v8169_v6 = vld [vmem:[#allocation10 + $0x8] sm:$0xff]  ;;  %v8168_v7 = vld [vmem:[#allocation10] sm:$0xff] }
  0x22   :  { %v136_v8 = vld [vmem:[#allocation2] sm:$0xff]  ;;  %v137_v9 = vld [vmem:[#allocation2 + $0x8] sm:$0xff]  ;;  %v138_v14 = vld [vmem:[#allocation2 + $0x10] sm:$0xff] }
  0x23   :  { %v168_v10 = vpack.c.bf16 %v137_v9, %v136_v8  ;;  %v144_v11 = vld [vmem:[#allocation2 + $0x40] sm:$0xff]  ;;  %v145_v12 = vld [vmem:[#allocation2 + $0x48] sm:$0xff]  ;;  %v139_v15 = vld [vmem:[#allocation2 + $0x18] sm:$0xff] }
  0x24   :  { %227 = vmatpush.bf16.msra.mxu0 %v8174_v1  ;;  %8417 = vmatpush.bf16.msra.mxu2 %v8174_v1  ;;  %v172_v13 = vpack.c.bf16 %v145_v12, %v144_v11  ;;  %v169_v16 = vpack.c.bf16 %v139_v15, %v138_v14  ;;  %v146_v17 = vld [vmem:[#allocation2 + $0x50] sm:$0xff]  ;;  %v147_v18 = vld [vmem:[#allocation2 + $0x58] sm:$0xff]  ;;  %v140_v22 = vld [vmem:[#allocation2 + $0x20] sm:$0xff] }
  0x25   :  { %v173_v19 = vpack.c.bf16 %v147_v18, %v146_v17  ;;  %v8183_v20 = vld [vmem:[#allocation11 + $0x38] sm:$0xff]  ;;  %v8182_v21 = vld [vmem:[#allocation11 + $0x30] sm:$0xff]  ;;  %v141_v23 = vld [vmem:[#allocation2 + $0x28] sm:$0xff] }
  0x26   :  { %365 = vmatpush.bf16.msra.mxu1 %v8183_v20  ;;  %8424 = vmatpush.bf16.msra.mxu3 %v8183_v20  ;;  %v8181_v24 = vld [vmem:[#allocation11 + $0x28] sm:$0xff]  ;;  %v170_v25 = vpack.c.bf16 %v141_v23, %v140_v22  ;;  %v148_v26 = vld [vmem:[#allocation2 + $0x60] sm:$0xff]  ;;  %v142_v30 = vld [vmem:[#allocation2 + $0x30] sm:$0xff] }
  0x27   :  { %v149_v27 = vld [vmem:[#allocation2 + $0x68] sm:$0xff]  ;;  %v8180_v28 = vld [vmem:[#allocation11 + $0x20] sm:$0xff]  ;;  %v143_v31 = vld [vmem:[#allocation2 + $0x38] sm:$0xff] }
  0x28   :  { %228 = vmatpush.bf16.msra.mxu0 %v8173_v2  ;;  %8418 = vmatpush.bf16.msra.mxu2 %v8173_v2  ;;  %v174_v29 = vpack.c.bf16 %v149_v27, %v148_v26  ;;  %v171_v32 = vpack.c.bf16 %v143_v31, %v142_v30  ;;  %v150_v33 = vld [vmem:[#allocation2 + $0x70] sm:$0xff]  ;;  %v151_v34 = vld [vmem:[#allocation2 + $0x78] sm:$0xff]  ;;  %v8177_v38 = vld [vmem:[#allocation11 + $0x8] sm:$0xff] }
  0x29   :  { %v175_v35 = vpack.c.bf16 %v151_v34, %v150_v33  ;;  %v8179_v36 = vld [vmem:[#allocation11 + $0x18] sm:$0xff]  ;;  %v8178_v37 = vld [vmem:[#allocation11 + $0x10] sm:$0xff]  ;;  %v8176_v39 = vld [vmem:[#allocation11] sm:$0xff] }
  0x2a   :  { %366 = vmatpush.bf16.msra.mxu1 %v8182_v21  ;;  %8425 = vmatpush.bf16.msra.mxu3 %v8182_v21  ;;  %v8995_v41 = vld [vmem:[#allocation13] ss:$0 sm:$0xff]  ;;  %v8207_v59 = vld [vmem:[#allocation10 + $0x78] sm:$0xff]  ;;  %v8206_v0 = vld [vmem:[#allocation10 + $0x70] sm:$0xff] }
  0x2b   :  { %v8205_v2 = vld [vmem:[#allocation10 + $0x68] sm:$0xff]  ;;  %v8203_v11 = vld [vmem:[#allocation10 + $0x58] sm:$0xff]  ;;  %v8202_v17 = vld [vmem:[#allocation10 + $0x50] sm:$0xff] }
  0x2c   :  { %229 = vmatpush.bf16.msra.mxu0 %v8172_v3  ;;  %8419 = vmatpush.bf16.msra.mxu2 %v8172_v3  ;;  %v8201_v20 = vld [vmem:[#allocation10 + $0x48] sm:$0xff]  ;;  %v1082_v26 = vld [vmem:[#allocation5] sm:$0xff] }
  0x2d   :  { %v1083_v27 = vld [vmem:[#allocation5 + $0x8] sm:$0xff] }
  0x2e   :  { %367 = vmatpush.bf16.msra.mxu1 %v8181_v24  ;;  %8426 = vmatpush.bf16.msra.mxu3 %v8181_v24 }
  0x30   :  { %230 = vmatpush.bf16.msra.mxu0 %v8171_v4  ;;  %8420 = vmatpush.bf16.msra.mxu2 %v8171_v4 }
  0x32   :  { %368 = vmatpush.bf16.msra.mxu1 %v8180_v28  ;;  %8427 = vmatpush.bf16.msra.mxu3 %v8180_v28 }
  0x34   :  { %231 = vmatpush.bf16.msra.mxu0 %v8170_v5  ;;  %8421 = vmatpush.bf16.msra.mxu2 %v8170_v5 }
  0x36   :  { %369 = vmatpush.bf16.msra.mxu1 %v8179_v36  ;;  %8428 = vmatpush.bf16.msra.mxu3 %v8179_v36 }
  0x38   :  { %232 = vmatpush.bf16.msra.mxu0 %v8169_v6  ;;  %8422 = vmatpush.bf16.msra.mxu2 %v8169_v6 }
  0x3a   :  { %370 = vmatpush.bf16.msra.mxu1 %v8178_v37  ;;  %8429 = vmatpush.bf16.msra.mxu3 %v8178_v37 }
  0x3c   :  { %233 = vmatpush.bf16.msra.mxu0 %v8168_v7  ;;  %8423 = vmatpush.bf16.msra.mxu2 %v8168_v7  ;;  %v8204_v7 = vld [vmem:[#allocation10 + $0x60] sm:$0xff] }
  0x3e   :  { %371 = vmatpush.bf16.msra.mxu1 %v8177_v38  ;;  %8430 = vmatpush.bf16.msra.mxu3 %v8177_v38  ;;  %v8190_v38 = vld [vmem:[#allocation11 + $0x70] sm:$0xff] }
  0x3f   :  { %234 = vmatmul.bf16.vlgmr.msra.gmra.mxu0 %v168_v10  ;;  %254 = vmatmul.bf16.vlgmr.msra.gmra.mxu2 %v172_v13 }
  0x40   :  { %1173 = vmatpush.bf16.msrb.mxu0 %v8207_v59  ;;  %v1089_v59 = vld [vmem:[#allocation5 + $0x38] sm:$0xff] }
  0x42   :  { %372 = vmatpush.bf16.msra.mxu1 %v8176_v39  ;;  %8431 = vmatpush.bf16.msra.mxu3 %v8176_v39 }
  0x44   :  { %1174 = vmatpush.bf16.msrb.mxu0 %v8206_v0 }
  0x48   :  { %1175 = vmatpush.bf16.msrb.mxu0 %v8205_v2 }
  0x4c   :  { %1176 = vmatpush.bf16.msrb.mxu0 %v8204_v7  ;;  %v1092_v7 = vld [vmem:[#allocation5 + $0x50] sm:$0xff] }
  0x4f   :  { %239 = vmatmul.bf16.gmra.mxu0 %v169_v16  ;;  %259 = vmatmul.bf16.gmra.mxu2 %v173_v19 }
  0x50   :  { %1177 = vmatpush.bf16.msrb.mxu0 %v8203_v11 }
  0x54   :  { %1178 = vmatpush.bf16.msrb.mxu0 %v8202_v17 }
  0x58   :  { %1179 = vmatpush.bf16.msrb.mxu0 %v8201_v20 }
  0x5f   :  { %244 = vmatmul.bf16.gmra.mxu0 %v170_v25  ;;  %264 = vmatmul.bf16.gmra.mxu2 %v174_v29  ;;  %v8200_v25 = vld [vmem:[#allocation10 + $0x40] sm:$0xff]  ;;  %v1115_v29 = vpack.c.bf16 %v1083_v27, %v1082_v26 }
  0x60   :  { %1180 = vmatpush.bf16.msrb.mxu0 %v8200_v25  ;;  %v8212_v25 = vld [vmem:[#allocation11 + $0xe0] sm:$0xff] }
  0x6f   :  { %249 = vmatmul.bf16.gmra.mxu0 %v171_v32  ;;  %269 = vmatmul.bf16.gmra.mxu2 %v175_v35  ;;  %v8191_v35 = vld [vmem:[#allocation11 + $0x78] sm:$0xff] }
  0x70   :  { %505 = vmatpush.bf16.msrb.mxu2 %v8191_v35 }
  0x74   :  { %506 = vmatpush.bf16.msrb.mxu2 %v8190_v38 }
  0x7f   :  { %1181 = vmatmul.bf16.vlgmr.msrb.gmra.mxu0 %v1115_v29 }
  0xbc   :  { %v235_v40 = vpop.f32.mrf.mxu0 }
  0xbd   :  { %v236_v42 = vadd.f32 %v8995_v41, %v235_v40 }
  0xbf   :  { %v275_v46 = vmax.f32 %v236_v42, 0.0  ;;  %v8189_v42 = vld [vmem:[#allocation11 + $0x68] sm:$0xff] }
  0xc0   :  { %507 = vmatpush.bf16.msrb.mxu2 %v8189_v42 }
  0xc2   :  { %v255_v45 = vpop.f32.mrf.mxu2 }
  0xc3   :  { %v256_v49 = vadd.f32 %v8995_v41, %v255_v45 }
  0xc4   :  { %v237_v43 = vpop.f32.mrf.mxu0 }
  0xc5   :  { %v238_v44 = vadd.f32 %v8995_v41, %v237_v43  ;;  %v283_v52 = vmax.f32 %v256_v49, 0.0 }
  0xc7   :  { %v276_v47 = vmax.f32 %v238_v44, 0.0 }
  0xc9   :  { %v307_v48 = vpack.c.bf16 %v276_v47, %v275_v46  ;;  %v1084_v46 = vld [vmem:[#allocation5 + $0x10] sm:$0xff]  ;;  %v1085_v47 = vld [vmem:[#allocation5 + $0x18] sm:$0xff] }
  0xca   :  { %v257_v51 = vpop.f32.mrf.mxu2 }
  0xcb   :  { %373 = vmatmul.bf16.vlgmr.msra.gmra.mxu1 %v307_v48  ;;  %v258_v53 = vadd.f32 %v8995_v41, %v257_v51  ;;  %v8188_v48 = vld [vmem:[#allocation11 + $0x60] sm:$0xff] }
  0xcc   :  { %v240_v50 = vpop.f32.mrf.mxu0  ;;  %508 = vmatpush.bf16.msrb.mxu2 %v8188_v48 }
  0xcd   :  { %v284_v54 = vmax.f32 %v258_v53, 0.0  ;;  %v241_v55 = vadd.f32 %v8995_v41, %v240_v50  ;;  %v1116_v50 = vpack.c.bf16 %v1085_v47, %v1084_v46  ;;  %v1087_v53 = vld [vmem:[#allocation5 + $0x28] sm:$0xff] }
  0xcf   :  { %v311_v56 = vpack.c.bf16 %v284_v54, %v283_v52  ;;  %v277_v61 = vmax.f32 %v241_v55, 0.0  ;;  %1186 = vmatmul.bf16.gmra.mxu0 %v1116_v50  ;;  %v1086_v52 = vld [vmem:[#allocation5 + $0x20] sm:$0xff]  ;;  %v8187_v55 = vld [vmem:[#allocation11 + $0x58] sm:$0xff] }
  0xd0   :  { %v1117_v54 = vpack.c.bf16 %v1087_v53, %v1086_v52  ;;  %509 = vmatpush.bf16.msrb.mxu2 %v8187_v55  ;;  %v1096_v55 = vld [vmem:[#allocation5 + $0x70] sm:$0xff] }
  0xd1   :  { %393 = vmatmul.bf16.vlgmr.msra.gmra.mxu3 %v311_v56  ;;  %v8186_v56 = vld [vmem:[#allocation11 + $0x50] sm:$0xff] }
  0xd2   :  { %v260_v60 = vpop.f32.mrf.mxu2 }
  0xd3   :  { %v261_v1 = vadd.f32 %v8995_v41, %v260_v60 }
  0xd4   :  { %v242_v57 = vpop.f32.mrf.mxu0  ;;  %510 = vmatpush.bf16.msrb.mxu2 %v8186_v56  ;;  %v1097_v56 = vld [vmem:[#allocation5 + $0x78] sm:$0xff] }
  0xd5   :  { %v243_v58 = vadd.f32 %v8995_v41, %v242_v57  ;;  %v285_v5 = vmax.f32 %v261_v1, 0.0  ;;  %v8185_v57 = vld [vmem:[#allocation11 + $0x48] sm:$0xff]  ;;  %v9013_v1 = vld [vmem:[#allocation13 + $0x1] ss:$0 sm:$0xff] }
  0xd7   :  { %v278_v62 = vmax.f32 %v243_v58, 0.0  ;;  %v1088_v58 = vld [vmem:[#allocation5 + $0x30] sm:$0xff] }
  0xd8   :  { %511 = vmatpush.bf16.msrb.mxu2 %v8185_v57  ;;  %v1118_v60 = vpack.c.bf16 %v1089_v59, %v1088_v58  ;;  %v1122_v57 = vpack.c.bf16 %v1097_v56, %v1096_v55 }
  0xd9   :  { %v308_v63 = vpack.c.bf16 %v278_v62, %v277_v61  ;;  %v1090_v61 = vld [vmem:[#allocation5 + $0x40] sm:$0xff]  ;;  %v1091_v62 = vld [vmem:[#allocation5 + $0x48] sm:$0xff] }
  0xda   :  { %v262_v4 = vpop.f32.mrf.mxu2 }
  0xdb   :  { %378 = vmatmul.bf16.gmra.mxu1 %v308_v63  ;;  %v263_v6 = vadd.f32 %v8995_v41, %v262_v4  ;;  %v1119_v63 = vpack.c.bf16 %v1091_v62, %v1090_v61 }
  0xdc   :  { %v245_v3 = vpop.f32.mrf.mxu0 }
  0xdd   :  { %v286_v8 = vmax.f32 %v263_v6, 0.0  ;;  %v246_v9 = vadd.f32 %v8995_v41, %v245_v3 }
  0xdf   :  { %v312_v10 = vpack.c.bf16 %v286_v8, %v285_v5  ;;  %v279_v15 = vmax.f32 %v246_v9, 0.0  ;;  %1191 = vmatmul.bf16.gmra.mxu0 %v1117_v54  ;;  %v1093_v8 = vld [vmem:[#allocation5 + $0x58] sm:$0xff] }
  0xe1   :  { %398 = vmatmul.bf16.gmra.mxu3 %v312_v10  ;;  %v1120_v10 = vpack.c.bf16 %v1093_v8, %v1092_v7 }
  0xe2   :  { %v265_v14 = vpop.f32.mrf.mxu2 }
  0xe3   :  { %v266_v19 = vadd.f32 %v8995_v41, %v265_v14 }
  0xe4   :  { %v247_v12 = vpop.f32.mrf.mxu0 }
  0xe5   :  { %v248_v13 = vadd.f32 %v8995_v41, %v247_v12  ;;  %v287_v23 = vmax.f32 %v266_v19, 0.0  ;;  %v1095_v19 = vld [vmem:[#allocation5 + $0x68] sm:$0xff] }
  0xe7   :  { %v280_v16 = vmax.f32 %v248_v13, 0.0 }
  0xe9   :  { %v309_v18 = vpack.c.bf16 %v280_v16, %v279_v15  ;;  %v8215_v15 = vld [vmem:[#allocation11 + $0xf8] sm:$0xff] }
  0xea   :  { %v267_v22 = vpop.f32.mrf.mxu2  ;;  %1313 = vmatpush.bf16.msrb.mxu1 %v8215_v15 }
  0xeb   :  { %383 = vmatmul.bf16.gmra.mxu1 %v309_v18  ;;  %v268_v24 = vadd.f32 %v8995_v41, %v267_v22  ;;  %v1094_v18 = vld [vmem:[#allocation5 + $0x60] sm:$0xff]  ;;  %v8214_v22 = vld [vmem:[#allocation11 + $0xf0] sm:$0xff] }
  0xec   :  { %v250_v21 = vpop.f32.mrf.mxu0 }
  0xed   :  { %v288_v28 = vmax.f32 %v268_v24, 0.0  ;;  %v251_v30 = vadd.f32 %v8995_v41, %v250_v21  ;;  %v1121_v21 = vpack.c.bf16 %v1095_v19, %v1094_v18  ;;  %v8213_v24 = vld [vmem:[#allocation11 + $0xe8] sm:$0xff] }
  0xee   :  { %1314 = vmatpush.bf16.msrb.mxu1 %v8214_v22  ;;  %v8198_v22 = vld [vmem:[#allocation11 + $0xb0] sm:$0xff] }
  0xef   :  { %v313_v31 = vpack.c.bf16 %v288_v28, %v287_v23  ;;  %v281_v36 = vmax.f32 %v251_v30, 0.0  ;;  %1196 = vmatmul.bf16.gmra.mxu0 %v1118_v60  ;;  %v8211_v28 = vld [vmem:[#allocation11 + $0xd8] sm:$0xff] }
  0xf1   :  { %403 = vmatmul.bf16.gmra.mxu3 %v313_v31 }
  0xf2   :  { %v270_v34 = vpop.f32.mrf.mxu2  ;;  %1315 = vmatpush.bf16.msrb.mxu1 %v8213_v24 }
  0xf3   :  { %v271_v40 = vadd.f32 %v8995_v41, %v270_v34  ;;  %v9021_v34 = vld [vmem:[#allocation13 + $0x6] ss:$0 sm:$0xff] }
  0xf4   :  { %v252_v32 = vpop.f32.mrf.mxu0 }
  0xf5   :  { %v253_v33 = vadd.f32 %v8995_v41, %v252_v32  ;;  %v289_v44 = vmax.f32 %v271_v40, 0.0 }
  0xf6   :  { %1316 = vmatpush.bf16.msrb.mxu1 %v8212_v25  ;;  %v8197_v25 = vld [vmem:[#allocation11 + $0xa8] sm:$0xff] }
  0xf7   :  { %v282_v37 = vmax.f32 %v253_v33, 0.0 }
  0xf9   :  { %v310_v39 = vpack.c.bf16 %v282_v37, %v281_v36  ;;  %v8210_v36 = vld [vmem:[#allocation11 + $0xd0] sm:$0xff] }
  0xfa   :  { %v272_v43 = vpop.f32.mrf.mxu2  ;;  %1317 = vmatpush.bf16.msrb.mxu1 %v8211_v28 }
  0xfb   :  { %388 = vmatmul.bf16.gmra.mxu1 %v310_v39  ;;  %v273_v45 = vadd.f32 %v8995_v41, %v272_v43  ;;  %v8184_v41 = vld [vmem:[#allocation11 + $0x40] sm:$0xff]  ;;  %v8209_v39 = vld [vmem:[#allocation11 + $0xc8] sm:$0xff] }
  0xfc   :  { %512 = vmatpush.bf16.msrb.mxu2 %v8184_v41  ;;  %v1182_v32 = vpop.f32.mrf.mxu0 }
  0xfd   :  { %v290_v49 = vmax.f32 %v273_v45, 0.0  ;;  %v1183_v38 = vadd.f32 %v9021_v34, %v1182_v32  ;;  %v8195_v32 = vld [vmem:[#allocation11 + $0x98] sm:$0xff] }
  0xfe   :  { %1318 = vmatpush.bf16.msrb.mxu1 %v8210_v36 }
  0xff   :  { %v314_v51 = vpack.c.bf16 %v290_v49, %v289_v44  ;;  %1201 = vmatmul.bf16.gmra.mxu0 %v1119_v63  ;;  %v1222_v42 = vmax.f32 %v1183_v38, 0.0  ;;  %v8208_v44 = vld [vmem:[#allocation11 + $0xc0] sm:$0xff] }
 0x101   :  { %408 = vmatmul.bf16.gmra.mxu3 %v314_v51 }
 0x102   :  { %1319 = vmatpush.bf16.msrb.mxu1 %v8209_v39 }
 0x104   :  { %v1184_v40 = vpop.f32.mrf.mxu0 }
 0x105   :  { %v1185_v43 = vadd.f32 %v9021_v34, %v1184_v40 }
 0x106   :  { %1320 = vmatpush.bf16.msrb.mxu1 %v8208_v44  ;;  %v8193_v44 = vld [vmem:[#allocation11 + $0x88] sm:$0xff] }
 0x107   :  { %v1223_v46 = vmax.f32 %v1185_v43, 0.0 }
 0x109   :  { %v1255_v49 = vpack.c.bf16 %v1223_v46, %v1222_v42 }
 0x10b   :  { %1321 = vmatmul.bf16.vlgmr.msrb.gmra.mxu1 %v1255_v49  ;;  %v8192_v49 = vld [vmem:[#allocation11 + $0x80] sm:$0xff] }
 0x10f   :  { %1206 = vmatmul.bf16.gmra.mxu0 %v1120_v10 }
 0x11f   :  { %1211 = vmatmul.bf16.gmra.mxu0 %v1121_v21  ;;  %v8199_v21 = vld [vmem:[#allocation11 + $0xb8] sm:$0xff] }
 0x120   :  { %645 = vmatpush.bf16.msrb.mxu3 %v8199_v21 }
 0x124   :  { %646 = vmatpush.bf16.msrb.mxu3 %v8198_v22  ;;  %v8221_v22 = vld [vmem:[#allocation11 + $0x128] sm:$0xff] }
 0x128   :  { %647 = vmatpush.bf16.msrb.mxu3 %v8197_v25 }
 0x12f   :  { %1216 = vmatmul.bf16.gmra.mxu0 %v1122_v57 }
 0x148   :  { %v374_v0 = vpop.f32.mrf.mxu1 }
 0x149   :  { %v375_v2 = vadd.f32 %v9013_v1, %v374_v0 }
 0x14b   :  { %v414_v5 = vmax.f32 %v375_v2, 0.0 }
 0x14c   :  { %v1187_v53 = vpop.f32.mrf.mxu0 }
 0x14d   :  { %v1188_v58 = vadd.f32 %v9021_v34, %v1187_v53 }
 0x14f   :  { %v1224_v60 = vmax.f32 %v1188_v58, 0.0 }
 0x150   :  { %v376_v3 = vpop.f32.mrf.mxu1 }
 0x151   :  { %v377_v4 = vadd.f32 %v9013_v1, %v376_v3 }
 0x153   :  { %v415_v6 = vmax.f32 %v377_v4, 0.0 }
 0x154   :  { %v394_v33 = vpop.f32.mrf.mxu3  ;;  %v1189_v59 = vpop.f32.mrf.mxu0 }
 0x155   :  { %v447_v9 = vpack.c.bf16 %v415_v6, %v414_v5  ;;  %v1190_v61 = vadd.f32 %v9021_v34, %v1189_v59  ;;  %v395_v62 = vadd.f32 %v9013_v1, %v394_v33  ;;  %v9044_v59 = vld [vmem:[#allocation13 + $0x2] ss:$0 sm:$0xff] }
 0x157   :  { %513 = vmatmul.bf16.vlgmr.msrb.gmra.mxu2 %v447_v9  ;;  %v1225_v0 = vmax.f32 %v1190_v61, 0.0  ;;  %v422_v3 = vmax.f32 %v395_v62, 0.0 }
 0x158   :  { %v379_v11 = vpop.f32.mrf.mxu1 }
 0x159   :  { %v380_v12 = vadd.f32 %v9013_v1, %v379_v11  ;;  %v1256_v2 = vpack.c.bf16 %v1225_v0, %v1224_v60 }
 0x15b   :  { %v416_v16 = vmax.f32 %v380_v12, 0.0  ;;  %1326 = vmatmul.bf16.gmra.mxu1 %v1256_v2 }
 0x15c   :  { %v396_v45 = vpop.f32.mrf.mxu3  ;;  %v1192_v6 = vpop.f32.mrf.mxu0 }
 0x15d   :  { %v397_v63 = vadd.f32 %v9013_v1, %v396_v45  ;;  %v1193_v8 = vadd.f32 %v9021_v34, %v1192_v6 }
 0x15f   :  { %v423_v4 = vmax.f32 %v397_v63, 0.0  ;;  %v1226_v11 = vmax.f32 %v1193_v8, 0.0 }
 0x160   :  { %v381_v13 = vpop.f32.mrf.mxu1 }
 0x161   :  { %v382_v14 = vadd.f32 %v9013_v1, %v381_v13  ;;  %v451_v7 = vpack.c.bf16 %v423_v4, %v422_v3 }
 0x163   :  { %v417_v17 = vmax.f32 %v382_v14, 0.0 }
 0x164   :  { %v399_v41 = vpop.f32.mrf.mxu3  ;;  %v1194_v9 = vpop.f32.mrf.mxu0 }
 0x165   :  { %v448_v20 = vpack.c.bf16 %v417_v17, %v416_v16  ;;  %v1195_v12 = vadd.f32 %v9021_v34, %v1194_v9  ;;  %v400_v13 = vadd.f32 %v9013_v1, %v399_v41 }
 0x167   :  { %518 = vmatmul.bf16.gmra.mxu2 %v448_v20  ;;  %v1227_v15 = vmax.f32 %v1195_v12, 0.0  ;;  %v424_v17 = vmax.f32 %v400_v13, 0.0  ;;  %v8223_v13 = vld [vmem:[#allocation11 + $0x138] sm:$0xff] }
 0x168   :  { %v384_v23 = vpop.f32.mrf.mxu1  ;;  %1453 = vmatpush.bf16.msra.mxu2 %v8223_v13 }
 0x169   :  { %v385_v26 = vadd.f32 %v9013_v1, %v384_v23  ;;  %v1257_v16 = vpack.c.bf16 %v1227_v15, %v1226_v11 }
 0x16b   :  { %v418_v30 = vmax.f32 %v385_v26, 0.0  ;;  %1331 = vmatmul.bf16.gmra.mxu1 %v1257_v16 }
 0x16c   :  { %v401_v5 = vpop.f32.mrf.mxu3 }
 0x16d   :  { %v402_v14 = vadd.f32 %v9013_v1, %v401_v5 }
 0x16f   :  { %v425_v18 = vmax.f32 %v402_v14, 0.0 }
 0x170   :  { %v386_v27 = vpop.f32.mrf.mxu1 }
 0x171   :  { %v387_v29 = vadd.f32 %v9013_v1, %v386_v27  ;;  %v452_v19 = vpack.c.bf16 %v425_v18, %v424_v17  ;;  %v8222_v17 = vld [vmem:[#allocation11 + $0x130] sm:$0xff] }
 0x172   :  { %1454 = vmatpush.bf16.msra.mxu2 %v8222_v17 }
 0x173   :  { %v419_v31 = vmax.f32 %v387_v29, 0.0  ;;  %v8196_v29 = vld [vmem:[#allocation11 + $0xa0] sm:$0xff] }
 0x174   :  { %v404_v10 = vpop.f32.mrf.mxu3  ;;  %648 = vmatpush.bf16.msrb.mxu3 %v8196_v29  ;;  %v9054_v29 = vld [vmem:[#allocation13 + $0x7] ss:$0 sm:$0xff] }
 0x175   :  { %v449_v35 = vpack.c.bf16 %v419_v31, %v418_v30  ;;  %v405_v23 = vadd.f32 %v9013_v1, %v404_v10  ;;  %v1197_v30 = vpop.f32.mrf.mxu0 }
 0x176   :  { %v1198_v33 = vadd.f32 %v9021_v34, %v1197_v30  ;;  %1455 = vmatpush.bf16.msra.mxu2 %v8221_v22  ;;  %v8218_v30 = vld [vmem:[#allocation11 + $0x110] sm:$0xff] }
 0x177   :  { %523 = vmatmul.bf16.gmra.mxu2 %v449_v35  ;;  %v426_v27 = vmax.f32 %v405_v23, 0.0 }
 0x178   :  { %v389_v37 = vpop.f32.mrf.mxu1  ;;  %649 = vmatpush.bf16.msrb.mxu3 %v8195_v32  ;;  %v1228_v40 = vmax.f32 %v1198_v33, 0.0 }
 0x179   :  { %v390_v47 = vadd.f32 %v9013_v1, %v389_v37  ;;  %v8194_v37 = vld [vmem:[#allocation11 + $0x90] sm:$0xff] }
 0x17b   :  { %v420_v51 = vmax.f32 %v390_v47, 0.0 }
 0x17c   :  { %v406_v20 = vpop.f32.mrf.mxu3  ;;  %650 = vmatpush.bf16.msrb.mxu3 %v8194_v37  ;;  %v8217_v37 = vld [vmem:[#allocation11 + $0x108] sm:$0xff] }
 0x17d   :  { %v407_v24 = vadd.f32 %v9013_v1, %v406_v20  ;;  %v1199_v36 = vpop.f32.mrf.mxu0 }
 0x17e   :  { %v1200_v42 = vadd.f32 %v9021_v34, %v1199_v36 }
 0x17f   :  { %v427_v28 = vmax.f32 %v407_v24, 0.0  ;;  %v8220_v24 = vld [vmem:[#allocation11 + $0x120] sm:$0xff] }
 0x180   :  { %v391_v48 = vpop.f32.mrf.mxu1  ;;  %v1229_v43 = vmax.f32 %v1200_v42, 0.0  ;;  %651 = vmatpush.bf16.msrb.mxu3 %v8193_v44  ;;  %1456 = vmatpush.bf16.msra.mxu2 %v8220_v24  ;;  %v8216_v44 = vld [vmem:[#allocation11 + $0x100] sm:$0xff] }
 0x181   :  { %v392_v50 = vadd.f32 %v9013_v1, %v391_v48  ;;  %v453_v31 = vpack.c.bf16 %v427_v28, %v426_v27 }
 0x182   :  { %v1258_v47 = vpack.c.bf16 %v1229_v43, %v1228_v40 }
 0x183   :  { %v421_v52 = vmax.f32 %v392_v50, 0.0 }
 0x184   :  { %v409_v26 = vpop.f32.mrf.mxu3  ;;  %1336 = vmatmul.bf16.gmra.mxu1 %v1258_v47  ;;  %652 = vmatpush.bf16.msrb.mxu3 %v8192_v49 }
 0x185   :  { %v450_v54 = vpack.c.bf16 %v421_v52, %v420_v51  ;;  %v410_v38 = vadd.f32 %v9013_v1, %v409_v26  ;;  %v1202_v48 = vpop.f32.mrf.mxu0  ;;  %v8219_v26 = vld [vmem:[#allocation11 + $0x118] sm:$0xff] }
 0x186   :  { %v1203_v51 = vadd.f32 %v9021_v34, %v1202_v48  ;;  %1457 = vmatpush.bf16.msra.mxu2 %v8219_v26 }
 0x187   :  { %528 = vmatmul.bf16.gmra.mxu2 %v450_v54  ;;  %v428_v45 = vmax.f32 %v410_v38, 0.0 }
 0x188   :  { %v1322_v27 = vpop.f32.mrf.mxu1 }
 0x189   :  { %v1323_v36 = vadd.f32 %v9054_v29, %v1322_v27 }
 0x18a   :  { %1458 = vmatpush.bf16.msra.mxu2 %v8218_v30 }
 0x18b   :  { %v1362_v42 = vmax.f32 %v1323_v36, 0.0 }
 0x18c   :  { %v411_v35 = vpop.f32.mrf.mxu3 }
 0x18d   :  { %v412_v39 = vadd.f32 %v9013_v1, %v411_v35  ;;  %v1204_v52 = vpop.f32.mrf.mxu0  ;;  %v1230_v1 = vmax.f32 %v1203_v51, 0.0 }
 0x18e   :  { %v1205_v53 = vadd.f32 %v9021_v34, %v1204_v52  ;;  %1459 = vmatpush.bf16.msra.mxu2 %v8217_v37 }
 0x18f   :  { %v429_v46 = vmax.f32 %v412_v39, 0.0 }
 0x190   :  { %v1231_v54 = vmax.f32 %v1205_v53, 0.0  ;;  %v1324_v40 = vpop.f32.mrf.mxu1 }
 0x191   :  { %v454_v50 = vpack.c.bf16 %v429_v46, %v428_v45  ;;  %v1325_v43 = vadd.f32 %v9054_v29, %v1324_v40 }
 0x192   :  { %v1259_v55 = vpack.c.bf16 %v1231_v54, %v1230_v1  ;;  %1460 = vmatpush.bf16.msra.mxu2 %v8216_v44 }
 0x193   :  { %v1363_v47 = vmax.f32 %v1325_v43, 0.0 }
 0x194   :  { %1341 = vmatmul.bf16.gmra.mxu1 %v1259_v55 }
 0x195   :  { %v1207_v56 = vpop.f32.mrf.mxu0  ;;  %v1395_v48 = vpack.c.bf16 %v1363_v47, %v1362_v42 }
 0x196   :  { %v1208_v57 = vadd.f32 %v9021_v34, %v1207_v56 }
 0x197   :  { %533 = vmatmul.bf16.gmra.mxu2 %v451_v7 }
 0x198   :  { %v1232_v60 = vmax.f32 %v1208_v57, 0.0 }
 0x19d   :  { %v1209_v58 = vpop.f32.mrf.mxu0 }
 0x19e   :  { %v1210_v61 = vadd.f32 %v9021_v34, %v1209_v58 }
 0x1a0   :  { %v1233_v62 = vmax.f32 %v1210_v61, 0.0 }
 0x1a2   :  { %v1260_v0 = vpack.c.bf16 %v1233_v62, %v1232_v60 }
 0x1a4   :  { %1346 = vmatmul.bf16.gmra.mxu1 %v1260_v0 }
 0x1a5   :  { %v1212_v4 = vpop.f32.mrf.mxu0 }
 0x1a6   :  { %v1213_v8 = vadd.f32 %v9021_v34, %v1212_v4 }
 0x1a7   :  { %538 = vmatmul.bf16.gmra.mxu2 %v452_v19 }
 0x1a8   :  { %v1234_v11 = vmax.f32 %v1213_v8, 0.0 }
 0x1ad   :  { %v1214_v10 = vpop.f32.mrf.mxu0 }
 0x1ae   :  { %v1215_v12 = vadd.f32 %v9021_v34, %v1214_v10 }
 0x1b0   :  { %v1235_v14 = vmax.f32 %v1215_v12, 0.0 }
 0x1b2   :  { %v1261_v16 = vpack.c.bf16 %v1235_v14, %v1234_v11 }
 0x1b4   :  { %1351 = vmatmul.bf16.gmra.mxu1 %v1261_v16 }
 0x1b5   :  { %v1217_v38 = vpop.f32.mrf.mxu0 }
 0x1b6   :  { %v1218_v46 = vadd.f32 %v9021_v34, %v1217_v38 }
 0x1b7   :  { %543 = vmatmul.bf16.gmra.mxu2 %v453_v31 }
 0x1bd   :  { %v1219_v49 = vpop.f32.mrf.mxu0 }
 0x1be   :  { %v1220_v51 = vadd.f32 %v9021_v34, %v1219_v49 }
 0x1c0   :  { %v1237_v53 = vmax.f32 %v1220_v51, 0.0 }
 0x1c7   :  { %548 = vmatmul.bf16.gmra.mxu2 %v454_v50  ;;  %v1236_v50 = vmax.f32 %v1218_v46, 0.0 }
 0x1c9   :  { %v1262_v56 = vpack.c.bf16 %v1237_v53, %v1236_v50 }
 0x1cb   :  { %1356 = vmatmul.bf16.gmra.mxu1 %v1262_v56 }
 0x1d7   :  { %1461 = vmatmul.bf16.vlgmr.msra.gmra.mxu2 %v1395_v48 }
 0x1d8   :  { %v1327_v52 = vpop.f32.mrf.mxu1 }
 0x1d9   :  { %v1328_v58 = vadd.f32 %v9054_v29, %v1327_v52 }
 0x1da   :  { %v514_v41 = vpop.f32.mrf.mxu2 }
 0x1db   :  { %v515_v63 = vadd.f32 %v9044_v59, %v514_v41  ;;  %v1364_v62 = vmax.f32 %v1328_v58, 0.0 }
 0x1dd   :  { %v554_v5 = vmax.f32 %v515_v63, 0.0 }
 0x1e0   :  { %v1329_v61 = vpop.f32.mrf.mxu1 }
 0x1e1   :  { %v1330_v34 = vadd.f32 %v9054_v29, %v1329_v61 }
 0x1e2   :  { %v516_v2 = vpop.f32.mrf.mxu2 }
 0x1e3   :  { %v517_v3 = vadd.f32 %v9044_v59, %v516_v2  ;;  %v1365_v0 = vmax.f32 %v1330_v34, 0.0 }
 0x1e5   :  { %v555_v6 = vmax.f32 %v517_v3, 0.0  ;;  %v1396_v2 = vpack.c.bf16 %v1365_v0, %v1364_v62 }
 0x1e7   :  { %v587_v7 = vpack.c.bf16 %v555_v6, %v554_v5  ;;  %1466 = vmatmul.bf16.gmra.mxu2 %v1396_v2 }
 0x1e8   :  { %v1332_v3 = vpop.f32.mrf.mxu1 }
 0x1e9   :  { %653 = vmatmul.bf16.vlgmr.msrb.gmra.mxu3 %v587_v7 }
 0x1ea   :  { %v519_v9 = vpop.f32.mrf.mxu2 }
 0x1eb   :  { %v520_v15 = vadd.f32 %v9044_v59, %v519_v9  ;;  %v1333_v9 = vadd.f32 %v9054_v29, %v1332_v3 }
 0x1ed   :  { %v556_v20 = vmax.f32 %v520_v15, 0.0  ;;  %v1366_v12 = vmax.f32 %v1333_v9, 0.0  ;;  %v9091_v9 = vld [vmem:[#allocation13 + $0x3] ss:$0 sm:$0xff] }
 0x1f0   :  { %v1334_v11 = vpop.f32.mrf.mxu1 }
 0x1f1   :  { %v1335_v13 = vadd.f32 %v9054_v29, %v1334_v11 }
 0x1f2   :  { %v521_v18 = vpop.f32.mrf.mxu2 }
 0x1f3   :  { %v522_v19 = vadd.f32 %v9044_v59, %v521_v18  ;;  %v1367_v15 = vmax.f32 %v1335_v13, 0.0  ;;  %v8227_v13 = vld [vmem:[#allocation11 + $0x158] sm:$0xff] }
 0x1f5   :  { %v557_v21 = vmax.f32 %v522_v19, 0.0  ;;  %v1397_v16 = vpack.c.bf16 %v1367_v15, %v1366_v12 }
 0x1f7   :  { %v588_v23 = vpack.c.bf16 %v557_v21, %v556_v20  ;;  %1471 = vmatmul.bf16.gmra.mxu2 %v1397_v16  ;;  %v9097_v16 = vld [vmem:[#allocation13 + $0x8] ss:$0 sm:$0xff] }
 0x1f9   :  { %658 = vmatmul.bf16.gmra.mxu3 %v588_v23 }
 0x1fa   :  { %v524_v25 = vpop.f32.mrf.mxu2 }
 0x1fb   :  { %v525_v28 = vadd.f32 %v9044_v59, %v524_v25 }
 0x1fd   :  { %v558_v33 = vmax.f32 %v525_v28, 0.0 }
 0x201   :  { %v1337_v24 = vpop.f32.mrf.mxu1 }
 0x202   :  { %v526_v31 = vpop.f32.mrf.mxu2 }
 0x203   :  { %v527_v32 = vadd.f32 %v9044_v59, %v526_v31  ;;  %v1338_v31 = vadd.f32 %v9054_v29, %v1337_v24 }
 0x205   :  { %v559_v35 = vmax.f32 %v527_v32, 0.0 }
 0x207   :  { %v589_v39 = vpack.c.bf16 %v559_v35, %v558_v33  ;;  %v1368_v35 = vmax.f32 %v1338_v31, 0.0 }
 0x209   :  { %663 = vmatmul.bf16.gmra.mxu3 %v589_v39  ;;  %v1339_v33 = vpop.f32.mrf.mxu1 }
 0x20a   :  { %v529_v45 = vpop.f32.mrf.mxu2  ;;  %v1340_v36 = vadd.f32 %v9054_v29, %v1339_v33 }
 0x20b   :  { %v530_v1 = vadd.f32 %v9044_v59, %v529_v45 }
 0x20c   :  { %v1369_v38 = vmax.f32 %v1340_v36, 0.0 }
 0x20d   :  { %v560_v57 = vmax.f32 %v530_v1, 0.0 }
 0x20e   :  { %v1398_v39 = vpack.c.bf16 %v1369_v38, %v1368_v35 }
 0x210   :  { %1476 = vmatmul.bf16.gmra.mxu2 %v1398_v39 }
 0x211   :  { %v1342_v40 = vpop.f32.mrf.mxu1 }
 0x212   :  { %v531_v54 = vpop.f32.mrf.mxu2  ;;  %v1343_v47 = vadd.f32 %v9054_v29, %v1342_v40 }
 0x213   :  { %v532_v55 = vadd.f32 %v9044_v59, %v531_v54 }
 0x214   :  { %v1370_v50 = vmax.f32 %v1343_v47, 0.0 }
 0x215   :  { %v561_v41 = vmax.f32 %v532_v55, 0.0 }
 0x217   :  { %v590_v60 = vpack.c.bf16 %v561_v41, %v560_v57 }
 0x219   :  { %668 = vmatmul.bf16.gmra.mxu3 %v590_v60  ;;  %v1344_v49 = vpop.f32.mrf.mxu1 }
 0x21a   :  { %v534_v63 = vpop.f32.mrf.mxu2  ;;  %v1345_v51 = vadd.f32 %v9054_v29, %v1344_v49 }
 0x21b   :  { %v535_v4 = vadd.f32 %v9044_v59, %v534_v63 }
 0x21c   :  { %v1371_v52 = vmax.f32 %v1345_v51, 0.0 }
 0x21d   :  { %v562_v7 = vmax.f32 %v535_v4, 0.0 }
 0x21e   :  { %v1399_v1 = vpack.c.bf16 %v1371_v52, %v1370_v50 }
 0x220   :  { %1481 = vmatmul.bf16.gmra.mxu2 %v1399_v1 }
 0x221   :  { %v1347_v53 = vpop.f32.mrf.mxu1 }
 0x222   :  { %v536_v5 = vpop.f32.mrf.mxu2  ;;  %v1348_v54 = vadd.f32 %v9054_v29, %v1347_v53 }
 0x223   :  { %v537_v6 = vadd.f32 %v9044_v59, %v536_v5  ;;  %v8231_v5 = vld [vmem:[#allocation11 + $0x178] sm:$0xff] }
 0x224   :  { %v1372_v56 = vmax.f32 %v1348_v54, 0.0  ;;  %1593 = vmatpush.bf16.msra.mxu3 %v8231_v5 }
 0x225   :  { %v563_v8 = vmax.f32 %v537_v6, 0.0  ;;  %v8230_v6 = vld [vmem:[#allocation11 + $0x170] sm:$0xff] }
 0x227   :  { %v591_v10 = vpack.c.bf16 %v563_v8, %v562_v7  ;;  %v8229_v8 = vld [vmem:[#allocation11 + $0x168] sm:$0xff] }
 0x228   :  { %1594 = vmatpush.bf16.msra.mxu3 %v8230_v6 }
 0x229   :  { %673 = vmatmul.bf16.gmra.mxu3 %v591_v10  ;;  %v1349_v55 = vpop.f32.mrf.mxu1  ;;  %v8228_v10 = vld [vmem:[#allocation11 + $0x160] sm:$0xff] }
 0x22a   :  { %v539_v14 = vpop.f32.mrf.mxu2 }
 0x22b   :  { %v540_v17 = vadd.f32 %v9044_v59, %v539_v14 }
 0x22c   :  { %1595 = vmatpush.bf16.msra.mxu3 %v8229_v8 }
 0x22d   :  { %v564_v20 = vmax.f32 %v540_v17, 0.0  ;;  %v8226_v17 = vld [vmem:[#allocation11 + $0x150] sm:$0xff] }
 0x230   :  { %1596 = vmatpush.bf16.msra.mxu3 %v8228_v10 }
 0x231   :  { %v1352_v60 = vpop.f32.mrf.mxu1 }
 0x232   :  { %v541_v18 = vpop.f32.mrf.mxu2  ;;  %v1353_v62 = vadd.f32 %v9054_v29, %v1352_v60 }
 0x233   :  { %v542_v19 = vadd.f32 %v9044_v59, %v541_v18 }
 0x234   :  { %v1374_v63 = vmax.f32 %v1353_v62, 0.0  ;;  %1597 = vmatpush.bf16.msra.mxu3 %v8227_v13 }
 0x235   :  { %v565_v21 = vmax.f32 %v542_v19, 0.0 }
 0x237   :  { %v592_v22 = vpack.c.bf16 %v565_v21, %v564_v20  ;;  %v8225_v21 = vld [vmem:[#allocation11 + $0x148] sm:$0xff] }
 0x238   :  { %1598 = vmatpush.bf16.msra.mxu3 %v8226_v17 }
 0x239   :  { %678 = vmatmul.bf16.gmra.mxu3 %v592_v22  ;;  %v1354_v34 = vpop.f32.mrf.mxu1 }
 0x23a   :  { %v544_v23 = vpop.f32.mrf.mxu2  ;;  %v1355_v0 = vadd.f32 %v9054_v29, %v1354_v34 }
 0x23b   :  { %v545_v25 = vadd.f32 %v9044_v59, %v544_v23 }
 0x23c   :  { %v1375_v2 = vmax.f32 %v1355_v0, 0.0  ;;  %1599 = vmatpush.bf16.msra.mxu3 %v8225_v21 }
 0x23d   :  { %v566_v28 = vmax.f32 %v545_v25, 0.0 }
 0x23e   :  { %v1401_v4 = vpack.c.bf16 %v1375_v2, %v1374_v63 }
 0x242   :  { %v546_v26 = vpop.f32.mrf.mxu2 }
 0x243   :  { %v547_v27 = vadd.f32 %v9044_v59, %v546_v26 }
 0x245   :  { %v567_v30 = vmax.f32 %v547_v27, 0.0 }
 0x247   :  { %v593_v32 = vpack.c.bf16 %v567_v30, %v566_v28  ;;  %v8224_v28 = vld [vmem:[#allocation11 + $0x140] sm:$0xff] }
 0x248   :  { %v1357_v15 = vpop.f32.mrf.mxu1  ;;  %1600 = vmatpush.bf16.msra.mxu3 %v8224_v28 }
 0x249   :  { %683 = vmatmul.bf16.gmra.mxu3 %v593_v32  ;;  %v1358_v20 = vadd.f32 %v9054_v29, %v1357_v15 }
 0x24a   :  { %v549_v37 = vpop.f32.mrf.mxu2 }
 0x24b   :  { %v550_v42 = vadd.f32 %v9044_v59, %v549_v37  ;;  %v1376_v25 = vmax.f32 %v1358_v20, 0.0 }
 0x24d   :  { %v568_v45 = vmax.f32 %v550_v42, 0.0 }
 0x250   :  { %v1359_v23 = vpop.f32.mrf.mxu1 }
 0x251   :  { %v1360_v27 = vadd.f32 %v9054_v29, %v1359_v23 }
 0x252   :  { %v551_v43 = vpop.f32.mrf.mxu2 }
 0x253   :  { %v552_v44 = vadd.f32 %v9044_v59, %v551_v43  ;;  %v1350_v59 = vadd.f32 %v9054_v29, %v1349_v55  ;;  %v1377_v33 = vmax.f32 %v1360_v27, 0.0 }
 0x255   :  { %v569_v46 = vmax.f32 %v552_v44, 0.0  ;;  %v1373_v57 = vmax.f32 %v1350_v59, 0.0  ;;  %v1402_v37 = vpack.c.bf16 %v1377_v33, %v1376_v25 }
 0x257   :  { %v594_v48 = vpack.c.bf16 %v569_v46, %v568_v45  ;;  %v1400_v58 = vpack.c.bf16 %v1373_v57, %v1372_v56 }
 0x259   :  { %688 = vmatmul.bf16.gmra.mxu3 %v594_v48  ;;  %1486 = vmatmul.bf16.gmra.mxu2 %v1400_v58 }
 0x25a   :  { %v1462_v14 = vpop.f32.mrf.mxu2 }
 0x25b   :  { %v1463_v19 = vadd.f32 %v9097_v16, %v1462_v14 }
 0x25d   :  { %v1502_v24 = vmax.f32 %v1463_v19, 0.0 }
 0x262   :  { %v1464_v22 = vpop.f32.mrf.mxu2 }
 0x263   :  { %v1465_v26 = vadd.f32 %v9097_v16, %v1464_v22 }
 0x265   :  { %v1503_v32 = vmax.f32 %v1465_v26, 0.0 }
 0x267   :  { %v1535_v36 = vpack.c.bf16 %v1503_v32, %v1502_v24 }
 0x269   :  { %1491 = vmatmul.bf16.gmra.mxu2 %v1401_v4  ;;  %1601 = vmatmul.bf16.vlgmr.msra.gmra.mxu3 %v1535_v36 }
 0x26a   :  { %v1467_v38 = vpop.f32.mrf.mxu2 }
 0x26b   :  { %v1468_v42 = vadd.f32 %v9097_v16, %v1467_v38 }
 0x26c   :  { %v9081_v41 = vpop.f32.mrf.mxu3 }
 0x26d   :  { %v1504_v44 = vmax.f32 %v1468_v42, 0.0 }
 0x272   :  { %v1469_v43 = vpop.f32.mrf.mxu2 }
 0x273   :  { %v1470_v45 = vadd.f32 %v9097_v16, %v1469_v43 }
 0x274   :  { %v9083_v61 = vpop.f32.mrf.mxu3 }
 0x275   :  { %v1505_v48 = vmax.f32 %v1470_v45, 0.0 }
 0x277   :  { %v1536_v50 = vpack.c.bf16 %v1505_v48, %v1504_v44 }
 0x279   :  { %1496 = vmatmul.bf16.gmra.mxu2 %v1402_v37  ;;  %1606 = vmatmul.bf16.gmra.mxu3 %v1536_v50 }
 0x27a   :  { %v1472_v51 = vpop.f32.mrf.mxu2 }
 0x27b   :  { %v1473_v54 = vadd.f32 %v9097_v16, %v1472_v51  ;;  %v9205_v51 = vadd.f32 %v9091_v9, %v9081_v41 }
 0x27c   :  { %v9087_v3 = vpop.f32.mrf.mxu3 }
 0x27d   :  { %v1506_v56 = vmax.f32 %v1473_v54, 0.0  ;;  %v9173_v27 = vadd.f32 %v9091_v9, %v9087_v3 }
 0x27f   :  { %v744_v33 = vmul.f32 %v9173_v27, %v9173_v27 }
 0x282   :  { %v1474_v55 = vpop.f32.mrf.mxu2 }
 0x283   :  { %v1475_v59 = vadd.f32 %v9097_v16, %v1474_v55 }
 0x284   :  { %v9089_v7 = vpop.f32.mrf.mxu3 }
 0x285   :  { %v1507_v60 = vmax.f32 %v1475_v59, 0.0  ;;  %v9195_v44 = vadd.f32 %v9091_v9, %v9089_v7 }
 0x287   :  { %v1537_v34 = vpack.c.bf16 %v1507_v60, %v1506_v56 }
 0x289   :  { %1611 = vmatmul.bf16.gmra.mxu3 %v1537_v34 }
 0x28c   :  { %v664_v11 = vpop.f32.mrf.mxu3 }
 0x28d   :  { %v9094_v12 = vadd.f32 %v9091_v9, %v664_v11 }
 0x28f   :  { %702 = vadd.xlane.f32.xlu2 %v9094_v12 }
 0x293   :  { %v1477_v8 = vpop.f32.mrf.mxu2 }
 0x294   :  { %v9099_v18 = vpop.f32.mrf.mxu3  ;;  %v1478_v14 = vadd.f32 %v9097_v16, %v1477_v8 }
 0x295   :  { %v9160_v17 = vadd.f32 %v9091_v9, %v9099_v18 }
 0x296   :  { %v1508_v19 = vmax.f32 %v1478_v14, 0.0 }
 0x297   :  { %v747_v25 = vmul.f32 %v9160_v17, %v9160_v17 }
 0x29b   :  { %v1479_v15 = vpop.f32.mrf.mxu2 }
 0x29c   :  { %v669_v30 = vpop.f32.mrf.mxu3  ;;  %v1480_v20 = vadd.f32 %v9097_v16, %v1479_v15 }
 0x29d   :  { %v9106_v31 = vadd.f32 %v9091_v9, %v669_v30 }
 0x29e   :  { %v1509_v23 = vmax.f32 %v1480_v20, 0.0 }
 0x29f   :  { %706 = vadd.xlane.f32.xlu1 %v9106_v31  ;;  %v748_v35 = vmul.f32 %v9106_v31, %v9106_v31 }
 0x2a0   :  { %v1538_v26 = vpack.c.bf16 %v1509_v23, %v1508_v19 }
 0x2a1   :  { %770 = vadd.xlane.f32.xlu0 %v748_v35 }
 0x2a2   :  { %1616 = vmatmul.bf16.gmra.mxu3 %v1538_v26 }
 0x2a3   :  { %v1482_v18 = vpop.f32.mrf.mxu2 }
 0x2a4   :  { %v671_v29 = vpop.f32.mrf.mxu3  ;;  %v1483_v35 = vadd.f32 %v9097_v16, %v1482_v18 }
 0x2a5   :  { %v9112_v39 = vadd.f32 %v9091_v9, %v671_v29  ;;  %v9187_v29 = vadd.f32 %v9091_v9, %v9083_v61 }
 0x2a6   :  { %v1510_v37 = vmax.f32 %v1483_v35, 0.0 }
 0x2a7   :  { %708 = vadd.xlane.f32.xlu2 %v9112_v39  ;;  %v749_v40 = vmul.f32 %v9112_v39, %v9112_v39  ;;  %v743_v54 = vmul.f32 %v9187_v29, %v9187_v29 }
 0x2a9   :  { %772 = vadd.xlane.f32.xlu1 %v749_v40  ;;  %v746_v40 = vmul.f32 %v9094_v12, %v9094_v12 }
 0x2ab   :  { %v1484_v36 = vpop.f32.mrf.mxu2 }
 0x2ac   :  { %v674_v46 = vpop.f32.mrf.mxu3  ;;  %v1485_v3 = vadd.f32 %v9097_v16, %v1484_v36 }
 0x2ad   :  { %v9120_v47 = vadd.f32 %v9091_v9, %v674_v46 }
 0x2ae   :  { %v1511_v38 = vmax.f32 %v1485_v3, 0.0 }
 0x2af   :  { %710 = vadd.xlane.f32.xlu0 %v9120_v47  ;;  %v750_v49 = vmul.f32 %v9120_v47, %v9120_v47 }
 0x2b0   :  { %v1539_v42 = vpack.c.bf16 %v1511_v38, %v1510_v37 }
 0x2b1   :  { %774 = vadd.xlane.f32.xlu2 %v750_v49  ;;  %v745_v49 = vmul.f32 %v9195_v44, %v9195_v44 }
 0x2b2   :  { %1621 = vmatmul.bf16.gmra.mxu3 %v1539_v42 }
 0x2b4   :  { %v676_v52 = vpop.f32.mrf.mxu3 }
 0x2b5   :  { %v9126_v1 = vadd.f32 %v9091_v9, %v676_v52 }
 0x2b7   :  { %712 = vadd.xlane.f32.xlu1 %v9126_v1  ;;  %v751_v53 = vmul.f32 %v9126_v1, %v9126_v1 }
 0x2b9   :  { %776 = vadd.xlane.f32.xlu0 %v751_v53  ;;  %v742_v53 = vmul.f32 %v9205_v51, %v9205_v51 }
 0x2bc   :  { %v679_v57 = vpop.f32.mrf.mxu3 }
 0x2bd   :  { %v9134_v58 = vadd.f32 %v9091_v9, %v679_v57 }
 0x2bf   :  { %714 = vadd.xlane.f32.xlu2 %v9134_v58  ;;  %v752_v62 = vmul.f32 %v9134_v58, %v9134_v58 }
 0x2c1   :  { %778 = vadd.xlane.f32.xlu1 %v752_v62 }
 0x2c4   :  { %v681_v63 = vpop.f32.mrf.mxu3 }
 0x2c5   :  { %v9140_v0 = vadd.f32 %v9091_v9, %v681_v63 }
 0x2c7   :  { %716 = vadd.xlane.f32.xlu0 %v9140_v0  ;;  %v753_v2 = vmul.f32 %v9140_v0, %v9140_v0 }
 0x2c9   :  { %780 = vadd.xlane.f32.xlu2 %v753_v2  ;;  %v9216_v2 = vld [vmem:[#allocation13 + $0x9] ss:$0 sm:$0xff] }
 0x2cc   :  { %v684_v4 = vpop.f32.mrf.mxu3 }
 0x2cd   :  { %v9146_v5 = vadd.f32 %v9091_v9, %v684_v4 }
 0x2cf   :  { %v754_v6 = vmul.f32 %v9146_v5, %v9146_v5 }
 0x2d1   :  { %782 = vadd.xlane.f32.xlu0 %v754_v6  ;;  %718 = vadd.xlane.f32.xlu2 %v9146_v5 }
 0x2d4   :  { %v686_v10 = vpop.f32.mrf.mxu3 }
 0x2d5   :  { %v9152_v11 = vadd.f32 %v9091_v9, %v686_v10 }
 0x2d7   :  { %v755_v13 = vmul.f32 %v9152_v11, %v9152_v11 }
 0x2d9   :  { %784 = vadd.xlane.f32.xlu1 %v755_v13  ;;  %720 = vadd.xlane.f32.xlu2 %v9152_v11 }
 0x2dc   :  { %v689_v21 = vpop.f32.mrf.mxu3  ;;  %v1487_v43 = vpop.f32.mrf.mxu2 }
 0x2dd   :  { %v9164_v22 = vadd.f32 %v9091_v9, %v689_v21  ;;  %v1488_v61 = vadd.f32 %v9097_v16, %v1487_v43 }
 0x2df   :  { %722 = vadd.xlane.f32.xlu0 %v9164_v22  ;;  %v756_v24 = vmul.f32 %v9164_v22, %v9164_v22  ;;  %v1512_v46 = vmax.f32 %v1488_v61, 0.0 }
 0x2e1   :  { %786 = vadd.xlane.f32.xlu1 %v756_v24  ;;  %768 = vadd.xlane.f32.xlu2 %v747_v25 }
 0x2e4   :  { %v691_v28 = vpop.f32.mrf.mxu3  ;;  %v1489_v45 = vpop.f32.mrf.mxu2 }
 0x2e5   :  { %v9176_v30 = vadd.f32 %v9091_v9, %v691_v28  ;;  %v1490_v48 = vadd.f32 %v9097_v16, %v1489_v45 }
 0x2e7   :  { %724 = vadd.xlane.f32.xlu0 %v9176_v30  ;;  %v757_v32 = vmul.f32 %v9176_v30, %v9176_v30  ;;  %v1513_v50 = vmax.f32 %v1490_v48, 0.0 }
 0x2e9   :  { %788 = vadd.xlane.f32.xlu1 %v757_v32  ;;  %762 = vadd.xlane.f32.xlu2 %v744_v33  ;;  %v1540_v7 = vpack.c.bf16 %v1513_v50, %v1512_v46 }
 0x2eb   :  { %1626 = vmatmul.bf16.gmra.mxu3 %v1540_v7 }
 0x2ec   :  { %v1492_v52 = vpop.f32.mrf.mxu2  ;;  %v1602_v4 = vpop.f32.mrf.mxu3 }
 0x2ed   :  { %v1493_v56 = vadd.f32 %v9097_v16, %v1492_v52  ;;  %v9219_v8 = vadd.f32 %v9216_v2, %v1602_v4 }
 0x2ef   :  { %704 = vadd.xlane.f32.xlu0 %v9160_v17  ;;  %v1514_v9 = vmax.f32 %v1493_v56, 0.0  ;;  %v1690_v26 = vmul.f32 %v9219_v8, %v9219_v8 }
 0x2f1   :  { %766 = vadd.xlane.f32.xlu1 %v746_v40  ;;  %696 = vadd.xlane.f32.xlu2 %v9187_v29 }
 0x2f4   :  { %v1494_v55 = vpop.f32.mrf.mxu2  ;;  %v1604_v19 = vpop.f32.mrf.mxu3 }
 0x2f5   :  { %v1495_v41 = vadd.f32 %v9097_v16, %v1494_v55  ;;  %v9228_v24 = vadd.f32 %v9216_v2, %v1604_v19 }
 0x2f7   :  { %698 = vadd.xlane.f32.xlu0 %v9173_v27  ;;  %v1515_v59 = vmax.f32 %v1495_v41, 0.0  ;;  %v1691_v36 = vmul.f32 %v9228_v24, %v9228_v24 }
 0x2f9   :  { %700 = vadd.xlane.f32.xlu1 %v9195_v44  ;;  %v1541_v57 = vpack.c.bf16 %v1515_v59, %v1514_v9  ;;  %1642 = vadd.xlane.f32.xlu2 %v9219_v8 }
 0x2fb   :  { %1631 = vmatmul.bf16.gmra.mxu3 %v1541_v57 }
 0x2fc   :  { %v1497_v6 = vpop.f32.mrf.mxu2  ;;  %v1607_v45 = vpop.f32.mrf.mxu3 }
 0x2fd   :  { %v1498_v21 = vadd.f32 %v9097_v16, %v1497_v6  ;;  %v9247_v50 = vadd.f32 %v9216_v2, %v1607_v45 }
 0x2ff   :  { %764 = vadd.xlane.f32.xlu0 %v745_v49  ;;  %v1516_v18 = vmax.f32 %v1498_v21, 0.0 }
 0x301   :  { %694 = vadd.xlane.f32.xlu1 %v9205_v51  ;;  %1708 = vadd.xlane.f32.xlu2 %v1691_v36 }
 0x302   :  { %v9214_v60 = vpop.xlane.xlu2 %702 }
 0x304   :  { %v1499_v23 = vpop.f32.mrf.mxu2 }
 0x305   :  { %v1500_v25 = vadd.f32 %v9097_v16, %v1499_v23 }
 0x307   :  { %758 = vadd.xlane.f32.xlu0 %v742_v53  ;;  %v1517_v35 = vmax.f32 %v1500_v25, 0.0 }
 0x309   :  { %760 = vadd.xlane.f32.xlu1 %v743_v54  ;;  %v1542_v40 = vpack.c.bf16 %v1517_v35, %v1516_v18 }
 0x30b   :  { %1636 = vmatmul.bf16.gmra.mxu3 %v1542_v40 }
 0x30f   :  { %1644 = vadd.xlane.f32.xlu0 %v9228_v24 }
 0x311   :  { %1706 = vadd.xlane.f32.xlu1 %v1690_v26 }
 0x312   :  { %v707_v62 = vpop.xlane.xlu1 %706 }
 0x313   :  { %v9238_v37 = vmul.f32 0.03125, %v707_v62  ;;  %v1609_v62 = vpop.f32.mrf.mxu3 }
 0x314   :  { %v771_v34 = vpop.xlane.xlu0 %770 }
 0x315   :  { %v828_v46 = vmul.f32 %v9238_v37, %v9238_v37  ;;  %v796_v48 = vmul.f32 0.03125, %v771_v34  ;;  %v9263_v34 = vadd.f32 %v9216_v2, %v1609_v62 }
 0x317   :  { %1646 = vadd.xlane.f32.xlu0 %v9247_v50  ;;  %v844_v54 = vsub.f32 %v796_v48, %v828_v46  ;;  %v1693_v19 = vmul.f32 %v9263_v34, %v9263_v34 }
 0x319   :  { %v9259_v57 = vadd.f32 1e-05, %v844_v54  ;;  %1648 = vadd.xlane.f32.xlu1 %v9263_v34 }
 0x31a   :  { %v709_v63 = vpop.xlane.xlu2 %708 }
 0x31b   :  { %v9222_v14 = vmul.f32 0.03125, %v709_v63  ;;  %vm936_vm2 = vweird.f32 %v9259_v57 }
 0x31c   :  { %v773_v10 = vpop.xlane.xlu1 %772 }
 0x31d   :  { %v829_v28 = vmul.f32 %v9222_v14, %v9222_v14  ;;  %v797_v32 = vmul.f32 0.03125, %v773_v10 }
 0x31f   :  { %v845_v43 = vsub.f32 %v797_v32, %v829_v28  ;;  %1712 = vadd.xlane.f32.xlu0 %v1693_v19 }
 0x321   :  { %v9251_v53 = vadd.f32 1e-05, %v845_v43 }
 0x322   :  { %v711_v13 = vpop.xlane.xlu0 %710 }
 0x323   :  { %v9224_v20 = vmul.f32 0.03125, %v711_v13  ;;  %8485 = vrsqrt.f32 %v9251_v53  ;;  %vm946_vm3 = vweird.f32 %v9251_v53 }
 0x324   :  { %v775_v15 = vpop.xlane.xlu2 %774 }
 0x325   :  { %v830_v16 = vmul.f32 %v9224_v20, %v9224_v20  ;;  %v798_v3 = vmul.f32 0.03125, %v775_v15  ;;  %v1692_v15 = vmul.f32 %v9247_v50, %v9247_v50 }
 0x327   :  { %v846_v49 = vsub.f32 %v798_v3, %v830_v16  ;;  %1710 = vadd.xlane.f32.xlu2 %v1692_v15 }
 0x329   :  { %v9254_v55 = vadd.f32 1e-05, %v846_v49  ;;  %v9277_v21 = vpop.eup %8485 }
 0x32a   :  { %v713_v33 = vpop.xlane.xlu1 %712  ;;  %v941_v35 = vmul.f32 %v9277_v21, %v9251_v53  ;;  %vm947_vm0 = vweird.f32 %v9277_v21 }
 0x32b   :  { %v9242_v42 = vmul.f32 0.03125, %v713_v33  ;;  %8487 = vrsqrt.f32 %v9254_v55  ;;  %v1612_v33 = vpop.f32.mrf.mxu3  ;;  %vm9357_vm4 = vmor %vm946_vm3, %vm947_vm0  ;;  %vm956_vm5 = vweird.f32 %v9254_v55 }
 0x32c   :  { %v777_v38 = vpop.xlane.xlu0 %776  ;;  %8489 = vrsqrt.f32 %v9259_v57  ;;  %v942_v49 = vmul.f32 %v9277_v21, %v941_v35 }
 0x32d   :  { %v831_v7 = vmul.f32 %v9242_v42, %v9242_v42  ;;  %v799_v52 = vmul.f32 0.03125, %v777_v38 }
 0x32f   :  { %v847_v41 = vsub.f32 %v799_v52, %v831_v7 }
 0x331   :  { %v9265_v63 = vadd.f32 1e-05, %v847_v41  ;;  %v9279_v23 = vpop.eup %8487 }
 0x332   :  { %v715_v61 = vpop.xlane.xlu2 %714  ;;  %v951_v36 = vmul.f32 %v9279_v23, %v9254_v55  ;;  %v9290_v3 = vpop.eup %8489  ;;  %vm957_vm1 = vweird.f32 %v9279_v23 }
 0x333   :  { %v9267_v4 = vmul.f32 0.03125, %v715_v61  ;;  %8491 = vrsqrt.f32 %v9265_v63  ;;  %v9297_v61 = vadd.f32 %v9216_v2, %v1612_v33  ;;  %v931_v48 = vmul.f32 %v9290_v3, %v9259_v57  ;;  %vm9367_vm7 = vmor %vm956_vm5, %vm957_vm1 }
 0x334   :  { %v779_v6 = vpop.xlane.xlu1 %778  ;;  %v952_v7 = vmul.f32 %v9279_v23, %v951_v36  ;;  %vm937_vm6 = vweird.f32 %v9290_v3  ;;  %vm966_vm10 = vweird.f32 %v9265_v63 }
 0x335   :  { %v832_v25 = vmul.f32 %v9267_v4, %v9267_v4  ;;  %v800_v26 = vmul.f32 0.03125, %v779_v6  ;;  %1650 = vadd.xlane.f32.xlu1 %v9297_v61  ;;  %v1614_v6 = vpop.f32.mrf.mxu3  ;;  %v1694_v33 = vmul.f32 %v9297_v61, %v9297_v61  ;;  %vm9394_vm9 = vmor %vm936_vm2, %vm937_vm6 }
 0x336   :  { %v953_v15 = vmul.f32 0.5, %v952_v7  ;;  %v9315_v19 = vadd.f32 %v9216_v2, %v1614_v6 }
 0x337   :  { %v848_v38 = vsub.f32 %v800_v26, %v832_v25  ;;  %1714 = vadd.xlane.f32.xlu0 %v1694_v33 }
 0x338   :  { %1652 = vadd.xlane.f32.xlu2 %v9315_v19 }
 0x339   :  { %v9299_v46 = vpop.eup %8491  ;;  %v9306_v52 = vadd.f32 1e-05, %v848_v38 }
 0x33a   :  { %v717_v56 = vpop.xlane.xlu0 %716  ;;  %vm967_vm8 = vweird.f32 %v9299_v46 }
 0x33b   :  { %v9257_v9 = vmul.f32 0.03125, %v717_v56  ;;  %vm9414_vm11 = vmor %vm966_vm10, %vm967_vm8  ;;  %vm976_vm12 = vweird.f32 %v9306_v52 }
 0x33c   :  { %v781_v59 = vpop.xlane.xlu2 %780 }
 0x33d   :  { %v833_v10 = vmul.f32 %v9257_v9, %v9257_v9  ;;  %v801_v13 = vmul.f32 0.03125, %v781_v59  ;;  %v961_v59 = vmul.f32 %v9299_v46, %v9265_v63 }
 0x33f   :  { %v849_v18 = vsub.f32 %v801_v13, %v833_v10  ;;  %v932_v10 = vmul.f32 %v9290_v3, %v931_v48  ;;  %v943_v13 = vmul.f32 0.5, %v942_v49  ;;  %v962_v35 = vmul.f32 %v9299_v46, %v961_v59 }
 0x340   :  { %v954_v48 = vsub.f32 1.5, %v953_v15  ;;  %v9344_v15 = vmul.f32 0.03125, %v9214_v60  ;;  %v813_v60 = vsub.f32 %v9112_v39, %v9222_v14 }
 0x341   :  { %v9294_v43 = vadd.f32 1e-05, %v849_v18  ;;  %v933_v38 = vmul.f32 0.5, %v932_v10 }
 0x343   :  { %8493 = vrsqrt.f32 %v9294_v43  ;;  %v934_v10 = vsub.f32 1.5, %v933_v38  ;;  %vm986_vm15 = vweird.f32 %v9294_v43 }
 0x344   :  { %v719_v28 = vpop.xlane.xlu2 %718  ;;  %v783_v16 = vpop.xlane.xlu0 %782  ;;  %8495 = vrsqrt.f32 %v9306_v52 }
 0x345   :  { %v9284_v32 = vmul.f32 0.03125, %v719_v28  ;;  %v802_v45 = vmul.f32 0.03125, %v783_v16  ;;  %v1695_v28 = vmul.f32 %v9315_v19, %v9315_v19  ;;  %v935_v53 = vmul.f32 %v9290_v3, %v934_v10 }
 0x347   :  { %v834_v40 = vmul.f32 %v9284_v32, %v9284_v32  ;;  %1716 = vadd.xlane.f32.xlu1 %v1695_v28 }
 0x349   :  { %v850_v54 = vsub.f32 %v802_v45, %v834_v40  ;;  %v9328_v16 = vpop.eup %8493  ;;  %v944_v40 = vsub.f32 1.5, %v943_v13 }
 0x34a   :  { %v981_v59 = vmul.f32 %v9328_v16, %v9294_v43  ;;  %vm987_vm13 = vweird.f32 %v9328_v16 }
 0x34b   :  { %v9318_v25 = vadd.f32 1e-05, %v850_v54  ;;  %vm9460_vm0 = vmor %vm986_vm15, %vm987_vm13 }
 0x34c   :  { %v785_v56 = vpop.xlane.xlu1 %784  ;;  %v721_v41 = vpop.xlane.xlu2 %720 }
 0x34d   :  { %v9311_v62 = vmul.f32 0.03125, %v721_v41  ;;  %v803_v26 = vmul.f32 0.03125, %v785_v56  ;;  %8497 = vrsqrt.f32 %v9318_v25  ;;  %v9335_v56 = vpop.eup %8495  ;;  %v963_v41 = vmul.f32 0.5, %v962_v35 }
 0x34e   :  { %v971_v28 = vmul.f32 %v9335_v56, %v9306_v52  ;;  %vm977_vm14 = vweird.f32 %v9335_v56  ;;  %vm996_vm8 = vweird.f32 %v9318_v25 }
 0x34f   :  { %v835_v18 = vmul.f32 %v9311_v62, %v9311_v62  ;;  %v964_v38 = vsub.f32 1.5, %v963_v41 }
 0x351   :  { %v851_v36 = vsub.f32 %v803_v26, %v835_v18  ;;  %v945_v26 = vmul.f32 %v9277_v21, %v944_v40  ;;  %v955_v18 = vmul.f32 %v9279_v23, %v954_v48  ;;  %v982_v40 = vmul.f32 %v9328_v16, %v981_v59 }
 0x352   :  { %v723_v45 = vpop.xlane.xlu0 %722 }
 0x353   :  { %v9331_v49 = vadd.f32 1e-05, %v851_v36  ;;  %v9333_v7 = vmul.f32 0.03125, %v723_v45  ;;  %v9353_v35 = vpop.eup %8497  ;;  %v814_v45 = vsub.f32 %v9120_v47, %v9224_v20  ;;  %v949_v55 = vsel %vm9357_vm4, %v9277_v21, %v945_v26  ;;  %vm9490_vm4 = vmor %vm976_vm12, %vm977_vm14 }
 0x354   :  { %v787_v54 = vpop.xlane.xlu1 %786  ;;  %v959_v41 = vsel %vm9367_vm7, %v9279_v23, %v955_v18  ;;  %v972_v20 = vmul.f32 %v9335_v56, %v971_v28  ;;  %v991_v59 = vmul.f32 %v9353_v35, %v9318_v25  ;;  %v965_v23 = vmul.f32 %v9299_v46, %v964_v38 }
 0x355   :  { %8499 = vrsqrt.f32 %v9331_v49  ;;  %v836_v6 = vmul.f32 %v9333_v7, %v9333_v7  ;;  %v804_v13 = vmul.f32 0.03125, %v787_v54  ;;  %v810_v28 = vsub.f32 %v9094_v12, %v9344_v15 }
 0x356   :  { %v1037_v36 = vmul.f32 %v949_v55, %v813_v60  ;;  %v826_v38 = vmul.f32 %v9344_v15, %v9344_v15  ;;  %v9418_v60 = vld [vmem:[#allocation13 + $0x4] ss:$0 sm:$0xff]  ;;  %v992_v63 = vmul.f32 %v9353_v35, %v991_v59  ;;  %v969_v55 = vsel %vm9414_vm11, %v9299_v46, %v965_v23 }
 0x357   :  { %v852_v33 = vsub.f32 %v804_v13, %v836_v6  ;;  %v983_v13 = vmul.f32 0.5, %v982_v40  ;;  %v812_v40 = vsub.f32 %v9106_v31, %v9238_v37  ;;  %vm997_vm1 = vweird.f32 %v9353_v35 }
 0x358   :  { %vm1006_vm6 = vweird.f32 %v9331_v49  ;;  %vm9522_vm10 = vmor %vm996_vm8, %vm997_vm1  ;;  %v819_v25 = vsub.f32 %v9152_v11, %v9311_v62 }
 0x359   :  { %v9371_v39 = vadd.f32 1e-05, %v852_v33  ;;  %v939_v33 = vsel %vm9394_vm9, %v9290_v3, %v935_v53  ;;  %v973_v3 = vmul.f32 0.5, %v972_v20  ;;  %v769_v53 = vpop.xlane.xlu2 %768  ;;  %v984_v31 = vsub.f32 1.5, %v983_v13 }
 0x35a   :  { %v725_v14 = vpop.xlane.xlu0 %724  ;;  %v816_v20 = vsub.f32 %v9134_v58, %v9267_v4  ;;  %v9434_v21 = vmul.f32 %v939_v33, %v812_v40  ;;  %v9455_v40 = vpop.f32.mrf.mxu3 }
 0x35b   :  { %v9373_v54 = vpop.eup %8499  ;;  %v9382_v47 = vmul.f32 0.03125, %v725_v14  ;;  %8501 = vrsqrt.f32 %v9371_v39  ;;  %v1038_v14 = vmul.f32 %v959_v41, %v814_v45  ;;  %v815_v45 = vsub.f32 %v9126_v1, %v9242_v42 }
 0x35c   :  { %v1001_v6 = vmul.f32 %v9373_v54, %v9331_v49  ;;  %v789_v10 = vpop.xlane.xlu1 %788  ;;  %v9437_v1 = vmul.f32 %v9418_v60, %v1037_v36  ;;  %v974_v13 = vsub.f32 1.5, %v973_v3  ;;  %v985_v33 = vmul.f32 %v9328_v16, %v984_v31 }
 0x35d   :  { %v837_v26 = vmul.f32 %v9382_v47, %v9382_v47  ;;  %v805_v18 = vmul.f32 0.03125, %v789_v10  ;;  %v9444_v23 = vmul.f32 %v9418_v60, %v1038_v14  ;;  %v818_v10 = vsub.f32 %v9146_v5, %v9284_v32 }
 0x35e   :  { %v1002_v57 = vmul.f32 %v9373_v54, %v1001_v6  ;;  %v817_v6 = vsub.f32 %v9140_v0, %v9257_v9  ;;  %v989_v5 = vsel %vm9460_vm0, %v9328_v16, %v985_v33  ;;  %vm1007_vm2 = vweird.f32 %v9373_v54 }
 0x35f   :  { %v853_v48 = vsub.f32 %v805_v18, %v837_v26  ;;  %v993_v26 = vmul.f32 0.5, %v992_v63  ;;  %v1039_v18 = vmul.f32 %v969_v55, %v815_v45  ;;  %v975_v55 = vmul.f32 %v9335_v56, %v974_v13  ;;  %vm9513_vm9 = vmor %vm1006_vm6, %vm1007_vm2 }
 0x360   :  { %v1003_v42 = vmul.f32 0.5, %v1002_v57  ;;  %vm1016_vm5 = vweird.f32 %v9371_v39  ;;  %v1054_v12 = vmul.f32 %v9418_v60, %v9434_v21 }
 0x361   :  { %v9426_v37 = vadd.f32 1e-05, %v853_v48  ;;  %v9428_v41 = vpop.eup %8501  ;;  %v795_v48 = vmul.f32 0.03125, %v769_v53  ;;  %v9465_v53 = vmul.f32 %v9418_v60, %v1039_v18  ;;  %v763_v13 = vpop.xlane.xlu2 %762 }
 0x362   :  { %v705_v59 = vpop.xlane.xlu0 %704  ;;  %v1011_v46 = vmul.f32 %v9428_v41, %v9371_v39  ;;  %v1004_v3 = vsub.f32 1.5, %v1003_v42  ;;  %vm1017_vm3 = vweird.f32 %v9428_v41  ;;  %v792_v52 = vmul.f32 0.03125, %v763_v13 }
 0x363   :  { %8503 = vrsqrt.f32 %v9426_v37  ;;  %v9446_v0 = vmul.f32 0.03125, %v705_v59  ;;  %v994_v59 = vsub.f32 1.5, %v993_v26  ;;  %vm9501_vm7 = vmor %vm1016_vm5, %vm1017_vm3  ;;  %v979_v39 = vsel %vm9490_vm4, %v9335_v56, %v975_v55 }
 0x364   :  { %v767_v9 = vpop.xlane.xlu1 %766  ;;  %v1012_v36 = vmul.f32 %v9428_v41, %v1011_v46  ;;  %v1005_v18 = vmul.f32 %v9373_v54, %v1004_v3  ;;  %v820_v55 = vsub.f32 %v9164_v22, %v9333_v7  ;;  %v1040_v22 = vmul.f32 %v979_v39, %v816_v20  ;;  %v9571_v39 = vld [vmem:[#allocation13 + $0x5] ss:$0 sm:$0xff] }
 0x365   :  { %v794_v57 = vmul.f32 0.03125, %v767_v9  ;;  %v827_v14 = vmul.f32 %v9446_v0, %v9446_v0  ;;  %vm1026_vm12 = vweird.f32 %v9426_v37  ;;  %v9568_v3 = vadd.f32 %v9216_v2, %v9455_v40 }
 0x366   :  { %v1013_v63 = vmul.f32 0.5, %v1012_v36  ;;  %v1009_v56 = vsel %vm9513_vm9, %v9373_v54, %v1005_v18 }
 0x367   :  { %v842_v45 = vsub.f32 %v794_v57, %v826_v38  ;;  %v843_v43 = vsub.f32 %v795_v48, %v827_v14  ;;  %v995_v57 = vmul.f32 %v9353_v35, %v994_v59  ;;  %1654 = vadd.xlane.f32.xlu2 %v9568_v3 }
 0x368   :  { %v1014_v32 = vsub.f32 1.5, %v1013_v63 }
 0x369   :  { %v9467_v46 = vpop.eup %8503  ;;  %v9473_v38 = vadd.f32 1e-05, %v842_v45  ;;  %v9479_v26 = vadd.f32 1e-05, %v843_v43  ;;  %v1041_v45 = vmul.f32 %v989_v5, %v817_v6  ;;  %v1619_v5 = vpop.f32.mrf.mxu3 }
 0x36a   :  { %v1021_v42 = vmul.f32 %v9467_v46, %v9426_v37  ;;  %v699_v9 = vpop.xlane.xlu0 %698  ;;  %v1015_v16 = vmul.f32 %v9428_v41, %v1014_v32  ;;  %vm1027_vm11 = vweird.f32 %v9467_v46  ;;  %v9574_v49 = vadd.f32 %v9216_v2, %v1619_v5 }
 0x36b   :  { %8505 = vrsqrt.f32 %v9473_v38  ;;  %v9484_v33 = vmul.f32 0.03125, %v699_v9  ;;  %v1059_v7 = vmul.f32 %v9418_v60, %v1041_v45  ;;  %v1043_v9 = vmul.f32 %v1009_v56, %v819_v25  ;;  %vm1028_vm13 = vmor %vm1026_vm12, %vm1027_vm11 }
 0x36c   :  { %v1022_v48 = vmul.f32 %v9467_v46, %v1021_v42  ;;  %8507 = vrsqrt.f32 %v9479_v26  ;;  %v701_v14 = vpop.xlane.xlu1 %700  ;;  %v1019_v31 = vsel %vm9501_vm7, %v9428_v41, %v1015_v16  ;;  %v999_v41 = vsel %vm9522_vm10, %v9353_v35, %v995_v57  ;;  %1656 = vadd.xlane.f32.xlu0 %v9574_v49 }
 0x36d   :  { %v824_v63 = vmul.f32 %v9484_v33, %v9484_v33  ;;  %v9537_v42 = vmul.f32 0.03125, %v701_v14  ;;  %v1044_v11 = vmul.f32 %v1019_v31, %v820_v55  ;;  %v1042_v36 = vmul.f32 %v999_v41, %v818_v10 }
 0x36e   :  { %v1023_v59 = vmul.f32 0.5, %v1022_v48  ;;  %v821_v57 = vsub.f32 %v9176_v30, %v9382_v47  ;;  %v1058_v25 = vmul.f32 %v9418_v60, %v1040_v22  ;;  %v9585_v41 = vadd.f32 %v9571_v39, %v1059_v7 }
 0x36f   :  { %v840_v43 = vsub.f32 %v792_v52, %v824_v63  ;;  %v825_v20 = vmul.f32 %v9537_v42, %v9537_v42  ;;  %v1062_v47 = vmul.f32 %v9418_v60, %v1044_v11  ;;  %v1061_v52 = vmul.f32 %v9418_v60, %v1043_v9 }
 0x370   :  { %v1024_v32 = vsub.f32 1.5, %v1023_v59  ;;  %v1060_v40 = vmul.f32 %v9418_v60, %v1042_v36  ;;  %12521 = vst [vmem:[#allocation20_spill] sm:$0xff] %v9585_v41  ;;  %vm916_vm0 = vweird.f32 %v9473_v38  ;;  %vm926_vm1 = vweird.f32 %v9479_v26 }
 0x371   :  { %v9539_v13 = vpop.eup %8505  ;;  %v9541_v62 = vadd.f32 1e-05, %v840_v43  ;;  %v1622_v56 = vpop.f32.mrf.mxu3  ;;  %v9593_v22 = vadd.f32 %v9571_v39, %v1062_v47 }
 0x372   :  { %v9547_v54 = vpop.eup %8507  ;;  %v1025_v35 = vmul.f32 %v9467_v46, %v1024_v32  ;;  %v911_v18 = vmul.f32 %v9539_v13, %v9473_v38  ;;  %v765_v16 = vpop.xlane.xlu0 %764  ;;  %vm917_vm14 = vweird.f32 %v9539_v13  ;;  %v9630_v38 = vadd.f32 %v9216_v2, %v1622_v56 }
 0x373   :  { %v921_v58 = vmul.f32 %v9547_v54, %v9479_v26  ;;  %8509 = vrsqrt.f32 %v9541_v62  ;;  %v793_v48 = vmul.f32 0.03125, %v765_v16  ;;  %12522 = vst [vmem:[#allocation21_spill] sm:$0xff] %v9593_v22  ;;  %vm927_vm15 = vweird.f32 %v9547_v54  ;;  %vm9622_vm2 = vmor %vm916_vm0, %vm917_vm14 }
 0x374   :  { %v1029_v4 = vsel %vm1028_vm13, %v9467_v46, %v1025_v35  ;;  %v912_v37 = vmul.f32 %v9539_v13, %v911_v18  ;;  %v695_v10 = vpop.xlane.xlu1 %694  ;;  %v697_v46 = vpop.xlane.xlu2 %696  ;;  %v9603_v18 = vadd.f32 %v9571_v39, %v1061_v52  ;;  %vm9632_vm3 = vmor %vm926_vm1, %vm927_vm15  ;;  %1658 = vadd.xlane.f32.xlu0 %v9630_v38  ;;  %vm896_vm5 = vweird.f32 %v9541_v62 }
 0x375   :  { %v1045_v14 = vmul.f32 %v1029_v4, %v821_v57  ;;  %v922_v30 = vmul.f32 %v9547_v54, %v921_v58  ;;  %v841_v45 = vsub.f32 %v793_v48, %v825_v20  ;;  %v9576_v59 = vmul.f32 0.03125, %v695_v10 }
 0x376   :  { %v913_v63 = vmul.f32 0.5, %v912_v37  ;;  %v9590_v11 = vmul.f32 0.03125, %v697_v46  ;;  %12524 = vst [vmem:[#allocation23_spill] sm:$0xff] %v9603_v18  ;;  %v9614_v48 = vadd.f32 %v9571_v39, %v1060_v40  ;;  %v809_v46 = vsub.f32 %v9195_v44, %v9537_v42 }
 0x377   :  { %v923_v31 = vmul.f32 0.5, %v922_v30  ;;  %v1063_v6 = vmul.f32 %v9418_v60, %v1045_v14  ;;  %v9582_v43 = vadd.f32 1e-05, %v841_v45  ;;  %v822_v36 = vmul.f32 %v9576_v59, %v9576_v59 }
 0x378   :  { %v914_v55 = vsub.f32 1.5, %v913_v63  ;;  %12525 = vst [vmem:[#allocation24_spill] sm:$0xff] %v9614_v48  ;;  %v823_v10 = vmul.f32 %v9590_v11, %v9590_v11  ;;  %v9627_v63 = vadd.f32 %v9571_v39, %v1058_v25 }
 0x379   :  { %v9588_v5 = vpop.eup %8509  ;;  %v924_v32 = vsub.f32 1.5, %v923_v31  ;;  %v9596_v9 = vadd.f32 %v9571_v39, %v1063_v6  ;;  %8511 = vrsqrt.f32 %v9582_v43  ;;  %v2084_v6 = vpack.c.bf16 %v9603_v18, %v9614_v48  ;;  %v1624_v40 = vpop.f32.mrf.mxu3 }
 0x37a   :  { %v891_v35 = vmul.f32 %v9588_v5, %v9541_v62  ;;  %v759_v7 = vpop.xlane.xlu0 %758  ;;  %v915_v16 = vmul.f32 %v9539_v13, %v914_v55  ;;  %12528 = vst [vmem:[#allocation25_spill] sm:$0xff] %v9627_v63  ;;  %vm897_vm4 = vweird.f32 %v9588_v5  ;;  %v9676_v62 = vadd.f32 %v9571_v39, %v9444_v23 }
 0x37b   :  { %12523 = vst [vmem:[#allocation22_spill] sm:$0xff] %v9596_v9  ;;  %v790_v57 = vmul.f32 0.03125, %v759_v7  ;;  %v2085_v58 = vpack.c.bf16 %v9596_v9, %v9593_v22  ;;  %v925_v4 = vmul.f32 %v9547_v54, %v924_v32  ;;  %v2083_v32 = vpack.c.bf16 %v9585_v41, %v9627_v63  ;;  %vm9669_vm6 = vmor %vm896_vm5, %vm897_vm4  ;;  %v8677_v41 = vld [vmem:[#allocation13 + $0x9] ss:$0 sm:$0xff] }
 0x37c   :  { %v892_v37 = vmul.f32 %v9588_v5, %v891_v35  ;;  %v761_v20 = vpop.xlane.xlu1 %760  ;;  %v919_v26 = vsel %vm9622_vm2, %v9539_v13, %v915_v16  ;;  %v9650_v35 = vadd.f32 %v9571_v39, %v9465_v53  ;;  %v811_v13 = vsub.f32 %v9160_v17, %v9446_v0  ;;  %12534 = vst [vmem:[#allocation27_spill] sm:$0xff] %v9676_v62 }
 0x37d   :  { %v838_v14 = vsub.f32 %v790_v57, %v822_v36  ;;  %v791_v30 = vmul.f32 0.03125, %v761_v20  ;;  %2182 = vmatpush.bf16.msra.mxu0 %v2085_v58  ;;  %v929_v56 = vsel %vm9632_vm3, %v9547_v54, %v925_v4  ;;  %v1034_v53 = vmul.f32 %v919_v26, %v810_v28 }
 0x37e   :  { %v893_v52 = vmul.f32 0.5, %v892_v37  ;;  %12531 = vst [vmem:[#allocation26_spill] sm:$0xff] %v9650_v35  ;;  %v1035_v36 = vmul.f32 %v929_v56, %v811_v13  ;;  %v1697_v17 = vmul.f32 %v9574_v49, %v9574_v49  ;;  %v1696_v0 = vmul.f32 %v9568_v3, %v9568_v3 }
 0x37f   :  { %v9639_v45 = vadd.f32 1e-05, %v838_v14  ;;  %v839_v31 = vsub.f32 %v791_v30, %v823_v10  ;;  %v8512_v25 = vpop.eup %8511  ;;  %v808_v4 = vsub.f32 %v9173_v27, %v9484_v33  ;;  %v2082_v37 = vpack.c.bf16 %v9650_v35, %v9676_v62  ;;  %v8259_v35 = vld [vmem:[#allocation10 + $0x98] sm:$0xff] }
 0x380   :  { %v894_v55 = vsub.f32 1.5, %v893_v52  ;;  %v901_v7 = vmul.f32 %v8512_v25, %v9582_v43  ;;  %1720 = vadd.xlane.f32.xlu2 %v1697_v17  ;;  %v9689_v23 = vadd.f32 %v9571_v39, %v9437_v1  ;;  %1718 = vadd.xlane.f32.xlu1 %v1696_v0  ;;  %v1053_v21 = vmul.f32 %v9418_v60, %v1035_v36 }
 0x381   :  { %8513 = vrsqrt.f32 %v9639_v45  ;;  %2183 = vmatpush.bf16.msra.mxu0 %v2084_v6  ;;  %v9660_v16 = vadd.f32 1e-05, %v839_v31  ;;  %vm907_vm7 = vweird.f32 %v8512_v25  ;;  %v1627_v14 = vpop.f32.mrf.mxu3  ;;  %v9695_v27 = vadd.f32 %v9571_v39, %v1054_v12 }
 0x382   :  { %v895_v54 = vmul.f32 %v9588_v5, %v894_v55  ;;  %v902_v57 = vmul.f32 %v8512_v25, %v901_v7  ;;  %12535 = vst [vmem:[#allocation28_spill] sm:$0xff] %v9689_v23  ;;  %vm906_vm8 = vweird.f32 %v9582_v43  ;;  %v1698_v1 = vmul.f32 %v9630_v38, %v9630_v38 }
 0x383   :  { %8515 = vrsqrt.f32 %v9660_v16  ;;  %12536 = vst [vmem:[#allocation29_spill] sm:$0xff] %v9695_v27  ;;  %vm908_vm9 = vmor %vm906_vm8, %vm907_vm7  ;;  %v2081_v31 = vpack.c.bf16 %v9689_v23, %v9695_v27  ;;  %v9705_v6 = vadd.f32 %v9216_v2, %v1624_v40  ;;  %vm876_vm11 = vweird.f32 %v9639_v45 }
 0x384   :  { %v899_v15 = vsel %vm9669_vm6, %v9588_v5, %v895_v54  ;;  %v903_v28 = vmul.f32 0.5, %v902_v57  ;;  %v1052_v5 = vmul.f32 %v9418_v60, %v1034_v53  ;;  %v9716_v54 = vadd.f32 %v9216_v2, %v1627_v14 }
 0x385   :  { %2184 = vmatpush.bf16.msra.mxu0 %v2083_v32  ;;  %v1032_v30 = vmul.f32 %v899_v15, %v808_v4  ;;  %v9712_v32 = vadd.f32 %v9571_v39, %v1053_v21  ;;  %v806_v53 = vsub.f32 %v9205_v51, %v9576_v59  ;;  %v1699_v59 = vmul.f32 %v9705_v6, %v9705_v6 }
 0x386   :  { %v904_v10 = vsub.f32 1.5, %v903_v28  ;;  %v9709_v43 = vadd.f32 %v9571_v39, %v1052_v5  ;;  %v1700_v51 = vmul.f32 %v9716_v54, %v9716_v54  ;;  %vm886_vm14 = vweird.f32 %v9660_v16 }
 0x387   :  { %v8514_v20 = vpop.eup %8513  ;;  %12538 = vst [vmem:[#allocation31_spill] sm:$0xff] %v9712_v32  ;;  %v1050_v13 = vmul.f32 %v9418_v60, %v1032_v30  ;;  %1724 = vadd.xlane.f32.xlu0 %v1699_v59  ;;  %v807_v21 = vsub.f32 %v9187_v29, %v9590_v11 }
 0x388   :  { %v871_v47 = vmul.f32 %v8514_v20, %v9639_v45  ;;  %v905_v33 = vmul.f32 %v8512_v25, %v904_v10  ;;  %12537 = vst [vmem:[#allocation30_spill] sm:$0xff] %v9709_v43  ;;  %1722 = vadd.xlane.f32.xlu2 %v1698_v1  ;;  %vm877_vm10 = vweird.f32 %v8514_v20  ;;  %1660 = vadd.xlane.f32.xlu1 %v9705_v6 }
 0x389   :  { %2185 = vmatpush.bf16.msra.mxu0 %v2082_v37  ;;  %v8516_v52 = vpop.eup %8515  ;;  %v2080_v57 = vpack.c.bf16 %v9712_v32, %v9709_v43  ;;  %v1629_v17 = vpop.f32.mrf.mxu3  ;;  %v9726_v58 = vadd.f32 %v9571_v39, %v1050_v13  ;;  %vm878_vm12 = vmor %vm876_vm11, %vm877_vm10 }
 0x38a   :  { %v872_v26 = vmul.f32 %v8514_v20, %v871_v47  ;;  %v909_v56 = vsel %vm908_vm9, %v8512_v25, %v905_v33  ;;  %v881_v55 = vmul.f32 %v8516_v52, %v9660_v16  ;;  %vm887_vm13 = vweird.f32 %v8516_v52  ;;  %v1643_v33 = vpop.xlane.xlu2 %1642  ;;  %v1707_v13 = vpop.xlane.xlu1 %1706 }
 0x38b   :  { %v1033_v42 = vmul.f32 %v909_v56, %v809_v46  ;;  %12539 = vst [vmem:[#allocation32_spill] sm:$0xff] %v9726_v58  ;;  %vm888_vm15 = vmor %vm886_vm14, %vm887_vm13 }
 0x38c   :  { %v873_v44 = vmul.f32 0.5, %v872_v26  ;;  %v882_v7 = vmul.f32 %v8516_v52, %v881_v55  ;;  %v1645_v55 = vpop.xlane.xlu0 %1644 }
 0x38d   :  { %2186 = vmatpush.bf16.msra.mxu0 %v2081_v31  ;;  %v1051_v25 = vmul.f32 %v9418_v60, %v1033_v42  ;;  %v1738_v42 = vmul.f32 0.03125, %v1707_v13 }
 0x38e   :  { %v874_v40 = vsub.f32 1.5, %v873_v44  ;;  %v883_v36 = vmul.f32 0.5, %v882_v7  ;;  %v9771_v44 = vmul.f32 0.03125, %v1645_v55 }
 0x38f   :  { %v9729_v12 = vadd.f32 %v9571_v39, %v1051_v25 }
 0x390   :  { %v875_v0 = vmul.f32 %v8514_v20, %v874_v40  ;;  %v884_v15 = vsub.f32 1.5, %v883_v36  ;;  %1726 = vadd.xlane.f32.xlu2 %v1700_v51  ;;  %1662 = vadd.xlane.f32.xlu1 %v9716_v54  ;;  %v1771_v40 = vmul.f32 %v9771_v44, %v9771_v44 }
 0x391   :  { %12540 = vst [vmem:[#allocation33_spill] sm:$0xff] %v9729_v12  ;;  %2187 = vmatpush.bf16.msra.mxu0 %v2080_v57  ;;  %v2079_v45 = vpack.c.bf16 %v9729_v12, %v9726_v58  ;;  %v1632_v16 = vpop.f32.mrf.mxu3 }
 0x392   :  { %v879_v28 = vsel %vm878_vm12, %v8514_v20, %v875_v0  ;;  %v885_v4 = vmul.f32 %v8516_v52, %v884_v15  ;;  %v9743_v20 = vadd.f32 %v9216_v2, %v1629_v17  ;;  %v9747_v47 = vadd.f32 %v9216_v2, %v1632_v16  ;;  %v1709_v7 = vpop.xlane.xlu2 %1708  ;;  %v8233_v15 = vld [vmem:[#allocation7 + $0x8] sm:$0xff] }
 0x393   :  { %v1030_v37 = vmul.f32 %v879_v28, %v806_v53  ;;  %v1739_v25 = vmul.f32 0.03125, %v1709_v7 }
 0x394   :  { %v889_v10 = vsel %vm888_vm15, %v8516_v52, %v885_v4  ;;  %1664 = vadd.xlane.f32.xlu0 %v9743_v20  ;;  %v8232_v52 = vld [vmem:[#allocation7] sm:$0xff]  ;;  %v1647_v0 = vpop.xlane.xlu0 %1646  ;;  %v1702_v4 = vmul.f32 %v9747_v47, %v9747_v47 }
 0x395   :  { %2188 = vmatpush.bf16.msra.mxu0 %v2079_v45  ;;  %v1031_v5 = vmul.f32 %v889_v10, %v807_v21  ;;  %v1048_v14 = vmul.f32 %v9418_v60, %v1030_v37  ;;  %v1787_v36 = vsub.f32 %v1739_v25, %v1771_v40  ;;  %v9775_v59 = vmul.f32 0.03125, %v1647_v0  ;;  %v1649_v10 = vpop.xlane.xlu1 %1648 }
 0x396   :  { %v1755_v0 = vsub.f32 %v9228_v24, %v9771_v44  ;;  %v9800_v24 = vld [vmem:[#allocation13 + $0xb] ss:$0 sm:$0xff] }
 0x397   :  { %v1049_v30 = vmul.f32 %v9418_v60, %v1031_v5  ;;  %v9750_v29 = vadd.f32 %v9571_v39, %v1048_v14  ;;  %v9759_v60 = vmul.f32 0.03125, %v1643_v33  ;;  %v1803_v17 = vadd.f32 1e-05, %v1787_v36 }
 0x398   :  { %1666 = vadd.xlane.f32.xlu2 %v9747_v47  ;;  %v1772_v5 = vmul.f32 %v9775_v59, %v9775_v59  ;;  %v9781_v14 = vmul.f32 0.03125, %v1649_v10 }
 0x399   :  { %12541 = vst [vmem:[#allocation34_spill] sm:$0xff] %v9750_v29  ;;  %v9753_v11 = vadd.f32 %v9571_v39, %v1049_v30  ;;  %v1634_v46 = vpop.f32.mrf.mxu3  ;;  %v1701_v39 = vmul.f32 %v9743_v20, %v9743_v20  ;;  %v1770_v31 = vmul.f32 %v9759_v60, %v9759_v60  ;;  %v1754_v36 = vsub.f32 %v9219_v8, %v9759_v60 }
 0x39a   :  { %v9762_v26 = vadd.f32 %v9216_v2, %v1634_v46  ;;  %v1711_v33 = vpop.xlane.xlu2 %1710  ;;  %vm1834_vm1 = vweird.f32 %v1803_v17 }
 0x39b   :  { %12542 = vst [vmem:[#allocation35_spill] sm:$0xff] %v9753_v11  ;;  %v2078_v1 = vpack.c.bf16 %v9753_v11, %v9750_v29  ;;  %1728 = vadd.xlane.f32.xlu1 %v1701_v39  ;;  %v1786_v53 = vsub.f32 %v1738_v42, %v1770_v31  ;;  %v1740_v46 = vmul.f32 0.03125, %v1711_v33 }
 0x39c   :  { %v1703_v56 = vmul.f32 %v9762_v26, %v9762_v26  ;;  %1668 = vadd.xlane.f32.xlu0 %v9762_v26 }
 0x39d   :  { %2189 = vmatpush.bf16.msra.mxu0 %v2078_v1  ;;  %v1802_v57 = vadd.f32 1e-05, %v1786_v53  ;;  %v1713_v1 = vpop.xlane.xlu0 %1712  ;;  %v1788_v13 = vsub.f32 %v1740_v46, %v1772_v5 }
 0x39e   :  { %v1741_v39 = vmul.f32 0.03125, %v1713_v1 }
 0x39f   :  { %8517 = vrsqrt.f32 %v1802_v57  ;;  %v1804_v25 = vadd.f32 1e-05, %v1788_v13  ;;  %vm1824_vm0 = vweird.f32 %v1802_v57 }
 0x3a0   :  { %2190 = vmatmul.bf16.vlgmr.msra.gmra.mxu0 %v8232_v52  ;;  %1732 = vadd.xlane.f32.xlu2 %v1703_v56  ;;  %8519 = vrsqrt.f32 %v1803_v17  ;;  %v1773_v52 = vmul.f32 %v9781_v14, %v9781_v14 }
 0x3a1   :  { %v1637_v56 = vpop.f32.mrf.mxu3  ;;  %8521 = vrsqrt.f32 %v1804_v25  ;;  %vm1844_vm6 = vweird.f32 %v1804_v25 }
 0x3a2   :  { %v1789_v42 = vsub.f32 %v1741_v39, %v1773_v52  ;;  %v9786_v7 = vadd.f32 %v9216_v2, %v1637_v56 }
 0x3a3   :  { %1730 = vadd.xlane.f32.xlu1 %v1702_v4 }
 0x3a4   :  { %v9788_v53 = vadd.f32 1e-05, %v1789_v42 }
 0x3a5   :  { %v8518_v51 = vpop.eup %8517 }
 0x3a6   :  { %v1819_v28 = vmul.f32 %v8518_v51, %v1802_v57  ;;  %v8520_v45 = vpop.eup %8519  ;;  %8523 = vrsqrt.f32 %v9788_v53  ;;  %vm1825_vm2 = vweird.f32 %v8518_v51  ;;  %vm1854_vm7 = vweird.f32 %v9788_v53 }
 0x3a7   :  { %v1829_v37 = vmul.f32 %v8520_v45, %v1803_v17  ;;  %vm1835_vm3 = vweird.f32 %v8520_v45  ;;  %vm1826_vm4 = vmor %vm1824_vm0, %vm1825_vm2  ;;  %v8522_v17 = vpop.eup %8521 }
 0x3a8   :  { %v1820_v21 = vmul.f32 %v8518_v51, %v1819_v28  ;;  %v8234_v28 = vld [vmem:[#allocation7 + $0x10] sm:$0xff]  ;;  %v1651_v2 = vpop.xlane.xlu1 %1650  ;;  %vm1836_vm5 = vmor %vm1834_vm1, %vm1835_vm3  ;;  %vm1845_vm8 = vweird.f32 %v8522_v17 }
 0x3a9   :  { %v1830_v16 = vmul.f32 %v8520_v45, %v1829_v37  ;;  %v9798_v57 = vmul.f32 0.03125, %v1651_v2  ;;  %vm1846_vm9 = vmor %vm1844_vm6, %vm1845_vm8 }
 0x3aa   :  { %v1821_v30 = vmul.f32 0.5, %v1820_v21  ;;  %v9796_v21 = vld [vmem:[#allocation13 + $0xa] ss:$0 sm:$0xff]  ;;  %v1715_v56 = vpop.xlane.xlu0 %1714 }
 0x3ab   :  { %v1831_v31 = vmul.f32 0.5, %v1830_v16  ;;  %1670 = vadd.xlane.f32.xlu1 %v9786_v7  ;;  %v1839_v16 = vmul.f32 %v8522_v17, %v1804_v25  ;;  %v1774_v46 = vmul.f32 %v9798_v57, %v9798_v57 }
 0x3ac   :  { %v1822_v55 = vsub.f32 1.5, %v1821_v30  ;;  %v8524_v5 = vpop.eup %8523  ;;  %v1653_v30 = vpop.xlane.xlu2 %1652 }
 0x3ad   :  { %v1832_v40 = vsub.f32 1.5, %v1831_v31  ;;  %v9805_v1 = vmul.f32 0.03125, %v1653_v30  ;;  %v1840_v52 = vmul.f32 %v8522_v17, %v1839_v16  ;;  %v8235_v16 = vld [vmem:[#allocation7 + $0x18] sm:$0xff]  ;;  %vm1855_vm10 = vweird.f32 %v8524_v5 }
 0x3ae   :  { %vm1856_vm11 = vmor %vm1854_vm7, %vm1855_vm10 }
 0x3af   :  { %v1833_v4 = vmul.f32 %v8520_v45, %v1832_v40  ;;  %v1775_v13 = vmul.f32 %v9805_v1, %v9805_v1  ;;  %v1841_v40 = vmul.f32 0.5, %v1840_v52 }
 0x3b0   :  { %2195 = vmatmul.bf16.gmra.mxu0 %v8233_v15  ;;  %v1823_v15 = vmul.f32 %v8518_v51, %v1822_v55 }
 0x3b1   :  { %v1837_v60 = vsel %vm1836_vm5, %v8520_v45, %v1833_v4 }
 0x3b2   :  { %v1827_v37 = vsel %vm1826_vm4, %v8518_v51, %v1823_v15  ;;  %v1979_v44 = vmul.f32 %v1837_v60, %v1755_v0  ;;  %v1849_v51 = vmul.f32 %v8524_v5, %v9788_v53 }
 0x3b3   :  { %v1978_v8 = vmul.f32 %v1827_v37, %v1754_v36  ;;  %v1742_v36 = vmul.f32 0.03125, %v1715_v56 }
 0x3b4   :  { %v1997_v33 = vmul.f32 %v9796_v21, %v1979_v44  ;;  %v1850_v55 = vmul.f32 %v8524_v5, %v1849_v51  ;;  %v1757_v44 = vsub.f32 %v9263_v34, %v9781_v14 }
 0x3b5   :  { %v1996_v10 = vmul.f32 %v9796_v21, %v1978_v8  ;;  %v1790_v2 = vsub.f32 %v1742_v36, %v1774_v46  ;;  %v1756_v8 = vsub.f32 %v9247_v50, %v9775_v59  ;;  %v1758_v36 = vsub.f32 %v9297_v61, %v9798_v57 }
 0x3b6   :  { %v9813_v39 = vadd.f32 %v9800_v24, %v1997_v33  ;;  %v1851_v0 = vmul.f32 0.5, %v1850_v55 }
 0x3b7   :  { %v9808_v45 = vadd.f32 %v9800_v24, %v1996_v10  ;;  %v1806_v60 = vadd.f32 1e-05, %v1790_v2  ;;  %v8236_v2 = vld [vmem:[#allocation7 + $0x20] sm:$0xff] }
 0x3b8   :  { %12544 = vst [vmem:[#allocation37_spill] sm:$0xff] %v9813_v39  ;;  %2321 = vrot.lane.b32.xlu2 %v9813_v39, %s8908_s15  ;;  %v1852_v4 = vsub.f32 1.5, %v1851_v0  ;;  %v1759_v0 = vsub.f32 %v9315_v19, %v9805_v1  ;;  %v8237_v1 = vld [vmem:[#allocation7 + $0x28] sm:$0xff] }
 0x3b9   :  { %12543 = vst [vmem:[#allocation36_spill] sm:$0xff] %v9808_v45  ;;  %2319 = vrot.lane.b32.xlu0 %v9808_v45, %s8908_s15  ;;  %vm1864_vm13 = vweird.f32 %v1806_v60 }
 0x3ba   :  { %v1717_v31 = vpop.xlane.xlu1 %1716  ;;  %v1853_v30 = vmul.f32 %v8524_v5, %v1852_v4 }
 0x3bb   :  { %v1743_v42 = vmul.f32 0.03125, %v1717_v31 }
 0x3bc   :  { %v1857_v51 = vsel %vm1856_vm11, %v8524_v5, %v1853_v30  ;;  %v8240_v30 = vld [vmem:[#allocation7 + $0x40] sm:$0xff] }
 0x3bd   :  { %v1791_v15 = vsub.f32 %v1743_v42, %v1775_v13  ;;  %v1981_v52 = vmul.f32 %v1857_v51, %v1757_v44  ;;  %v8241_v51 = vld [vmem:[#allocation7 + $0x48] sm:$0xff] }
 0x3bf   :  { %v1807_v37 = vadd.f32 1e-05, %v1791_v15  ;;  %v1999_v53 = vmul.f32 %v9796_v21, %v1981_v52 }
 0x3c0   :  { %2200 = vmatmul.bf16.gmra.mxu0 %v8234_v28  ;;  %v1842_v28 = vsub.f32 1.5, %v1841_v40 }
 0x3c1   :  { %8525 = vrsqrt.f32 %v1807_v37  ;;  %v9832_v56 = vadd.f32 %v9800_v24, %v1999_v53  ;;  %vm1874_vm12 = vweird.f32 %v1807_v37 }
 0x3c2   :  { %v1843_v10 = vmul.f32 %v8522_v17, %v1842_v28  ;;  %8527 = vrsqrt.f32 %v1806_v60 }
 0x3c3   :  { %12546 = vst [vmem:[#allocation39_spill] sm:$0xff] %v9832_v56  ;;  %2325 = vrot.lane.b32.xlu0 %v9832_v56, %s8908_s15 }
 0x3c4   :  { %v1847_v25 = vsel %vm1846_vm9, %v8522_v17, %v1843_v10 }
 0x3c5   :  { %v1980_v33 = vmul.f32 %v1847_v25, %v1756_v8 }
 0x3c7   :  { %v1998_v50 = vmul.f32 %v9796_v21, %v1980_v33  ;;  %v8526_v59 = vpop.eup %8525 }
 0x3c8   :  { %v8528_v34 = vpop.eup %8527  ;;  %v1869_v14 = vmul.f32 %v8526_v59, %v1807_v37  ;;  %vm1875_vm14 = vweird.f32 %v8526_v59 }
 0x3c9   :  { %v9829_v46 = vadd.f32 %v9800_v24, %v1998_v50  ;;  %v1859_v31 = vmul.f32 %v8528_v34, %v1806_v60  ;;  %vm1865_vm15 = vweird.f32 %v8528_v34  ;;  %vm1876_vm0 = vmor %vm1874_vm12, %vm1875_vm14  ;;  %v8238_v60 = vld [vmem:[#allocation7 + $0x30] sm:$0xff] }
 0x3ca   :  { %v1870_v17 = vmul.f32 %v8526_v59, %v1869_v14  ;;  %vm1866_vm1 = vmor %vm1864_vm13, %vm1865_vm15  ;;  %v8243_v14 = vld [vmem:[#allocation7 + $0x58] sm:$0xff] }
 0x3cb   :  { %12545 = vst [vmem:[#allocation38_spill] sm:$0xff] %v9829_v46  ;;  %2323 = vrot.lane.b32.xlu1 %v9829_v46, %s8908_s15  ;;  %v1860_v5 = vmul.f32 %v8528_v34, %v1859_v31 }
 0x3cc   :  { %v1871_v55 = vmul.f32 0.5, %v1870_v17 }
 0x3cd   :  { %v1861_v13 = vmul.f32 0.5, %v1860_v5  ;;  %v8244_v5 = vld [vmem:[#allocation7 + $0x60] sm:$0xff] }
 0x3ce   :  { %v1872_v42 = vsub.f32 1.5, %v1871_v55 }
 0x3cf   :  { %v1862_v40 = vsub.f32 1.5, %v1861_v13 }
 0x3d0   :  { %2205 = vmatmul.bf16.gmra.mxu0 %v8235_v16  ;;  %v1873_v15 = vmul.f32 %v8526_v59, %v1872_v42  ;;  %v8239_v16 = vld [vmem:[#allocation7 + $0x38] sm:$0xff]  ;;  %v8245_v42 = vld [vmem:[#allocation7 + $0x68] sm:$0xff] }
 0x3d1   :  { %v1863_v28 = vmul.f32 %v8528_v34, %v1862_v40 }
 0x3d2   :  { %v1877_v4 = vsel %vm1876_vm0, %v8526_v59, %v1873_v15  ;;  %v8242_v59 = vld [vmem:[#allocation7 + $0x50] sm:$0xff] }
 0x3d3   :  { %v1983_v8 = vmul.f32 %v1877_v4, %v1759_v0  ;;  %v1867_v44 = vsel %vm1866_vm1, %v8528_v34, %v1863_v28  ;;  %v8246_v0 = vld [vmem:[#allocation7 + $0x70] sm:$0xff] }
 0x3d4   :  { %v1982_v10 = vmul.f32 %v1867_v44, %v1758_v36 }
 0x3d5   :  { %v2001_v37 = vmul.f32 %v9796_v21, %v1983_v8 }
 0x3d6   :  { %v2000_v61 = vmul.f32 %v9796_v21, %v1982_v10 }
 0x3d7   :  { %v9845_v57 = vadd.f32 %v9800_v24, %v2001_v37 }
 0x3d8   :  { %v9848_v19 = vadd.f32 %v9800_v24, %v2000_v61 }
 0x3d9   :  { %12547 = vst [vmem:[#allocation40_spill] sm:$0xff] %v9845_v57  ;;  %2329 = vrot.lane.b32.xlu0 %v9845_v57, %s8908_s15 }
 0x3da   :  { %12548 = vst [vmem:[#allocation41_spill] sm:$0xff] %v9848_v19  ;;  %2327 = vrot.lane.b32.xlu2 %v9848_v19, %s8908_s15 }
 0x3e0   :  { %2210 = vmatmul.bf16.gmra.mxu0 %v8236_v2  ;;  %v8247_v2 = vld [vmem:[#allocation7 + $0x78] sm:$0xff] }
 0x3f0   :  { %2215 = vmatmul.bf16.gmra.mxu0 %v8237_v1  ;;  %v1655_v1 = vpop.xlane.xlu2 %1654 }
 0x400   :  { %2220 = vmatmul.bf16.gmra.mxu0 %v8238_v60  ;;  %v1657_v60 = vpop.xlane.xlu0 %1656 }
 0x410   :  { %2225 = vmatmul.bf16.gmra.mxu0 %v8239_v16 }
 0x41d   :  { %v9854_v25 = vpop.f32.mrf.mxu0 }
 0x420   :  { %2230 = vmatmul.bf16.gmra.mxu0 %v8240_v30  ;;  %v1719_v30 = vpop.xlane.xlu1 %1718 }
 0x421   :  { %v1744_v56 = vmul.f32 0.03125, %v1719_v30  ;;  %v8262_v30 = vld [vmem:[#allocation10 + $0xb0] sm:$0xff] }
 0x425   :  { %v9856_v33 = vpop.f32.mrf.mxu0 }
 0x42d   :  { %v9858_v52 = vpop.f32.mrf.mxu0 }
 0x430   :  { %2235 = vmatmul.bf16.gmra.mxu0 %v8241_v51  ;;  %v1721_v51 = vpop.xlane.xlu2 %1720 }
 0x435   :  { %v9860_v50 = vpop.f32.mrf.mxu0 }
 0x43d   :  { %v9862_v53 = vpop.f32.mrf.mxu0 }
 0x440   :  { %2240 = vmatmul.bf16.gmra.mxu0 %v8242_v59  ;;  %v1659_v59 = vpop.xlane.xlu0 %1658 }
 0x441   :  { %v9910_v9 = vmul.f32 0.03125, %v1659_v59 }
 0x445   :  { %v9864_v34 = vpop.f32.mrf.mxu0 }
 0x44d   :  { %v9866_v31 = vpop.f32.mrf.mxu0 }
 0x450   :  { %2245 = vmatmul.bf16.gmra.mxu0 %v8243_v14 }
 0x455   :  { %v9868_v17 = vpop.f32.mrf.mxu0 }
 0x45d   :  { %v9870_v55 = vpop.f32.mrf.mxu0 }
 0x460   :  { %2250 = vmatmul.bf16.gmra.mxu0 %v8244_v5  ;;  %v9892_v5 = vmul.f32 0.03125, %v1657_v60 }
 0x465   :  { %v9872_v13 = vpop.f32.mrf.mxu0 }
 0x46d   :  { %v9874_v40 = vpop.f32.mrf.mxu0 }
 0x470   :  { %2255 = vmatmul.bf16.gmra.mxu0 %v8245_v42  ;;  %v1661_v42 = vpop.xlane.xlu1 %1660 }
 0x475   :  { %v9876_v36 = vpop.f32.mrf.mxu0 }
 0x47d   :  { %v9878_v15 = vpop.f32.mrf.mxu0 }
 0x47e   :  { %12549 = vst [vmem:[#allocation42_spill] sm:$0xff] %v9878_v15 }
 0x480   :  { %2260 = vmatmul.bf16.gmra.mxu0 %v8246_v0  ;;  %v1723_v0 = vpop.xlane.xlu2 %1722 }
 0x485   :  { %v9880_v28 = vpop.f32.mrf.mxu0 }
 0x486   :  { %12550 = vst [vmem:[#allocation43_spill] sm:$0xff] %v9880_v28 }
 0x488   :  { %v1727_v22 = vpop.xlane.xlu2 %1726 }
 0x489   :  { %v1748_v48 = vmul.f32 0.03125, %v1727_v22  ;;  %v1704_v22 = vmul.f32 %v9786_v7, %v9786_v7 }
 0x48d   :  { %v9882_v4 = vpop.f32.mrf.mxu0 }
 0x48e   :  { %12551 = vst [vmem:[#allocation44_spill] sm:$0xff] %v9882_v4 }
 0x490   :  { %2265 = vmatmul.bf16.gmra.mxu0 %v8247_v2  ;;  %v9894_v2 = vmul.f32 0.03125, %v1661_v42  ;;  %v1663_v42 = vpop.xlane.xlu1 %1662  ;;  %v1667_v23 = vpop.xlane.xlu2 %1666 }
 0x491   :  { %v9955_v27 = vmul.f32 0.03125, %v1667_v23 }
 0x492   :  { %v1779_v57 = vmul.f32 %v9894_v2, %v9894_v2 }
 0x493   :  { %v1782_v23 = vmul.f32 %v9955_v27, %v9955_v27 }
 0x495   :  { %v9884_v8 = vpop.f32.mrf.mxu0 }
 0x496   :  { %12552 = vst [vmem:[#allocation45_spill] sm:$0xff] %v9884_v8  ;;  %v8257_v8 = vld [vmem:[#allocation10 + $0x88] sm:$0xff] }
 0x49d   :  { %v2231_v44 = vpop.f32.mrf.mxu0 }
 0x49e   :  { %2271 = vrot.lane.b32.xlu1 %v2231_v44, %s8915_s6  ;;  %v1745_v44 = vmul.f32 0.03125, %v1721_v51  ;;  %v9906_v51 = vmul.f32 0.03125, %v1663_v42  ;;  %v1729_v42 = vpop.xlane.xlu1 %1728 }
 0x4a5   :  { %v2233_v10 = vpop.f32.mrf.mxu0 }
 0x4a6   :  { %2273 = vrot.lane.b32.xlu2 %v2233_v10, %s8915_s6  ;;  %v1777_v10 = vmul.f32 %v9892_v5, %v9892_v5 }
 0x4ad   :  { %v2236_v37 = vpop.f32.mrf.mxu0 }
 0x4ae   :  { %2275 = vrot.lane.b32.xlu0 %v2236_v37, %s8915_s6  ;;  %v1725_v37 = vpop.xlane.xlu0 %1724 }
 0x4af   :  { %v1747_v19 = vmul.f32 0.03125, %v1725_v37 }
 0x4b1   :  { %v1795_v39 = vsub.f32 %v1747_v19, %v1779_v57  ;;  %v1746_v57 = vmul.f32 0.03125, %v1723_v0 }
 0x4b3   :  { %v9914_v37 = vadd.f32 1e-05, %v1795_v39 }
 0x4b5   :  { %v2238_v61 = vpop.f32.mrf.mxu0  ;;  %vm1914_vm4 = vweird.f32 %v9914_v37 }
 0x4b6   :  { %2277 = vrot.lane.b32.xlu2 %v2238_v61, %s8915_s6  ;;  %v1665_v39 = vpop.xlane.xlu0 %1664 }
 0x4b7   :  { %v9931_v0 = vmul.f32 0.03125, %v1665_v39  ;;  %v1749_v39 = vmul.f32 0.03125, %v1729_v42 }
 0x4bd   :  { %v2241_v16 = vpop.f32.mrf.mxu0 }
 0x4be   :  { %2279 = vrot.lane.b32.xlu0 %v2241_v16, %s8915_s6  ;;  %v9900_v16 = vmul.f32 0.03125, %v1655_v1  ;;  %v8263_v1 = vld [vmem:[#allocation10 + $0xb8] sm:$0xff]  ;;  %v1669_v12 = vpop.xlane.xlu0 %1668 }
 0x4bf   :  { %2442 = vmatpush.bf16.msra.mxu1 %v8263_v1 }
 0x4c0   :  { %v1776_v60 = vmul.f32 %v9900_v16, %v9900_v16 }
 0x4c2   :  { %v1792_v45 = vsub.f32 %v1744_v56, %v1776_v60  ;;  %v1778_v56 = vmul.f32 %v9910_v9, %v9910_v9 }
 0x4c3   :  { %2443 = vmatpush.bf16.msra.mxu1 %v8262_v30 }
 0x4c4   :  { %v9919_v19 = vadd.f32 1e-05, %v1792_v45 }
 0x4c5   :  { %v2243_v14 = vpop.f32.mrf.mxu0 }
 0x4c6   :  { %2281 = vrot.lane.b32.xlu1 %v2243_v14, %s8915_s6  ;;  %v1793_v14 = vsub.f32 %v1745_v44, %v1777_v10  ;;  %v1780_v44 = vmul.f32 %v9906_v51, %v9906_v51  ;;  %v1794_v10 = vsub.f32 %v1746_v57, %v1778_v56  ;;  %v1639_v57 = vpop.f32.mrf.mxu3  ;;  %v8260_v56 = vld [vmem:[#allocation10 + $0xa0] sm:$0xff]  ;;  %vm1884_vm7 = vweird.f32 %v9919_v19 }
 0x4c7   :  { %v9948_v63 = vadd.f32 %v8677_v41, %v1639_v57 }
 0x4c8   :  { %v9908_v46 = vadd.f32 1e-05, %v1793_v14  ;;  %v1796_v59 = vsub.f32 %v1748_v48, %v1780_v44  ;;  %v8261_v14 = vld [vmem:[#allocation10 + $0xa8] sm:$0xff]  ;;  %v9939_v30 = vadd.f32 1e-05, %v1794_v10 }
 0x4c9   :  { %2444 = vmatpush.bf16.msra.mxu1 %v8261_v14 }
 0x4ca   :  { %8529 = vrsqrt.f32 %v9908_v46  ;;  %v9929_v45 = vadd.f32 1e-05, %v1796_v59  ;;  %v1781_v59 = vmul.f32 %v9931_v0, %v9931_v0  ;;  %vm1894_vm2 = vweird.f32 %v9908_v46 }
 0x4cb   :  { %8531 = vrsqrt.f32 %v9914_v37  ;;  %vm1904_vm13 = vweird.f32 %v9939_v30 }
 0x4cc   :  { %8533 = vrsqrt.f32 %v9919_v19  ;;  %v1797_v42 = vsub.f32 %v1749_v39, %v1781_v59  ;;  %vm1924_vm11 = vweird.f32 %v9929_v45 }
 0x4cd   :  { %v9898_v61 = vpop.f32.mrf.mxu0  ;;  %8535 = vrsqrt.f32 %v9929_v45  ;;  %2445 = vmatpush.bf16.msra.mxu1 %v8260_v56  ;;  %v8258_v56 = vld [vmem:[#allocation10 + $0x90] sm:$0xff] }
 0x4ce   :  { %8537 = vrsqrt.f32 %v9939_v30  ;;  %v9967_v29 = vadd.f32 1e-05, %v1797_v42  ;;  %v1733_v42 = vpop.xlane.xlu2 %1732 }
 0x4d0   :  { %v9927_v60 = vpop.eup %8529  ;;  %8539 = vrsqrt.f32 %v9967_v29  ;;  %vm1934_vm1 = vweird.f32 %v9967_v29 }
 0x4d1   :  { %v9935_v48 = vpop.eup %8531  ;;  %v1889_v44 = vmul.f32 %v9927_v60, %v9908_v46  ;;  %2446 = vmatpush.bf16.msra.mxu1 %v8259_v35  ;;  %vm1895_vm3 = vweird.f32 %v9927_v60 }
 0x4d2   :  { %v1909_v14 = vmul.f32 %v9935_v48, %v9914_v37  ;;  %vm9986_vm5 = vmor %vm1894_vm2, %vm1895_vm3  ;;  %vm1915_vm6 = vweird.f32 %v9935_v48 }
 0x4d3   :  { %v1890_v10 = vmul.f32 %v9927_v60, %v1889_v44  ;;  %v1731_v44 = vpop.xlane.xlu1 %1730  ;;  %vm10007_vm9 = vmor %vm1914_vm4, %vm1915_vm6 }
 0x4d4   :  { %v1910_v32 = vmul.f32 %v9935_v48, %v1909_v14  ;;  %v1750_v39 = vmul.f32 0.03125, %v1731_v44  ;;  %v1705_v14 = vmul.f32 %v9948_v63, %v9948_v63  ;;  %v1751_v44 = vmul.f32 0.03125, %v1733_v42 }
 0x4d5   :  { %v9912_v18 = vpop.f32.mrf.mxu0  ;;  %v1891_v57 = vmul.f32 0.5, %v1890_v10  ;;  %2447 = vmatpush.bf16.msra.mxu1 %v8258_v56 }
 0x4d6   :  { %v1911_v35 = vmul.f32 0.5, %v1910_v32 }
 0x4d7   :  { %v1892_v10 = vsub.f32 1.5, %v1891_v57 }
 0x4d8   :  { %v1912_v32 = vsub.f32 1.5, %v1911_v35 }
 0x4d9   :  { %2448 = vmatpush.bf16.msra.mxu1 %v8257_v8  ;;  %v1893_v57 = vmul.f32 %v9927_v60, %v1892_v10  ;;  %v8256_v8 = vld [vmem:[#allocation10 + $0x80] sm:$0xff] }
 0x4dd   :  { %v9933_v1 = vpop.f32.mrf.mxu0  ;;  %2449 = vmatpush.bf16.msra.mxu1 %v8256_v8  ;;  %v1764_v8 = vsub.f32 %v9716_v54, %v9906_v51 }
 0x4df   :  { %1734 = vadd.xlane.f32.xlu2 %v1704_v22  ;;  %v9941_v22 = vpop.eup %8533 }
 0x4e0   :  { %v1879_v62 = vmul.f32 %v9941_v22, %v9919_v19  ;;  %v9958_v41 = vpop.eup %8535  ;;  %vm1885_vm8 = vweird.f32 %v9941_v22  ;;  %v10032_v19 = vpop.permute.xlu2 %2321 }
 0x4e1   :  { %v9963_v11 = vpop.eup %8537  ;;  %v1919_v59 = vmul.f32 %v9958_v41, %v9929_v45  ;;  %vm10018_vm10 = vmor %vm1884_vm7, %vm1885_vm8  ;;  %vm1925_vm12 = vweird.f32 %v9958_v41 }
 0x4e2   :  { %v1880_v43 = vmul.f32 %v9941_v22, %v1879_v62  ;;  %v9973_v62 = vmul.f32 0.03125, %v1669_v12  ;;  %v1899_v15 = vmul.f32 %v9963_v11, %v9939_v30  ;;  %v1798_v12 = vsub.f32 %v1750_v39, %v1782_v23  ;;  %v10011_v10 = vpop.eup %8539  ;;  %vm10051_vm15 = vmor %vm1924_vm11, %vm1925_vm12 }
 0x4e3   :  { %v1920_v56 = vmul.f32 %v9958_v41, %v1919_v59  ;;  %v1761_v23 = vsub.f32 %v9574_v49, %v9892_v5  ;;  %v1897_v49 = vsel %vm9986_vm5, %v9927_v60, %v1893_v57  ;;  %vm1905_vm14 = vweird.f32 %v9963_v11 }
 0x4e4   :  { %v1881_v4 = vmul.f32 0.5, %v1880_v43  ;;  %v1783_v43 = vmul.f32 %v9973_v62, %v9973_v62  ;;  %v9994_v59 = vadd.f32 1e-05, %v1798_v12  ;;  %vm10063_vm0 = vmor %vm1904_vm13, %vm1905_vm14  ;;  %vm1935_vm2 = vweird.f32 %v10011_v10 }
 0x4e5   :  { %v9961_v58 = vpop.f32.mrf.mxu0  ;;  %v1921_v35 = vmul.f32 0.5, %v1920_v56  ;;  %v1763_v56 = vsub.f32 %v9705_v6, %v9894_v2  ;;  %v1985_v37 = vmul.f32 %v1897_v49, %v1761_v23  ;;  %v1929_v6 = vmul.f32 %v10011_v10, %v9967_v29  ;;  %vm1936_vm3 = vmor %vm1934_vm1, %vm1935_vm2 }
 0x4e6   :  { %v1882_v28 = vsub.f32 1.5, %v1881_v4  ;;  %v1799_v39 = vsub.f32 %v1751_v44, %v1783_v43  ;;  %8541 = vrsqrt.f32 %v9994_v59  ;;  %vm1944_vm4 = vweird.f32 %v9994_v59 }
 0x4e7   :  { %v1922_v12 = vsub.f32 1.5, %v1921_v35  ;;  %v2003_v43 = vmul.f32 %v9796_v21, %v1985_v37 }
 0x4e8   :  { %1672 = vadd.xlane.f32.xlu0 %v9948_v63  ;;  %v1883_v42 = vmul.f32 %v9941_v22, %v1882_v28  ;;  %v1760_v28 = vsub.f32 %v9568_v3, %v9900_v16  ;;  %v10030_v2 = vadd.f32 1e-05, %v1799_v39  ;;  %v10041_v16 = vpop.xlane.xlu1 %1670  ;;  %v1762_v39 = vsub.f32 %v9630_v38, %v9910_v9  ;;  %v10078_v5 = vpop.permute.xlu2 %2327 }
 0x4e9   :  { %v1923_v57 = vmul.f32 %v9958_v41, %v1922_v12 }
 0x4ea   :  { %v1887_v44 = vsel %vm10018_vm10, %v9941_v22, %v1883_v42  ;;  %8543 = vrsqrt.f32 %v10030_v2  ;;  %vm1954_vm7 = vweird.f32 %v10030_v2 }
 0x4eb   :  { %v1984_v45 = vmul.f32 %v1887_v44, %v1760_v28 }
 0x4ed   :  { %v9996_v4 = vpop.f32.mrf.mxu0  ;;  %v2002_v51 = vmul.f32 %v9796_v21, %v1984_v45 }
 0x4f0   :  { %1736 = vadd.xlane.f32.xlu1 %v1705_v14  ;;  %v1900_v14 = vmul.f32 %v9963_v11, %v1899_v15  ;;  %v1913_v15 = vmul.f32 %v9935_v48, %v1912_v32  ;;  %v10098_v12 = vpop.permute.xlu1 %2323 }
 0x4f2   :  { %v1901_v32 = vmul.f32 0.5, %v1900_v14  ;;  %v1917_v60 = vsel %vm10007_vm9, %v9935_v48, %v1913_v15  ;;  %v10055_v14 = vpop.eup %8541  ;;  %v1927_v15 = vsel %vm10051_vm15, %v9958_v41, %v1923_v57 }
 0x4f3   :  { %v1987_v3 = vmul.f32 %v1917_v60, %v1763_v56  ;;  %v1939_v54 = vmul.f32 %v10055_v14, %v9994_v59  ;;  %v10085_v42 = vpop.eup %8543  ;;  %v1988_v9 = vmul.f32 %v1927_v15, %v1764_v8  ;;  %vm1945_vm5 = vweird.f32 %v10055_v14 }
 0x4f4   :  { %v1902_v48 = vsub.f32 1.5, %v1901_v32  ;;  %v1949_v60 = vmul.f32 %v10085_v42, %v10030_v2  ;;  %vm1946_vm6 = vmor %vm1944_vm4, %vm1945_vm5  ;;  %vm1955_vm8 = vweird.f32 %v10085_v42  ;;  %v1767_v2 = vsub.f32 %v9762_v26, %v9973_v62 }
 0x4f5   :  { %v10057_v46 = vpop.f32.mrf.mxu0  ;;  %v2005_v23 = vmul.f32 %v9796_v21, %v1987_v3  ;;  %v1940_v56 = vmul.f32 %v10055_v14, %v1939_v54  ;;  %v2006_v28 = vmul.f32 %v9796_v21, %v1988_v9  ;;  %vm1956_vm9 = vmor %vm1954_vm7, %vm1955_vm8 }
 0x4f6   :  { %v1903_v30 = vmul.f32 %v9963_v11, %v1902_v48 }
 0x4f7   :  { %2285 = vrot.lane.b32.xlu2 %v9912_v18, %s8915_s6  ;;  %v10088_v41 = vadd.f32 %v9800_v24, %v2005_v23  ;;  %v10094_v18 = vadd.f32 %v9800_v24, %v2002_v51  ;;  %v1941_v44 = vmul.f32 0.5, %v1940_v56  ;;  %v10111_v29 = vadd.f32 %v9800_v24, %v2006_v28 }
 0x4f8   :  { %v1907_v32 = vsel %vm10063_vm0, %v9963_v11, %v1903_v30  ;;  %v2320_v11 = vpop.permute.xlu0 %2319 }
 0x4f9   :  { %12564 = vst [vmem:[#allocation47_spill] sm:$0xff] %v10088_v41  ;;  %v1986_v37 = vmul.f32 %v1907_v32, %v1762_v39  ;;  %v1942_v45 = vsub.f32 1.5, %v1941_v44 }
 0x4fa   :  { %12565 = vst [vmem:[#allocation48_spill] sm:$0xff] %v10094_v18 }
 0x4fb   :  { %v2004_v48 = vmul.f32 %v9796_v21, %v1986_v37  ;;  %12566 = vst [vmem:[#allocation49_spill] sm:$0xff] %v10111_v29  ;;  %v1943_v39 = vmul.f32 %v10055_v14, %v1942_v45 }
 0x4fc   :  { %2283 = vrot.lane.b32.xlu0 %v9898_v61, %s8915_s6  ;;  %v1930_v61 = vmul.f32 %v10011_v10, %v1929_v6 }
 0x4fd   :  { %v2261_v6 = vpop.f32.mrf.mxu0  ;;  %v10119_v30 = vadd.f32 %v9800_v24, %v2004_v48 }
 0x4fe   :  { %v1931_v49 = vmul.f32 0.5, %v1930_v61  ;;  %v1765_v61 = vsub.f32 %v9743_v20, %v9931_v0 }
 0x4ff   :  { %2287 = vrot.lane.b32.xlu2 %v9933_v1, %s8915_s6  ;;  %v10068_v1 = vadd.f32 %v9800_v24, %v2003_v43  ;;  %v1950_v43 = vmul.f32 %v10085_v42, %v1949_v60  ;;  %12567 = vst [vmem:[#allocation50_spill] sm:$0xff] %v10119_v30 }
 0x500   :  { %v1932_v38 = vsub.f32 1.5, %v1931_v49  ;;  %v2274_v57 = vpop.permute.xlu2 %2273 }
 0x501   :  { %12563 = vst [vmem:[#allocation46_spill] sm:$0xff] %v10068_v1  ;;  %v2304_v22 = vadd.f32 %v2274_v57, %v9856_v33  ;;  %v1951_v23 = vmul.f32 0.5, %v1950_v43 }
 0x502   :  { %v1933_v3 = vmul.f32 %v10011_v10, %v1932_v38 }
 0x503   :  { %v2352_v33 = vadd.f32 %v10032_v19, %v2304_v22  ;;  %v1952_v49 = vsub.f32 1.5, %v1951_v23  ;;  %v1947_v19 = vsel %vm1946_vm6, %v10055_v14, %v1943_v39 }
 0x504   :  { %2333 = vrot.lane.b32.xlu0 %v10068_v1, %s8908_s15  ;;  %v1937_v8 = vsel %vm1936_vm3, %v10011_v10, %v1933_v3 }
 0x505   :  { %v1989_v20 = vmul.f32 %v1937_v8, %v1765_v61  ;;  %v2263_v10 = vpop.f32.mrf.mxu0  ;;  %v1688_v61 = vmul.f32 0.03125, %v10041_v16 }
 0x507   :  { %2337 = vrot.lane.b32.xlu2 %v10088_v41, %s8908_s15  ;;  %v2007_v54 = vmul.f32 %v9796_v21, %v1989_v20  ;;  %v1784_v22 = vmul.f32 %v1688_v61, %v1688_v61 }
 0x509   :  { %2331 = vrot.lane.b32.xlu1 %v10094_v18, %s8908_s15 }
 0x50c   :  { %2289 = vrot.lane.b32.xlu0 %v9961_v58, %s8915_s6  ;;  %v2326_v58 = vpop.permute.xlu0 %2325 }
 0x50d   :  { %v2266_v9 = vpop.f32.mrf.mxu0 }
 0x50f   :  { %2339 = vrot.lane.b32.xlu2 %v10111_v29, %s8908_s15 }
 0x510   :  { %v2272_v35 = vpop.permute.xlu1 %2271  ;;  %v2278_v32 = vpop.permute.xlu2 %2277 }
 0x511   :  { %v2303_v15 = vadd.f32 %v2272_v35, %v9854_v25  ;;  %2335 = vrot.lane.b32.xlu1 %v10119_v30, %s8908_s15  ;;  %v1766_v25 = vsub.f32 %v9747_v47, %v9955_v27  ;;  %v10142_v27 = vadd.f32 %v9800_v24, %v2007_v54  ;;  %v2306_v56 = vadd.f32 %v2278_v32, %v9860_v50  ;;  %v8270_v54 = vld [vmem:[#allocation11 + $0x1b0] sm:$0xff] }
 0x513   :  { %v2351_v0 = vadd.f32 %v2320_v11, %v2303_v15  ;;  %12568 = vst [vmem:[#allocation51_spill] sm:$0xff] %v10142_v27  ;;  %v1990_v47 = vmul.f32 %v1947_v19, %v1766_v25  ;;  %v2354_v62 = vadd.f32 %v2326_v58, %v2306_v56  ;;  %v1768_v19 = vsub.f32 %v9786_v7, %v1688_v61  ;;  %v8265_v61 = vld [vmem:[#allocation11 + $0x188] sm:$0xff] }
 0x514   :  { %2291 = vrot.lane.b32.xlu0 %v9996_v4, %s8915_s6  ;;  %v2330_v51 = vpop.permute.xlu0 %2329  ;;  %v1953_v4 = vmul.f32 %v10085_v42, %v1952_v49 }
 0x515   :  { %v2384_v59 = vpack.c.bf16 %v2352_v33, %v2351_v0  ;;  %v2008_v38 = vmul.f32 %v9796_v21, %v1990_v47  ;;  %v8269_v47 = vld [vmem:[#allocation11 + $0x1a8] sm:$0xff] }
 0x516   :  { %v1957_v14 = vsel %vm1956_vm9, %v10085_v42, %v1953_v4 }
 0x517   :  { %2450 = vmatmul.bf16.vlgmr.msra.gmra.mxu1 %v2384_v59  ;;  %2297 = vrot.lane.b32.xlu2 %v2263_v10, %s8915_s6  ;;  %v10155_v26 = vadd.f32 %v9800_v24, %v2008_v38  ;;  %v8271_v10 = vld [vmem:[#allocation11 + $0x1b8] sm:$0xff]  ;;  %v8268_v38 = vld [vmem:[#allocation11 + $0x1a0] sm:$0xff] }
 0x518   :  { %2582 = vmatpush.bf16.msrb.mxu2 %v8271_v10 }
 0x519   :  { %2293 = vrot.lane.b32.xlu1 %v10057_v46, %s8915_s6  ;;  %v1991_v46 = vmul.f32 %v1957_v14, %v1767_v2  ;;  %12569 = vst [vmem:[#allocation52_spill] sm:$0xff] %v10155_v26 }
 0x51b   :  { %v2009_v42 = vmul.f32 %v9796_v21, %v1991_v46  ;;  %v8267_v46 = vld [vmem:[#allocation11 + $0x198] sm:$0xff] }
 0x51c   :  { %2341 = vrot.lane.b32.xlu0 %v10142_v27, %s8908_s15  ;;  %2583 = vmatpush.bf16.msrb.mxu2 %v8270_v54 }
 0x51d   :  { %v10162_v28 = vadd.f32 %v9800_v24, %v2009_v42 }
 0x51f   :  { %2299 = vrot.lane.b32.xlu2 %v2266_v9, %s8915_s6  ;;  %12570 = vst [vmem:[#allocation53_spill] sm:$0xff] %v10162_v28 }
 0x520   :  { %v2276_v37 = vpop.permute.xlu0 %2275  ;;  %2584 = vmatpush.bf16.msrb.mxu2 %v8269_v47 }
 0x521   :  { %v2305_v60 = vadd.f32 %v2276_v37, %v9858_v52  ;;  %2295 = vrot.lane.b32.xlu1 %v2261_v6, %s8915_s6  ;;  %v2268_v52 = vpop.f32.mrf.mxu0 }
 0x523   :  { %v2353_v11 = vadd.f32 %v10098_v12, %v2305_v60 }
 0x524   :  { %2343 = vrot.lane.b32.xlu0 %v10155_v26, %s8908_s15  ;;  %2585 = vmatpush.bf16.msrb.mxu2 %v8268_v38  ;;  %v12574_v38 = vld [vmem:[#allocation42_spill] sm:$0xff] }
 0x525   :  { %v2385_v50 = vpack.c.bf16 %v2354_v62, %v2353_v11  ;;  %v8266_v11 = vld [vmem:[#allocation11 + $0x190] sm:$0xff] }
 0x527   :  { %2455 = vmatmul.bf16.gmra.mxu1 %v2385_v50 }
 0x528   :  { %2586 = vmatpush.bf16.msrb.mxu2 %v8267_v46 }
 0x529   :  { %2345 = vrot.lane.b32.xlu1 %v10162_v28, %s8908_s15 }
 0x52c   :  { %2301 = vrot.lane.b32.xlu0 %v2268_v52, %s8915_s6  ;;  %2587 = vmatpush.bf16.msrb.mxu2 %v8266_v11 }
 0x530   :  { %v2280_v6 = vpop.permute.xlu0 %2279  ;;  %2588 = vmatpush.bf16.msrb.mxu2 %v8265_v61 }
 0x531   :  { %v2307_v44 = vadd.f32 %v2280_v6, %v9862_v53 }
 0x533   :  { %v2355_v3 = vadd.f32 %v10078_v5, %v2307_v44 }
 0x538   :  { %v2282_v12 = vpop.permute.xlu1 %2281 }
 0x539   :  { %v2308_v48 = vadd.f32 %v2282_v12, %v9864_v34 }
 0x53b   :  { %v2356_v43 = vadd.f32 %v2330_v51, %v2308_v48 }
 0x53d   :  { %v2386_v57 = vpack.c.bf16 %v2356_v43, %v2355_v3 }
 0x53f   :  { %2460 = vmatmul.bf16.gmra.mxu1 %v2386_v57 }
 0x552   :  { %v1735_v45 = vpop.xlane.xlu2 %1734 }
 0x553   :  { %v1752_v8 = vmul.f32 0.03125, %v1735_v45 }
 0x555   :  { %v1800_v23 = vsub.f32 %v1752_v8, %v1784_v22 }
 0x557   :  { %v1816_v58 = vadd.f32 1e-05, %v1800_v23 }
 0x559   :  { %8545 = vrsqrt.f32 %v1816_v58  ;;  %vm1964_vm11 = vweird.f32 %v1816_v58 }
 0x55a   :  { %v2286_v60 = vpop.permute.xlu2 %2285 }
 0x55b   :  { %v1673_v35 = vpop.xlane.xlu0 %1672  ;;  %v2310_v52 = vadd.f32 %v2286_v60, %v9868_v17  ;;  %v8264_v17 = vld [vmem:[#allocation11 + $0x180] sm:$0xff] }
 0x55c   :  { %v1689_v53 = vmul.f32 0.03125, %v1673_v35  ;;  %2589 = vmatpush.bf16.msrb.mxu2 %v8264_v17 }
 0x55e   :  { %v1785_v39 = vmul.f32 %v1689_v53, %v1689_v53  ;;  %v1769_v6 = vsub.f32 %v9948_v63, %v1689_v53 }
 0x55f   :  { %v8546_v15 = vpop.eup %8545 }
 0x560   :  { %v1959_v20 = vmul.f32 %v8546_v15, %v1816_v58  ;;  %vm1965_vm10 = vweird.f32 %v8546_v15 }
 0x561   :  { %vm1966_vm12 = vmor %vm1964_vm11, %vm1965_vm10 }
 0x562   :  { %v1960_v33 = vmul.f32 %v8546_v15, %v1959_v20  ;;  %v2288_v63 = vpop.permute.xlu2 %2287 }
 0x563   :  { %v1737_v0 = vpop.xlane.xlu1 %1736  ;;  %v2311_v58 = vadd.f32 %v2288_v63, %v9870_v55  ;;  %v12575_v63 = vld [vmem:[#allocation44_spill] sm:$0xff] }
 0x564   :  { %v1961_v34 = vmul.f32 0.5, %v1960_v33  ;;  %v1753_v5 = vmul.f32 0.03125, %v1737_v0 }
 0x566   :  { %v1962_v49 = vsub.f32 1.5, %v1961_v34  ;;  %v1801_v59 = vsub.f32 %v1753_v5, %v1785_v39  ;;  %v10190_v5 = vld [vmem:[#allocation13 + $0xc] ss:$0 sm:$0xff] }
 0x568   :  { %v1817_v16 = vadd.f32 1e-05, %v1801_v59  ;;  %v1963_v25 = vmul.f32 %v8546_v15, %v1962_v49 }
 0x56a   :  { %8547 = vrsqrt.f32 %v1817_v16  ;;  %v1967_v51 = vsel %vm1966_vm12, %v8546_v15, %v1963_v25  ;;  %vm1974_vm14 = vweird.f32 %v1817_v16  ;;  %v2338_v20 = vpop.permute.xlu2 %2337 }
 0x56b   :  { %v1992_v4 = vmul.f32 %v1967_v51, %v1768_v19 }
 0x56d   :  { %v2010_v2 = vmul.f32 %v9796_v21, %v1992_v4 }
 0x56e   :  { %v2284_v32 = vpop.permute.xlu0 %2283 }
 0x56f   :  { %v10174_v14 = vadd.f32 %v9800_v24, %v2010_v2  ;;  %v2309_v44 = vadd.f32 %v2284_v32, %v9866_v31 }
 0x570   :  { %v8548_v9 = vpop.eup %8547 }
 0x571   :  { %12571 = vst [vmem:[#allocation54_spill] sm:$0xff] %v10174_v14  ;;  %v1969_v56 = vmul.f32 %v8548_v9, %v1817_v16  ;;  %2347 = vrot.lane.b32.xlu1 %v10174_v14, %s8908_s15  ;;  %vm1975_vm13 = vweird.f32 %v8548_v9 }
 0x572   :  { %vm1976_vm15 = vmor %vm1974_vm14, %vm1975_vm13  ;;  %v2340_v59 = vpop.permute.xlu2 %2339 }
 0x573   :  { %v1970_v7 = vmul.f32 %v8548_v9, %v1969_v56 }
 0x575   :  { %v1971_v37 = vmul.f32 0.5, %v1970_v7 }
 0x576   :  { %v2334_v42 = vpop.permute.xlu0 %2333 }
 0x577   :  { %v1972_v62 = vsub.f32 1.5, %v1971_v37  ;;  %v2358_v3 = vadd.f32 %v2334_v42, %v2310_v52 }
 0x579   :  { %v1973_v50 = vmul.f32 %v8548_v9, %v1972_v62 }
 0x57a   :  { %v2298_v2 = vpop.permute.xlu2 %2297 }
 0x57b   :  { %v2332_v12 = vpop.permute.xlu1 %2331  ;;  %v1977_v48 = vsel %vm1976_vm15, %v8548_v9, %v1973_v50  ;;  %v12573_v9 = vld [vmem:[#allocation43_spill] sm:$0xff] }
 0x57c   :  { %v2357_v43 = vadd.f32 %v2332_v12, %v2309_v44  ;;  %v1993_v57 = vmul.f32 %v1977_v48, %v1769_v6 }
 0x57e   :  { %v2387_v45 = vpack.c.bf16 %v2358_v3, %v2357_v43  ;;  %v2011_v22 = vmul.f32 %v9796_v21, %v1993_v57  ;;  %v2290_v31 = vpop.permute.xlu0 %2289 }
 0x57f   :  { %v2312_v35 = vadd.f32 %v2290_v31, %v9872_v13 }
 0x580   :  { %2465 = vmatmul.bf16.gmra.mxu1 %v2387_v45  ;;  %v10183_v8 = vadd.f32 %v9800_v24, %v2011_v22 }
 0x581   :  { %v2360_v21 = vadd.f32 %v2338_v20, %v2312_v35 }
 0x582   :  { %12572 = vst [vmem:[#allocation55_spill] sm:$0xff] %v10183_v8  ;;  %2349 = vrot.lane.b32.xlu2 %v10183_v8, %s8908_s15  ;;  %v2300_v45 = vpop.permute.xlu2 %2299 }
 0x583   :  { %v2336_v23 = vpop.permute.xlu1 %2335  ;;  %v2317_v31 = vadd.f32 %v2300_v45, %v12575_v63 }
 0x584   :  { %v2359_v15 = vadd.f32 %v2336_v23, %v2311_v58  ;;  %v12576_v23 = vld [vmem:[#allocation45_spill] sm:$0xff] }
 0x586   :  { %v2292_v53 = vpop.permute.xlu0 %2291  ;;  %v2388_v33 = vpack.c.bf16 %v2360_v21, %v2359_v15 }
 0x587   :  { %v2313_v10 = vadd.f32 %v2292_v53, %v9874_v40  ;;  %v2316_v40 = vadd.f32 %v2298_v2, %v12573_v9  ;;  %v8279_v53 = vld [vmem:[#allocation11 + $0x1f8] sm:$0xff] }
 0x588   :  { %2722 = vmatpush.bf16.msrb.mxu3 %v8279_v53 }
 0x589   :  { %v2361_v13 = vadd.f32 %v2340_v59, %v2313_v10  ;;  %v8275_v59 = vld [vmem:[#allocation11 + $0x1d8] sm:$0xff] }
 0x58b   :  { %v2294_v24 = vpop.permute.xlu1 %2293 }
 0x58c   :  { %v2314_v34 = vadd.f32 %v2294_v24, %v9876_v36 }
 0x58e   :  { %v2342_v39 = vpop.permute.xlu0 %2341 }
 0x58f   :  { %v2362_v49 = vadd.f32 %v2342_v39, %v2314_v34  ;;  %v8276_v34 = vld [vmem:[#allocation11 + $0x1e0] sm:$0xff] }
 0x590   :  { %2470 = vmatmul.bf16.gmra.mxu1 %v2388_v33  ;;  %v8278_v33 = vld [vmem:[#allocation11 + $0x1f0] sm:$0xff] }
 0x591   :  { %v2389_v19 = vpack.c.bf16 %v2362_v49, %v2361_v13  ;;  %2723 = vmatpush.bf16.msrb.mxu3 %v8278_v33 }
 0x593   :  { %v2296_v25 = vpop.permute.xlu1 %2295 }
 0x594   :  { %v2451_v0 = vpop.f32.mrf.mxu1  ;;  %v2315_v56 = vadd.f32 %v2296_v25, %v12574_v38 }
 0x595   :  { %v2452_v55 = vadd.f32 %v10190_v5, %v2451_v0  ;;  %v8277_v0 = vld [vmem:[#allocation11 + $0x1e8] sm:$0xff] }
 0x596   :  { %v2344_v7 = vpop.permute.xlu0 %2343  ;;  %2724 = vmatpush.bf16.msrb.mxu3 %v8277_v0 }
 0x597   :  { %v2491_v51 = vmax.f32 %v2452_v55, 0.0  ;;  %v2363_v60 = vadd.f32 %v2344_v7, %v2315_v56 }
 0x59a   :  { %2725 = vmatpush.bf16.msrb.mxu3 %v8276_v34 }
 0x59b   :  { %v2346_v32 = vpop.permute.xlu1 %2345 }
 0x59c   :  { %v2453_v16 = vpop.f32.mrf.mxu1  ;;  %v2364_v46 = vadd.f32 %v2346_v32, %v2316_v40 }
 0x59d   :  { %v2454_v54 = vadd.f32 %v10190_v5, %v2453_v16  ;;  %v8274_v16 = vld [vmem:[#allocation11 + $0x1d0] sm:$0xff] }
 0x59e   :  { %v2390_v42 = vpack.c.bf16 %v2364_v46, %v2363_v60  ;;  %v2302_v22 = vpop.permute.xlu0 %2301  ;;  %2726 = vmatpush.bf16.msrb.mxu3 %v8275_v59 }
 0x59f   :  { %v2492_v4 = vmax.f32 %v2454_v54, 0.0  ;;  %v2318_v58 = vadd.f32 %v2302_v22, %v12576_v23 }
 0x5a0   :  { %2475 = vmatmul.bf16.gmra.mxu1 %v2389_v19  ;;  %v8273_v19 = vld [vmem:[#allocation11 + $0x1c8] sm:$0xff] }
 0x5a1   :  { %v2524_v47 = vpack.c.bf16 %v2492_v4, %v2491_v51  ;;  %v8272_v51 = vld [vmem:[#allocation11 + $0x1c0] sm:$0xff] }
 0x5a2   :  { %2727 = vmatpush.bf16.msrb.mxu3 %v8274_v16 }
 0x5a3   :  { %2590 = vmatmul.bf16.vlgmr.msrb.gmra.mxu2 %v2524_v47 }
 0x5a4   :  { %v2456_v36 = vpop.f32.mrf.mxu1 }
 0x5a5   :  { %v2457_v37 = vadd.f32 %v10190_v5, %v2456_v36 }
 0x5a6   :  { %2728 = vmatpush.bf16.msrb.mxu3 %v8273_v19 }
 0x5a7   :  { %v2493_v50 = vmax.f32 %v2457_v37, 0.0 }
 0x5aa   :  { %2729 = vmatpush.bf16.msrb.mxu3 %v8272_v51  ;;  %v8285_v51 = vld [vmem:[#allocation11 + $0x228] sm:$0xff] }
 0x5ac   :  { %v2458_v62 = vpop.f32.mrf.mxu1 }
 0x5ad   :  { %v2459_v11 = vadd.f32 %v10190_v5, %v2458_v62  ;;  %v10209_v62 = vld [vmem:[#allocation13 + $0xd] ss:$0 sm:$0xff] }
 0x5af   :  { %v2494_v52 = vmax.f32 %v2459_v11, 0.0 }
 0x5b0   :  { %2480 = vmatmul.bf16.gmra.mxu1 %v2390_v42 }
 0x5b1   :  { %v2525_v6 = vpack.c.bf16 %v2494_v52, %v2493_v50 }
 0x5b3   :  { %2595 = vmatmul.bf16.gmra.mxu2 %v2525_v6 }
 0x5bc   :  { %v2461_v44 = vpop.f32.mrf.mxu1 }
 0x5bd   :  { %v2462_v12 = vadd.f32 %v10190_v5, %v2461_v44 }
 0x5bf   :  { %v2495_v43 = vmax.f32 %v2462_v12, 0.0 }
 0x5c4   :  { %v2463_v48 = vpop.f32.mrf.mxu1 }
 0x5c5   :  { %v2464_v3 = vadd.f32 %v10190_v5, %v2463_v48 }
 0x5c7   :  { %v2496_v57 = vmax.f32 %v2464_v3, 0.0 }
 0x5c9   :  { %v2526_v61 = vpack.c.bf16 %v2496_v57, %v2495_v43 }
 0x5cb   :  { %2600 = vmatmul.bf16.gmra.mxu2 %v2526_v61 }
 0x5dc   :  { %v2350_v17 = vpop.permute.xlu2 %2349 }
 0x5dd   :  { %v2366_v15 = vadd.f32 %v2350_v17, %v2318_v58 }
 0x5e3   :  { %v2348_v35 = vpop.permute.xlu1 %2347 }
 0x5e4   :  { %v2365_v20 = vadd.f32 %v2348_v35, %v2317_v31 }
 0x5e6   :  { %v2391_v21 = vpack.c.bf16 %v2366_v15, %v2365_v20 }
 0x5e8   :  { %2485 = vmatmul.bf16.gmra.mxu1 %v2391_v21 }
 0x5fd   :  { %v2466_v24 = vpop.f32.mrf.mxu1 }
 0x5fe   :  { %v2467_v39 = vadd.f32 %v10190_v5, %v2466_v24 }
 0x600   :  { %v2497_v55 = vmax.f32 %v2467_v39, 0.0 }
 0x605   :  { %v2468_v10 = vpop.f32.mrf.mxu1 }
 0x606   :  { %v2469_v49 = vadd.f32 %v10190_v5, %v2468_v10 }
 0x608   :  { %v2498_v13 = vmax.f32 %v2469_v49, 0.0 }
 0x60a   :  { %v2527_v25 = vpack.c.bf16 %v2498_v13, %v2497_v55 }
 0x60c   :  { %2605 = vmatmul.bf16.gmra.mxu2 %v2527_v25  ;;  %v8287_v25 = vld [vmem:[#allocation11 + $0x238] sm:$0xff] }
 0x60d   :  { %v2471_v54 = vpop.f32.mrf.mxu1  ;;  %2862 = vmatpush.bf16.msrb.mxu1 %v8287_v25 }
 0x60e   :  { %v2472_v4 = vadd.f32 %v10190_v5, %v2471_v54  ;;  %v8286_v54 = vld [vmem:[#allocation11 + $0x230] sm:$0xff] }
 0x610   :  { %v2499_v2 = vmax.f32 %v2472_v4, 0.0  ;;  %v8284_v4 = vld [vmem:[#allocation11 + $0x220] sm:$0xff] }
 0x611   :  { %2863 = vmatpush.bf16.msrb.mxu1 %v8286_v54 }
 0x615   :  { %v2473_v47 = vpop.f32.mrf.mxu1  ;;  %2864 = vmatpush.bf16.msrb.mxu1 %v8285_v51 }
 0x616   :  { %v2474_v36 = vadd.f32 %v10190_v5, %v2473_v47 }
 0x618   :  { %v2500_v32 = vmax.f32 %v2474_v36, 0.0 }
 0x619   :  { %2865 = vmatpush.bf16.msrb.mxu1 %v8284_v4 }
 0x61a   :  { %v2528_v9 = vpack.c.bf16 %v2500_v32, %v2499_v2  ;;  %v8283_v32 = vld [vmem:[#allocation11 + $0x218] sm:$0xff] }
 0x61c   :  { %2610 = vmatmul.bf16.gmra.mxu2 %v2528_v9 }
 0x61d   :  { %v2476_v40 = vpop.f32.mrf.mxu1  ;;  %2866 = vmatpush.bf16.msrb.mxu1 %v8283_v32 }
 0x61e   :  { %v2477_v38 = vadd.f32 %v10190_v5, %v2476_v40  ;;  %v8282_v40 = vld [vmem:[#allocation11 + $0x210] sm:$0xff] }
 0x620   :  { %v2501_v37 = vmax.f32 %v2477_v38, 0.0 }
 0x621   :  { %2867 = vmatpush.bf16.msrb.mxu1 %v8282_v40 }
 0x625   :  { %v2478_v56 = vpop.f32.mrf.mxu1 }
 0x626   :  { %v2479_v7 = vadd.f32 %v10190_v5, %v2478_v56  ;;  %v2591_v46 = vpop.f32.mrf.mxu2 }
 0x627   :  { %v2592_v42 = vadd.f32 %v10209_v62, %v2591_v46  ;;  %v8280_v46 = vld [vmem:[#allocation11 + $0x200] sm:$0xff] }
 0x628   :  { %v2502_v60 = vmax.f32 %v2479_v7, 0.0  ;;  %v8281_v7 = vld [vmem:[#allocation11 + $0x208] sm:$0xff] }
 0x629   :  { %v2631_v44 = vmax.f32 %v2592_v42, 0.0  ;;  %2868 = vmatpush.bf16.msrb.mxu1 %v8281_v7 }
 0x62a   :  { %v2529_v11 = vpack.c.bf16 %v2502_v60, %v2501_v37 }
 0x62c   :  { %2615 = vmatmul.bf16.gmra.mxu2 %v2529_v11 }
 0x62d   :  { %v2481_v50 = vpop.f32.mrf.mxu1  ;;  %2869 = vmatpush.bf16.msrb.mxu1 %v8280_v46 }
 0x62e   :  { %v2593_v52 = vpop.f32.mrf.mxu2  ;;  %v2482_v3 = vadd.f32 %v10190_v5, %v2481_v50 }
 0x62f   :  { %v2594_v6 = vadd.f32 %v10209_v62, %v2593_v52 }
 0x630   :  { %v2503_v45 = vmax.f32 %v2482_v3, 0.0 }
 0x631   :  { %v2632_v12 = vmax.f32 %v2594_v6, 0.0 }
 0x633   :  { %v2664_v48 = vpack.c.bf16 %v2632_v12, %v2631_v44 }
 0x635   :  { %v2483_v43 = vpop.f32.mrf.mxu1  ;;  %2730 = vmatmul.bf16.vlgmr.msrb.gmra.mxu3 %v2664_v48 }
 0x636   :  { %v2484_v57 = vadd.f32 %v10190_v5, %v2483_v43  ;;  %v2596_v61 = vpop.f32.mrf.mxu2 }
 0x637   :  { %v2597_v63 = vadd.f32 %v10209_v62, %v2596_v61  ;;  %v10227_v61 = vld [vmem:[#allocation13 + $0xe] ss:$0 sm:$0xff] }
 0x638   :  { %v2504_v22 = vmax.f32 %v2484_v57, 0.0 }
 0x639   :  { %v2633_v58 = vmax.f32 %v2597_v63, 0.0 }
 0x63a   :  { %v2530_v17 = vpack.c.bf16 %v2504_v22, %v2503_v45 }
 0x63c   :  { %2620 = vmatmul.bf16.gmra.mxu2 %v2530_v17 }
 0x63e   :  { %v2598_v31 = vpop.f32.mrf.mxu2 }
 0x63f   :  { %v2599_v23 = vadd.f32 %v10209_v62, %v2598_v31 }
 0x641   :  { %v2634_v35 = vmax.f32 %v2599_v23, 0.0 }
 0x643   :  { %v2665_v15 = vpack.c.bf16 %v2634_v35, %v2633_v58 }
 0x645   :  { %2735 = vmatmul.bf16.gmra.mxu3 %v2665_v15 }
 0x64e   :  { %v2601_v20 = vpop.f32.mrf.mxu2 }
 0x64f   :  { %v2602_v21 = vadd.f32 %v10209_v62, %v2601_v20 }
 0x651   :  { %v2635_v24 = vmax.f32 %v2602_v21, 0.0 }
 0x656   :  { %v2603_v53 = vpop.f32.mrf.mxu2 }
 0x657   :  { %v2604_v33 = vadd.f32 %v10209_v62, %v2603_v53 }
 0x659   :  { %v2636_v0 = vmax.f32 %v2604_v33, 0.0 }
 0x65b   :  { %v2666_v34 = vpack.c.bf16 %v2636_v0, %v2635_v24 }
 0x65d   :  { %2740 = vmatmul.bf16.gmra.mxu3 %v2666_v34 }
 0x665   :  { %v2486_v39 = vpop.f32.mrf.mxu1 }
 0x666   :  { %v2487_v10 = vadd.f32 %v10190_v5, %v2486_v39 }
 0x668   :  { %v2505_v55 = vmax.f32 %v2487_v10, 0.0 }
 0x66d   :  { %v2488_v49 = vpop.f32.mrf.mxu1 }
 0x66e   :  { %v2489_v59 = vadd.f32 %v10190_v5, %v2488_v49 }
 0x670   :  { %v2506_v13 = vmax.f32 %v2489_v59, 0.0 }
 0x672   :  { %v2531_v16 = vpack.c.bf16 %v2506_v13, %v2505_v55 }
 0x674   :  { %2625 = vmatmul.bf16.gmra.mxu2 %v2531_v16 }
 0x68f   :  { %v2606_v19 = vpop.f32.mrf.mxu2 }
 0x690   :  { %v2607_v47 = vadd.f32 %v10209_v62, %v2606_v19 }
 0x692   :  { %v2637_v5 = vmax.f32 %v2607_v47, 0.0 }
 0x697   :  { %v2608_v36 = vpop.f32.mrf.mxu2 }
 0x698   :  { %v2609_v2 = vadd.f32 %v10209_v62, %v2608_v36 }
 0x69a   :  { %v2638_v9 = vmax.f32 %v2609_v2, 0.0 }
 0x69c   :  { %v2667_v38 = vpack.c.bf16 %v2638_v9, %v2637_v5 }
 0x69e   :  { %2745 = vmatmul.bf16.gmra.mxu3 %v2667_v38 }
 0x69f   :  { %v2611_v56 = vpop.f32.mrf.mxu2 }
 0x6a0   :  { %v2612_v37 = vadd.f32 %v10209_v62, %v2611_v56 }
 0x6a2   :  { %v2639_v42 = vmax.f32 %v2612_v37, 0.0 }
 0x6a7   :  { %v2613_v60 = vpop.f32.mrf.mxu2 }
 0x6a8   :  { %v2614_v11 = vadd.f32 %v10209_v62, %v2613_v60 }
 0x6aa   :  { %v2640_v50 = vmax.f32 %v2614_v11, 0.0 }
 0x6ac   :  { %v2668_v52 = vpack.c.bf16 %v2640_v50, %v2639_v42 }
 0x6ae   :  { %2750 = vmatmul.bf16.gmra.mxu3 %v2668_v52 }
 0x6af   :  { %v2616_v6 = vpop.f32.mrf.mxu2 }
 0x6b0   :  { %v2617_v44 = vadd.f32 %v10209_v62, %v2616_v6 }
 0x6b2   :  { %v2641_v43 = vmax.f32 %v2617_v44, 0.0 }
 0x6b7   :  { %v2618_v12 = vpop.f32.mrf.mxu2 }
 0x6b8   :  { %v2619_v48 = vadd.f32 %v10209_v62, %v2618_v12  ;;  %v2731_v3 = vpop.f32.mrf.mxu3 }
 0x6b9   :  { %v2732_v22 = vadd.f32 %v10227_v61, %v2731_v3 }
 0x6ba   :  { %v2642_v57 = vmax.f32 %v2619_v48, 0.0 }
 0x6bb   :  { %v2771_v23 = vmax.f32 %v2732_v22, 0.0 }
 0x6bc   :  { %v2669_v45 = vpack.c.bf16 %v2642_v57, %v2641_v43 }
 0x6be   :  { %2755 = vmatmul.bf16.gmra.mxu3 %v2669_v45 }
 0x6bf   :  { %v2621_v17 = vpop.f32.mrf.mxu2 }
 0x6c0   :  { %v2733_v63 = vpop.f32.mrf.mxu3  ;;  %v2622_v15 = vadd.f32 %v10209_v62, %v2621_v17 }
 0x6c1   :  { %v2734_v31 = vadd.f32 %v10227_v61, %v2733_v63 }
 0x6c2   :  { %v2643_v33 = vmax.f32 %v2622_v15, 0.0 }
 0x6c3   :  { %v2772_v58 = vmax.f32 %v2734_v31, 0.0 }
 0x6c5   :  { %v2804_v35 = vpack.c.bf16 %v2772_v58, %v2771_v23 }
 0x6c7   :  { %v2623_v20 = vpop.f32.mrf.mxu2  ;;  %2870 = vmatmul.bf16.vlgmr.msrb.gmra.mxu1 %v2804_v35 }
 0x6c8   :  { %v2624_v21 = vadd.f32 %v10209_v62, %v2623_v20  ;;  %v2736_v53 = vpop.f32.mrf.mxu3 }
 0x6c9   :  { %v2737_v34 = vadd.f32 %v10227_v61, %v2736_v53 }
 0x6ca   :  { %v2644_v24 = vmax.f32 %v2624_v21, 0.0 }
 0x6cb   :  { %v2773_v49 = vmax.f32 %v2737_v34, 0.0 }
 0x6cc   :  { %v2670_v0 = vpack.c.bf16 %v2644_v24, %v2643_v33 }
 0x6ce   :  { %2760 = vmatmul.bf16.gmra.mxu3 %v2670_v0 }
 0x6d0   :  { %v2738_v39 = vpop.f32.mrf.mxu3 }
 0x6d1   :  { %v2739_v10 = vadd.f32 %v10227_v61, %v2738_v39 }
 0x6d3   :  { %v2774_v59 = vmax.f32 %v2739_v10, 0.0 }
 0x6d5   :  { %v2805_v55 = vpack.c.bf16 %v2774_v59, %v2773_v49 }
 0x6d7   :  { %2875 = vmatmul.bf16.gmra.mxu1 %v2805_v55 }
 0x6e0   :  { %v2741_v13 = vpop.f32.mrf.mxu3 }
 0x6e1   :  { %v2742_v16 = vadd.f32 %v10227_v61, %v2741_v13 }
 0x6e3   :  { %v2775_v19 = vmax.f32 %v2742_v16, 0.0 }
 0x6e8   :  { %v2743_v25 = vpop.f32.mrf.mxu3 }
 0x6e9   :  { %v2744_v54 = vadd.f32 %v10227_v61, %v2743_v25  ;;  %v10257_v25 = vld [vmem:[#allocation13 + $0xf] ss:$0 sm:$0xff] }
 0x6eb   :  { %v2776_v51 = vmax.f32 %v2744_v54, 0.0 }
 0x6ed   :  { %v2806_v4 = vpack.c.bf16 %v2776_v51, %v2775_v19 }
 0x6ef   :  { %2880 = vmatmul.bf16.gmra.mxu1 %v2806_v4 }
 0x6f7   :  { %v2626_v47 = vpop.f32.mrf.mxu2 }
 0x6f8   :  { %v2627_v36 = vadd.f32 %v10209_v62, %v2626_v47 }
 0x6fa   :  { %v2645_v5 = vmax.f32 %v2627_v36, 0.0 }
 0x6ff   :  { %v2628_v2 = vpop.f32.mrf.mxu2 }
 0x700   :  { %v2629_v32 = vadd.f32 %v10209_v62, %v2628_v2 }
 0x702   :  { %v2646_v9 = vmax.f32 %v2629_v32, 0.0 }
 0x704   :  { %v2671_v40 = vpack.c.bf16 %v2646_v9, %v2645_v5 }
 0x706   :  { %2765 = vmatmul.bf16.gmra.mxu3 %v2671_v40 }
 0x721   :  { %v2746_v38 = vpop.f32.mrf.mxu3 }
 0x722   :  { %v2747_v56 = vadd.f32 %v10227_v61, %v2746_v38 }
 0x724   :  { %v2777_v37 = vmax.f32 %v2747_v56, 0.0 }
 0x729   :  { %v2748_v7 = vpop.f32.mrf.mxu3 }
 0x72a   :  { %v2749_v46 = vadd.f32 %v10227_v61, %v2748_v7 }
 0x72c   :  { %v2778_v60 = vmax.f32 %v2749_v46, 0.0 }
 0x72e   :  { %v2807_v11 = vpack.c.bf16 %v2778_v60, %v2777_v37 }
 0x730   :  { %2885 = vmatmul.bf16.gmra.mxu1 %v2807_v11 }
 0x731   :  { %v2751_v42 = vpop.f32.mrf.mxu3 }
 0x732   :  { %v2752_v50 = vadd.f32 %v10227_v61, %v2751_v42 }
 0x734   :  { %v2779_v6 = vmax.f32 %v2752_v50, 0.0 }
 0x739   :  { %v2753_v52 = vpop.f32.mrf.mxu3 }
 0x73a   :  { %v2754_v62 = vadd.f32 %v10227_v61, %v2753_v52 }
 0x73c   :  { %v2780_v44 = vmax.f32 %v2754_v62, 0.0 }
 0x73e   :  { %v2808_v12 = vpack.c.bf16 %v2780_v44, %v2779_v6 }
 0x740   :  { %2890 = vmatmul.bf16.gmra.mxu1 %v2808_v12 }
 0x741   :  { %v2756_v48 = vpop.f32.mrf.mxu3 }
 0x742   :  { %v2757_v3 = vadd.f32 %v10227_v61, %v2756_v48 }
 0x744   :  { %v2781_v45 = vmax.f32 %v2757_v3, 0.0  ;;  %v10247_v21 = vpop.f32.mrf.mxu1 }
 0x749   :  { %v2758_v43 = vpop.f32.mrf.mxu3 }
 0x74a   :  { %v2759_v57 = vadd.f32 %v10227_v61, %v2758_v43 }
 0x74c   :  { %v2782_v22 = vmax.f32 %v2759_v57, 0.0  ;;  %v10249_v53 = vpop.f32.mrf.mxu1 }
 0x74e   :  { %v2809_v17 = vpack.c.bf16 %v2782_v22, %v2781_v45 }
 0x750   :  { %2895 = vmatmul.bf16.gmra.mxu1 %v2809_v17 }
 0x751   :  { %v2761_v63 = vpop.f32.mrf.mxu3 }
 0x752   :  { %v2762_v31 = vadd.f32 %v10227_v61, %v2761_v63 }
 0x754   :  { %v2783_v35 = vmax.f32 %v2762_v31, 0.0  ;;  %v10251_v33 = vpop.f32.mrf.mxu1 }
 0x755   :  { %v10333_v31 = vadd.f32 %v10257_v25, %v10251_v33 }
 0x759   :  { %v2763_v23 = vpop.f32.mrf.mxu3 }
 0x75a   :  { %v2764_v58 = vadd.f32 %v10227_v61, %v2763_v23 }
 0x75c   :  { %v2784_v15 = vmax.f32 %v2764_v58, 0.0  ;;  %v10255_v10 = vpop.f32.mrf.mxu1  ;;  %v2961_v58 = vmul.f32 %v10333_v31, %v10333_v31 }
 0x75d   :  { %v10337_v23 = vadd.f32 %v10257_v25, %v10255_v10 }
 0x75e   :  { %v2810_v20 = vpack.c.bf16 %v2784_v15, %v2783_v35  ;;  %v10345_v35 = vadd.f32 %v10257_v25, %v10247_v21  ;;  %v10349_v15 = vadd.f32 %v10257_v25, %v10249_v53 }
 0x760   :  { %2900 = vmatmul.bf16.gmra.mxu1 %v2810_v20  ;;  %v2962_v20 = vmul.f32 %v10337_v23, %v10337_v23  ;;  %v2960_v33 = vmul.f32 %v10349_v15, %v10349_v15  ;;  %v2959_v21 = vmul.f32 %v10345_v35, %v10345_v35 }
 0x76c   :  { %v2881_v13 = vpop.f32.mrf.mxu1 }
 0x76d   :  { %v10317_v57 = vadd.f32 %v10257_v25, %v2881_v13 }
 0x76f   :  { %v2963_v17 = vmul.f32 %v10317_v57, %v10317_v57 }
 0x774   :  { %v2883_v16 = vpop.f32.mrf.mxu1 }
 0x775   :  { %v10324_v22 = vadd.f32 %v10257_v25, %v2883_v16 }
 0x777   :  { %v2964_v63 = vmul.f32 %v10324_v22, %v10324_v22 }
 0x789   :  { %v2766_v24 = vpop.f32.mrf.mxu3 }
 0x78a   :  { %v2767_v0 = vadd.f32 %v10227_v61, %v2766_v24 }
 0x78c   :  { %v2785_v49 = vmax.f32 %v2767_v0, 0.0 }
 0x791   :  { %v2768_v34 = vpop.f32.mrf.mxu3 }
 0x792   :  { %v2769_v39 = vadd.f32 %v10227_v61, %v2768_v34 }
 0x794   :  { %v2786_v59 = vmax.f32 %v2769_v39, 0.0 }
 0x796   :  { %v2811_v55 = vpack.c.bf16 %v2786_v59, %v2785_v49 }
 0x798   :  { %2905 = vmatmul.bf16.gmra.mxu1 %v2811_v55 }
 0x7ad   :  { %v2886_v54 = vpop.f32.mrf.mxu1 }
 0x7ae   :  { %v10260_v19 = vadd.f32 %v10257_v25, %v2886_v54 }
 0x7b0   :  { %2923 = vadd.xlane.f32.xlu1 %v10260_v19  ;;  %v2965_v51 = vmul.f32 %v10260_v19, %v10260_v19 }
 0x7b2   :  { %2987 = vadd.xlane.f32.xlu0 %v2965_v51 }
 0x7b5   :  { %v2888_v61 = vpop.f32.mrf.mxu1 }
 0x7b6   :  { %v10266_v4 = vadd.f32 %v10257_v25, %v2888_v61 }
 0x7b8   :  { %2925 = vadd.xlane.f32.xlu2 %v10266_v4  ;;  %v2966_v47 = vmul.f32 %v10266_v4, %v10266_v4 }
 0x7ba   :  { %2989 = vadd.xlane.f32.xlu1 %v2966_v47 }
 0x7bd   :  { %v2891_v36 = vpop.f32.mrf.mxu1 }
 0x7be   :  { %v10272_v2 = vadd.f32 %v10257_v25, %v2891_v36 }
 0x7c0   :  { %2927 = vadd.xlane.f32.xlu0 %v10272_v2  ;;  %v2967_v32 = vmul.f32 %v10272_v2, %v10272_v2 }
 0x7c2   :  { %2991 = vadd.xlane.f32.xlu2 %v2967_v32 }
 0x7c5   :  { %v2893_v5 = vpop.f32.mrf.mxu1 }
 0x7c6   :  { %v10278_v9 = vadd.f32 %v10257_v25, %v2893_v5 }
 0x7c8   :  { %2929 = vadd.xlane.f32.xlu1 %v10278_v9  ;;  %v2968_v40 = vmul.f32 %v10278_v9, %v10278_v9 }
 0x7ca   :  { %2993 = vadd.xlane.f32.xlu0 %v2968_v40 }
 0x7cd   :  { %v2896_v38 = vpop.f32.mrf.mxu1 }
 0x7ce   :  { %v10284_v56 = vadd.f32 %v10257_v25, %v2896_v38 }
 0x7d0   :  { %2931 = vadd.xlane.f32.xlu2 %v10284_v56  ;;  %v2969_v7 = vmul.f32 %v10284_v56, %v10284_v56 }
 0x7d2   :  { %2995 = vadd.xlane.f32.xlu1 %v2969_v7 }
 0x7d5   :  { %v2898_v46 = vpop.f32.mrf.mxu1 }
 0x7d6   :  { %v10290_v37 = vadd.f32 %v10257_v25, %v2898_v46 }
 0x7d8   :  { %2933 = vadd.xlane.f32.xlu0 %v10290_v37  ;;  %v2970_v60 = vmul.f32 %v10290_v37, %v10290_v37 }
 0x7da   :  { %2997 = vadd.xlane.f32.xlu2 %v2970_v60 }
 0x7dd   :  { %v2901_v11 = vpop.f32.mrf.mxu1 }
 0x7de   :  { %v10296_v42 = vadd.f32 %v10257_v25, %v2901_v11 }
 0x7e0   :  { %2935 = vadd.xlane.f32.xlu1 %v10296_v42  ;;  %v2971_v50 = vmul.f32 %v10296_v42, %v10296_v42 }
 0x7e2   :  { %2999 = vadd.xlane.f32.xlu0 %v2971_v50 }
 0x7e5   :  { %v2903_v52 = vpop.f32.mrf.mxu1 }
 0x7e6   :  { %v10302_v62 = vadd.f32 %v10257_v25, %v2903_v52 }
 0x7e8   :  { %2937 = vadd.xlane.f32.xlu2 %v10302_v62  ;;  %v2972_v6 = vmul.f32 %v10302_v62, %v10302_v62 }
 0x7ea   :  { %3001 = vadd.xlane.f32.xlu1 %v2972_v6 }
 0x815   :  { %v2906_v44 = vpop.f32.mrf.mxu1 }
 0x816   :  { %v10308_v12 = vadd.f32 %v10257_v25, %v2906_v44 }
 0x818   :  { %2939 = vadd.xlane.f32.xlu0 %v10308_v12  ;;  %v2973_v48 = vmul.f32 %v10308_v12, %v10308_v12 }
 0x81a   :  { %3003 = vadd.xlane.f32.xlu2 %v2973_v48 }
 0x81d   :  { %v2908_v3 = vpop.f32.mrf.mxu1 }
 0x81e   :  { %v10314_v43 = vadd.f32 %v10257_v25, %v2908_v3 }
 0x820   :  { %2941 = vadd.xlane.f32.xlu1 %v10314_v43  ;;  %v2974_v45 = vmul.f32 %v10314_v43, %v10314_v43 }
 0x822   :  { %3005 = vadd.xlane.f32.xlu0 %v2974_v45  ;;  %2919 = vadd.xlane.f32.xlu2 %v10317_v57 }
 0x823   :  { %v2924_v24 = vpop.xlane.xlu1 %2923 }
 0x824   :  { %v10359_v59 = vmul.f32 0.03125, %v2924_v24 }
 0x825   :  { %v2988_v34 = vpop.xlane.xlu0 %2987 }
 0x826   :  { %v3045_v16 = vmul.f32 %v10359_v59, %v10359_v59  ;;  %v3013_v25 = vmul.f32 0.03125, %v2988_v34 }
 0x828   :  { %2983 = vadd.xlane.f32.xlu1 %v2963_v17  ;;  %v3061_v32 = vsub.f32 %v3013_v25, %v3045_v16 }
 0x82a   :  { %2921 = vadd.xlane.f32.xlu0 %v10324_v22  ;;  %2985 = vadd.xlane.f32.xlu2 %v2964_v63  ;;  %v10371_v46 = vadd.f32 1e-05, %v3061_v32 }
 0x82b   :  { %v2926_v0 = vpop.xlane.xlu2 %2925 }
 0x82c   :  { %v10361_v13 = vmul.f32 0.03125, %v2926_v0  ;;  %8549 = vrsqrt.f32 %v10371_v46  ;;  %vm3153_vm1 = vweird.f32 %v10371_v46 }
 0x82d   :  { %v2990_v53 = vpop.xlane.xlu1 %2989 }
 0x82e   :  { %v3046_v47 = vmul.f32 %v10361_v13, %v10361_v13  ;;  %v3014_v36 = vmul.f32 0.03125, %v2990_v53 }
 0x830   :  { %2917 = vadd.xlane.f32.xlu1 %v10337_v23  ;;  %v3062_v7 = vsub.f32 %v3014_v36, %v3046_v47 }
 0x832   :  { %2915 = vadd.xlane.f32.xlu0 %v10333_v31  ;;  %2979 = vadd.xlane.f32.xlu2 %v2961_v58  ;;  %v10375_v6 = vadd.f32 1e-05, %v3062_v7  ;;  %v10391_v24 = vpop.eup %8549 }
 0x833   :  { %v2928_v49 = vpop.xlane.xlu0 %2927  ;;  %v3148_v25 = vmul.f32 %v10391_v24, %v10371_v46  ;;  %vm3154_vm0 = vweird.f32 %v10391_v24 }
 0x834   :  { %v10365_v51 = vmul.f32 0.03125, %v2928_v49  ;;  %8551 = vrsqrt.f32 %v10375_v6  ;;  %vm10459_vm3 = vmor %vm3153_vm1, %vm3154_vm0  ;;  %vm3163_vm4 = vweird.f32 %v10375_v6 }
 0x835   :  { %v2992_v39 = vpop.xlane.xlu2 %2991  ;;  %v3149_v7 = vmul.f32 %v10391_v24, %v3148_v25 }
 0x836   :  { %v3047_v40 = vmul.f32 %v10365_v51, %v10365_v51  ;;  %v3015_v38 = vmul.f32 0.03125, %v2992_v39 }
 0x838   :  { %2911 = vadd.xlane.f32.xlu1 %v10345_v35  ;;  %v3063_v50 = vsub.f32 %v3015_v38, %v3047_v40 }
 0x83a   :  { %2981 = vadd.xlane.f32.xlu0 %v2962_v20  ;;  %2913 = vadd.xlane.f32.xlu2 %v10349_v15  ;;  %v10380_v45 = vadd.f32 1e-05, %v3063_v50  ;;  %v10400_v16 = vpop.eup %8551 }
 0x83b   :  { %v2930_v10 = vpop.xlane.xlu1 %2929  ;;  %vm3164_vm2 = vweird.f32 %v10400_v16 }
 0x83c   :  { %v10373_v60 = vmul.f32 0.03125, %v2930_v10  ;;  %8553 = vrsqrt.f32 %v10380_v45  ;;  %vm10483_vm5 = vmor %vm3163_vm4, %vm3164_vm2  ;;  %vm3173_vm6 = vweird.f32 %v10380_v45 }
 0x83d   :  { %v2994_v61 = vpop.xlane.xlu0 %2993 }
 0x83e   :  { %v3048_v44 = vmul.f32 %v10373_v60, %v10373_v60  ;;  %v3016_v48 = vmul.f32 0.03125, %v2994_v61 }
 0x840   :  { %2977 = vadd.xlane.f32.xlu1 %v2960_v33  ;;  %v3064_v20 = vsub.f32 %v3016_v48, %v3048_v44 }
 0x842   :  { %2975 = vadd.xlane.f32.xlu0 %v2959_v21  ;;  %v10404_v61 = vadd.f32 1e-05, %v3064_v20  ;;  %v10408_v40 = vpop.eup %8553  ;;  %v3150_v20 = vmul.f32 0.5, %v3149_v7 }
 0x843   :  { %v2932_v55 = vpop.xlane.xlu2 %2931  ;;  %vm3174_vm7 = vweird.f32 %v10408_v40 }
 0x844   :  { %v10382_v17 = vmul.f32 0.03125, %v2932_v55  ;;  %8555 = vrsqrt.f32 %v10404_v61  ;;  %vm3183_vm8 = vweird.f32 %v10404_v61  ;;  %vm10505_vm9 = vmor %vm3173_vm6, %vm3174_vm7 }
 0x845   :  { %v2996_v54 = vpop.xlane.xlu1 %2995 }
 0x846   :  { %v3049_v0 = vmul.f32 %v10382_v17, %v10382_v17  ;;  %v3017_v53 = vmul.f32 0.03125, %v2996_v54 }
 0x848   :  { %v3065_v36 = vsub.f32 %v3017_v53, %v3049_v0 }
 0x84a   :  { %v10414_v50 = vadd.f32 1e-05, %v3065_v36  ;;  %v10426_v0 = vpop.eup %8555 }
 0x84b   :  { %v2934_v52 = vpop.xlane.xlu0 %2933  ;;  %v3178_v25 = vmul.f32 %v10426_v0, %v10404_v61  ;;  %vm3184_vm10 = vweird.f32 %v10426_v0 }
 0x84c   :  { %v10385_v63 = vmul.f32 0.03125, %v2934_v52  ;;  %v3168_v52 = vmul.f32 %v10408_v40, %v10380_v45  ;;  %8557 = vrsqrt.f32 %v10414_v50  ;;  %vm3193_vm11 = vweird.f32 %v10414_v50  ;;  %vm10544_vm12 = vmor %vm3183_vm8, %vm3184_vm10 }
 0x84d   :  { %v2998_v5 = vpop.xlane.xlu2 %2997 }
 0x84e   :  { %v3050_v39 = vmul.f32 %v10385_v63, %v10385_v63  ;;  %v3018_v10 = vmul.f32 0.03125, %v2998_v5  ;;  %v3158_v5 = vmul.f32 %v10400_v16, %v10375_v6  ;;  %v3169_v53 = vmul.f32 %v10408_v40, %v3168_v52 }
 0x850   :  { %v3066_v32 = vsub.f32 %v3018_v10, %v3050_v39  ;;  %v3159_v48 = vmul.f32 %v10400_v16, %v3158_v5  ;;  %v3170_v36 = vmul.f32 0.5, %v3169_v53 }
 0x852   :  { %v10418_v44 = vadd.f32 1e-05, %v3066_v32  ;;  %v3160_v39 = vmul.f32 0.5, %v3159_v48  ;;  %v10438_v32 = vpop.eup %8557  ;;  %v3029_v48 = vsub.f32 %v10260_v19, %v10359_v59 }
 0x853   :  { %v2936_v11 = vpop.xlane.xlu1 %2935  ;;  %vm3194_vm13 = vweird.f32 %v10438_v32 }
 0x854   :  { %v10389_v33 = vmul.f32 0.03125, %v2936_v11  ;;  %8559 = vrsqrt.f32 %v10418_v44  ;;  %v3161_v5 = vsub.f32 1.5, %v3160_v39  ;;  %v3030_v39 = vsub.f32 %v10266_v4, %v10361_v13  ;;  %vm10572_vm1 = vmor %vm3193_vm11, %vm3194_vm13 }
 0x855   :  { %v3000_v34 = vpop.xlane.xlu0 %2999  ;;  %v3031_v4 = vsub.f32 %v10272_v2, %v10365_v51  ;;  %vm3203_vm14 = vweird.f32 %v10418_v44 }
 0x856   :  { %v3051_v47 = vmul.f32 %v10389_v33, %v10389_v33  ;;  %v3019_v54 = vmul.f32 0.03125, %v3000_v34  ;;  %v3162_v59 = vmul.f32 %v10400_v16, %v3161_v5 }
 0x858   :  { %v3067_v11 = vsub.f32 %v3019_v54, %v3051_v47 }
 0x85a   :  { %v10440_v7 = vpop.eup %8559 }
 0x85b   :  { %v2938_v3 = vpop.xlane.xlu2 %2937  ;;  %v3198_v46 = vmul.f32 %v10440_v7, %v10418_v44  ;;  %vm3204_vm0 = vweird.f32 %v10440_v7 }
 0x85c   :  { %v10387_v58 = vmul.f32 0.03125, %v2938_v3  ;;  %vm10592_vm7 = vmor %vm3203_vm14, %vm3204_vm0 }
 0x85d   :  { %v3002_v21 = vpop.xlane.xlu1 %3001 }
 0x85e   :  { %v3052_v49 = vmul.f32 %v10387_v58, %v10387_v58  ;;  %v3020_v55 = vmul.f32 0.03125, %v3002_v21  ;;  %v10423_v21 = vadd.f32 1e-05, %v3067_v11 }
 0x860   :  { %v3068_v38 = vsub.f32 %v3020_v55, %v3052_v49  ;;  %v3151_v49 = vsub.f32 1.5, %v3150_v20  ;;  %v3179_v20 = vmul.f32 %v10426_v0, %v3178_v25  ;;  %vm3213_vm4 = vweird.f32 %v10423_v21 }
 0x862   :  { %v10421_v3 = vadd.f32 1e-05, %v3068_v38  ;;  %v3152_v11 = vmul.f32 %v10391_v24, %v3151_v49  ;;  %v3171_v49 = vsub.f32 1.5, %v3170_v36 }
 0x864   :  { %8561 = vrsqrt.f32 %v10421_v3  ;;  %v3156_v5 = vsel %vm10459_vm3, %v10391_v24, %v3152_v11  ;;  %v3172_v51 = vmul.f32 %v10408_v40, %v3171_v49  ;;  %v3199_v11 = vmul.f32 %v10440_v7, %v3198_v46 }
 0x865   :  { %8563 = vrsqrt.f32 %v10423_v21  ;;  %v10501_v49 = vmul.f32 %v3156_v5, %v3029_v48  ;;  %vm3223_vm8 = vweird.f32 %v10421_v3 }
 0x866   :  { %v3176_v5 = vsel %vm10505_vm9, %v10408_v40, %v3172_v51  ;;  %v3200_v2 = vmul.f32 0.5, %v3199_v11 }
 0x867   :  { %v10534_v26 = vmul.f32 %v3176_v5, %v3031_v4  ;;  %v3035_v5 = vsub.f32 %v10296_v42, %v10389_v33  ;;  %v10646_v42 = vld [vmem:[#allocation13 + $0x10] ss:$0 sm:$0xff] }
 0x868   :  { %v3201_v27 = vsub.f32 1.5, %v3200_v2 }
 0x86a   :  { %v10444_v52 = vpop.eup %8561 }
 0x86b   :  { %v3218_v13 = vmul.f32 %v10444_v52, %v10421_v3  ;;  %vm3224_vm2 = vweird.f32 %v10444_v52 }
 0x86c   :  { %vm10608_vm9 = vmor %vm3223_vm8, %vm3224_vm2 }
 0x86d   :  { %v3219_v45 = vmul.f32 %v10444_v52, %v3218_v13 }
 0x88b   :  { %v2940_v34 = vpop.xlane.xlu0 %2939 }
 0x88c   :  { %v10431_v10 = vmul.f32 0.03125, %v2940_v34  ;;  %v10452_v34 = vpop.eup %8563 }
 0x88d   :  { %v3004_v55 = vpop.xlane.xlu2 %3003  ;;  %v3208_v8 = vmul.f32 %v10452_v34, %v10423_v21 }
 0x88e   :  { %v3053_v47 = vmul.f32 %v10431_v10, %v10431_v10  ;;  %v3021_v54 = vmul.f32 0.03125, %v3004_v55  ;;  %v3188_v55 = vmul.f32 %v10438_v32, %v10414_v50  ;;  %v3037_v3 = vsub.f32 %v10308_v12, %v10431_v10 }
 0x890   :  { %v3069_v38 = vsub.f32 %v3021_v54, %v3053_v47  ;;  %v3189_v24 = vmul.f32 %v10438_v32, %v3188_v55  ;;  %v3034_v55 = vsub.f32 %v10290_v37, %v10385_v63 }
 0x892   :  { %v10450_v53 = vadd.f32 1e-05, %v3069_v38  ;;  %v3180_v38 = vmul.f32 0.5, %v3179_v20 }
 0x893   :  { %v2942_v47 = vpop.xlane.xlu1 %2941 }
 0x894   :  { %8565 = vrsqrt.f32 %v10450_v53  ;;  %v10467_v25 = vmul.f32 0.03125, %v2942_v47  ;;  %v3181_v46 = vsub.f32 1.5, %v3180_v38  ;;  %vm3233_vm3 = vweird.f32 %v10450_v53 }
 0x895   :  { %v3006_v54 = vpop.xlane.xlu0 %3005  ;;  %v2920_v36 = vpop.xlane.xlu2 %2919 }
 0x896   :  { %v3054_v47 = vmul.f32 %v10467_v25, %v10467_v25  ;;  %v3022_v6 = vmul.f32 0.03125, %v3006_v54  ;;  %v10492_v19 = vmul.f32 0.03125, %v2920_v36  ;;  %v3166_v54 = vsel %vm10483_vm5, %v10400_v16, %v3162_v59 }
 0x897   :  { %v3209_v16 = vmul.f32 %v10452_v34, %v3208_v8  ;;  %v10528_v40 = vmul.f32 %v10426_v0, %v3181_v46  ;;  %vm3214_vm5 = vweird.f32 %v10452_v34  ;;  %v3036_v46 = vsub.f32 %v10302_v62, %v10387_v58 }
 0x898   :  { %v3070_v20 = vsub.f32 %v3022_v6, %v3054_v47  ;;  %v3190_v47 = vmul.f32 0.5, %v3189_v24  ;;  %v10519_v6 = vmul.f32 %v3166_v54, %v3030_v39  ;;  %v3043_v38 = vmul.f32 %v10492_v19, %v10492_v19  ;;  %vm10622_vm10 = vmor %vm3213_vm4, %vm3214_vm5 }
 0x899   :  { %v3220_v24 = vmul.f32 0.5, %v3219_v45  ;;  %v3210_v39 = vmul.f32 0.5, %v3209_v16  ;;  %v3186_v61 = vsel %vm10544_vm12, %v10426_v0, %v10528_v40 }
 0x89a   :  { %v10503_v28 = vpop.eup %8565  ;;  %v10512_v59 = vadd.f32 1e-05, %v3070_v20  ;;  %v3191_v54 = vsub.f32 1.5, %v3190_v47 }
 0x89b   :  { %v3228_v13 = vmul.f32 %v10503_v28, %v10450_v53  ;;  %v2984_v48 = vpop.xlane.xlu1 %2983  ;;  %v3221_v4 = vsub.f32 1.5, %v3220_v24  ;;  %v3211_v47 = vsub.f32 1.5, %v3210_v39  ;;  %vm3234_vm15 = vweird.f32 %v10503_v28 }
 0x89c   :  { %8567 = vrsqrt.f32 %v10512_v59  ;;  %v3011_v8 = vmul.f32 0.03125, %v2984_v48  ;;  %v3192_v24 = vmul.f32 %v10438_v32, %v3191_v54  ;;  %vm10585_vm6 = vmor %vm3233_vm3, %vm3234_vm15  ;;  %vm3243_vm12 = vweird.f32 %v10512_v59 }
 0x89d   :  { %v3229_v20 = vmul.f32 %v10503_v28, %v3228_v13  ;;  %v2922_v36 = vpop.xlane.xlu0 %2921  ;;  %v2986_v14 = vpop.xlane.xlu2 %2985  ;;  %v3222_v33 = vmul.f32 %v10444_v52, %v3221_v4  ;;  %v3212_v39 = vmul.f32 %v10452_v34, %v3211_v47 }
 0x89e   :  { %v3059_v51 = vsub.f32 %v3011_v8, %v3043_v38  ;;  %v10530_v11 = vmul.f32 0.03125, %v2922_v36  ;;  %v3012_v29 = vmul.f32 0.03125, %v2986_v14 }
 0x89f   :  { %v3230_v48 = vmul.f32 0.5, %v3229_v20  ;;  %v3226_v10 = vsel %vm10608_vm9, %v10444_v52, %v3222_v33  ;;  %v3216_v21 = vsel %vm10622_vm10, %v10452_v34, %v3212_v39  ;;  %v3038_v52 = vsub.f32 %v10314_v43, %v10467_v25 }
 0x8a0   :  { %v10536_v45 = vadd.f32 1e-05, %v3059_v51  ;;  %v3044_v13 = vmul.f32 %v10530_v11, %v10530_v11  ;;  %v3260_v33 = vmul.f32 %v3226_v10, %v3036_v46  ;;  %v12595_v34 = vsub.f32 %v10278_v9, %v10373_v60 }
 0x8a1   :  { %v3231_v36 = vsub.f32 1.5, %v3230_v48  ;;  %v12596_v39 = vsub.f32 %v10284_v56, %v10382_v17  ;;  %v3259_v60 = vmul.f32 %v3216_v21, %v3035_v5  ;;  %v10670_v17 = vld [vmem:[#allocation13 + $0x11] ss:$0 sm:$0xff] }
 0x8a2   :  { %v10550_v16 = vpop.eup %8567  ;;  %8569 = vrsqrt.f32 %v10536_v45  ;;  %v3060_v14 = vsub.f32 %v3012_v29, %v3044_v13  ;;  %v3202_v29 = vmul.f32 %v10440_v7, %v3201_v27  ;;  %v3278_v63 = vmul.f32 %v10646_v42, %v3260_v33 }
 0x8a3   :  { %v3232_v2 = vmul.f32 %v10503_v28, %v3231_v36  ;;  %v3238_v38 = vmul.f32 %v10550_v16, %v10512_v59  ;;  %v2918_v8 = vpop.xlane.xlu1 %2917  ;;  %vm3244_vm11 = vweird.f32 %v10550_v16  ;;  %v3277_v62 = vmul.f32 %v10646_v42, %v3259_v60 }
 0x8a4   :  { %v10566_v20 = vadd.f32 1e-05, %v3060_v14  ;;  %v3206_v4 = vsel %vm10592_vm7, %v10440_v7, %v3202_v29  ;;  %vm3245_vm13 = vmor %vm3243_vm12, %vm3244_vm11  ;;  %vm3133_vm2 = vweird.f32 %v10536_v45 }
 0x8a5   :  { %v3239_v27 = vmul.f32 %v10550_v16, %v3238_v38  ;;  %v2916_v0 = vpop.xlane.xlu0 %2915  ;;  %v2980_v40 = vpop.xlane.xlu2 %2979  ;;  %v3236_v51 = vsel %vm10585_vm6, %v10503_v28, %v3232_v2  ;;  %v3196_v28 = vsel %vm10572_vm1, %v10438_v32, %v3192_v24  ;;  %v10640_v2 = vmul.f32 0.03125, %v2918_v8 }
 0x8a6   :  { %8571 = vrsqrt.f32 %v10566_v20  ;;  %v10600_v48 = vmul.f32 0.03125, %v2916_v0  ;;  %v3261_v32 = vmul.f32 %v3236_v51, %v3037_v3  ;;  %v3009_v36 = vmul.f32 0.03125, %v2980_v40 }
 0x8a7   :  { %v3240_v54 = vmul.f32 0.5, %v3239_v27  ;;  %v3256_v27 = vmul.f32 %v3186_v61, %v12595_v34  ;;  %v3257_v43 = vmul.f32 %v3196_v28, %v12596_v39  ;;  %v3258_v25 = vmul.f32 %v3206_v4, %v3034_v55 }
 0x8a8   :  { %v10602_v13 = vpop.eup %8569  ;;  %v3041_v7 = vmul.f32 %v10600_v48, %v10600_v48  ;;  %v3279_v9 = vmul.f32 %v10646_v42, %v3261_v32  ;;  %v3042_v51 = vmul.f32 %v10640_v2, %v10640_v2  ;;  %vm3143_vm0 = vweird.f32 %v10566_v20 }
 0x8a9   :  { %v3241_v58 = vsub.f32 1.5, %v3240_v54  ;;  %v3128_v12 = vmul.f32 %v10602_v13, %v10536_v45  ;;  %v3276_v5 = vmul.f32 %v10646_v42, %v3258_v25  ;;  %v3274_v44 = vmul.f32 %v10646_v42, %v3256_v27 }
 0x8aa   :  { %v3057_v29 = vsub.f32 %v3009_v36, %v3041_v7  ;;  %v10678_v28 = vadd.f32 %v10670_v17, %v3279_v9  ;;  %v3275_v7 = vmul.f32 %v10646_v42, %v3257_v43  ;;  %vm3134_vm15 = vweird.f32 %v10602_v13 }
 0x8ab   :  { %v3242_v47 = vmul.f32 %v10550_v16, %v3241_v58  ;;  %v3129_v14 = vmul.f32 %v10602_v13, %v3128_v12  ;;  %v2912_v38 = vpop.xlane.xlu1 %2911  ;;  %v3272_v9 = vmul.f32 %v10646_v42, %v10519_v6  ;;  %vm10726_vm3 = vmor %vm3133_vm2, %vm3134_vm15  ;;  %v3273_v45 = vmul.f32 %v10646_v42, %v10534_v26 }
 0x8ac   :  { %v10642_v24 = vpop.eup %8571  ;;  %v10660_v53 = vadd.f32 1e-05, %v3057_v29  ;;  %v10675_v3 = vmul.f32 0.03125, %v2912_v38  ;;  %12597 = vst [vmem:[#allocation43_spill] sm:$0xff] %v10678_v28  ;;  %v10698_v29 = vadd.f32 %v10670_v17, %v3276_v5 }
 0x8ad   :  { %v3246_v59 = vsel %vm3245_vm13, %v10550_v16, %v3242_v47  ;;  %v3138_v8 = vmul.f32 %v10642_v24, %v10566_v20  ;;  %v2982_v0 = vpop.xlane.xlu0 %2981  ;;  %v2914_v40 = vpop.xlane.xlu2 %2913  ;;  %v3130_v16 = vmul.f32 0.5, %v3129_v14  ;;  %v10692_v14 = vadd.f32 %v10670_v17, %v3278_v63 }
 0x8ae   :  { %v3262_v50 = vmul.f32 %v3246_v59, %v3038_v52  ;;  %v3010_v54 = vmul.f32 0.03125, %v2982_v0  ;;  %8573 = vrsqrt.f32 %v10660_v53  ;;  %v10667_v56 = vmul.f32 0.03125, %v2914_v40  ;;  %12600 = vst [vmem:[#allocation45_spill] sm:$0xff] %v10698_v29 }
 0x8af   :  { %v3139_v61 = vmul.f32 %v10642_v24, %v3138_v8  ;;  %v3131_v58 = vsub.f32 1.5, %v3130_v16  ;;  %12599 = vst [vmem:[#allocation44_spill] sm:$0xff] %v10692_v14  ;;  %vm3144_vm14 = vweird.f32 %v10642_v24  ;;  %v3039_v34 = vmul.f32 %v10675_v3, %v10675_v3 }
 0x8b0   :  { %v3280_v37 = vmul.f32 %v10646_v42, %v3262_v50  ;;  %v3058_v46 = vsub.f32 %v3010_v54, %v3042_v51  ;;  %v3040_v36 = vmul.f32 %v10667_v56, %v10667_v56  ;;  %v10703_v8 = vadd.f32 %v10670_v17, %v3277_v62  ;;  %vm10709_vm1 = vmor %vm3143_vm0, %vm3144_vm14 }
 0x8b1   :  { %v3140_v55 = vmul.f32 0.5, %v3139_v61  ;;  %v3132_v0 = vmul.f32 %v10602_v13, %v3131_v58  ;;  %v10721_v20 = vadd.f32 %v10670_v17, %v3275_v7  ;;  %v3028_v51 = vsub.f32 %v10324_v22, %v10530_v11 }
 0x8b2   :  { %v10681_v4 = vadd.f32 %v10670_v17, %v3280_v37  ;;  %v10684_v10 = vadd.f32 1e-05, %v3058_v46  ;;  %12601 = vst [vmem:[#allocation56_spill] sm:$0xff] %v10703_v8  ;;  %v3305_v50 = vpack.c.bf16 %v10692_v14, %v10703_v8  ;;  %v10740_v63 = vadd.f32 %v10670_v17, %v3274_v44 }
 0x8b3   :  { %v3141_v12 = vsub.f32 1.5, %v3140_v55  ;;  %v2978_v32 = vpop.xlane.xlu1 %2977  ;;  %12604 = vst [vmem:[#allocation57_spill] sm:$0xff] %v10721_v20  ;;  %v3136_v22 = vsel %vm10726_vm3, %v10602_v13, %v3132_v0  ;;  %v3027_v11 = vsub.f32 %v10317_v57, %v10492_v19  ;;  %v10750_v62 = vadd.f32 %v10670_v17, %v3273_v45  ;;  %v8252_v19 = vld [vmem:[#allocation8 + $0x20] sm:$0xff] }
 0x8b4   :  { %12598 = vst [vmem:[#allocation42_spill] sm:$0xff] %v10681_v4  ;;  %v3008_v21 = vmul.f32 0.03125, %v2978_v32  ;;  %v3306_v47 = vpack.c.bf16 %v10681_v4, %v10678_v28  ;;  %8575 = vrsqrt.f32 %v10684_v10  ;;  %v8574_v33 = vpop.eup %8573  ;;  %v3271_v44 = vmul.f32 %v10646_v42, %v10501_v49 }
 0x8b5   :  { %v3142_v38 = vmul.f32 %v10642_v24, %v3141_v12  ;;  %v2976_v52 = vpop.xlane.xlu0 %2975  ;;  %v3108_v40 = vmul.f32 %v8574_v33, %v10660_v53  ;;  %12607 = vst [vmem:[#allocation58_spill] sm:$0xff] %v10740_v63  ;;  %vm3114_vm4 = vweird.f32 %v8574_v33  ;;  %v3251_v58 = vmul.f32 %v3136_v22, %v3027_v11 }
 0x8b6   :  { %v3056_v27 = vsub.f32 %v3008_v21, %v3040_v36  ;;  %v3007_v59 = vmul.f32 0.03125, %v2976_v52  ;;  %3355 = vmatpush.bf16.msra.mxu2 %v3306_v47  ;;  %12608 = vst [vmem:[#allocation59_spill] sm:$0xff] %v10750_v62  ;;  %vm3113_vm5 = vweird.f32 %v10660_v53  ;;  %v3303_v32 = vpack.c.bf16 %v10740_v63, %v10750_v62 }
 0x8b7   :  { %v3109_v60 = vmul.f32 %v8574_v33, %v3108_v40  ;;  %v3146_v16 = vsel %vm10709_vm1, %v10642_v24, %v3142_v38  ;;  %v3304_v24 = vpack.c.bf16 %v10698_v29, %v10721_v20  ;;  %vm10755_vm6 = vmor %vm3113_vm5, %vm3114_vm4  ;;  %v10762_v7 = vadd.f32 %v10670_v17, %v3272_v9 }
 0x8b8   :  { %v10713_v43 = vadd.f32 1e-05, %v3056_v27  ;;  %v3055_v25 = vsub.f32 %v3007_v59, %v3039_v34  ;;  %v3252_v26 = vmul.f32 %v3146_v16, %v3028_v51  ;;  %v3025_v49 = vsub.f32 %v10333_v31, %v10600_v48 }
 0x8b9   :  { %v3110_v37 = vmul.f32 0.5, %v3109_v60  ;;  %12611 = vst [vmem:[#allocation60_spill] sm:$0xff] %v10762_v7  ;;  %v10771_v52 = vadd.f32 %v10670_v17, %v3271_v44  ;;  %v3269_v34 = vmul.f32 %v10646_v42, %v3251_v58  ;;  %vm3123_vm8 = vweird.f32 %v10684_v10  ;;  %v8249_v58 = vld [vmem:[#allocation8 + $0x8] sm:$0xff] }
 0x8ba   :  { %8577 = vrsqrt.f32 %v10713_v43  ;;  %v10733_v6 = vadd.f32 1e-05, %v3055_v25  ;;  %3356 = vmatpush.bf16.msra.mxu2 %v3305_v50  ;;  %v8576_v54 = vpop.eup %8575  ;;  %v3270_v36 = vmul.f32 %v10646_v42, %v3252_v26  ;;  %vm3103_vm11 = vweird.f32 %v10713_v43 }
 0x8bb   :  { %v3118_v55 = vmul.f32 %v8576_v54, %v10684_v10  ;;  %v3111_v46 = vsub.f32 1.5, %v3110_v37  ;;  %vm3124_vm7 = vweird.f32 %v8576_v54  ;;  %12612 = vst [vmem:[#allocation61_spill] sm:$0xff] %v10771_v52  ;;  %v3302_v31 = vpack.c.bf16 %v10762_v7, %v10771_v52 }
 0x8bc   :  { %8579 = vrsqrt.f32 %v10733_v6  ;;  %v10779_v48 = vadd.f32 %v10670_v17, %v3270_v36  ;;  %vm3125_vm9 = vmor %vm3123_vm8, %vm3124_vm7  ;;  %v10784_v50 = vadd.f32 %v10670_v17, %v3269_v34  ;;  %v3024_v37 = vsub.f32 %v10349_v15, %v10667_v56 }
 0x8bd   :  { %v3119_v5 = vmul.f32 %v8576_v54, %v3118_v55  ;;  %v3112_v13 = vmul.f32 %v8574_v33, %v3111_v46  ;;  %vm3093_vm14 = vweird.f32 %v10733_v6  ;;  %v3023_v11 = vsub.f32 %v10345_v35, %v10675_v3  ;;  %v8248_v3 = vld [vmem:[#allocation8] sm:$0xff] }
 0x8be   :  { %3357 = vmatpush.bf16.msra.mxu2 %v3304_v24  ;;  %12613 = vst [vmem:[#allocation62_spill] sm:$0xff] %v10779_v48  ;;  %v3301_v51 = vpack.c.bf16 %v10779_v48, %v10784_v50 }
 0x8bf   :  { %v3120_v12 = vmul.f32 0.5, %v3119_v5  ;;  %v3116_v53 = vsel %vm10755_vm6, %v8574_v33, %v3112_v13  ;;  %v3026_v33 = vsub.f32 %v10337_v23, %v10640_v2  ;;  %12614 = vst [vmem:[#allocation63_spill] sm:$0xff] %v10784_v50  ;;  %v8250_v13 = vld [vmem:[#allocation8 + $0x10] sm:$0xff] }
 0x8c0   :  { %v8578_v57 = vpop.eup %8577  ;;  %v3249_v0 = vmul.f32 %v3116_v53, %v3025_v49 }
 0x8c1   :  { %v3098_v21 = vmul.f32 %v8578_v57, %v10713_v43  ;;  %v3121_v38 = vsub.f32 1.5, %v3120_v12  ;;  %vm3104_vm10 = vweird.f32 %v8578_v57  ;;  %v8254_v12 = vld [vmem:[#allocation8 + $0x30] sm:$0xff] }
 0x8c2   :  { %v8580_v47 = vpop.eup %8579  ;;  %3358 = vmatpush.bf16.msra.mxu2 %v3303_v32  ;;  %v3267_v61 = vmul.f32 %v10646_v42, %v3249_v0  ;;  %vm3105_vm13 = vmor %vm3103_vm11, %vm3104_vm10  ;;  %v8294_v0 = vld [vmem:[#allocation10 + $0xf0] sm:$0xff] }
 0x8c3   :  { %v3099_v27 = vmul.f32 %v8578_v57, %v3098_v21  ;;  %v3088_v59 = vmul.f32 %v8580_v47, %v10733_v6  ;;  %v3122_v40 = vmul.f32 %v8576_v54, %v3121_v38  ;;  %vm3094_vm12 = vweird.f32 %v8580_v47 }
 0x8c4   :  { %v10796_v24 = vadd.f32 %v10670_v17, %v3267_v61  ;;  %vm3095_vm15 = vmor %vm3093_vm14, %vm3094_vm12  ;;  %v8288_v61 = vld [vmem:[#allocation10 + $0xc0] sm:$0xff] }
 0x8c5   :  { %v3100_v39 = vmul.f32 0.5, %v3099_v27  ;;  %v3089_v25 = vmul.f32 %v8580_v47, %v3088_v59  ;;  %v3126_v9 = vsel %vm3125_vm9, %v8576_v54, %v3122_v40  ;;  %v8295_v27 = vld [vmem:[#allocation10 + $0xf8] sm:$0xff] }
 0x8c6   :  { %3359 = vmatpush.bf16.msra.mxu2 %v3302_v31  ;;  %v3250_v16 = vmul.f32 %v3126_v9, %v3026_v33  ;;  %3527 = vmatpush.bf16.msra.mxu3 %v8295_v27  ;;  %v8293_v31 = vld [vmem:[#allocation10 + $0xe8] sm:$0xff]  ;;  %v8303_v33 = vld [vmem:[#allocation11 + $0x278] sm:$0xff]  ;;  %v12624_v27 = vld [vmem:[#allocation28_spill] sm:$0xff] }
 0x8c7   :  { %v3101_v60 = vsub.f32 1.5, %v3100_v39  ;;  %v3090_v10 = vmul.f32 0.5, %v3089_v25  ;;  %v8292_v39 = vld [vmem:[#allocation10 + $0xe0] sm:$0xff]  ;;  %3667 = vmatpush.bf16.msrb.mxu0 %v8303_v33  ;;  %v8291_v9 = vld [vmem:[#allocation10 + $0xd8] sm:$0xff] }
 0x8c8   :  { %v3268_v45 = vmul.f32 %v10646_v42, %v3250_v16  ;;  %v8289_v16 = vld [vmem:[#allocation10 + $0xc8] sm:$0xff] }
 0x8c9   :  { %v3102_v23 = vmul.f32 %v8578_v57, %v3101_v60  ;;  %v3091_v2 = vsub.f32 1.5, %v3090_v10  ;;  %v8290_v60 = vld [vmem:[#allocation10 + $0xd0] sm:$0xff] }
 0x8ca   :  { %3360 = vmatpush.bf16.msra.mxu2 %v3301_v51  ;;  %v10799_v43 = vadd.f32 %v10670_v17, %v3268_v45  ;;  %3528 = vmatpush.bf16.msra.mxu3 %v8294_v0 }
 0x8cb   :  { %v3092_v54 = vmul.f32 %v8580_v47, %v3091_v2  ;;  %v3106_v22 = vsel %vm3105_vm13, %v8578_v57, %v3102_v23  ;;  %v8251_v57 = vld [vmem:[#allocation8 + $0x18] sm:$0xff]  ;;  %v8302_v2 = vld [vmem:[#allocation11 + $0x270] sm:$0xff] }
 0x8cc   :  { %12615 = vst [vmem:[#allocation64_spill] sm:$0xff] %v10799_v43  ;;  %v3248_v55 = vmul.f32 %v3106_v22, %v3024_v37  ;;  %v3300_v15 = vpack.c.bf16 %v10799_v43, %v10796_v24  ;;  %3668 = vmatpush.bf16.msrb.mxu0 %v8302_v2 }
 0x8cd   :  { %v3096_v56 = vsel %vm3095_vm15, %v8580_v47, %v3092_v54 }
 0x8ce   :  { %v3247_v26 = vmul.f32 %v3096_v56, %v3023_v11  ;;  %v3266_v6 = vmul.f32 %v10646_v42, %v3248_v55  ;;  %3361 = vmatpush.bf16.msra.mxu2 %v3300_v15  ;;  %3529 = vmatpush.bf16.msra.mxu3 %v8293_v31  ;;  %v12617_v11 = vld [vmem:[#allocation34_spill] sm:$0xff]  ;;  %v12618_v15 = vld [vmem:[#allocation35_spill] sm:$0xff] }
 0x8d0   :  { %v3265_v46 = vmul.f32 %v10646_v42, %v3247_v26  ;;  %v10811_v44 = vadd.f32 %v10670_v17, %v3266_v6  ;;  %v8253_v42 = vld [vmem:[#allocation8 + $0x28] sm:$0xff] }
 0x8d2   :  { %v10808_v5 = vadd.f32 %v10670_v17, %v3265_v46  ;;  %12616 = vst [vmem:[#allocation65_spill] sm:$0xff] %v10811_v44  ;;  %v8255_v17 = vld [vmem:[#allocation8 + $0x38] sm:$0xff]  ;;  %3530 = vmatpush.bf16.msra.mxu3 %v8292_v39  ;;  %v12625_v39 = vld [vmem:[#allocation27_spill] sm:$0xff] }
 0x8d4   :  { %v3299_v35 = vpack.c.bf16 %v10811_v44, %v10808_v5 }
 0x8d6   :  { %3362 = vmatpush.bf16.msra.mxu2 %v3299_v35  ;;  %3531 = vmatpush.bf16.msra.mxu3 %v8291_v9  ;;  %v12619_v35 = vld [vmem:[#allocation32_spill] sm:$0xff]  ;;  %v12626_v9 = vld [vmem:[#allocation26_spill] sm:$0xff] }
 0x8d9   :  { %3363 = vmatmul.bf16.vlgmr.msra.gmra.mxu2 %v8248_v3 }
 0x8da   :  { %3532 = vmatpush.bf16.msra.mxu3 %v8290_v60 }
 0x8de   :  { %3533 = vmatpush.bf16.msra.mxu3 %v8289_v16  ;;  %v8299_v16 = vld [vmem:[#allocation11 + $0x258] sm:$0xff] }
 0x8e2   :  { %3534 = vmatpush.bf16.msra.mxu3 %v8288_v61 }
 0x8e9   :  { %3368 = vmatmul.bf16.gmra.mxu2 %v8249_v58  ;;  %v12620_v58 = vld [vmem:[#allocation33_spill] sm:$0xff] }
 0x8f9   :  { %3373 = vmatmul.bf16.gmra.mxu2 %v8250_v13 }
 0x909   :  { %3378 = vmatmul.bf16.gmra.mxu2 %v8251_v57 }
 0x919   :  { %3383 = vmatmul.bf16.gmra.mxu2 %v8252_v19  ;;  %v8301_v19 = vld [vmem:[#allocation11 + $0x268] sm:$0xff] }
 0x91a   :  { %3669 = vmatpush.bf16.msrb.mxu0 %v8301_v19 }
 0x929   :  { %3388 = vmatmul.bf16.gmra.mxu2 %v8253_v42 }
 0x939   :  { %3393 = vmatmul.bf16.gmra.mxu2 %v8254_v12 }
 0x949   :  { %3398 = vmatmul.bf16.gmra.mxu2 %v8255_v17  ;;  %v12621_v17 = vld [vmem:[#allocation30_spill] sm:$0xff] }
 0x95c   :  { %v3364_v32 = vpop.f32.mrf.mxu2 }
 0x95d   :  { %3404 = vrot.lane.b32.xlu2 %v3364_v32, %s8915_s6 }
 0x964   :  { %v3366_v36 = vpop.f32.mrf.mxu2 }
 0x965   :  { %3406 = vrot.lane.b32.xlu0 %v3366_v36, %s8915_s6  ;;  %v12622_v36 = vld [vmem:[#allocation31_spill] sm:$0xff] }
 0x96c   :  { %v3369_v49 = vpop.f32.mrf.mxu2 }
 0x96d   :  { %3408 = vrot.lane.b32.xlu1 %v3369_v49, %s8915_s6 }
 0x974   :  { %v3371_v21 = vpop.f32.mrf.mxu2 }
 0x975   :  { %3410 = vrot.lane.b32.xlu0 %v3371_v21, %s8915_s6 }
 0x97c   :  { %v3374_v53 = vpop.f32.mrf.mxu2 }
 0x97d   :  { %3412 = vrot.lane.b32.xlu2 %v3374_v53, %s8915_s6 }
 0x984   :  { %v3376_v47 = vpop.f32.mrf.mxu2 }
 0x985   :  { %3414 = vrot.lane.b32.xlu0 %v3376_v47, %s8915_s6 }
 0x98c   :  { %v3379_v38 = vpop.f32.mrf.mxu2 }
 0x98d   :  { %3416 = vrot.lane.b32.xlu2 %v3379_v38, %s8915_s6  ;;  %v12623_v38 = vld [vmem:[#allocation29_spill] sm:$0xff] }
 0x994   :  { %v3381_v34 = vpop.f32.mrf.mxu2 }
 0x995   :  { %3418 = vrot.lane.b32.xlu1 %v3381_v34, %s8915_s6 }
 0x99c   :  { %v3384_v59 = vpop.f32.mrf.mxu2 }
 0x99d   :  { %3420 = vrot.lane.b32.xlu0 %v3384_v59, %s8915_s6 }
 0x9a4   :  { %v3386_v40 = vpop.f32.mrf.mxu2 }
 0x9a5   :  { %3422 = vrot.lane.b32.xlu2 %v3386_v40, %s8915_s6  ;;  %v8300_v40 = vld [vmem:[#allocation11 + $0x260] sm:$0xff] }
 0x9a6   :  { %3670 = vmatpush.bf16.msrb.mxu0 %v8300_v40 }
 0x9aa   :  { %3671 = vmatpush.bf16.msrb.mxu0 %v8299_v16 }
 0x9ac   :  { %v3389_v25 = vpop.f32.mrf.mxu2 }
 0x9ad   :  { %3424 = vrot.lane.b32.xlu1 %v3389_v25, %s8915_s6 }
 0x9b4   :  { %v3391_v10 = vpop.f32.mrf.mxu2 }
 0x9b5   :  { %3426 = vrot.lane.b32.xlu0 %v3391_v10, %s8915_s6 }
 0x9b7   :  { %v3405_v54 = vpop.permute.xlu2 %3404 }
 0x9b8   :  { %v3436_v55 = vadd.f32 %v3405_v54, %v12617_v11 }
 0x9bc   :  { %v3394_v51 = vpop.f32.mrf.mxu2 }
 0x9bd   :  { %3428 = vrot.lane.b32.xlu2 %v3394_v51, %s8915_s6 }
 0x9c4   :  { %v3396_v23 = vpop.f32.mrf.mxu2 }
 0x9c5   :  { %3430 = vrot.lane.b32.xlu1 %v3396_v23, %s8915_s6  ;;  %v12627_v23 = vld [vmem:[#allocation25_spill] sm:$0xff] }
 0x9cc   :  { %v3399_v45 = vpop.f32.mrf.mxu2 }
 0x9cd   :  { %3432 = vrot.lane.b32.xlu0 %v3399_v45, %s8915_s6  ;;  %v12628_v45 = vld [vmem:[#allocation20_spill] sm:$0xff] }
 0x9d4   :  { %v3401_v37 = vpop.f32.mrf.mxu2 }
 0x9d5   :  { %3434 = vrot.lane.b32.xlu2 %v3401_v37, %s8915_s6 }
 0x9d7   :  { %v3407_v22 = vpop.permute.xlu0 %3406  ;;  %v3413_v42 = vpop.permute.xlu2 %3412 }
 0x9d8   :  { %v3437_v56 = vadd.f32 %v3407_v22, %v12618_v15  ;;  %v3440_v32 = vadd.f32 %v3413_v42, %v12621_v17  ;;  %v12631_v42 = vld [vmem:[#allocation21_spill] sm:$0xff] }
 0x9da   :  { %v3469_v26 = vpack.c.bf16 %v3437_v56, %v3436_v55  ;;  %v12629_v56 = vld [vmem:[#allocation24_spill] sm:$0xff] }
 0x9dc   :  { %3535 = vmatmul.bf16.vlgmr.msra.gmra.mxu3 %v3469_v26 }
 0x9df   :  { %v3409_v6 = vpop.permute.xlu1 %3408 }
 0x9e0   :  { %v3438_v3 = vadd.f32 %v3409_v6, %v12619_v35  ;;  %v12630_v6 = vld [vmem:[#allocation23_spill] sm:$0xff] }
 0x9e7   :  { %v3411_v46 = vpop.permute.xlu0 %3410  ;;  %v3417_v53 = vpop.permute.xlu2 %3416 }
 0x9e8   :  { %v3439_v13 = vadd.f32 %v3411_v46, %v12620_v58  ;;  %v3442_v34 = vadd.f32 %v3417_v53, %v12623_v38 }
 0x9ea   :  { %v3470_v57 = vpack.c.bf16 %v3439_v13, %v3438_v3  ;;  %v8298_v13 = vld [vmem:[#allocation11 + $0x250] sm:$0xff] }
 0x9eb   :  { %3672 = vmatpush.bf16.msrb.mxu0 %v8298_v13 }
 0x9ec   :  { %3540 = vmatmul.bf16.gmra.mxu3 %v3470_v57 }
 0x9f7   :  { %v3415_v12 = vpop.permute.xlu0 %3414 }
 0x9f8   :  { %v3441_v49 = vadd.f32 %v3415_v12, %v12622_v36  ;;  %v11126_v36 = vld [vmem:[#allocation13 + $0x16] ss:$0 sm:$0xff] }
 0x9fa   :  { %v3471_v21 = vpack.c.bf16 %v3441_v49, %v3440_v32  ;;  %v8297_v32 = vld [vmem:[#allocation11 + $0x248] sm:$0xff]  ;;  %v12632_v49 = vld [vmem:[#allocation22_spill] sm:$0xff] }
 0x9fb   :  { %3673 = vmatpush.bf16.msrb.mxu0 %v8297_v32 }
 0x9fc   :  { %3545 = vmatmul.bf16.gmra.mxu3 %v3471_v21 }
 0x9ff   :  { %v3423_v33 = vpop.permute.xlu2 %3422 }
 0xa00   :  { %v3445_v60 = vadd.f32 %v3423_v33, %v12626_v9 }
 0xa07   :  { %v3419_v47 = vpop.permute.xlu1 %3418 }
 0xa08   :  { %v3443_v59 = vadd.f32 %v3419_v47, %v12624_v27  ;;  %v8296_v47 = vld [vmem:[#allocation11 + $0x240] sm:$0xff] }
 0xa09   :  { %3674 = vmatpush.bf16.msrb.mxu0 %v8296_v47 }
 0xa0a   :  { %v3472_v0 = vpack.c.bf16 %v3443_v59, %v3442_v34  ;;  %v10847_v59 = vld [vmem:[#allocation13 + $0x12] ss:$0 sm:$0xff] }
 0xa0c   :  { %3550 = vmatmul.bf16.gmra.mxu3 %v3472_v0 }
 0xa0f   :  { %v3421_v31 = vpop.permute.xlu0 %3420 }
 0xa10   :  { %v3444_v25 = vadd.f32 %v3421_v31, %v12625_v39 }
 0xa12   :  { %v3473_v10 = vpack.c.bf16 %v3445_v60, %v3444_v25 }
 0xa17   :  { %v3429_v22 = vpop.permute.xlu2 %3428 }
 0xa18   :  { %v3448_v26 = vadd.f32 %v3429_v22, %v12629_v56 }
 0xa1c   :  { %3555 = vmatmul.bf16.gmra.mxu3 %v3473_v10 }
 0xa1f   :  { %v3425_v61 = vpop.permute.xlu1 %3424 }
 0xa20   :  { %v3446_v2 = vadd.f32 %v3425_v61, %v12627_v23 }
 0xa27   :  { %v3427_v51 = vpop.permute.xlu0 %3426 }
 0xa28   :  { %v3447_v37 = vadd.f32 %v3427_v51, %v12628_v45 }
 0xa2a   :  { %v3474_v54 = vpack.c.bf16 %v3447_v37, %v3446_v2 }
 0xa2c   :  { %3560 = vmatmul.bf16.gmra.mxu3 %v3474_v54 }
 0xa2f   :  { %v3435_v19 = vpop.permute.xlu2 %3434 }
 0xa30   :  { %v3451_v21 = vadd.f32 %v3435_v19, %v12632_v49 }
 0xa37   :  { %v3431_v55 = vpop.permute.xlu1 %3430 }
 0xa38   :  { %v3449_v46 = vadd.f32 %v3431_v55, %v12630_v6 }
 0xa3a   :  { %v3475_v3 = vpack.c.bf16 %v3449_v46, %v3448_v26 }
 0xa3c   :  { %3565 = vmatmul.bf16.gmra.mxu3 %v3475_v3 }
 0xa3f   :  { %v3433_v57 = vpop.permute.xlu0 %3432 }
 0xa40   :  { %v3450_v12 = vadd.f32 %v3433_v57, %v12631_v42 }
 0xa42   :  { %v3476_v53 = vpack.c.bf16 %v3451_v21, %v3450_v12 }
 0xa4c   :  { %3570 = vmatmul.bf16.gmra.mxu3 %v3476_v53 }
 0xa5f   :  { %v3536_v34 = vpop.f32.mrf.mxu3 }
 0xa60   :  { %v3537_v0 = vadd.f32 %v10847_v59, %v3536_v34 }
 0xa62   :  { %v3576_v33 = vmax.f32 %v3537_v0, 0.0 }
 0xa67   :  { %v3538_v40 = vpop.f32.mrf.mxu3 }
 0xa68   :  { %v3539_v31 = vadd.f32 %v10847_v59, %v3538_v40 }
 0xa6a   :  { %v3577_v25 = vmax.f32 %v3539_v31, 0.0 }
 0xa6c   :  { %v3609_v60 = vpack.c.bf16 %v3577_v25, %v3576_v33 }
 0xa6e   :  { %3675 = vmatmul.bf16.vlgmr.msrb.gmra.mxu0 %v3609_v60 }
 0xa6f   :  { %v3541_v10 = vpop.f32.mrf.mxu3 }
 0xa70   :  { %v3542_v16 = vadd.f32 %v10847_v59, %v3541_v10 }
 0xa72   :  { %v3578_v2 = vmax.f32 %v3542_v16, 0.0 }
 0xa77   :  { %v3543_v61 = vpop.f32.mrf.mxu3 }
 0xa78   :  { %v3544_v51 = vadd.f32 %v10847_v59, %v3543_v61 }
 0xa7a   :  { %v3579_v37 = vmax.f32 %v3544_v51, 0.0 }
 0xa7c   :  { %v3610_v54 = vpack.c.bf16 %v3579_v37, %v3578_v2 }
 0xa7e   :  { %3680 = vmatmul.bf16.gmra.mxu0 %v3610_v54 }
 0xa7f   :  { %v3546_v22 = vpop.f32.mrf.mxu3 }
 0xa80   :  { %v3547_v55 = vadd.f32 %v10847_v59, %v3546_v22  ;;  %v8311_v22 = vld [vmem:[#allocation11 + $0x2b8] sm:$0xff] }
 0xa81   :  { %3807 = vmatpush.bf16.msra.mxu1 %v8311_v22 }
 0xa82   :  { %v3580_v3 = vmax.f32 %v3547_v55, 0.0 }
 0xa87   :  { %v3548_v26 = vpop.f32.mrf.mxu3 }
 0xa88   :  { %v3549_v46 = vadd.f32 %v10847_v59, %v3548_v26  ;;  %v8310_v26 = vld [vmem:[#allocation11 + $0x2b0] sm:$0xff] }
 0xa89   :  { %3808 = vmatpush.bf16.msra.mxu1 %v8310_v26 }
 0xa8a   :  { %v3581_v13 = vmax.f32 %v3549_v46, 0.0 }
 0xa8c   :  { %v3611_v57 = vpack.c.bf16 %v3581_v13, %v3580_v3  ;;  %v8309_v3 = vld [vmem:[#allocation11 + $0x2a8] sm:$0xff]  ;;  %v8308_v13 = vld [vmem:[#allocation11 + $0x2a0] sm:$0xff] }
 0xa8d   :  { %3809 = vmatpush.bf16.msra.mxu1 %v8309_v3 }
 0xa8e   :  { %3685 = vmatmul.bf16.gmra.mxu0 %v3611_v57 }
 0xa8f   :  { %v3551_v19 = vpop.f32.mrf.mxu3 }
 0xa90   :  { %v3552_v12 = vadd.f32 %v10847_v59, %v3551_v19 }
 0xa91   :  { %3810 = vmatpush.bf16.msra.mxu1 %v8308_v13 }
 0xa92   :  { %v3582_v53 = vmax.f32 %v3552_v12, 0.0 }
 0xa97   :  { %v3553_v32 = vpop.f32.mrf.mxu3 }
 0xa98   :  { %v3554_v21 = vadd.f32 %v10847_v59, %v3553_v32 }
 0xa9a   :  { %v3583_v47 = vmax.f32 %v3554_v21, 0.0 }
 0xa9c   :  { %v3612_v34 = vpack.c.bf16 %v3583_v47, %v3582_v53  ;;  %v8307_v53 = vld [vmem:[#allocation11 + $0x298] sm:$0xff] }
 0xa9d   :  { %3811 = vmatpush.bf16.msra.mxu1 %v8307_v53 }
 0xa9e   :  { %3690 = vmatmul.bf16.gmra.mxu0 %v3612_v34  ;;  %v8306_v34 = vld [vmem:[#allocation11 + $0x290] sm:$0xff] }
 0xa9f   :  { %v3556_v0 = vpop.f32.mrf.mxu3 }
 0xaa0   :  { %v3557_v40 = vadd.f32 %v10847_v59, %v3556_v0 }
 0xaa1   :  { %3812 = vmatpush.bf16.msra.mxu1 %v8306_v34 }
 0xaa2   :  { %v3584_v25 = vmax.f32 %v3557_v40, 0.0  ;;  %v8305_v40 = vld [vmem:[#allocation11 + $0x288] sm:$0xff] }
 0xaa5   :  { %3813 = vmatpush.bf16.msra.mxu1 %v8305_v40 }
 0xaa7   :  { %v3558_v31 = vpop.f32.mrf.mxu3 }
 0xaa8   :  { %v3559_v33 = vadd.f32 %v10847_v59, %v3558_v31 }
 0xaaa   :  { %v3585_v60 = vmax.f32 %v3559_v33, 0.0 }
 0xaac   :  { %v3613_v10 = vpack.c.bf16 %v3585_v60, %v3584_v25  ;;  %v8304_v25 = vld [vmem:[#allocation11 + $0x280] sm:$0xff] }
 0xaad   :  { %3814 = vmatpush.bf16.msra.mxu1 %v8304_v25 }
 0xaae   :  { %3695 = vmatmul.bf16.gmra.mxu0 %v3613_v10 }
 0xaaf   :  { %v3561_v16 = vpop.f32.mrf.mxu3 }
 0xab0   :  { %v3562_v61 = vadd.f32 %v10847_v59, %v3561_v16 }
 0xab2   :  { %v3586_v37 = vmax.f32 %v3562_v61, 0.0 }
 0xab7   :  { %v3563_v51 = vpop.f32.mrf.mxu3 }
 0xab8   :  { %v3564_v2 = vadd.f32 %v10847_v59, %v3563_v51 }
 0xaba   :  { %v3587_v54 = vmax.f32 %v3564_v2, 0.0  ;;  %v10865_v2 = vld [vmem:[#allocation13 + $0x13] ss:$0 sm:$0xff] }
 0xabc   :  { %v3614_v55 = vpack.c.bf16 %v3587_v54, %v3586_v37 }
 0xabe   :  { %3700 = vmatmul.bf16.gmra.mxu0 %v3614_v55 }
 0xabf   :  { %v3566_v46 = vpop.f32.mrf.mxu3 }
 0xac0   :  { %v3567_v57 = vadd.f32 %v10847_v59, %v3566_v46 }
 0xac2   :  { %v3588_v32 = vmax.f32 %v3567_v57, 0.0 }
 0xac7   :  { %v3568_v19 = vpop.f32.mrf.mxu3 }
 0xac8   :  { %v3569_v12 = vadd.f32 %v10847_v59, %v3568_v19 }
 0xaca   :  { %v3589_v21 = vmax.f32 %v3569_v12, 0.0 }
 0xacc   :  { %v3615_v47 = vpack.c.bf16 %v3589_v21, %v3588_v32 }
 0xace   :  { %3705 = vmatmul.bf16.gmra.mxu0 %v3615_v47 }
 0xacf   :  { %v3571_v0 = vpop.f32.mrf.mxu3 }
 0xad0   :  { %v3572_v31 = vadd.f32 %v10847_v59, %v3571_v0 }
 0xad2   :  { %v3590_v10 = vmax.f32 %v3572_v31, 0.0 }
 0xad7   :  { %v3573_v33 = vpop.f32.mrf.mxu3 }
 0xad8   :  { %v3574_v60 = vadd.f32 %v10847_v59, %v3573_v33 }
 0xada   :  { %v3591_v16 = vmax.f32 %v3574_v60, 0.0 }
 0xadc   :  { %v3616_v61 = vpack.c.bf16 %v3591_v16, %v3590_v10 }
 0xade   :  { %3710 = vmatmul.bf16.gmra.mxu0 %v3616_v61 }
 0xaeb   :  { %v3676_v51 = vpop.f32.mrf.mxu0 }
 0xaec   :  { %v3677_v37 = vadd.f32 %v10865_v2, %v3676_v51 }
 0xaee   :  { %v3716_v55 = vmax.f32 %v3677_v37, 0.0 }
 0xaf3   :  { %v3678_v54 = vpop.f32.mrf.mxu0 }
 0xaf4   :  { %v3679_v22 = vadd.f32 %v10865_v2, %v3678_v54 }
 0xaf6   :  { %v3717_v26 = vmax.f32 %v3679_v22, 0.0 }
 0xaf8   :  { %v3749_v46 = vpack.c.bf16 %v3717_v26, %v3716_v55 }
 0xafa   :  { %3815 = vmatmul.bf16.vlgmr.msra.gmra.mxu1 %v3749_v46 }
 0xafb   :  { %v3681_v3 = vpop.f32.mrf.mxu0 }
 0xafc   :  { %v3682_v59 = vadd.f32 %v10865_v2, %v3681_v3 }
 0xafe   :  { %v3718_v19 = vmax.f32 %v3682_v59, 0.0 }
 0xb03   :  { %v3683_v13 = vpop.f32.mrf.mxu0 }
 0xb04   :  { %v3684_v57 = vadd.f32 %v10865_v2, %v3683_v13 }
 0xb06   :  { %v3719_v12 = vmax.f32 %v3684_v57, 0.0 }
 0xb08   :  { %v3750_v32 = vpack.c.bf16 %v3719_v12, %v3718_v19 }
 0xb0a   :  { %3820 = vmatmul.bf16.gmra.mxu1 %v3750_v32 }
 0xb0b   :  { %v3686_v21 = vpop.f32.mrf.mxu0 }
 0xb0c   :  { %v3687_v53 = vadd.f32 %v10865_v2, %v3686_v21  ;;  %v8319_v21 = vld [vmem:[#allocation11 + $0x2f8] sm:$0xff] }
 0xb0d   :  { %3947 = vmatpush.bf16.msrb.mxu2 %v8319_v21 }
 0xb0e   :  { %v3720_v0 = vmax.f32 %v3687_v53, 0.0 }
 0xb13   :  { %v3688_v47 = vpop.f32.mrf.mxu0 }
 0xb14   :  { %v3689_v34 = vadd.f32 %v10865_v2, %v3688_v47  ;;  %v8318_v47 = vld [vmem:[#allocation11 + $0x2f0] sm:$0xff] }
 0xb15   :  { %3948 = vmatpush.bf16.msrb.mxu2 %v8318_v47 }
 0xb16   :  { %v3721_v40 = vmax.f32 %v3689_v34, 0.0 }
 0xb18   :  { %v3751_v31 = vpack.c.bf16 %v3721_v40, %v3720_v0  ;;  %v8317_v0 = vld [vmem:[#allocation11 + $0x2e8] sm:$0xff]  ;;  %v8316_v40 = vld [vmem:[#allocation11 + $0x2e0] sm:$0xff] }
 0xb19   :  { %3949 = vmatpush.bf16.msrb.mxu2 %v8317_v0 }
 0xb1a   :  { %3825 = vmatmul.bf16.gmra.mxu1 %v3751_v31 }
 0xb1b   :  { %v3691_v33 = vpop.f32.mrf.mxu0 }
 0xb1c   :  { %v3692_v25 = vadd.f32 %v10865_v2, %v3691_v33 }
 0xb1d   :  { %3950 = vmatpush.bf16.msrb.mxu2 %v8316_v40 }
 0xb1e   :  { %v3722_v16 = vmax.f32 %v3692_v25, 0.0 }
 0xb23   :  { %v3693_v60 = vpop.f32.mrf.mxu0 }
 0xb24   :  { %v3694_v10 = vadd.f32 %v10865_v2, %v3693_v60 }
 0xb26   :  { %v3723_v61 = vmax.f32 %v3694_v10, 0.0 }
 0xb28   :  { %v3752_v51 = vpack.c.bf16 %v3723_v61, %v3722_v16  ;;  %v8315_v16 = vld [vmem:[#allocation11 + $0x2d8] sm:$0xff] }
 0xb29   :  { %3951 = vmatpush.bf16.msrb.mxu2 %v8315_v16 }
 0xb2a   :  { %3830 = vmatmul.bf16.gmra.mxu1 %v3752_v51  ;;  %v8314_v51 = vld [vmem:[#allocation11 + $0x2d0] sm:$0xff] }
 0xb2b   :  { %v3696_v37 = vpop.f32.mrf.mxu0 }
 0xb2c   :  { %v3697_v54 = vadd.f32 %v10865_v2, %v3696_v37 }
 0xb2d   :  { %3952 = vmatpush.bf16.msrb.mxu2 %v8314_v51 }
 0xb2e   :  { %v3724_v26 = vmax.f32 %v3697_v54, 0.0  ;;  %v8313_v54 = vld [vmem:[#allocation11 + $0x2c8] sm:$0xff] }
 0xb31   :  { %3953 = vmatpush.bf16.msrb.mxu2 %v8313_v54 }
 0xb33   :  { %v3698_v22 = vpop.f32.mrf.mxu0 }
 0xb34   :  { %v3699_v55 = vadd.f32 %v10865_v2, %v3698_v22 }
 0xb36   :  { %v3725_v46 = vmax.f32 %v3699_v55, 0.0 }
 0xb38   :  { %v3753_v3 = vpack.c.bf16 %v3725_v46, %v3724_v26  ;;  %v8312_v26 = vld [vmem:[#allocation11 + $0x2c0] sm:$0xff] }
 0xb39   :  { %3954 = vmatpush.bf16.msrb.mxu2 %v8312_v26 }
 0xb3a   :  { %3835 = vmatmul.bf16.gmra.mxu1 %v3753_v3 }
 0xb3b   :  { %v3701_v59 = vpop.f32.mrf.mxu0 }
 0xb3c   :  { %v3702_v13 = vadd.f32 %v10865_v2, %v3701_v59 }
 0xb3e   :  { %v3726_v12 = vmax.f32 %v3702_v13, 0.0 }
 0xb43   :  { %v3703_v57 = vpop.f32.mrf.mxu0 }
 0xb44   :  { %v3704_v19 = vadd.f32 %v10865_v2, %v3703_v57 }
 0xb46   :  { %v3727_v32 = vmax.f32 %v3704_v19, 0.0  ;;  %v8465_v19 = vld [vmem:[#allocation13 + $0x14] ss:$0 sm:$0xff] }
 0xb48   :  { %v3754_v53 = vpack.c.bf16 %v3727_v32, %v3726_v12 }
 0xb4a   :  { %3840 = vmatmul.bf16.gmra.mxu1 %v3754_v53 }
 0xb4b   :  { %v3706_v34 = vpop.f32.mrf.mxu0 }
 0xb4c   :  { %v3707_v31 = vadd.f32 %v10865_v2, %v3706_v34 }
 0xb4e   :  { %v3728_v60 = vmax.f32 %v3707_v31, 0.0 }
 0xb53   :  { %v3708_v33 = vpop.f32.mrf.mxu0 }
 0xb54   :  { %v3709_v25 = vadd.f32 %v10865_v2, %v3708_v33 }
 0xb56   :  { %v3729_v10 = vmax.f32 %v3709_v25, 0.0 }
 0xb58   :  { %v3755_v61 = vpack.c.bf16 %v3729_v10, %v3728_v60 }
 0xb5a   :  { %3845 = vmatmul.bf16.gmra.mxu1 %v3755_v61 }
 0xb5b   :  { %v3711_v37 = vpop.f32.mrf.mxu0 }
 0xb5c   :  { %v3712_v22 = vadd.f32 %v10865_v2, %v3711_v37 }
 0xb5e   :  { %v3730_v3 = vmax.f32 %v3712_v22, 0.0 }
 0xb63   :  { %v3713_v55 = vpop.f32.mrf.mxu0 }
 0xb64   :  { %v3714_v46 = vadd.f32 %v10865_v2, %v3713_v55 }
 0xb66   :  { %v3731_v59 = vmax.f32 %v3714_v46, 0.0 }
 0xb68   :  { %v3756_v13 = vpack.c.bf16 %v3731_v59, %v3730_v3 }
 0xb6a   :  { %3850 = vmatmul.bf16.gmra.mxu1 %v3756_v13 }
 0xb77   :  { %v3816_v57 = vpop.f32.mrf.mxu1 }
 0xb78   :  { %v3817_v12 = vadd.f32 %v8465_v19, %v3816_v57 }
 0xb7a   :  { %v3856_v53 = vmax.f32 %v3817_v12, 0.0 }
 0xb7f   :  { %v3818_v32 = vpop.f32.mrf.mxu1 }
 0xb80   :  { %v3819_v21 = vadd.f32 %v8465_v19, %v3818_v32 }
 0xb82   :  { %v3857_v47 = vmax.f32 %v3819_v21, 0.0 }
 0xb84   :  { %v3889_v34 = vpack.c.bf16 %v3857_v47, %v3856_v53 }
 0xb86   :  { %3955 = vmatmul.bf16.vlgmr.msrb.gmra.mxu2 %v3889_v34 }
 0xb87   :  { %v3821_v0 = vpop.f32.mrf.mxu1 }
 0xb88   :  { %v3822_v40 = vadd.f32 %v8465_v19, %v3821_v0 }
 0xb8a   :  { %v3858_v25 = vmax.f32 %v3822_v40, 0.0 }
 0xb8f   :  { %v3823_v31 = vpop.f32.mrf.mxu1 }
 0xb90   :  { %v3824_v33 = vadd.f32 %v8465_v19, %v3823_v31 }
 0xb92   :  { %v3859_v2 = vmax.f32 %v3824_v33, 0.0 }
 0xb94   :  { %v3890_v60 = vpack.c.bf16 %v3859_v2, %v3858_v25 }
 0xb96   :  { %3960 = vmatmul.bf16.gmra.mxu2 %v3890_v60 }
 0xb97   :  { %v3826_v10 = vpop.f32.mrf.mxu1 }
 0xb98   :  { %v3827_v16 = vadd.f32 %v8465_v19, %v3826_v10 }
 0xb9a   :  { %v3860_v37 = vmax.f32 %v3827_v16, 0.0 }
 0xb9f   :  { %v3828_v61 = vpop.f32.mrf.mxu1 }
 0xba0   :  { %v3829_v51 = vadd.f32 %v8465_v19, %v3828_v61 }
 0xba2   :  { %v3861_v54 = vmax.f32 %v3829_v51, 0.0 }
 0xba4   :  { %v3891_v22 = vpack.c.bf16 %v3861_v54, %v3860_v37 }
 0xba6   :  { %3965 = vmatmul.bf16.gmra.mxu2 %v3891_v22 }
 0xba7   :  { %v3831_v55 = vpop.f32.mrf.mxu1 }
 0xba8   :  { %v3832_v26 = vadd.f32 %v8465_v19, %v3831_v55 }
 0xbaa   :  { %v3862_v59 = vmax.f32 %v3832_v26, 0.0 }
 0xbaf   :  { %v3833_v46 = vpop.f32.mrf.mxu1 }
 0xbb0   :  { %v3834_v3 = vadd.f32 %v8465_v19, %v3833_v46 }
 0xbb2   :  { %v3863_v13 = vmax.f32 %v3834_v3, 0.0 }
 0xbb4   :  { %v3892_v57 = vpack.c.bf16 %v3863_v13, %v3862_v59 }
 0xbb6   :  { %3970 = vmatmul.bf16.gmra.mxu2 %v3892_v57 }
 0xbb7   :  { %v3836_v12 = vpop.f32.mrf.mxu1 }
 0xbb8   :  { %v3837_v32 = vadd.f32 %v8465_v19, %v3836_v12 }
 0xbba   :  { %v3864_v47 = vmax.f32 %v3837_v32, 0.0 }
 0xbbf   :  { %v3838_v21 = vpop.f32.mrf.mxu1 }
 0xbc0   :  { %v3839_v53 = vadd.f32 %v8465_v19, %v3838_v21 }
 0xbc2   :  { %v3865_v34 = vmax.f32 %v3839_v53, 0.0 }
 0xbc4   :  { %v3893_v0 = vpack.c.bf16 %v3865_v34, %v3864_v47 }
 0xbc6   :  { %3975 = vmatmul.bf16.gmra.mxu2 %v3893_v0 }
 0xbc7   :  { %v3841_v40 = vpop.f32.mrf.mxu1 }
 0xbc8   :  { %v3842_v31 = vadd.f32 %v8465_v19, %v3841_v40  ;;  %v10889_v40 = vld [vmem:[#allocation13 + $0x15] ss:$0 sm:$0xff] }
 0xbca   :  { %v3866_v2 = vmax.f32 %v3842_v31, 0.0 }
 0xbcf   :  { %v3843_v33 = vpop.f32.mrf.mxu1 }
 0xbd0   :  { %v3844_v25 = vadd.f32 %v8465_v19, %v3843_v33 }
 0xbd2   :  { %v3867_v60 = vmax.f32 %v3844_v25, 0.0 }
 0xbd4   :  { %v3894_v10 = vpack.c.bf16 %v3867_v60, %v3866_v2 }
 0xbd6   :  { %3980 = vmatmul.bf16.gmra.mxu2 %v3894_v10 }
 0xbd7   :  { %v3846_v16 = vpop.f32.mrf.mxu1 }
 0xbd8   :  { %v3847_v61 = vadd.f32 %v8465_v19, %v3846_v16 }
 0xbda   :  { %v3868_v54 = vmax.f32 %v3847_v61, 0.0 }
 0xbdf   :  { %v3848_v51 = vpop.f32.mrf.mxu1 }
 0xbe0   :  { %v3849_v37 = vadd.f32 %v8465_v19, %v3848_v51 }
 0xbe2   :  { %v3869_v22 = vmax.f32 %v3849_v37, 0.0 }
 0xbe4   :  { %v3895_v55 = vpack.c.bf16 %v3869_v22, %v3868_v54 }
 0xbe6   :  { %3985 = vmatmul.bf16.gmra.mxu2 %v3895_v55 }
 0xbe7   :  { %v3851_v26 = vpop.f32.mrf.mxu1 }
 0xbe8   :  { %v3852_v46 = vadd.f32 %v8465_v19, %v3851_v26 }
 0xbea   :  { %v3870_v13 = vmax.f32 %v3852_v46, 0.0 }
 0xbef   :  { %v3853_v3 = vpop.f32.mrf.mxu1 }
 0xbf0   :  { %v3854_v59 = vadd.f32 %v8465_v19, %v3853_v3 }
 0xbf2   :  { %v3871_v57 = vmax.f32 %v3854_v59, 0.0 }
 0xbf4   :  { %v3896_v12 = vpack.c.bf16 %v3871_v57, %v3870_v13 }
 0xbf6   :  { %3990 = vmatmul.bf16.gmra.mxu2 %v3896_v12 }
 0xc09   :  { %v10883_v32 = vpop.f32.mrf.mxu2 }
 0xc11   :  { %v10885_v21 = vpop.f32.mrf.mxu2 }
 0xc19   :  { %v10887_v53 = vpop.f32.mrf.mxu2 }
 0xc21   :  { %v3963_v47 = vpop.f32.mrf.mxu2 }
 0xc29   :  { %v3966_v34 = vpop.f32.mrf.mxu2 }
 0xc31   :  { %v3968_v0 = vpop.f32.mrf.mxu2 }
 0xc39   :  { %v3971_v31 = vpop.f32.mrf.mxu2 }
 0xc3a   :  { %v10892_v33 = vadd.f32 %v10889_v40, %v3971_v31 }
 0xc3c   :  { %4008 = vadd.xlane.f32.xlu2 %v10892_v33  ;;  %v4050_v19 = vmul.f32 %v10892_v33, %v10892_v33 }
 0xc3e   :  { %4072 = vadd.xlane.f32.xlu1 %v4050_v19 }
 0xc41   :  { %v3973_v25 = vpop.f32.mrf.mxu2 }
 0xc42   :  { %v10898_v2 = vadd.f32 %v10889_v40, %v3973_v25 }
 0xc44   :  { %4010 = vadd.xlane.f32.xlu0 %v10898_v2  ;;  %v4051_v60 = vmul.f32 %v10898_v2, %v10898_v2 }
 0xc46   :  { %4074 = vadd.xlane.f32.xlu2 %v4051_v60 }
 0xc49   :  { %v3976_v10 = vpop.f32.mrf.mxu2 }
 0xc4a   :  { %v10904_v16 = vadd.f32 %v10889_v40, %v3976_v10 }
 0xc4c   :  { %4012 = vadd.xlane.f32.xlu1 %v10904_v16  ;;  %v4052_v61 = vmul.f32 %v10904_v16, %v10904_v16 }
 0xc4e   :  { %4076 = vadd.xlane.f32.xlu0 %v4052_v61 }
 0xc51   :  { %v3978_v51 = vpop.f32.mrf.mxu2 }
 0xc52   :  { %v10910_v37 = vadd.f32 %v10889_v40, %v3978_v51  ;;  %v10946_v51 = vadd.f32 %v10889_v40, %v3966_v34  ;;  %v10960_v34 = vadd.f32 %v10889_v40, %v3968_v0  ;;  %v10979_v0 = vadd.f32 %v10889_v40, %v10885_v21  ;;  %v12635_v21 = vld [vmem:[#allocation36_spill] sm:$0xff] }
 0xc54   :  { %4014 = vadd.xlane.f32.xlu2 %v10910_v37  ;;  %v4053_v54 = vmul.f32 %v10910_v37, %v10910_v37  ;;  %12634 = vst [vmem:[#allocation27_spill] sm:$0xff] %v10979_v0 }
 0xc56   :  { %4078 = vadd.xlane.f32.xlu1 %v4053_v54 }
 0xc59   :  { %v3981_v22 = vpop.f32.mrf.mxu2 }
 0xc5a   :  { %v10916_v55 = vadd.f32 %v10889_v40, %v3981_v22 }
 0xc5c   :  { %4016 = vadd.xlane.f32.xlu0 %v10916_v55  ;;  %v4054_v26 = vmul.f32 %v10916_v55, %v10916_v55 }
 0xc5e   :  { %4080 = vadd.xlane.f32.xlu2 %v4054_v26 }
 0xc61   :  { %v3983_v46 = vpop.f32.mrf.mxu2 }
 0xc62   :  { %v10922_v3 = vadd.f32 %v10889_v40, %v3983_v46  ;;  %v4048_v46 = vmul.f32 %v10946_v51, %v10946_v51 }
 0xc64   :  { %4018 = vadd.xlane.f32.xlu1 %v10922_v3  ;;  %v4055_v59 = vmul.f32 %v10922_v3, %v10922_v3 }
 0xc66   :  { %4082 = vadd.xlane.f32.xlu0 %v4055_v59  ;;  %v10957_v59 = vadd.f32 %v10889_v40, %v3963_v47  ;;  %v10973_v47 = vadd.f32 %v10889_v40, %v10887_v53  ;;  %v4045_v53 = vmul.f32 %v10979_v0, %v10979_v0 }
 0xc69   :  { %v3986_v13 = vpop.f32.mrf.mxu2 }
 0xc6a   :  { %v10928_v57 = vadd.f32 %v10889_v40, %v3986_v13  ;;  %v4049_v13 = vmul.f32 %v10960_v34, %v10960_v34 }
 0xc6c   :  { %4020 = vadd.xlane.f32.xlu2 %v10928_v57  ;;  %v4056_v12 = vmul.f32 %v10928_v57, %v10928_v57 }
 0xc6e   :  { %4084 = vadd.xlane.f32.xlu1 %v4056_v12  ;;  %v10969_v12 = vadd.f32 %v10889_v40, %v10883_v32  ;;  %v4047_v32 = vmul.f32 %v10957_v59, %v10957_v59 }
 0xc70   :  { %12633 = vst [vmem:[#allocation28_spill] sm:$0xff] %v10969_v12 }
 0xc71   :  { %v3988_v31 = vpop.f32.mrf.mxu2 }
 0xc72   :  { %v10934_v19 = vadd.f32 %v10889_v40, %v3988_v31  ;;  %v4046_v31 = vmul.f32 %v10973_v47, %v10973_v47 }
 0xc74   :  { %4022 = vadd.xlane.f32.xlu0 %v10934_v19  ;;  %v4057_v25 = vmul.f32 %v10934_v19, %v10934_v19 }
 0xc76   :  { %4086 = vadd.xlane.f32.xlu2 %v4057_v25  ;;  %v4044_v25 = vmul.f32 %v10969_v12, %v10969_v12 }
 0xc79   :  { %v3991_v60 = vpop.f32.mrf.mxu2 }
 0xc7a   :  { %v10940_v10 = vadd.f32 %v10889_v40, %v3991_v60  ;;  %v12636_v60 = vld [vmem:[#allocation38_spill] sm:$0xff] }
 0xc7c   :  { %4024 = vadd.xlane.f32.xlu1 %v10940_v10  ;;  %v4058_v61 = vmul.f32 %v10940_v10, %v10940_v10 }
 0xc7e   :  { %4088 = vadd.xlane.f32.xlu2 %v4058_v61  ;;  %v4386_v61 = vadd.f32 %v10796_v24, %v12636_v60 }
 0xc81   :  { %v3993_v54 = vpop.f32.mrf.mxu2 }
 0xc82   :  { %v10949_v22 = vadd.f32 %v10889_v40, %v3993_v54  ;;  %v4384_v40 = vadd.f32 %v10808_v5, %v12635_v21 }
 0xc84   :  { %4026 = vadd.xlane.f32.xlu0 %v10949_v22  ;;  %v4059_v26 = vmul.f32 %v10949_v22, %v10949_v22 }
 0xc86   :  { %4090 = vadd.xlane.f32.xlu1 %v4059_v26  ;;  %4068 = vadd.xlane.f32.xlu2 %v4048_v46 }
 0xc8c   :  { %4004 = vadd.xlane.f32.xlu0 %v10946_v51 }
 0xc8e   :  { %4006 = vadd.xlane.f32.xlu1 %v10960_v34  ;;  %4002 = vadd.xlane.f32.xlu2 %v10957_v59 }
 0xc94   :  { %4070 = vadd.xlane.f32.xlu0 %v4049_v13 }
 0xc96   :  { %4000 = vadd.xlane.f32.xlu1 %v10973_v47  ;;  %3996 = vadd.xlane.f32.xlu2 %v10969_v12 }
 0xc9c   :  { %4064 = vadd.xlane.f32.xlu0 %v4046_v31 }
 0xc9e   :  { %4066 = vadd.xlane.f32.xlu1 %v4047_v32  ;;  %4062 = vadd.xlane.f32.xlu2 %v4045_v53 }
 0xca4   :  { %3998 = vadd.xlane.f32.xlu0 %v10979_v0 }
 0xca6   :  { %4060 = vadd.xlane.f32.xlu1 %v4044_v25 }
 0xcaf   :  { %v4009_v54 = vpop.xlane.xlu2 %4008 }
 0xcb0   :  { %v10996_v32 = vmul.f32 0.03125, %v4009_v54 }
 0xcb1   :  { %v4073_v26 = vpop.xlane.xlu1 %4072 }
 0xcb2   :  { %v4130_v5 = vmul.f32 %v10996_v32, %v10996_v32  ;;  %v4098_v25 = vmul.f32 0.03125, %v4073_v26 }
 0xcb4   :  { %v4146_v28 = vsub.f32 %v4098_v25, %v4130_v5 }
 0xcb6   :  { %4561 = vrot.lane.b32.xlu2 %v4384_v40, %s8908_s15  ;;  %v11010_v20 = vadd.f32 1e-05, %v4146_v28 }
 0xcb7   :  { %v4011_v46 = vpop.xlane.xlu0 %4010 }
 0xcb8   :  { %v10998_v4 = vmul.f32 0.03125, %v4011_v46  ;;  %8581 = vrsqrt.f32 %v11010_v20  ;;  %vm4238_vm1 = vweird.f32 %v11010_v20 }
 0xcb9   :  { %v4075_v13 = vpop.xlane.xlu2 %4074 }
 0xcba   :  { %v4131_v60 = vmul.f32 %v10998_v4, %v10998_v4 }
 0xcbe   :  { %4565 = vrot.lane.b32.xlu2 %v4386_v61, %s8908_s15  ;;  %v4099_v61 = vmul.f32 0.03125, %v4075_v13 }
 0xcbf   :  { %v4013_v31 = vpop.xlane.xlu1 %4012 }
 0xcc0   :  { %v11002_v21 = vmul.f32 0.03125, %v4013_v31  ;;  %v4147_v46 = vsub.f32 %v4099_v61, %v4131_v60 }
 0xcc1   :  { %v4077_v53 = vpop.xlane.xlu0 %4076 }
 0xcc2   :  { %v4132_v54 = vmul.f32 %v11002_v21, %v11002_v21  ;;  %v4100_v8 = vmul.f32 0.03125, %v4077_v53  ;;  %v11012_v41 = vadd.f32 1e-05, %v4147_v46 }
 0xcc4   :  { %v4148_v26 = vsub.f32 %v4100_v8, %v4132_v54  ;;  %8583 = vrsqrt.f32 %v11012_v41  ;;  %vm4248_vm4 = vweird.f32 %v11012_v41 }
 0xcc6   :  { %v11019_v53 = vadd.f32 1e-05, %v4148_v26 }
 0xcc7   :  { %v4015_v40 = vpop.xlane.xlu2 %4014 }
 0xcc8   :  { %v11008_v29 = vmul.f32 0.03125, %v4015_v40  ;;  %8585 = vrsqrt.f32 %v11019_v53  ;;  %vm4258_vm5 = vweird.f32 %v11019_v53 }
 0xcc9   :  { %v4079_v24 = vpop.xlane.xlu1 %4078 }
 0xcca   :  { %v4133_v62 = vmul.f32 %v11008_v29, %v11008_v29  ;;  %v4101_v13 = vmul.f32 0.03125, %v4079_v24  ;;  %v11027_v24 = vpop.eup %8581 }
 0xccb   :  { %vm4239_vm0 = vweird.f32 %v11027_v24 }
 0xccc   :  { %v4149_v28 = vsub.f32 %v4101_v13, %v4133_v62  ;;  %v11035_v13 = vpop.eup %8583  ;;  %vm11095_vm3 = vmor %vm4238_vm1, %vm4239_vm0 }
 0xccd   :  { %vm4249_vm2 = vweird.f32 %v11035_v13 }
 0xcce   :  { %v11042_v1 = vpop.eup %8585  ;;  %vm11110_vm7 = vmor %vm4248_vm4, %vm4249_vm2 }
 0xccf   :  { %v4017_v14 = vpop.xlane.xlu0 %4016  ;;  %v4253_v18 = vmul.f32 %v11042_v1, %v11019_v53  ;;  %vm4259_vm6 = vweird.f32 %v11042_v1 }
 0xcd0   :  { %v11022_v40 = vmul.f32 0.03125, %v4017_v14  ;;  %vm4260_vm8 = vmor %vm4258_vm5, %vm4259_vm6 }
 0xcd1   :  { %v4081_v31 = vpop.xlane.xlu2 %4080  ;;  %v4254_v43 = vmul.f32 %v11042_v1, %v4253_v18 }
 0xcd2   :  { %v4134_v54 = vmul.f32 %v11022_v40, %v11022_v40  ;;  %v4102_v46 = vmul.f32 0.03125, %v4081_v31  ;;  %v4243_v31 = vmul.f32 %v11035_v13, %v11012_v41 }
 0xcd7   :  { %v4019_v63 = vpop.xlane.xlu1 %4018 }
 0xcd8   :  { %v11016_v5 = vmul.f32 0.03125, %v4019_v63  ;;  %v11029_v63 = vadd.f32 1e-05, %v4149_v28  ;;  %v4150_v28 = vsub.f32 %v4102_v46, %v4134_v54  ;;  %v4244_v54 = vmul.f32 %v11035_v13, %v4243_v31 }
 0xcd9   :  { %v4083_v25 = vpop.xlane.xlu0 %4082 }
 0xcda   :  { %v4135_v8 = vmul.f32 %v11016_v5, %v11016_v5  ;;  %v4103_v60 = vmul.f32 0.03125, %v4083_v25  ;;  %v4233_v25 = vmul.f32 %v11027_v24, %v11010_v20  ;;  %8587 = vrsqrt.f32 %v11029_v63 }
 0xcdb   :  { %v11051_v48 = vadd.f32 1e-05, %v4150_v28  ;;  %v4245_v28 = vmul.f32 0.5, %v4244_v54  ;;  %v4115_v20 = vsub.f32 %v10898_v2, %v10998_v4  ;;  %vm4268_vm10 = vweird.f32 %v11029_v63 }
 0xcdc   :  { %v4151_v62 = vsub.f32 %v4103_v60, %v4135_v8  ;;  %v4234_v8 = vmul.f32 %v11027_v24, %v4233_v25 }
 0xcdd   :  { %v4246_v18 = vsub.f32 1.5, %v4245_v28  ;;  %vm4278_vm13 = vweird.f32 %v11051_v48 }
 0xcdf   :  { %v4021_v61 = vpop.xlane.xlu2 %4020 }
 0xce0   :  { %v11033_v26 = vmul.f32 0.03125, %v4021_v61  ;;  %v11046_v61 = vadd.f32 1e-05, %v4151_v62  ;;  %v11057_v50 = vpop.eup %8587 }
 0xce1   :  { %v4085_v14 = vpop.xlane.xlu1 %4084  ;;  %v4263_v31 = vmul.f32 %v11057_v50, %v11029_v63  ;;  %vm4269_vm9 = vweird.f32 %v11057_v50 }
 0xce2   :  { %v4136_v30 = vmul.f32 %v11033_v26, %v11033_v26  ;;  %v4104_v7 = vmul.f32 0.03125, %v4085_v14  ;;  %8589 = vrsqrt.f32 %v11046_v61  ;;  %vm11155_vm11 = vmor %vm4268_vm10, %vm4269_vm9  ;;  %vm4288_vm14 = vweird.f32 %v11046_v61 }
 0xce3   :  { %8591 = vrsqrt.f32 %v11051_v48 }
 0xce4   :  { %v4152_v60 = vsub.f32 %v4104_v7, %v4136_v30  ;;  %v4235_v30 = vmul.f32 0.5, %v4234_v8  ;;  %v4255_v8 = vmul.f32 0.5, %v4254_v43 }
 0xce6   :  { %v11061_v7 = vadd.f32 1e-05, %v4152_v60  ;;  %v4236_v15 = vsub.f32 1.5, %v4235_v30  ;;  %v4256_v43 = vsub.f32 1.5, %v4255_v8 }
 0xce7   :  { %v4023_v52 = vpop.xlane.xlu0 %4022 }
 0xce8   :  { %v11053_v14 = vmul.f32 0.03125, %v4023_v52  ;;  %v11069_v11 = vpop.eup %8589  ;;  %8593 = vrsqrt.f32 %v11061_v7  ;;  %v4237_v58 = vmul.f32 %v11027_v24, %v4236_v15  ;;  %v4114_v15 = vsub.f32 %v10892_v33, %v10996_v32 }
 0xce9   :  { %v4087_v46 = vpop.xlane.xlu2 %4086  ;;  %v4257_v4 = vmul.f32 %v11042_v1, %v4256_v43  ;;  %v4116_v32 = vsub.f32 %v10904_v16, %v11002_v21  ;;  %v4117_v16 = vsub.f32 %v10910_v37, %v11008_v29  ;;  %vm4289_vm12 = vweird.f32 %v11069_v11 }
 0xcea   :  { %v4137_v62 = vmul.f32 %v11053_v14, %v11053_v14  ;;  %v4105_v25 = vmul.f32 0.03125, %v4087_v46  ;;  %vm11185_vm0 = vmor %vm4288_vm14, %vm4289_vm12 }
 0xcec   :  { %v4153_v52 = vsub.f32 %v4105_v25, %v4137_v62  ;;  %v4264_v62 = vmul.f32 %v11057_v50, %v4263_v31  ;;  %v11076_v25 = vpop.eup %8591  ;;  %v4247_v31 = vmul.f32 %v11035_v13, %v4246_v18  ;;  %v4241_v18 = vsel %vm11095_vm3, %v11027_v24, %v4237_v58 }
 0xced   :  { %v4273_v0 = vmul.f32 %v11076_v25, %v11051_v48  ;;  %v4338_v43 = vmul.f32 %v4241_v18, %v4114_v15  ;;  %vm4279_vm15 = vweird.f32 %v11076_v25 }
 0xcee   :  { %v11067_v44 = vadd.f32 1e-05, %v4153_v52  ;;  %v4283_v52 = vmul.f32 %v11069_v11, %v11046_v61  ;;  %v4265_v35 = vmul.f32 0.5, %v4264_v62  ;;  %v4251_v41 = vsel %vm11110_vm7, %v11035_v13, %v4247_v31  ;;  %vm11216_vm6 = vmor %vm4278_vm13, %vm4279_vm15 }
 0xcef   :  { %v4025_v46 = vpop.xlane.xlu1 %4024  ;;  %v4274_v24 = vmul.f32 %v11076_v25, %v4273_v0  ;;  %v4261_v0 = vsel %vm4260_vm8, %v11042_v1, %v4257_v4  ;;  %v11148_v1 = vmul.f32 %v11126_v36, %v4338_v43  ;;  %vm4298_vm8 = vweird.f32 %v11061_v7 }
 0xcf0   :  { %8595 = vrsqrt.f32 %v11067_v44  ;;  %v11073_v60 = vmul.f32 0.03125, %v4025_v46  ;;  %v11085_v46 = vpop.eup %8593  ;;  %v4266_v58 = vsub.f32 1.5, %v4265_v35  ;;  %v4339_v35 = vmul.f32 %v4251_v41, %v4115_v20 }
 0xcf1   :  { %v4089_v54 = vpop.xlane.xlu2 %4088  ;;  %v4340_v20 = vmul.f32 %v4261_v0, %v4116_v32  ;;  %vm4299_vm4 = vweird.f32 %v11085_v46  ;;  %vm4308_vm7 = vweird.f32 %v11067_v44 }
 0xcf2   :  { %v4138_v30 = vmul.f32 %v11073_v60, %v11073_v60  ;;  %v4106_v12 = vmul.f32 0.03125, %v4089_v54  ;;  %v4267_v15 = vmul.f32 %v11057_v50, %v4266_v58  ;;  %v11163_v58 = vmul.f32 %v11126_v36, %v4339_v35  ;;  %vm11236_vm10 = vmor %vm4298_vm8, %vm4299_vm4 }
 0xcf3   :  { %v4119_v35 = vsub.f32 %v10922_v3, %v11016_v5 }
 0xcf4   :  { %v4154_v28 = vsub.f32 %v4106_v12, %v4138_v30  ;;  %v4284_v12 = vmul.f32 %v11069_v11, %v4283_v52  ;;  %v4293_v52 = vmul.f32 %v11085_v46, %v11061_v7  ;;  %v4271_v63 = vsel %vm11155_vm11, %v11057_v50, %v4267_v15 }
 0xcf6   :  { %v11091_v17 = vpop.eup %8595  ;;  %v11102_v8 = vadd.f32 1e-05, %v4154_v28  ;;  %v4285_v54 = vmul.f32 0.5, %v4284_v12  ;;  %v4275_v12 = vmul.f32 0.5, %v4274_v24  ;;  %v4294_v18 = vmul.f32 %v11085_v46, %v4293_v52 }
 0xcf7   :  { %v4027_v33 = vpop.xlane.xlu0 %4026  ;;  %v4303_v2 = vmul.f32 %v11091_v17, %v11067_v44  ;;  %vm4309_vm2 = vweird.f32 %v11091_v17  ;;  %v4122_v44 = vsub.f32 %v10940_v10, %v11073_v60 }
 0xcf8   :  { %8597 = vrsqrt.f32 %v11102_v8  ;;  %v11118_v62 = vmul.f32 0.03125, %v4027_v33  ;;  %v4286_v21 = vsub.f32 1.5, %v4285_v54  ;;  %v4276_v24 = vsub.f32 1.5, %v4275_v12  ;;  %vm11230_vm9 = vmor %vm4308_vm7, %vm4309_vm2 }
 0xcf9   :  { %v4091_v30 = vpop.xlane.xlu1 %4090  ;;  %v4069_v28 = vpop.xlane.xlu2 %4068  ;;  %v4304_v13 = vmul.f32 %v11091_v17, %v4303_v2  ;;  %v4295_v52 = vmul.f32 0.5, %v4294_v18  ;;  %vm4318_vm3 = vweird.f32 %v11102_v8 }
 0xcfa   :  { %v4139_v33 = vmul.f32 %v11118_v62, %v11118_v62  ;;  %v4107_v38 = vmul.f32 0.03125, %v4091_v30  ;;  %v4096_v32 = vmul.f32 0.03125, %v4069_v28  ;;  %v11182_v28 = vmul.f32 %v4271_v63, %v4117_v16 }
 0xcfb   :  { %v4305_v29 = vmul.f32 0.5, %v4304_v13  ;;  %v4296_v3 = vsub.f32 1.5, %v4295_v52  ;;  %v4120_v52 = vsub.f32 %v10928_v57, %v11033_v26 }
 0xcfc   :  { %v4155_v31 = vsub.f32 %v4107_v38, %v4139_v33  ;;  %v4118_v38 = vsub.f32 %v10916_v55, %v11022_v40  ;;  %v4287_v33 = vmul.f32 %v11069_v11, %v4286_v21 }
 0xcfd   :  { %v4306_v15 = vsub.f32 1.5, %v4305_v29 }
 0xcfe   :  { %v11141_v30 = vpop.eup %8597  ;;  %v11145_v53 = vadd.f32 1e-05, %v4155_v31  ;;  %v11177_v31 = vmul.f32 %v11126_v36, %v4340_v20  ;;  %v4277_v20 = vmul.f32 %v11076_v25, %v4276_v24  ;;  %v4291_v61 = vsel %vm11185_vm0, %v11069_v11, %v4287_v33 }
 0xcff   :  { %v4313_v4 = vmul.f32 %v11141_v30, %v11102_v8  ;;  %v4005_v2 = vpop.xlane.xlu0 %4004  ;;  %vm4319_vm1 = vweird.f32 %v11141_v30  ;;  %v4307_v63 = vmul.f32 %v11091_v17, %v4306_v15 }
 0xd00   :  { %8599 = vrsqrt.f32 %v11145_v53  ;;  %v11160_v37 = vmul.f32 0.03125, %v4005_v2  ;;  %vm11208_vm5 = vmor %vm4318_vm3, %vm4319_vm1  ;;  %vm4328_vm12 = vweird.f32 %v11145_v53 }
 0xd01   :  { %v4314_v43 = vmul.f32 %v11141_v30, %v4313_v4  ;;  %v4007_v54 = vpop.xlane.xlu1 %4006  ;;  %v4003_v50 = vpop.xlane.xlu2 %4002  ;;  %v4311_v7 = vsel %vm11230_vm9, %v11091_v17, %v4307_v63  ;;  %v11269_v63 = vld [vmem:[#allocation13 + $0x17] ss:$0 sm:$0xff] }
 0xd02   :  { %v4128_v0 = vmul.f32 %v11160_v37, %v11160_v37  ;;  %v11180_v18 = vmul.f32 0.03125, %v4007_v54 }
 0xd03   :  { %v4315_v13 = vmul.f32 0.5, %v4314_v43  ;;  %v4297_v43 = vmul.f32 %v11085_v46, %v4296_v3 }
 0xd04   :  { %v4144_v12 = vsub.f32 %v4096_v32, %v4128_v0  ;;  %v4129_v11 = vmul.f32 %v11180_v18, %v11180_v18  ;;  %v4343_v0 = vmul.f32 %v4291_v61, %v4119_v35 }
 0xd05   :  { %v4316_v5 = vsub.f32 1.5, %v4315_v13  ;;  %v4281_v13 = vsel %vm11216_vm6, %v11076_v25, %v4277_v20  ;;  %v4301_v10 = vsel %vm11236_vm10, %v11085_v46, %v4297_v43 }
 0xd06   :  { %v8600_v4 = vpop.eup %8599  ;;  %v11194_v2 = vadd.f32 1e-05, %v4144_v12  ;;  %v4361_v17 = vmul.f32 %v11126_v36, %v4343_v0 }
 0xd07   :  { %v4317_v16 = vmul.f32 %v11141_v30, %v4316_v5  ;;  %v4323_v41 = vmul.f32 %v8600_v4, %v11145_v53  ;;  %v4071_v29 = vpop.xlane.xlu0 %4070  ;;  %vm4329_vm11 = vweird.f32 %v8600_v4 }
 0xd08   :  { %8601 = vrsqrt.f32 %v11194_v2  ;;  %v4097_v24 = vmul.f32 0.03125, %v4071_v29  ;;  %v4123_v29 = vsub.f32 %v10949_v22, %v11118_v62  ;;  %vm4330_vm13 = vmor %vm4328_vm12, %vm4329_vm11  ;;  %vm4218_vm0 = vweird.f32 %v11194_v2 }
 0xd09   :  { %v4324_v54 = vmul.f32 %v8600_v4, %v4323_v41  ;;  %v4001_v33 = vpop.xlane.xlu1 %4000  ;;  %v4321_v57 = vsel %vm11208_vm5, %v11141_v30, %v4317_v16  ;;  %v4121_v30 = vsub.f32 %v10934_v19, %v11053_v14  ;;  %v3997_v3 = vpop.xlane.xlu2 %3996  ;;  %v4342_v19 = vmul.f32 %v4281_v13, %v4118_v38 }
 0xd0a   :  { %v4145_v26 = vsub.f32 %v4097_v24, %v4129_v11  ;;  %v11247_v12 = vmul.f32 0.03125, %v4001_v33  ;;  %v4346_v60 = vmul.f32 %v4321_v57, %v4122_v44  ;;  %v11257_v14 = vmul.f32 0.03125, %v4003_v50 }
 0xd0b   :  { %v4325_v35 = vmul.f32 0.5, %v4324_v54  ;;  %v4345_v20 = vmul.f32 %v4311_v7, %v4121_v30  ;;  %v4344_v41 = vmul.f32 %v4301_v10, %v4120_v52  ;;  %v4359_v24 = vmul.f32 %v11126_v36, %v11182_v28 }
 0xd0c   :  { %v11245_v25 = vadd.f32 1e-05, %v4145_v26  ;;  %v4126_v55 = vmul.f32 %v11247_v12, %v11247_v12  ;;  %v4364_v38 = vmul.f32 %v11126_v36, %v4346_v60  ;;  %v4127_v22 = vmul.f32 %v11257_v14, %v11257_v14 }
 0xd0d   :  { %v4326_v21 = vsub.f32 1.5, %v4325_v35  ;;  %v4363_v54 = vmul.f32 %v11126_v36, %v4345_v20  ;;  %v4360_v33 = vmul.f32 %v11126_v36, %v4342_v19  ;;  %v4362_v28 = vmul.f32 %v11126_v36, %v4344_v41 }
 0xd0e   :  { %v11252_v5 = vpop.eup %8601  ;;  %8603 = vrsqrt.f32 %v11245_v25  ;;  %v11284_v48 = vmul.f32 0.03125, %v3997_v3  ;;  %v4382_v44 = vadd.f32 %v11269_v63, %v4364_v38  ;;  %v4377_v35 = vadd.f32 %v11269_v63, %v4359_v24 }
 0xd0f   :  { %v4327_v61 = vmul.f32 %v8600_v4, %v4326_v21  ;;  %v4213_v46 = vmul.f32 %v11252_v5, %v11194_v2  ;;  %v4065_v16 = vpop.xlane.xlu0 %4064  ;;  %v4381_v19 = vadd.f32 %v11269_v63, %v4363_v54  ;;  %vm4219_vm14 = vweird.f32 %v11252_v5 }
 0xd10   :  { %v4094_v40 = vmul.f32 0.03125, %v4065_v16  ;;  %v4124_v41 = vmul.f32 %v11284_v48, %v11284_v48  ;;  %vm11326_vm1 = vmor %vm4218_vm0, %vm4219_vm14  ;;  %vm4228_vm2 = vweird.f32 %v11245_v25 }
 0xd11   :  { %v4331_v50 = vsel %vm4330_vm13, %v8600_v4, %v4327_v61  ;;  %v4214_v53 = vmul.f32 %v11252_v5, %v4213_v46  ;;  %v4067_v11 = vpop.xlane.xlu1 %4066  ;;  %v4379_v4 = vadd.f32 %v11269_v63, %v4361_v17  ;;  %v4063_v60 = vpop.xlane.xlu2 %4062  ;;  %v4378_v17 = vadd.f32 %v11269_v63, %v4360_v33 }
 0xd12   :  { %v4347_v52 = vmul.f32 %v4331_v50, %v4123_v29  ;;  %v4142_v62 = vsub.f32 %v4094_v40, %v4126_v55  ;;  %v4095_v43 = vmul.f32 0.03125, %v4067_v11  ;;  %v4380_v46 = vadd.f32 %v11269_v63, %v4362_v28 }
 0xd13   :  { %v4215_v8 = vmul.f32 0.5, %v4214_v53  ;;  %v11295_v3 = vadd.f32 %v4379_v4, %v12628_v45  ;;  %v11308_v55 = vadd.f32 %v4382_v44, %v12631_v42  ;;  %v4093_v40 = vmul.f32 0.03125, %v4063_v60 }
 0xd14   :  { %v8604_v32 = vpop.eup %8603  ;;  %v4365_v0 = vmul.f32 %v11126_v36, %v4347_v52  ;;  %v11280_v57 = vadd.f32 1e-05, %v4142_v62  ;;  %v4143_v26 = vsub.f32 %v4095_v43, %v4127_v22  ;;  %v11316_v11 = vadd.f32 %v4381_v19, %v12630_v6 }
 0xd15   :  { %v4223_v13 = vmul.f32 %v8604_v32, %v11245_v25  ;;  %v4216_v15 = vsub.f32 1.5, %v4215_v8  ;;  %12653 = vst [vmem:[#allocation26_spill] sm:$0xff] %v11295_v3  ;;  %vm4229_vm15 = vweird.f32 %v8604_v32  ;;  %v11320_v22 = vadd.f32 %v4380_v46, %v12629_v56 }
 0xd16   :  { %8605 = vrsqrt.f32 %v11280_v57  ;;  %v11289_v30 = vadd.f32 1e-05, %v4143_v26  ;;  %v4383_v7 = vadd.f32 %v11269_v63, %v4365_v0  ;;  %12655 = vst [vmem:[#allocation20_spill] sm:$0xff] %v11308_v55  ;;  %v4112_v62 = vsub.f32 %v10946_v51, %v11160_v37  ;;  %vm4230_vm3 = vmor %vm4228_vm2, %vm4229_vm15 }
 0xd17   :  { %v4224_v10 = vmul.f32 %v8604_v32, %v4223_v13  ;;  %v3999_v21 = vpop.xlane.xlu0 %3998  ;;  %v4217_v45 = vmul.f32 %v11252_v5, %v4216_v15  ;;  %12656 = vst [vmem:[#allocation24_spill] sm:$0xff] %v11316_v11  ;;  %v4113_v51 = vsub.f32 %v10960_v34, %v11180_v18  ;;  %v4422_v0 = vpack.c.bf16 %v11316_v11, %v11320_v22 }
 0xd18   :  { %8607 = vrsqrt.f32 %v11289_v30  ;;  %v11298_v20 = vmul.f32 0.03125, %v3999_v21  ;;  %v11301_v61 = vadd.f32 %v4383_v7, %v12632_v49  ;;  %12657 = vst [vmem:[#allocation23_spill] sm:$0xff] %v11320_v22  ;;  %v4376_v34 = vadd.f32 %v11269_v63, %v11177_v31 }
 0xd19   :  { %v4225_v16 = vmul.f32 0.5, %v4224_v10  ;;  %v4061_v29 = vpop.xlane.xlu1 %4060  ;;  %v4221_v56 = vsel %vm11326_vm1, %v11252_v5, %v4217_v45  ;;  %v11347_v5 = vadd.f32 %v4378_v17, %v12627_v23  ;;  %v11355_v44 = vadd.f32 %v4377_v35, %v12626_v9 }
 0xd1a   :  { %12654 = vst [vmem:[#allocation25_spill] sm:$0xff] %v11301_v61  ;;  %v4125_v38 = vmul.f32 %v11298_v20, %v11298_v20  ;;  %v4092_v49 = vmul.f32 0.03125, %v4061_v29  ;;  %v4423_v53 = vpack.c.bf16 %v11301_v61, %v11308_v55  ;;  %v4336_v18 = vmul.f32 %v4221_v56, %v4112_v62 }
 0xd1b   :  { %v4226_v50 = vsub.f32 1.5, %v4225_v16  ;;  %12660 = vst [vmem:[#allocation21_spill] sm:$0xff] %v11347_v5  ;;  %v4375_v15 = vadd.f32 %v11269_v63, %v11163_v58  ;;  %vm4198_vm5 = vweird.f32 %v11280_v57  ;;  %v11362_v10 = vadd.f32 %v4376_v34, %v12625_v39  ;;  %v12671_v34 = vld [vmem:[#allocation32_spill] sm:$0xff] }
 0xd1c   :  { %v8606_v24 = vpop.eup %8605  ;;  %v4141_v42 = vsub.f32 %v4093_v40, %v4125_v38  ;;  %v4140_v52 = vsub.f32 %v4092_v49, %v4124_v41  ;;  %4424 = vmatpush.bf16.msrb.mxu3 %v4423_v53  ;;  %12661 = vst [vmem:[#allocation22_spill] sm:$0xff] %v11355_v44  ;;  %v4374_v60 = vadd.f32 %v11269_v63, %v11148_v1  ;;  %vm4208_vm8 = vweird.f32 %v11289_v30  ;;  %v12664_v40 = vld [vmem:[#allocation29_spill] sm:$0xff] }
 0xd1d   :  { %v4227_v8 = vmul.f32 %v8604_v32, %v4226_v50  ;;  %v4193_v6 = vmul.f32 %v8606_v24, %v11280_v57  ;;  %vm4199_vm4 = vweird.f32 %v8606_v24  ;;  %12662 = vst [vmem:[#allocation36_spill] sm:$0xff] %v11362_v10  ;;  %v4354_v21 = vmul.f32 %v11126_v36, %v4336_v18 }
 0xd1e   :  { %v8608_v2 = vpop.eup %8607  ;;  %v11338_v37 = vadd.f32 1e-05, %v4141_v42  ;;  %v11340_v54 = vadd.f32 1e-05, %v4140_v52  ;;  %v4110_v19 = vsub.f32 %v10973_v47, %v11247_v12  ;;  %vm4200_vm7 = vmor %vm4198_vm5, %vm4199_vm4  ;;  %v4420_v39 = vpack.c.bf16 %v11355_v44, %v11362_v10 }
 0xd1f   :  { %v4231_v33 = vsel %vm4230_vm3, %v8604_v32, %v4227_v8  ;;  %v4194_v4 = vmul.f32 %v8606_v24, %v4193_v6  ;;  %v4203_v25 = vmul.f32 %v8608_v2, %v11289_v30  ;;  %v4421_v32 = vpack.c.bf16 %v11295_v3, %v11347_v5  ;;  %v12668_v6 = vld [vmem:[#allocation30_spill] sm:$0xff] }
 0xd20   :  { %v4337_v26 = vmul.f32 %v4231_v33, %v4113_v51  ;;  %8609 = vrsqrt.f32 %v11338_v37  ;;  %4425 = vmatpush.bf16.msrb.mxu3 %v4422_v0  ;;  %vm4209_vm6 = vweird.f32 %v8608_v2  ;;  %v11373_v57 = vadd.f32 %v4375_v15, %v12624_v27  ;;  %v12670_v33 = vld [vmem:[#allocation27_spill] sm:$0xff] }
 0xd21   :  { %v4195_v28 = vmul.f32 0.5, %v4194_v4  ;;  %v4204_v13 = vmul.f32 %v8608_v2, %v4203_v25  ;;  %8611 = vrsqrt.f32 %v11340_v54  ;;  %v4111_v29 = vsub.f32 %v10957_v59, %v11257_v14  ;;  %vm4210_vm9 = vmor %vm4208_vm8, %vm4209_vm6  ;;  %v12666_v14 = vld [vmem:[#allocation31_spill] sm:$0xff] }
 0xd22   :  { %v4355_v31 = vmul.f32 %v11126_v36, %v4337_v26  ;;  %12663 = vst [vmem:[#allocation38_spill] sm:$0xff] %v11373_v57  ;;  %v4372_v30 = vadd.f32 %v11269_v63, %v4354_v21  ;;  %v11383_v38 = vadd.f32 %v4374_v60, %v12664_v40  ;;  %v4109_v4 = vsub.f32 %v12670_v33, %v11298_v20 }
 0xd23   :  { %v4196_v23 = vsub.f32 1.5, %v4195_v28  ;;  %v4205_v7 = vmul.f32 0.5, %v4204_v13  ;;  %vm4188_vm12 = vweird.f32 %v11338_v37  ;;  %vm4178_vm14 = vweird.f32 %v11340_v54  ;;  %v12672_v28 = vld [vmem:[#allocation33_spill] sm:$0xff] }
 0xd24   :  { %4426 = vmatpush.bf16.msrb.mxu3 %v4421_v32  ;;  %v4373_v41 = vadd.f32 %v11269_v63, %v4355_v31  ;;  %12665 = vst [vmem:[#allocation29_spill] sm:$0xff] %v11383_v38  ;;  %v4419_v59 = vpack.c.bf16 %v11373_v57, %v11383_v38  ;;  %v12673_v32 = vld [vmem:[#allocation28_spill] sm:$0xff] }
 0xd25   :  { %v4197_v9 = vmul.f32 %v8606_v24, %v4196_v23  ;;  %v4206_v35 = vsub.f32 1.5, %v4205_v7  ;;  %v4108_v15 = vsub.f32 %v12673_v32, %v11284_v48  ;;  %v12677_v32 = vld [vmem:[#allocation65_spill] sm:$0xff] }
 0xd26   :  { %v8610_v58 = vpop.eup %8609  ;;  %v11389_v42 = vadd.f32 %v4373_v41, %v12666_v14  ;;  %v8684_v41 = vld [vmem:[#allocation7 + $0x30] sm:$0xff] }
 0xd27   :  { %v8612_v1 = vpop.eup %8611  ;;  %v4201_v17 = vsel %vm4200_vm7, %v8606_v24, %v4197_v9  ;;  %v4207_v46 = vmul.f32 %v8608_v2, %v4206_v35  ;;  %v4183_v16 = vmul.f32 %v8610_v58, %v11338_v37  ;;  %vm4189_vm10 = vweird.f32 %v8610_v58  ;;  %v12674_v35 = vld [vmem:[#allocation35_spill] sm:$0xff] }
 0xd28   :  { %v4334_v47 = vmul.f32 %v4201_v17, %v4110_v19  ;;  %v4173_v12 = vmul.f32 %v8612_v1, %v11340_v54  ;;  %4427 = vmatpush.bf16.msrb.mxu3 %v4420_v39  ;;  %12667 = vst [vmem:[#allocation31_spill] sm:$0xff] %v11389_v42  ;;  %vm4179_vm11 = vweird.f32 %v8612_v1  ;;  %vm4190_vm13 = vmor %vm4188_vm12, %vm4189_vm10  ;;  %v8679_v17 = vld [vmem:[#allocation7 + $0x8] sm:$0xff] }
 0xd29   :  { %v4211_v45 = vsel %vm4210_vm9, %v8608_v2, %v4207_v46  ;;  %v4184_v27 = vmul.f32 %v8610_v58, %v4183_v16  ;;  %v11394_v2 = vadd.f32 %v4372_v30, %v12668_v6  ;;  %vm4180_vm15 = vmor %vm4178_vm14, %vm4179_vm11  ;;  %v8680_v46 = vld [vmem:[#allocation7 + $0x10] sm:$0xff]  ;;  %v8682_v16 = vld [vmem:[#allocation7 + $0x20] sm:$0xff] }
 0xd2a   :  { %v4335_v49 = vmul.f32 %v4211_v45, %v4111_v29  ;;  %v4174_v50 = vmul.f32 %v8612_v1, %v4173_v12  ;;  %v4352_v53 = vmul.f32 %v11126_v36, %v4334_v47  ;;  %v8685_v29 = vld [vmem:[#allocation7 + $0x38] sm:$0xff]  ;;  %v8686_v47 = vld [vmem:[#allocation7 + $0x40] sm:$0xff]  ;;  %v8687_v45 = vld [vmem:[#allocation7 + $0x48] sm:$0xff] }
 0xd2b   :  { %v4185_v24 = vmul.f32 0.5, %v4184_v27  ;;  %12669 = vst [vmem:[#allocation30_spill] sm:$0xff] %v11394_v2  ;;  %v4418_v0 = vpack.c.bf16 %v11389_v42, %v11394_v2 }
 0xd2c   :  { %v4175_v52 = vmul.f32 0.5, %v4174_v50  ;;  %v4353_v62 = vmul.f32 %v11126_v36, %v4335_v49  ;;  %v4370_v43 = vadd.f32 %v11269_v63, %v4352_v53  ;;  %4428 = vmatpush.bf16.msrb.mxu3 %v4419_v59  ;;  %v8688_v49 = vld [vmem:[#allocation7 + $0x50] sm:$0xff] }
 0xd2d   :  { %v4186_v8 = vsub.f32 1.5, %v4185_v24  ;;  %v8689_v24 = vld [vmem:[#allocation7 + $0x58] sm:$0xff] }
 0xd2e   :  { %v4176_v56 = vsub.f32 1.5, %v4175_v52  ;;  %v4371_v51 = vadd.f32 %v11269_v63, %v4353_v62  ;;  %v11404_v18 = vadd.f32 %v4370_v43, %v12671_v34  ;;  %v8690_v52 = vld [vmem:[#allocation7 + $0x60] sm:$0xff] }
 0xd2f   :  { %v4187_v25 = vmul.f32 %v8610_v58, %v4186_v8  ;;  %v8691_v8 = vld [vmem:[#allocation7 + $0x68] sm:$0xff] }
 0xd30   :  { %v4177_v26 = vmul.f32 %v8612_v1, %v4176_v56  ;;  %v11407_v13 = vadd.f32 %v4371_v51, %v12672_v28  ;;  %4429 = vmatpush.bf16.msrb.mxu3 %v4418_v0  ;;  %v8692_v51 = vld [vmem:[#allocation7 + $0x70] sm:$0xff]  ;;  %v12676_v28 = vld [vmem:[#allocation37_spill] sm:$0xff] }
 0xd31   :  { %v4191_v20 = vsel %vm4190_vm13, %v8610_v58, %v4187_v25  ;;  %v12675_v58 = vld [vmem:[#allocation34_spill] sm:$0xff]  ;;  %v8693_v25 = vld [vmem:[#allocation7 + $0x78] sm:$0xff] }
 0xd32   :  { %v4333_v37 = vmul.f32 %v4191_v20, %v4109_v4  ;;  %v4181_v23 = vsel %vm4180_vm15, %v8612_v1, %v4177_v26  ;;  %v4417_v7 = vpack.c.bf16 %v11407_v13, %v11404_v18  ;;  %v8678_v1 = vld [vmem:[#allocation7] sm:$0xff] }
 0xd33   :  { %v4332_v31 = vmul.f32 %v4181_v23, %v4108_v15  ;;  %v4385_v15 = vadd.f32 %v12677_v32, %v12676_v28  ;;  %v12678_v23 = vld [vmem:[#allocation39_spill] sm:$0xff]  ;;  %v12691_v28 = vld [vmem:[#allocation58_spill] sm:$0xff] }
 0xd34   :  { %v4351_v54 = vmul.f32 %v11126_v36, %v4333_v37  ;;  %4430 = vmatpush.bf16.msrb.mxu3 %v4417_v7  ;;  %v12679_v7 = vld [vmem:[#allocation64_spill] sm:$0xff] }
 0xd35   :  { %v4350_v60 = vmul.f32 %v11126_v36, %v4332_v31  ;;  %v8681_v36 = vld [vmem:[#allocation7 + $0x18] sm:$0xff]  ;;  %v4387_v31 = vadd.f32 %v12679_v7, %v12678_v23 }
 0xd36   :  { %v4369_v21 = vadd.f32 %v11269_v63, %v4351_v54  ;;  %v12692_v23 = vld [vmem:[#allocation49_spill] sm:$0xff] }
 0xd37   :  { %v4368_v9 = vadd.f32 %v11269_v63, %v4350_v60  ;;  %v8683_v63 = vld [vmem:[#allocation7 + $0x28] sm:$0xff]  ;;  %v12680_v60 = vld [vmem:[#allocation41_spill] sm:$0xff] }
 0xd38   :  { %v11418_v48 = vadd.f32 %v4369_v21, %v12674_v35  ;;  %v12681_v21 = vld [vmem:[#allocation63_spill] sm:$0xff]  ;;  %v12693_v7 = vld [vmem:[#allocation57_spill] sm:$0xff] }
 0xd39   :  { %v11421_v19 = vadd.f32 %v4368_v9, %v12675_v58  ;;  %v4388_v9 = vadd.f32 %v12681_v21, %v12680_v60  ;;  %v12682_v58 = vld [vmem:[#allocation40_spill] sm:$0xff]  ;;  %v8323_v60 = vld [vmem:[#allocation10 + $0x118] sm:$0xff] }
 0xd3a   :  { %v8322_v21 = vld [vmem:[#allocation10 + $0x110] sm:$0xff] }
 0xd3b   :  { %v4416_v39 = vpack.c.bf16 %v11418_v48, %v11421_v19 }
 0xd3d   :  { %4431 = vmatpush.bf16.msrb.mxu3 %v4416_v39  ;;  %v12683_v39 = vld [vmem:[#allocation62_spill] sm:$0xff] }
 0xd40   :  { %4432 = vmatmul.bf16.vlgmr.msrb.gmra.mxu3 %v8678_v1  ;;  %v4389_v1 = vadd.f32 %v12683_v39, %v12682_v58 }
 0xd50   :  { %4437 = vmatmul.bf16.gmra.mxu3 %v8679_v17 }
 0xd60   :  { %4442 = vmatmul.bf16.gmra.mxu3 %v8680_v46  ;;  %v12684_v46 = vld [vmem:[#allocation48_spill] sm:$0xff] }
 0xd70   :  { %4447 = vmatmul.bf16.gmra.mxu3 %v8681_v36  ;;  %v12685_v36 = vld [vmem:[#allocation61_spill] sm:$0xff] }
 0xd80   :  { %4452 = vmatmul.bf16.gmra.mxu3 %v8682_v16  ;;  %v4390_v16 = vadd.f32 %v12685_v36, %v12684_v46  ;;  %v12696_v46 = vld [vmem:[#allocation52_spill] sm:$0xff] }
 0xd81   :  { %v12697_v36 = vld [vmem:[#allocation56_spill] sm:$0xff] }
 0xd90   :  { %4457 = vmatmul.bf16.gmra.mxu3 %v8683_v63 }
 0xda0   :  { %4462 = vmatmul.bf16.gmra.mxu3 %v8684_v41  ;;  %v12686_v41 = vld [vmem:[#allocation46_spill] sm:$0xff] }
 0xdb0   :  { %4467 = vmatmul.bf16.gmra.mxu3 %v8685_v29  ;;  %v12687_v29 = vld [vmem:[#allocation60_spill] sm:$0xff] }
 0xdc0   :  { %4472 = vmatmul.bf16.gmra.mxu3 %v8686_v47  ;;  %v4391_v47 = vadd.f32 %v12687_v29, %v12686_v41  ;;  %v12698_v41 = vld [vmem:[#allocation53_spill] sm:$0xff]  ;;  %v12699_v29 = vld [vmem:[#allocation44_spill] sm:$0xff] }
 0xdc3   :  { %v11425_v12 = vpop.f32.mrf.mxu3 }
 0xdcb   :  { %v11427_v30 = vpop.f32.mrf.mxu3 }
 0xdd0   :  { %4477 = vmatmul.bf16.gmra.mxu3 %v8687_v45 }
 0xdd3   :  { %v11429_v27 = vpop.f32.mrf.mxu3 }
 0xddb   :  { %v11431_v40 = vpop.f32.mrf.mxu3 }
 0xde0   :  { %4482 = vmatmul.bf16.gmra.mxu3 %v8688_v49  ;;  %v8327_v49 = vld [vmem:[#allocation10 + $0x138] sm:$0xff] }
 0xde1   :  { %4684 = vmatpush.bf16.msra.mxu0 %v8327_v49  ;;  %v12700_v49 = vld [vmem:[#allocation54_spill] sm:$0xff] }
 0xde3   :  { %v11433_v50 = vpop.f32.mrf.mxu3 }
 0xdeb   :  { %v11435_v53 = vpop.f32.mrf.mxu3 }
 0xdf0   :  { %4487 = vmatmul.bf16.gmra.mxu3 %v8689_v24  ;;  %v12688_v24 = vld [vmem:[#allocation50_spill] sm:$0xff] }
 0xdf3   :  { %v11437_v59 = vpop.f32.mrf.mxu3 }
 0xdfb   :  { %v11439_v14 = vpop.f32.mrf.mxu3 }
 0xe00   :  { %4492 = vmatmul.bf16.gmra.mxu3 %v8690_v52  ;;  %v12689_v52 = vld [vmem:[#allocation59_spill] sm:$0xff] }
 0xe03   :  { %v11441_v62 = vpop.f32.mrf.mxu3 }
 0xe0b   :  { %v11443_v43 = vpop.f32.mrf.mxu3 }
 0xe10   :  { %4497 = vmatmul.bf16.gmra.mxu3 %v8691_v8  ;;  %v4392_v8 = vadd.f32 %v12689_v52, %v12688_v24  ;;  %v12701_v24 = vld [vmem:[#allocation43_spill] sm:$0xff] }
 0xe11   :  { %v4398_v52 = vadd.f32 %v12701_v24, %v12700_v49 }
 0xe13   :  { %v11445_v6 = vpop.f32.mrf.mxu3 }
 0xe1b   :  { %v11447_v56 = vpop.f32.mrf.mxu3 }
 0xe20   :  { %4502 = vmatmul.bf16.gmra.mxu3 %v8692_v51 }
 0xe23   :  { %v11449_v33 = vpop.f32.mrf.mxu3 }
 0xe2b   :  { %v11451_v4 = vpop.f32.mrf.mxu3 }
 0xe30   :  { %4507 = vmatmul.bf16.gmra.mxu3 %v8693_v25  ;;  %v8326_v25 = vld [vmem:[#allocation10 + $0x130] sm:$0xff] }
 0xe31   :  { %4685 = vmatpush.bf16.msra.mxu0 %v8326_v25  ;;  %v12702_v25 = vld [vmem:[#allocation55_spill] sm:$0xff] }
 0xe33   :  { %v11453_v0 = vpop.f32.mrf.mxu3 }
 0xe3b   :  { %v11455_v26 = vpop.f32.mrf.mxu3 }
 0xe43   :  { %v4473_v34 = vpop.f32.mrf.mxu3 }
 0xe44   :  { %4513 = vrot.lane.b32.xlu0 %v4473_v34, %s8915_s6  ;;  %v12690_v34 = vld [vmem:[#allocation47_spill] sm:$0xff] }
 0xe45   :  { %v4393_v32 = vadd.f32 %v12691_v28, %v12690_v34  ;;  %v12703_v34 = vld [vmem:[#allocation42_spill] sm:$0xff] }
 0xe46   :  { %v4399_v28 = vadd.f32 %v12703_v34, %v12702_v25 }
 0xe4b   :  { %v4475_v20 = vpop.f32.mrf.mxu3 }
 0xe4c   :  { %4563 = vrot.lane.b32.xlu0 %v4385_v15, %s8908_s15  ;;  %4515 = vrot.lane.b32.xlu1 %v4475_v20, %s8915_s6  ;;  %v8325_v20 = vld [vmem:[#allocation10 + $0x128] sm:$0xff] }
 0xe4d   :  { %4686 = vmatpush.bf16.msra.mxu0 %v8325_v20 }
 0xe53   :  { %v4478_v37 = vpop.f32.mrf.mxu3 }
 0xe54   :  { %4517 = vrot.lane.b32.xlu1 %v4478_v37, %s8915_s6  ;;  %v8324_v37 = vld [vmem:[#allocation10 + $0x120] sm:$0xff] }
 0xe55   :  { %4687 = vmatpush.bf16.msra.mxu0 %v8324_v37 }
 0xe59   :  { %4688 = vmatpush.bf16.msra.mxu0 %v8323_v60 }
 0xe5b   :  { %v4480_v54 = vpop.f32.mrf.mxu3 }
 0xe5c   :  { %4567 = vrot.lane.b32.xlu1 %v4387_v31, %s8908_s15  ;;  %4519 = vrot.lane.b32.xlu0 %v4480_v54, %s8915_s6  ;;  %v4394_v31 = vadd.f32 %v12693_v7, %v12692_v23  ;;  %v4562_v23 = vpop.permute.xlu2 %4561 }
 0xe5d   :  { %4689 = vmatpush.bf16.msra.mxu0 %v8322_v21 }
 0xe63   :  { %v4483_v35 = vpop.f32.mrf.mxu3 }
 0xe64   :  { %4569 = vrot.lane.b32.xlu1 %v4388_v9, %s8908_s15  ;;  %4521 = vrot.lane.b32.xlu0 %v4483_v35, %s8915_s6  ;;  %v12694_v9 = vld [vmem:[#allocation51_spill] sm:$0xff]  ;;  %v12695_v35 = vld [vmem:[#allocation45_spill] sm:$0xff] }
 0xe65   :  { %v4395_v58 = vadd.f32 %v12695_v35, %v12694_v9 }
 0xe6b   :  { %v4485_v17 = vpop.f32.mrf.mxu3 }
 0xe6c   :  { %4571 = vrot.lane.b32.xlu0 %v4389_v1, %s8908_s15  ;;  %4523 = vrot.lane.b32.xlu2 %v4485_v17, %s8915_s6  ;;  %v8321_v1 = vld [vmem:[#allocation10 + $0x108] sm:$0xff]  ;;  %v8320_v17 = vld [vmem:[#allocation10 + $0x100] sm:$0xff] }
 0xe6d   :  { %4690 = vmatpush.bf16.msra.mxu0 %v8321_v1 }
 0xe71   :  { %4691 = vmatpush.bf16.msra.mxu0 %v8320_v17 }
 0xe73   :  { %v4488_v63 = vpop.f32.mrf.mxu3 }
 0xe74   :  { %4573 = vrot.lane.b32.xlu0 %v4390_v16, %s8908_s15  ;;  %4525 = vrot.lane.b32.xlu2 %v4488_v63, %s8915_s6  ;;  %v4396_v16 = vadd.f32 %v12697_v36, %v12696_v46 }
 0xe7b   :  { %v4490_v45 = vpop.f32.mrf.mxu3 }
 0xe7c   :  { %4575 = vrot.lane.b32.xlu2 %v4391_v47, %s8908_s15  ;;  %4527 = vrot.lane.b32.xlu1 %v4490_v45, %s8915_s6  ;;  %v4397_v47 = vadd.f32 %v12699_v29, %v12698_v41 }
 0xe83   :  { %v4493_v51 = vpop.f32.mrf.mxu3 }
 0xe84   :  { %4577 = vrot.lane.b32.xlu2 %v4392_v8, %s8908_s15  ;;  %4529 = vrot.lane.b32.xlu1 %v4493_v51, %s8915_s6 }
 0xe8b   :  { %v4495_v15 = vpop.f32.mrf.mxu3 }
 0xe8c   :  { %4579 = vrot.lane.b32.xlu1 %v4393_v32, %s8908_s15  ;;  %4531 = vrot.lane.b32.xlu0 %v4495_v15, %s8915_s6 }
 0xe93   :  { %v4498_v54 = vpop.f32.mrf.mxu3 }
 0xe94   :  { %4581 = vrot.lane.b32.xlu1 %v4394_v31, %s8908_s15  ;;  %4533 = vrot.lane.b32.xlu0 %v4498_v54, %s8915_s6 }
 0xe9b   :  { %v4500_v39 = vpop.f32.mrf.mxu3 }
 0xe9c   :  { %4583 = vrot.lane.b32.xlu0 %v4395_v58, %s8908_s15  ;;  %4535 = vrot.lane.b32.xlu2 %v4500_v39, %s8915_s6  ;;  %v4566_v39 = vpop.permute.xlu2 %4565 }
 0xea3   :  { %v4503_v63 = vpop.f32.mrf.mxu3 }
 0xea4   :  { %4585 = vrot.lane.b32.xlu0 %v4396_v16, %s8908_s15  ;;  %4537 = vrot.lane.b32.xlu2 %v4503_v63, %s8915_s6 }
 0xeab   :  { %v4505_v45 = vpop.f32.mrf.mxu3 }
 0xeac   :  { %4587 = vrot.lane.b32.xlu2 %v4397_v47, %s8908_s15  ;;  %4539 = vrot.lane.b32.xlu1 %v4505_v45, %s8915_s6 }
 0xeb3   :  { %v4508_v8 = vpop.f32.mrf.mxu3 }
 0xeb4   :  { %4589 = vrot.lane.b32.xlu2 %v4398_v52, %s8908_s15  ;;  %4541 = vrot.lane.b32.xlu1 %v4508_v8, %s8915_s6 }
 0xeb6   :  { %v4514_v51 = vpop.permute.xlu0 %4513 }
 0xeb7   :  { %v4545_v15 = vadd.f32 %v4514_v51, %v11425_v12 }
 0xeb9   :  { %v4593_v31 = vadd.f32 %v4562_v23, %v4545_v15 }
 0xebb   :  { %v4510_v32 = vpop.f32.mrf.mxu3 }
 0xebc   :  { %4591 = vrot.lane.b32.xlu1 %v4399_v28, %s8908_s15  ;;  %4543 = vrot.lane.b32.xlu0 %v4510_v32, %s8915_s6 }
 0xebe   :  { %v4516_v20 = vpop.permute.xlu1 %4515  ;;  %v4564_v7 = vpop.permute.xlu0 %4563 }
 0xebf   :  { %v4546_v37 = vadd.f32 %v4516_v20, %v11427_v30 }
 0xec1   :  { %v4594_v54 = vadd.f32 %v4564_v7, %v4546_v37 }
 0xec3   :  { %v4626_v60 = vpack.c.bf16 %v4594_v54, %v4593_v31  ;;  %v8335_v54 = vld [vmem:[#allocation11 + $0x338] sm:$0xff] }
 0xec4   :  { %4824 = vmatpush.bf16.msrb.mxu1 %v8335_v54 }
 0xec5   :  { %4692 = vmatmul.bf16.vlgmr.msra.gmra.mxu0 %v4626_v60 }
 0xec6   :  { %v4518_v21 = vpop.permute.xlu1 %4517  ;;  %v4524_v30 = vpop.permute.xlu2 %4523 }
 0xec7   :  { %v4547_v9 = vadd.f32 %v4518_v21, %v11429_v27  ;;  %v4550_v16 = vadd.f32 %v4524_v30, %v11435_v53 }
 0xec9   :  { %v4595_v17 = vadd.f32 %v4566_v39, %v4547_v9 }
 0xece   :  { %v4520_v35 = vpop.permute.xlu0 %4519  ;;  %v4568_v1 = vpop.permute.xlu1 %4567 }
 0xecf   :  { %v4548_v58 = vadd.f32 %v4520_v35, %v11431_v40  ;;  %v4526_v49 = vpop.permute.xlu2 %4525 }
 0xed0   :  { %v4551_v52 = vadd.f32 %v4526_v49, %v11437_v59 }
 0xed1   :  { %v4596_v46 = vadd.f32 %v4568_v1, %v4548_v58 }
 0xed3   :  { %v4627_v12 = vpack.c.bf16 %v4596_v46, %v4595_v17  ;;  %v8333_v17 = vld [vmem:[#allocation11 + $0x328] sm:$0xff]  ;;  %v8332_v46 = vld [vmem:[#allocation11 + $0x320] sm:$0xff] }
 0xed5   :  { %4697 = vmatmul.bf16.gmra.mxu0 %v4627_v12 }
 0xed6   :  { %v4522_v36 = vpop.permute.xlu0 %4521  ;;  %v4570_v47 = vpop.permute.xlu1 %4569 }
 0xed7   :  { %v4549_v63 = vadd.f32 %v4522_v36, %v11433_v50  ;;  %v4576_v51 = vpop.permute.xlu2 %4575 }
 0xed9   :  { %v4597_v45 = vadd.f32 %v4570_v47, %v4549_v63  ;;  %v8330_v47 = vld [vmem:[#allocation11 + $0x310] sm:$0xff] }
 0xede   :  { %v4572_v41 = vpop.permute.xlu0 %4571 }
 0xedf   :  { %v4598_v29 = vadd.f32 %v4572_v41, %v4550_v16  ;;  %v4578_v20 = vpop.permute.xlu2 %4577  ;;  %v8331_v41 = vld [vmem:[#allocation11 + $0x318] sm:$0xff] }
 0xee1   :  { %v4628_v27 = vpack.c.bf16 %v4598_v29, %v4597_v45 }
 0xee5   :  { %4702 = vmatmul.bf16.gmra.mxu0 %v4628_v27  ;;  %v8329_v27 = vld [vmem:[#allocation11 + $0x308] sm:$0xff] }
 0xee6   :  { %v4574_v40 = vpop.permute.xlu0 %4573 }
 0xee7   :  { %v4599_v25 = vadd.f32 %v4574_v40, %v4551_v52  ;;  %v8328_v40 = vld [vmem:[#allocation11 + $0x300] sm:$0xff] }
 0xeee   :  { %v4528_v24 = vpop.permute.xlu1 %4527 }
 0xeef   :  { %v4552_v8 = vadd.f32 %v4528_v24, %v11439_v14 }
 0xef1   :  { %v4600_v34 = vadd.f32 %v4576_v51, %v4552_v8 }
 0xef3   :  { %v4629_v28 = vpack.c.bf16 %v4600_v34, %v4599_v25 }
 0xef5   :  { %4707 = vmatmul.bf16.gmra.mxu0 %v4629_v28  ;;  %v11531_v28 = vld [vmem:[#allocation13 + $0x18] ss:$0 sm:$0xff] }
 0xef6   :  { %v4530_v53 = vpop.permute.xlu1 %4529  ;;  %v4536_v14 = vpop.permute.xlu2 %4535 }
 0xef7   :  { %v4553_v50 = vadd.f32 %v4530_v53, %v11441_v62  ;;  %v4556_v60 = vadd.f32 %v4536_v14, %v11447_v56 }
 0xef9   :  { %v4601_v23 = vadd.f32 %v4578_v20, %v4553_v50 }
 0xefe   :  { %v4532_v32 = vpop.permute.xlu0 %4531  ;;  %v4580_v37 = vpop.permute.xlu1 %4579 }
 0xeff   :  { %v4554_v15 = vadd.f32 %v4532_v32, %v11443_v43  ;;  %v8334_v43 = vld [vmem:[#allocation11 + $0x330] sm:$0xff]  ;;  %v4538_v1 = vpop.permute.xlu2 %4537 }
 0xf00   :  { %4825 = vmatpush.bf16.msrb.mxu1 %v8334_v43  ;;  %v4557_v30 = vadd.f32 %v4538_v1, %v11449_v33 }
 0xf01   :  { %v4602_v7 = vadd.f32 %v4580_v37, %v4554_v15 }
 0xf03   :  { %v4630_v31 = vpack.c.bf16 %v4602_v7, %v4601_v23 }
 0xf04   :  { %4826 = vmatpush.bf16.msrb.mxu1 %v8333_v17 }
 0xf05   :  { %4712 = vmatmul.bf16.gmra.mxu0 %v4630_v31 }
 0xf06   :  { %v4534_v59 = vpop.permute.xlu0 %4533  ;;  %v4582_v62 = vpop.permute.xlu1 %4581 }
 0xf07   :  { %v4555_v21 = vadd.f32 %v4534_v59, %v11445_v6  ;;  %v4588_v6 = vpop.permute.xlu2 %4587 }
 0xf08   :  { %4827 = vmatpush.bf16.msrb.mxu1 %v8332_v46 }
 0xf09   :  { %v4603_v58 = vadd.f32 %v4582_v62, %v4555_v21 }
 0xf0c   :  { %4828 = vmatpush.bf16.msrb.mxu1 %v8331_v41 }
 0xf0e   :  { %v4584_v9 = vpop.permute.xlu0 %4583 }
 0xf0f   :  { %v4604_v35 = vadd.f32 %v4584_v9, %v4556_v60 }
 0xf10   :  { %4829 = vmatpush.bf16.msrb.mxu1 %v8330_v47 }
 0xf11   :  { %v4631_v39 = vpack.c.bf16 %v4604_v35, %v4603_v58 }
 0xf14   :  { %4830 = vmatpush.bf16.msrb.mxu1 %v8329_v27 }
 0xf15   :  { %4717 = vmatmul.bf16.gmra.mxu0 %v4631_v39 }
 0xf16   :  { %v4586_v12 = vpop.permute.xlu0 %4585 }
 0xf17   :  { %v4605_v16 = vadd.f32 %v4586_v12, %v4557_v30 }
 0xf18   :  { %4831 = vmatpush.bf16.msrb.mxu1 %v8328_v40 }
 0xf1e   :  { %v4540_v36 = vpop.permute.xlu1 %4539 }
 0xf1f   :  { %v4558_v56 = vadd.f32 %v4540_v36, %v11451_v4  ;;  %v4590_v4 = vpop.permute.xlu2 %4589 }
 0xf21   :  { %v4606_v63 = vadd.f32 %v4588_v6, %v4558_v56 }
 0xf23   :  { %v4632_v29 = vpack.c.bf16 %v4606_v63, %v4605_v16 }
 0xf25   :  { %4722 = vmatmul.bf16.gmra.mxu0 %v4632_v29 }
 0xf26   :  { %v4542_v45 = vpop.permute.xlu1 %4541 }
 0xf27   :  { %v4559_v49 = vadd.f32 %v4542_v45, %v11453_v0 }
 0xf29   :  { %v4607_v8 = vadd.f32 %v4590_v4, %v4559_v49 }
 0xf2e   :  { %v4544_v24 = vpop.permute.xlu0 %4543  ;;  %v4592_v52 = vpop.permute.xlu1 %4591 }
 0xf2f   :  { %v4560_v33 = vadd.f32 %v4544_v24, %v11455_v26 }
 0xf31   :  { %v4608_v51 = vadd.f32 %v4592_v52, %v4560_v33  ;;  %v8343_v33 = vld [vmem:[#allocation11 + $0x378] sm:$0xff]  ;;  %v8342_v52 = vld [vmem:[#allocation11 + $0x370] sm:$0xff] }
 0xf32   :  { %4964 = vmatpush.bf16.msra.mxu2 %v8343_v33 }
 0xf33   :  { %v4633_v25 = vpack.c.bf16 %v4608_v51, %v4607_v8  ;;  %v8341_v51 = vld [vmem:[#allocation11 + $0x368] sm:$0xff] }
 0xf35   :  { %4727 = vmatmul.bf16.gmra.mxu0 %v4633_v25  ;;  %v8340_v25 = vld [vmem:[#allocation11 + $0x360] sm:$0xff] }
 0xf36   :  { %4965 = vmatpush.bf16.msra.mxu2 %v8342_v52 }
 0xf3a   :  { %4966 = vmatpush.bf16.msra.mxu2 %v8341_v51 }
 0xf3e   :  { %4967 = vmatpush.bf16.msra.mxu2 %v8340_v25 }
 0xf42   :  { %v4693_v34 = vpop.f32.mrf.mxu0 }
 0xf43   :  { %v4694_v53 = vadd.f32 %v11531_v28, %v4693_v34 }
 0xf45   :  { %v4733_v0 = vmax.f32 %v4694_v53, 0.0 }
 0xf4a   :  { %v4695_v50 = vpop.f32.mrf.mxu0 }
 0xf4b   :  { %v4696_v32 = vadd.f32 %v11531_v28, %v4695_v50 }
 0xf4d   :  { %v4734_v15 = vmax.f32 %v4696_v32, 0.0 }
 0xf4f   :  { %v4766_v20 = vpack.c.bf16 %v4734_v15, %v4733_v0  ;;  %v8339_v15 = vld [vmem:[#allocation11 + $0x358] sm:$0xff] }
 0xf50   :  { %4968 = vmatpush.bf16.msra.mxu2 %v8339_v15 }
 0xf51   :  { %4832 = vmatmul.bf16.vlgmr.msrb.gmra.mxu1 %v4766_v20 }
 0xf52   :  { %v4698_v26 = vpop.f32.mrf.mxu0 }
 0xf53   :  { %v4699_v37 = vadd.f32 %v11531_v28, %v4698_v26  ;;  %v8338_v26 = vld [vmem:[#allocation11 + $0x350] sm:$0xff] }
 0xf54   :  { %4969 = vmatpush.bf16.msra.mxu2 %v8338_v26 }
 0xf55   :  { %v4735_v31 = vmax.f32 %v4699_v37, 0.0 }
 0xf5a   :  { %v4700_v23 = vpop.f32.mrf.mxu0 }
 0xf5b   :  { %v4701_v7 = vadd.f32 %v11531_v28, %v4700_v23  ;;  %v8337_v23 = vld [vmem:[#allocation11 + $0x348] sm:$0xff] }
 0xf5c   :  { %4970 = vmatpush.bf16.msra.mxu2 %v8337_v23 }
 0xf5d   :  { %v4736_v59 = vmax.f32 %v4701_v7, 0.0 }
 0xf5f   :  { %v4767_v54 = vpack.c.bf16 %v4736_v59, %v4735_v31  ;;  %v8336_v31 = vld [vmem:[#allocation11 + $0x340] sm:$0xff] }
 0xf60   :  { %4971 = vmatpush.bf16.msra.mxu2 %v8336_v31  ;;  %v8351_v31 = vld [vmem:[#allocation11 + $0x3b8] sm:$0xff] }
 0xf61   :  { %4837 = vmatmul.bf16.gmra.mxu1 %v4767_v54  ;;  %5104 = vmatpush.bf16.msrb.mxu0 %v8351_v31 }
 0xf62   :  { %v4703_v14 = vpop.f32.mrf.mxu0 }
 0xf63   :  { %v4704_v60 = vadd.f32 %v11531_v28, %v4703_v14 }
 0xf65   :  { %v4737_v35 = vmax.f32 %v4704_v60, 0.0 }
 0xf6a   :  { %v4705_v21 = vpop.f32.mrf.mxu0 }
 0xf6b   :  { %v4706_v9 = vadd.f32 %v11531_v28, %v4705_v21 }
 0xf6d   :  { %v4738_v62 = vmax.f32 %v4706_v9, 0.0 }
 0xf6f   :  { %v4768_v58 = vpack.c.bf16 %v4738_v62, %v4737_v35  ;;  %v11549_v35 = vld [vmem:[#allocation13 + $0x19] ss:$0 sm:$0xff] }
 0xf71   :  { %4842 = vmatmul.bf16.gmra.mxu1 %v4768_v58 }
 0xf72   :  { %v4708_v39 = vpop.f32.mrf.mxu0 }
 0xf73   :  { %v4709_v43 = vadd.f32 %v11531_v28, %v4708_v39 }
 0xf75   :  { %v4739_v46 = vmax.f32 %v4709_v43, 0.0 }
 0xf7a   :  { %v4710_v1 = vpop.f32.mrf.mxu0 }
 0xf7b   :  { %v4711_v17 = vadd.f32 %v11531_v28, %v4710_v1 }
 0xf7d   :  { %v4740_v12 = vmax.f32 %v4711_v17, 0.0 }
 0xf7f   :  { %v4769_v36 = vpack.c.bf16 %v4740_v12, %v4739_v46 }
 0xf81   :  { %4847 = vmatmul.bf16.gmra.mxu1 %v4769_v36 }
 0xf82   :  { %v4713_v30 = vpop.f32.mrf.mxu0 }
 0xf83   :  { %v4714_v56 = vadd.f32 %v11531_v28, %v4713_v30 }
 0xf85   :  { %v4741_v63 = vmax.f32 %v4714_v56, 0.0 }
 0xf8a   :  { %v4715_v6 = vpop.f32.mrf.mxu0 }
 0xf8b   :  { %v4716_v16 = vadd.f32 %v11531_v28, %v4715_v6 }
 0xf8d   :  { %v4742_v41 = vmax.f32 %v4716_v16, 0.0 }
 0xf8f   :  { %v4770_v29 = vpack.c.bf16 %v4742_v41, %v4741_v63 }
 0xf91   :  { %4852 = vmatmul.bf16.gmra.mxu1 %v4770_v29 }
 0xf92   :  { %v4718_v47 = vpop.f32.mrf.mxu0 }
 0xf93   :  { %v4719_v45 = vadd.f32 %v11531_v28, %v4718_v47 }
 0xf95   :  { %v4743_v40 = vmax.f32 %v4719_v45, 0.0 }
 0xf9a   :  { %v4720_v27 = vpop.f32.mrf.mxu0 }
 0xf9b   :  { %v4721_v49 = vadd.f32 %v11531_v28, %v4720_v27 }
 0xf9d   :  { %v4744_v24 = vmax.f32 %v4721_v49, 0.0 }
 0xf9f   :  { %v4771_v4 = vpack.c.bf16 %v4744_v24, %v4743_v40 }
 0xfa1   :  { %4857 = vmatmul.bf16.gmra.mxu1 %v4771_v4 }
 0xfa2   :  { %v4723_v8 = vpop.f32.mrf.mxu0 }
 0xfa3   :  { %v4724_v34 = vadd.f32 %v11531_v28, %v4723_v8 }
 0xfa5   :  { %v4745_v32 = vmax.f32 %v4724_v34, 0.0 }
 0xfaa   :  { %v4725_v53 = vpop.f32.mrf.mxu0 }
 0xfab   :  { %v4726_v50 = vadd.f32 %v11531_v28, %v4725_v53 }
 0xfad   :  { %v4746_v0 = vmax.f32 %v4726_v50, 0.0 }
 0xfaf   :  { %v4772_v20 = vpack.c.bf16 %v4746_v0, %v4745_v32 }
 0xfb1   :  { %4862 = vmatmul.bf16.gmra.mxu1 %v4772_v20 }
 0xfb2   :  { %v4728_v37 = vpop.f32.mrf.mxu0 }
 0xfb3   :  { %v4729_v7 = vadd.f32 %v11531_v28, %v4728_v37 }
 0xfb5   :  { %v4747_v14 = vmax.f32 %v4729_v7, 0.0 }
 0xfba   :  { %v4730_v59 = vpop.f32.mrf.mxu0 }
 0xfbb   :  { %v4731_v54 = vadd.f32 %v11531_v28, %v4730_v59 }
 0xfbd   :  { %v4748_v60 = vmax.f32 %v4731_v54, 0.0  ;;  %v8350_v54 = vld [vmem:[#allocation11 + $0x3b0] sm:$0xff] }
 0xfbe   :  { %5105 = vmatpush.bf16.msrb.mxu0 %v8350_v54 }
 0xfbf   :  { %v4773_v21 = vpack.c.bf16 %v4748_v60, %v4747_v14  ;;  %v8349_v60 = vld [vmem:[#allocation11 + $0x3a8] sm:$0xff] }
 0xfc1   :  { %4867 = vmatmul.bf16.gmra.mxu1 %v4773_v21  ;;  %v8348_v21 = vld [vmem:[#allocation11 + $0x3a0] sm:$0xff] }
 0xfc2   :  { %5106 = vmatpush.bf16.msrb.mxu0 %v8349_v60 }
 0xfc6   :  { %5107 = vmatpush.bf16.msrb.mxu0 %v8348_v21 }
 0xfce   :  { %v4833_v9 = vpop.f32.mrf.mxu1 }
 0xfcf   :  { %v4834_v62 = vadd.f32 %v11549_v35, %v4833_v9 }
 0xfd1   :  { %v4873_v43 = vmax.f32 %v4834_v62, 0.0 }
 0xfd6   :  { %v4835_v58 = vpop.f32.mrf.mxu1 }
 0xfd7   :  { %v4836_v39 = vadd.f32 %v11549_v35, %v4835_v58 }
 0xfd9   :  { %v4874_v1 = vmax.f32 %v4836_v39, 0.0 }
 0xfdb   :  { %v4906_v17 = vpack.c.bf16 %v4874_v1, %v4873_v43 }
 0xfdd   :  { %4972 = vmatmul.bf16.vlgmr.msra.gmra.mxu2 %v4906_v17 }
 0xfde   :  { %v4838_v46 = vpop.f32.mrf.mxu1 }
 0xfdf   :  { %v4839_v28 = vadd.f32 %v11549_v35, %v4838_v46  ;;  %v8347_v46 = vld [vmem:[#allocation11 + $0x398] sm:$0xff] }
 0xfe0   :  { %5108 = vmatpush.bf16.msrb.mxu0 %v8347_v46 }
 0xfe1   :  { %v4875_v30 = vmax.f32 %v4839_v28, 0.0  ;;  %v8346_v28 = vld [vmem:[#allocation11 + $0x390] sm:$0xff] }
 0xfe4   :  { %5109 = vmatpush.bf16.msrb.mxu0 %v8346_v28 }
 0xfe6   :  { %v4840_v12 = vpop.f32.mrf.mxu1 }
 0xfe7   :  { %v4841_v36 = vadd.f32 %v11549_v35, %v4840_v12 }
 0xfe9   :  { %v4876_v56 = vmax.f32 %v4841_v36, 0.0 }
 0xfeb   :  { %v4907_v6 = vpack.c.bf16 %v4876_v56, %v4875_v30  ;;  %v8345_v56 = vld [vmem:[#allocation11 + $0x388] sm:$0xff] }
 0xfec   :  { %5110 = vmatpush.bf16.msrb.mxu0 %v8345_v56 }
 0xfed   :  { %4977 = vmatmul.bf16.gmra.mxu2 %v4907_v6 }
 0xfee   :  { %v4843_v16 = vpop.f32.mrf.mxu1 }
 0xfef   :  { %v4844_v63 = vadd.f32 %v11549_v35, %v4843_v16 }
 0xff1   :  { %v4877_v47 = vmax.f32 %v4844_v63, 0.0 }
 0xff6   :  { %v4845_v41 = vpop.f32.mrf.mxu1 }
 0xff7   :  { %v4846_v29 = vadd.f32 %v11549_v35, %v4845_v41  ;;  %v8344_v41 = vld [vmem:[#allocation11 + $0x380] sm:$0xff] }
 0xff8   :  { %5111 = vmatpush.bf16.msrb.mxu0 %v8344_v41 }
 0xff9   :  { %v4878_v45 = vmax.f32 %v4846_v29, 0.0 }
 0xffb   :  { %v4908_v27 = vpack.c.bf16 %v4878_v45, %v4877_v47  ;;  %v8471_v47 = vld [vmem:[#allocation13 + $0x1a] ss:$0 sm:$0xff] }
 0xffd   :  { %4982 = vmatmul.bf16.gmra.mxu2 %v4908_v27 }
 0xffe   :  { %v4848_v49 = vpop.f32.mrf.mxu1 }
 0xfff   :  { %v4849_v40 = vadd.f32 %v11549_v35, %v4848_v49 }
0x1001   :  { %v4879_v4 = vmax.f32 %v4849_v40, 0.0 }
0x1006   :  { %v4850_v24 = vpop.f32.mrf.mxu1 }
0x1007   :  { %v4851_v33 = vadd.f32 %v11549_v35, %v4850_v24 }
0x1009   :  { %v4880_v52 = vmax.f32 %v4851_v33, 0.0 }
0x100b   :  { %v4909_v8 = vpack.c.bf16 %v4880_v52, %v4879_v4 }
0x100d   :  { %4987 = vmatmul.bf16.gmra.mxu2 %v4909_v8 }
0x100e   :  { %v4853_v51 = vpop.f32.mrf.mxu1 }
0x100f   :  { %v4854_v25 = vadd.f32 %v11549_v35, %v4853_v51 }
0x1011   :  { %v4881_v50 = vmax.f32 %v4854_v25, 0.0 }
0x1016   :  { %v4855_v34 = vpop.f32.mrf.mxu1 }
0x1017   :  { %v4856_v53 = vadd.f32 %v11549_v35, %v4855_v34 }
0x1019   :  { %v4882_v32 = vmax.f32 %v4856_v53, 0.0 }
0x101b   :  { %v4910_v0 = vpack.c.bf16 %v4882_v32, %v4881_v50 }
0x101d   :  { %4992 = vmatmul.bf16.gmra.mxu2 %v4910_v0 }
0x101e   :  { %v4858_v15 = vpop.f32.mrf.mxu1 }
0x101f   :  { %v4859_v20 = vadd.f32 %v11549_v35, %v4858_v15 }
0x1021   :  { %v4883_v23 = vmax.f32 %v4859_v20, 0.0 }
0x1026   :  { %v4860_v26 = vpop.f32.mrf.mxu1 }
0x1027   :  { %v4861_v37 = vadd.f32 %v11549_v35, %v4860_v26 }
0x1029   :  { %v4884_v7 = vmax.f32 %v4861_v37, 0.0 }
0x102b   :  { %v4911_v59 = vpack.c.bf16 %v4884_v7, %v4883_v23 }
0x102d   :  { %4997 = vmatmul.bf16.gmra.mxu2 %v4911_v59 }
0x102e   :  { %v4863_v14 = vpop.f32.mrf.mxu1 }
0x102f   :  { %v4864_v9 = vadd.f32 %v11549_v35, %v4863_v14 }
0x1031   :  { %v4885_v39 = vmax.f32 %v4864_v9, 0.0 }
0x1036   :  { %v4865_v62 = vpop.f32.mrf.mxu1 }
0x1037   :  { %v4866_v58 = vadd.f32 %v11549_v35, %v4865_v62 }
0x1039   :  { %v4886_v43 = vmax.f32 %v4866_v58, 0.0 }
0x103b   :  { %v4912_v1 = vpack.c.bf16 %v4886_v43, %v4885_v39 }
0x103d   :  { %5002 = vmatmul.bf16.gmra.mxu2 %v4912_v1 }
0x103e   :  { %v4868_v17 = vpop.f32.mrf.mxu1 }
0x103f   :  { %v4869_v12 = vadd.f32 %v11549_v35, %v4868_v17 }
0x1041   :  { %v4887_v6 = vmax.f32 %v4869_v12, 0.0 }
0x1046   :  { %v4870_v36 = vpop.f32.mrf.mxu1 }
0x1047   :  { %v4871_v30 = vadd.f32 %v11549_v35, %v4870_v36 }
0x1049   :  { %v4888_v16 = vmax.f32 %v4871_v30, 0.0 }
0x104b   :  { %v4913_v63 = vpack.c.bf16 %v4888_v16, %v4887_v6 }
0x104d   :  { %5007 = vmatmul.bf16.gmra.mxu2 %v4913_v63 }
0x1060   :  { %v4973_v29 = vpop.f32.mrf.mxu2 }
0x1061   :  { %v4974_v45 = vadd.f32 %v8471_v47, %v4973_v29 }
0x1063   :  { %v5013_v40 = vmax.f32 %v4974_v45, 0.0 }
0x1068   :  { %v4975_v27 = vpop.f32.mrf.mxu2 }
0x1069   :  { %v4976_v49 = vadd.f32 %v8471_v47, %v4975_v27 }
0x106b   :  { %v5014_v24 = vmax.f32 %v4976_v49, 0.0 }
0x106d   :  { %v5046_v33 = vpack.c.bf16 %v5014_v24, %v5013_v40 }
0x106f   :  { %5112 = vmatmul.bf16.vlgmr.msrb.gmra.mxu0 %v5046_v33 }
0x1070   :  { %v4978_v4 = vpop.f32.mrf.mxu2 }
0x1071   :  { %v4979_v52 = vadd.f32 %v8471_v47, %v4978_v4 }
0x1073   :  { %v5015_v51 = vmax.f32 %v4979_v52, 0.0 }
0x1078   :  { %v4980_v35 = vpop.f32.mrf.mxu2 }
0x1079   :  { %v4981_v8 = vadd.f32 %v8471_v47, %v4980_v35 }
0x107b   :  { %v5016_v25 = vmax.f32 %v4981_v8, 0.0 }
0x107d   :  { %v5047_v34 = vpack.c.bf16 %v5016_v25, %v5015_v51 }
0x107f   :  { %5117 = vmatmul.bf16.gmra.mxu0 %v5047_v34 }
0x1080   :  { %v4983_v53 = vpop.f32.mrf.mxu2 }
0x1081   :  { %v4984_v50 = vadd.f32 %v8471_v47, %v4983_v53 }
0x1083   :  { %v5017_v15 = vmax.f32 %v4984_v50, 0.0  ;;  %v11575_v50 = vld [vmem:[#allocation13 + $0x1b] ss:$0 sm:$0xff] }
0x1088   :  { %v4985_v32 = vpop.f32.mrf.mxu2 }
0x1089   :  { %v4986_v0 = vadd.f32 %v8471_v47, %v4985_v32 }
0x108b   :  { %v5018_v20 = vmax.f32 %v4986_v0, 0.0 }
0x108d   :  { %v5048_v26 = vpack.c.bf16 %v5018_v20, %v5017_v15 }
0x108f   :  { %5122 = vmatmul.bf16.gmra.mxu0 %v5048_v26 }
0x1090   :  { %v4988_v37 = vpop.f32.mrf.mxu2 }
0x1091   :  { %v4989_v23 = vadd.f32 %v8471_v47, %v4988_v37 }
0x1093   :  { %v5019_v59 = vmax.f32 %v4989_v23, 0.0 }
0x1098   :  { %v4990_v7 = vpop.f32.mrf.mxu2 }
0x1099   :  { %v4991_v31 = vadd.f32 %v8471_v47, %v4990_v7 }
0x109b   :  { %v5020_v54 = vmax.f32 %v4991_v31, 0.0 }
0x109d   :  { %v5049_v14 = vpack.c.bf16 %v5020_v54, %v5019_v59 }
0x109f   :  { %5127 = vmatmul.bf16.gmra.mxu0 %v5049_v14 }
0x10a0   :  { %v4993_v60 = vpop.f32.mrf.mxu2 }
0x10a1   :  { %v4994_v21 = vadd.f32 %v8471_v47, %v4993_v60 }
0x10a3   :  { %v5021_v58 = vmax.f32 %v4994_v21, 0.0 }
0x10a8   :  { %v4995_v9 = vpop.f32.mrf.mxu2 }
0x10a9   :  { %v4996_v62 = vadd.f32 %v8471_v47, %v4995_v9 }
0x10ab   :  { %v5022_v39 = vmax.f32 %v4996_v62, 0.0 }
0x10ad   :  { %v5050_v43 = vpack.c.bf16 %v5022_v39, %v5021_v58 }
0x10af   :  { %5132 = vmatmul.bf16.gmra.mxu0 %v5050_v43 }
0x10b0   :  { %v4998_v1 = vpop.f32.mrf.mxu2 }
0x10b1   :  { %v4999_v17 = vadd.f32 %v8471_v47, %v4998_v1 }
0x10b3   :  { %v5023_v12 = vmax.f32 %v4999_v17, 0.0 }
0x10b8   :  { %v5000_v46 = vpop.f32.mrf.mxu2 }
0x10b9   :  { %v5001_v28 = vadd.f32 %v8471_v47, %v5000_v46 }
0x10bb   :  { %v5024_v36 = vmax.f32 %v5001_v28, 0.0 }
0x10bd   :  { %v5051_v30 = vpack.c.bf16 %v5024_v36, %v5023_v12 }
0x10bf   :  { %5137 = vmatmul.bf16.gmra.mxu0 %v5051_v30 }
0x10c0   :  { %v5003_v56 = vpop.f32.mrf.mxu2 }
0x10c1   :  { %v5004_v6 = vadd.f32 %v8471_v47, %v5003_v56 }
0x10c3   :  { %v5025_v41 = vmax.f32 %v5004_v6, 0.0 }
0x10c8   :  { %v5005_v16 = vpop.f32.mrf.mxu2 }
0x10c9   :  { %v5006_v63 = vadd.f32 %v8471_v47, %v5005_v16 }
0x10cb   :  { %v5026_v29 = vmax.f32 %v5006_v63, 0.0 }
0x10cd   :  { %v5052_v45 = vpack.c.bf16 %v5026_v29, %v5025_v41 }
0x10cf   :  { %5142 = vmatmul.bf16.gmra.mxu0 %v5052_v45 }
0x10d0   :  { %v5008_v27 = vpop.f32.mrf.mxu2 }
0x10d1   :  { %v5009_v49 = vadd.f32 %v8471_v47, %v5008_v27 }
0x10d3   :  { %v5027_v33 = vmax.f32 %v5009_v49, 0.0 }
0x10d8   :  { %v5010_v40 = vpop.f32.mrf.mxu2 }
0x10d9   :  { %v5011_v24 = vadd.f32 %v8471_v47, %v5010_v40 }
0x10db   :  { %v5028_v4 = vmax.f32 %v5011_v24, 0.0 }
0x10dd   :  { %v5053_v52 = vpack.c.bf16 %v5028_v4, %v5027_v33 }
0x10df   :  { %5147 = vmatmul.bf16.gmra.mxu0 %v5053_v52 }
0x10ec   :  { %v11567_v35 = vpop.f32.mrf.mxu0 }
0x10ed   :  { %v11663_v24 = vadd.f32 %v11575_v50, %v11567_v35 }
0x10ef   :  { %v5201_v35 = vmul.f32 %v11663_v24, %v11663_v24 }
0x10f4   :  { %v11569_v8 = vpop.f32.mrf.mxu0 }
0x10f5   :  { %v11667_v33 = vadd.f32 %v11575_v50, %v11569_v8 }
0x10f7   :  { %v5202_v52 = vmul.f32 %v11667_v33, %v11667_v33 }
0x10fc   :  { %v11571_v51 = vpop.f32.mrf.mxu0 }
0x10fd   :  { %v11651_v27 = vadd.f32 %v11575_v50, %v11571_v51 }
0x10ff   :  { %v5203_v40 = vmul.f32 %v11651_v27, %v11651_v27 }
0x1104   :  { %v11573_v25 = vpop.f32.mrf.mxu0 }
0x1105   :  { %v11655_v49 = vadd.f32 %v11575_v50, %v11573_v25 }
0x1107   :  { %v5204_v4 = vmul.f32 %v11655_v49, %v11655_v49 }
0x110c   :  { %v5123_v34 = vpop.f32.mrf.mxu0 }
0x110d   :  { %v11635_v16 = vadd.f32 %v11575_v50, %v5123_v34 }
0x110f   :  { %v5205_v29 = vmul.f32 %v11635_v16, %v11635_v16 }
0x1114   :  { %v5125_v53 = vpop.f32.mrf.mxu0 }
0x1115   :  { %v11642_v41 = vadd.f32 %v11575_v50, %v5125_v53 }
0x1117   :  { %v5206_v45 = vmul.f32 %v11642_v41, %v11642_v41 }
0x111c   :  { %v5128_v32 = vpop.f32.mrf.mxu0 }
0x111d   :  { %v11578_v0 = vadd.f32 %v11575_v50, %v5128_v32 }
0x111f   :  { %5165 = vadd.xlane.f32.xlu2 %v11578_v0  ;;  %v5207_v47 = vmul.f32 %v11578_v0, %v11578_v0 }
0x1121   :  { %5229 = vadd.xlane.f32.xlu0 %v5207_v47 }
0x1124   :  { %v5130_v15 = vpop.f32.mrf.mxu0 }
0x1125   :  { %v11584_v20 = vadd.f32 %v11575_v50, %v5130_v15 }
0x1127   :  { %5167 = vadd.xlane.f32.xlu1 %v11584_v20  ;;  %v5208_v26 = vmul.f32 %v11584_v20, %v11584_v20 }
0x1129   :  { %5231 = vadd.xlane.f32.xlu2 %v5208_v26 }
0x112c   :  { %v5133_v37 = vpop.f32.mrf.mxu0 }
0x112d   :  { %v11590_v23 = vadd.f32 %v11575_v50, %v5133_v37 }
0x112f   :  { %5169 = vadd.xlane.f32.xlu0 %v11590_v23  ;;  %v5209_v7 = vmul.f32 %v11590_v23, %v11590_v23 }
0x1131   :  { %5233 = vadd.xlane.f32.xlu1 %v5209_v7 }
0x1134   :  { %v5135_v31 = vpop.f32.mrf.mxu0 }
0x1135   :  { %v11596_v59 = vadd.f32 %v11575_v50, %v5135_v31 }
0x1137   :  { %5171 = vadd.xlane.f32.xlu2 %v11596_v59  ;;  %v5210_v54 = vmul.f32 %v11596_v59, %v11596_v59 }
0x1139   :  { %5235 = vadd.xlane.f32.xlu0 %v5210_v54 }
0x113c   :  { %v5138_v14 = vpop.f32.mrf.mxu0 }
0x113d   :  { %v11602_v60 = vadd.f32 %v11575_v50, %v5138_v14 }
0x113f   :  { %5173 = vadd.xlane.f32.xlu1 %v11602_v60  ;;  %v5211_v21 = vmul.f32 %v11602_v60, %v11602_v60 }
0x1141   :  { %5237 = vadd.xlane.f32.xlu2 %v5211_v21 }
0x1144   :  { %v5140_v9 = vpop.f32.mrf.mxu0 }
0x1145   :  { %v11608_v62 = vadd.f32 %v11575_v50, %v5140_v9 }
0x1147   :  { %5175 = vadd.xlane.f32.xlu0 %v11608_v62  ;;  %v5212_v58 = vmul.f32 %v11608_v62, %v11608_v62 }
0x1149   :  { %5239 = vadd.xlane.f32.xlu1 %v5212_v58 }
0x114c   :  { %v5143_v39 = vpop.f32.mrf.mxu0 }
0x114d   :  { %v11614_v43 = vadd.f32 %v11575_v50, %v5143_v39 }
0x114f   :  { %5177 = vadd.xlane.f32.xlu2 %v11614_v43  ;;  %v5213_v1 = vmul.f32 %v11614_v43, %v11614_v43 }
0x1151   :  { %5241 = vadd.xlane.f32.xlu0 %v5213_v1 }
0x1154   :  { %v5145_v17 = vpop.f32.mrf.mxu0 }
0x1155   :  { %v11620_v46 = vadd.f32 %v11575_v50, %v5145_v17 }
0x1157   :  { %5179 = vadd.xlane.f32.xlu1 %v11620_v46  ;;  %v5214_v28 = vmul.f32 %v11620_v46, %v11620_v46 }
0x1159   :  { %5243 = vadd.xlane.f32.xlu2 %v5214_v28 }
0x115c   :  { %v5148_v12 = vpop.f32.mrf.mxu0 }
0x115d   :  { %v11626_v36 = vadd.f32 %v11575_v50, %v5148_v12 }
0x115f   :  { %5181 = vadd.xlane.f32.xlu0 %v11626_v36  ;;  %v5215_v30 = vmul.f32 %v11626_v36, %v11626_v36 }
0x1161   :  { %5245 = vadd.xlane.f32.xlu1 %v5215_v30 }
0x1164   :  { %v5150_v56 = vpop.f32.mrf.mxu0 }
0x1165   :  { %v11632_v6 = vadd.f32 %v11575_v50, %v5150_v56 }
0x1167   :  { %5183 = vadd.xlane.f32.xlu2 %v11632_v6  ;;  %v5216_v63 = vmul.f32 %v11632_v6, %v11632_v6 }
0x1169   :  { %5247 = vadd.xlane.f32.xlu0 %v5216_v63  ;;  %5161 = vadd.xlane.f32.xlu1 %v11635_v16 }
0x116f   :  { %5225 = vadd.xlane.f32.xlu2 %v5205_v29 }
0x1171   :  { %5163 = vadd.xlane.f32.xlu0 %v11642_v41  ;;  %5227 = vadd.xlane.f32.xlu1 %v5206_v45 }
0x1177   :  { %5159 = vadd.xlane.f32.xlu2 %v11655_v49 }
0x1179   :  { %5157 = vadd.xlane.f32.xlu0 %v11651_v27  ;;  %5221 = vadd.xlane.f32.xlu1 %v5203_v40 }
0x117f   :  { %5153 = vadd.xlane.f32.xlu2 %v11663_v24 }
0x1181   :  { %5223 = vadd.xlane.f32.xlu0 %v5204_v4  ;;  %5155 = vadd.xlane.f32.xlu1 %v11667_v33 }
0x1187   :  { %5219 = vadd.xlane.f32.xlu2 %v5202_v52 }
0x1189   :  { %5217 = vadd.xlane.f32.xlu0 %v5201_v35 }
0x1192   :  { %v5166_v51 = vpop.xlane.xlu2 %5165 }
0x1193   :  { %v5191_v25 = vmul.f32 0.03125, %v5166_v51 }
0x1194   :  { %v5230_v8 = vpop.xlane.xlu0 %5229 }
0x1195   :  { %v5287_v34 = vmul.f32 %v5191_v25, %v5191_v25  ;;  %v5255_v53 = vmul.f32 0.03125, %v5230_v8  ;;  %v5271_v21 = vsub.f32 %v11578_v0, %v5191_v25 }
0x1197   :  { %v5303_v50 = vsub.f32 %v5255_v53, %v5287_v34 }
0x1199   :  { %v5319_v32 = vadd.f32 1e-05, %v5303_v50 }
0x119a   :  { %v5168_v54 = vpop.xlane.xlu1 %5167 }
0x119b   :  { %8613 = vrsqrt.f32 %v5319_v32  ;;  %vm5395_vm1 = vweird.f32 %v5319_v32  ;;  %v11680_v1 = vmul.f32 0.03125, %v5168_v54 }
0x119c   :  { %v5232_v14 = vpop.xlane.xlu2 %5231 }
0x119d   :  { %v5288_v56 = vmul.f32 %v11680_v1, %v11680_v1  ;;  %v5256_v63 = vmul.f32 0.03125, %v5232_v14 }
0x119f   :  { %v5304_v45 = vsub.f32 %v5256_v63, %v5288_v56 }
0x11a1   :  { %v8614_v47 = vpop.eup %8613  ;;  %v11690_v25 = vadd.f32 1e-05, %v5304_v45 }
0x11a2   :  { %v5390_v15 = vmul.f32 %v8614_v47, %v5319_v32  ;;  %vm5396_vm0 = vweird.f32 %v8614_v47  ;;  %v5170_v58 = vpop.xlane.xlu0 %5169 }
0x11a3   :  { %vm5397_vm2 = vmor %vm5395_vm1, %vm5396_vm0  ;;  %v11682_v12 = vmul.f32 0.03125, %v5170_v58  ;;  %8615 = vrsqrt.f32 %v11690_v25  ;;  %vm5405_vm4 = vweird.f32 %v11690_v25 }
0x11a4   :  { %v5391_v26 = vmul.f32 %v8614_v47, %v5390_v15  ;;  %v5234_v17 = vpop.xlane.xlu1 %5233 }
0x11a5   :  { %v5289_v29 = vmul.f32 %v11682_v12, %v11682_v12  ;;  %v5257_v0 = vmul.f32 0.03125, %v5234_v17 }
0x11a6   :  { %v5392_v37 = vmul.f32 0.5, %v5391_v26 }
0x11a7   :  { %v5305_v35 = vsub.f32 %v5257_v0, %v5289_v29 }
0x11a8   :  { %v5393_v7 = vsub.f32 1.5, %v5392_v37 }
0x11a9   :  { %v11694_v53 = vadd.f32 1e-05, %v5305_v35 }
0x11aa   :  { %v5394_v31 = vmul.f32 %v8614_v47, %v5393_v7  ;;  %v5172_v28 = vpop.xlane.xlu2 %5171 }
0x11ab   :  { %v11688_v52 = vmul.f32 0.03125, %v5172_v28  ;;  %8617 = vrsqrt.f32 %v11694_v53  ;;  %vm5415_vm7 = vweird.f32 %v11694_v53 }
0x11ac   :  { %v5398_v9 = vsel %vm5397_vm2, %v8614_v47, %v5394_v31  ;;  %v5236_v30 = vpop.xlane.xlu0 %5235 }
0x11ad   :  { %v11678_v39 = vmul.f32 %v5398_v9, %v5271_v21  ;;  %v5290_v8 = vmul.f32 %v11688_v52, %v11688_v52  ;;  %v5258_v34 = vmul.f32 0.03125, %v5236_v30  ;;  %v11708_v9 = vpop.eup %8615 }
0x11ae   :  { %v5400_v0 = vmul.f32 %v11708_v9, %v11690_v25  ;;  %vm5406_vm3 = vweird.f32 %v11708_v9 }
0x11af   :  { %v5306_v26 = vsub.f32 %v5258_v34, %v5290_v8  ;;  %vm11778_vm5 = vmor %vm5405_vm4, %vm5406_vm3 }
0x11b1   :  { %v11710_v58 = vadd.f32 1e-05, %v5306_v26  ;;  %v11714_v29 = vpop.eup %8617 }
0x11b2   :  { %v5174_v40 = vpop.xlane.xlu1 %5173  ;;  %v5410_v34 = vmul.f32 %v11714_v29, %v11694_v53  ;;  %vm5416_vm6 = vweird.f32 %v11714_v29 }
0x11b3   :  { %v11696_v50 = vmul.f32 0.03125, %v5174_v40  ;;  %8619 = vrsqrt.f32 %v11710_v58  ;;  %vm5425_vm8 = vweird.f32 %v11710_v58  ;;  %vm11800_vm9 = vmor %vm5415_vm7, %vm5416_vm6 }
0x11b4   :  { %v5238_v4 = vpop.xlane.xlu2 %5237 }
0x11b5   :  { %v5291_v7 = vmul.f32 %v11696_v50, %v11696_v50  ;;  %v5259_v31 = vmul.f32 0.03125, %v5238_v4 }
0x11b7   :  { %v5307_v30 = vsub.f32 %v5259_v31, %v5291_v7 }
0x11b9   :  { %v11721_v35 = vadd.f32 1e-05, %v5307_v30 }
0x11ba   :  { %v5176_v51 = vpop.xlane.xlu0 %5175 }
0x11bb   :  { %v11699_v32 = vmul.f32 0.03125, %v5176_v51  ;;  %8621 = vrsqrt.f32 %v11721_v35  ;;  %vm5435_vm11 = vweird.f32 %v11721_v35 }
0x11bc   :  { %v5240_v47 = vpop.xlane.xlu1 %5239 }
0x11bd   :  { %v5292_v14 = vmul.f32 %v11699_v32, %v11699_v32  ;;  %v5260_v21 = vmul.f32 0.03125, %v5240_v47 }
0x11bf   :  { %v5308_v56 = vsub.f32 %v5260_v21, %v5292_v14  ;;  %v5411_v14 = vmul.f32 %v11714_v29, %v5410_v34 }
0x11c1   :  { %v11727_v47 = vadd.f32 1e-05, %v5308_v56 }
0x11c2   :  { %v5178_v15 = vpop.xlane.xlu2 %5177 }
0x11c3   :  { %v11701_v37 = vmul.f32 0.03125, %v5178_v15  ;;  %v5401_v15 = vmul.f32 %v11708_v9, %v5400_v0  ;;  %8623 = vrsqrt.f32 %v11727_v47  ;;  %vm5445_vm14 = vweird.f32 %v11727_v47 }
0x11c4   :  { %v5242_v54 = vpop.xlane.xlu0 %5241 }
0x11c5   :  { %v5293_v17 = vmul.f32 %v11701_v37, %v11701_v37  ;;  %v5261_v28 = vmul.f32 0.03125, %v5242_v54  ;;  %v11735_v54 = vpop.eup %8619 }
0x11c6   :  { %v5420_v56 = vmul.f32 %v11735_v54, %v11710_v58  ;;  %vm5426_vm10 = vweird.f32 %v11735_v54 }
0x11c7   :  { %v5309_v40 = vsub.f32 %v5261_v28, %v5293_v17  ;;  %v5402_v17 = vmul.f32 0.5, %v5401_v15  ;;  %vm11839_vm12 = vmor %vm5425_vm8, %vm5426_vm10 }
0x11c9   :  { %v11730_v7 = vadd.f32 1e-05, %v5309_v40  ;;  %v5412_v40 = vmul.f32 0.5, %v5411_v14 }
0x11ca   :  { %v5180_v63 = vpop.xlane.xlu1 %5179 }
0x11cb   :  { %v11718_v45 = vmul.f32 0.03125, %v5180_v63  ;;  %v5413_v55 = vsub.f32 1.5, %v5412_v40  ;;  %vm5455_vm4 = vweird.f32 %v11730_v7 }
0x11cc   :  { %v5244_v4 = vpop.xlane.xlu2 %5243 }
0x11cd   :  { %v5294_v51 = vmul.f32 %v11718_v45, %v11718_v45  ;;  %v5262_v8 = vmul.f32 0.03125, %v5244_v4  ;;  %v11747_v4 = vpop.eup %8621 }
0x11ce   :  { %v11749_v34 = vpop.eup %8623  ;;  %v5430_v14 = vmul.f32 %v11747_v4, %v11721_v35  ;;  %vm5436_vm13 = vweird.f32 %v11747_v4 }
0x11cf   :  { %v5310_v26 = vsub.f32 %v5262_v8, %v5294_v51  ;;  %v5403_v51 = vsub.f32 1.5, %v5402_v17  ;;  %vm5446_vm0 = vweird.f32 %v11749_v34  ;;  %vm11867_vm1 = vmor %vm5435_vm11, %vm5436_vm13 }
0x11d0   :  { %v5431_v25 = vmul.f32 %v11747_v4, %v5430_v14  ;;  %vm11887_vm7 = vmor %vm5445_vm14, %vm5446_vm0 }
0x11d1   :  { %v11733_v31 = vadd.f32 1e-05, %v5310_v26  ;;  %v5421_v26 = vmul.f32 %v11735_v54, %v5420_v56  ;;  %v5404_v17 = vmul.f32 %v11708_v9, %v5403_v51  ;;  %v5272_v56 = vsub.f32 %v11584_v20, %v11680_v1 }
0x11d2   :  { %v5182_v21 = vpop.xlane.xlu0 %5181  ;;  %v5273_v20 = vsub.f32 %v11590_v23, %v11682_v12  ;;  %v5414_v1 = vmul.f32 %v11714_v29, %v5413_v55 }
0x11d3   :  { %8625 = vrsqrt.f32 %v11733_v31  ;;  %v11740_v28 = vmul.f32 0.03125, %v5182_v21  ;;  %v5422_v22 = vmul.f32 0.5, %v5421_v26  ;;  %v5408_v26 = vsel %vm11778_vm5, %v11708_v9, %v5404_v17 }
0x11d4   :  { %8627 = vrsqrt.f32 %v11730_v7  ;;  %v5246_v30 = vpop.xlane.xlu1 %5245  ;;  %v5418_v53 = vsel %vm11800_vm9, %v11714_v29, %v5414_v1  ;;  %v5432_v17 = vmul.f32 0.5, %v5431_v25  ;;  %vm5465_vm8 = vweird.f32 %v11733_v31 }
0x11d5   :  { %v5295_v63 = vmul.f32 %v11740_v28, %v11740_v28  ;;  %v5263_v0 = vmul.f32 0.03125, %v5246_v30  ;;  %v5423_v9 = vsub.f32 1.5, %v5422_v22  ;;  %v11829_v38 = vmul.f32 %v5418_v53, %v5273_v20 }
0x11d7   :  { %v5311_v8 = vsub.f32 %v5263_v0, %v5295_v63  ;;  %v5440_v63 = vmul.f32 %v11749_v34, %v11727_v47  ;;  %v11823_v14 = vmul.f32 %v11735_v54, %v5423_v9 }
0x11d9   :  { %v11751_v15 = vpop.eup %8625  ;;  %v11754_v21 = vadd.f32 1e-05, %v5311_v8  ;;  %v5428_v53 = vsel %vm11839_vm12, %v11735_v54, %v11823_v14 }
0x11da   :  { %v11756_v61 = vpop.eup %8627  ;;  %v5184_v30 = vpop.xlane.xlu2 %5183  ;;  %v5460_v40 = vmul.f32 %v11751_v15, %v11733_v31  ;;  %vm5466_vm2 = vweird.f32 %v11751_v15  ;;  %v5278_v31 = vsub.f32 %v11620_v46, %v11718_v45 }
0x11db   :  { %8629 = vrsqrt.f32 %v11754_v21  ;;  %v11765_v0 = vmul.f32 0.03125, %v5184_v30  ;;  %v5450_v51 = vmul.f32 %v11756_v61, %v11730_v7  ;;  %v11814_v30 = vmul.f32 %v5408_v26, %v5272_v56  ;;  %vm11909_vm9 = vmor %vm5465_vm8, %vm5466_vm2 }
0x11dc   :  { %v5248_v8 = vpop.xlane.xlu0 %5247  ;;  %v5162_v11 = vpop.xlane.xlu1 %5161  ;;  %v5461_v55 = vmul.f32 %v11751_v15, %v5460_v40  ;;  %vm5475_vm3 = vweird.f32 %v11754_v21  ;;  %vm5456_vm5 = vweird.f32 %v11756_v61 }
0x11dd   :  { %v5296_v3 = vmul.f32 %v11765_v0, %v11765_v0  ;;  %v5264_v5 = vmul.f32 0.03125, %v5248_v8  ;;  %v5441_v8 = vmul.f32 %v11749_v34, %v5440_v63  ;;  %v11791_v10 = vmul.f32 0.03125, %v5162_v11  ;;  %vm11917_vm10 = vmor %vm5455_vm4, %vm5456_vm5 }
0x11de   :  { %v5451_v11 = vmul.f32 %v11756_v61, %v5450_v51 }
0x11df   :  { %v5312_v44 = vsub.f32 %v5264_v5, %v5296_v3  ;;  %v5442_v23 = vmul.f32 0.5, %v5441_v8  ;;  %v5285_v22 = vmul.f32 %v11791_v10, %v11791_v10  ;;  %v5433_v3 = vsub.f32 1.5, %v5432_v17 }
0x11e0   :  { %v5452_v56 = vmul.f32 0.5, %v5451_v11 }
0x11e1   :  { %v11798_v12 = vpop.eup %8629  ;;  %v11807_v5 = vadd.f32 1e-05, %v5312_v44  ;;  %v5462_v44 = vmul.f32 0.5, %v5461_v55  ;;  %v5443_v42 = vsub.f32 1.5, %v5442_v23 }
0x11e2   :  { %v5470_v63 = vmul.f32 %v11798_v12, %v11754_v21  ;;  %v5226_v40 = vpop.xlane.xlu2 %5225  ;;  %v5453_v17 = vsub.f32 1.5, %v5452_v56  ;;  %vm5476_vm15 = vweird.f32 %v11798_v12 }
0x11e3   :  { %8631 = vrsqrt.f32 %v11807_v5  ;;  %v5253_v51 = vmul.f32 0.03125, %v5226_v40  ;;  %v5276_v40 = vsub.f32 %v11608_v62, %v11699_v32  ;;  %v5463_v20 = vsub.f32 1.5, %v5462_v44  ;;  %vm11880_vm6 = vmor %vm5475_vm3, %vm5476_vm15 }
0x11e4   :  { %v5471_v29 = vmul.f32 %v11798_v12, %v5470_v63  ;;  %v5164_v1 = vpop.xlane.xlu0 %5163  ;;  %v5228_v25 = vpop.xlane.xlu1 %5227  ;;  %vm5485_vm12 = vweird.f32 %v11807_v5 }
0x11e5   :  { %v5301_v26 = vsub.f32 %v5253_v51, %v5285_v22  ;;  %v11825_v8 = vmul.f32 0.03125, %v5164_v1  ;;  %v5254_v2 = vmul.f32 0.03125, %v5228_v25  ;;  %v5277_v22 = vsub.f32 %v11614_v43, %v11701_v37 }
0x11e6   :  { %v5472_v57 = vmul.f32 0.5, %v5471_v29  ;;  %v5434_v29 = vmul.f32 %v11747_v4, %v5433_v3  ;;  %v5444_v1 = vmul.f32 %v11749_v34, %v5443_v42  ;;  %v5464_v43 = vmul.f32 %v11751_v15, %v5463_v20 }
0x11e7   :  { %v11831_v55 = vadd.f32 1e-05, %v5301_v26  ;;  %v5286_v63 = vmul.f32 %v11825_v8, %v11825_v8  ;;  %v5454_v25 = vmul.f32 %v11756_v61, %v5453_v17  ;;  %v5279_v20 = vsub.f32 %v11626_v36, %v11740_v28 }
0x11e8   :  { %v5473_v23 = vsub.f32 1.5, %v5472_v57  ;;  %v5438_v9 = vsel %vm11867_vm1, %v11747_v4, %v5434_v29  ;;  %v5448_v47 = vsel %vm11887_vm7, %v11749_v34, %v5444_v1  ;;  %v5468_v34 = vsel %vm11909_vm9, %v11751_v15, %v5464_v43  ;;  %v11941_v1 = vld [vmem:[#allocation13 + $0x1c] ss:$0 sm:$0xff] }
0x11e9   :  { %v11845_v11 = vpop.eup %8631  ;;  %8633 = vrsqrt.f32 %v11831_v55  ;;  %v5302_v58 = vsub.f32 %v5254_v2, %v5286_v63  ;;  %v5458_v36 = vsel %vm11917_vm10, %v11756_v61, %v5454_v25  ;;  %v5280_v29 = vsub.f32 %v11632_v6, %v11765_v0 }
0x11ea   :  { %v5474_v51 = vmul.f32 %v11798_v12, %v5473_v23  ;;  %v5480_v57 = vmul.f32 %v11845_v11, %v11807_v5  ;;  %v5160_v44 = vpop.xlane.xlu2 %5159  ;;  %vm5486_vm11 = vweird.f32 %v11845_v11  ;;  %v5502_v2 = vmul.f32 %v5468_v34, %v5278_v31 }
0x11eb   :  { %v11861_v54 = vadd.f32 1e-05, %v5302_v58  ;;  %v11935_v58 = vmul.f32 0.03125, %v5160_v44  ;;  %vm5487_vm13 = vmor %vm5485_vm12, %vm5486_vm11  ;;  %v12720_v43 = vsub.f32 %v11596_v59, %v11688_v52  ;;  %v12721_v25 = vsub.f32 %v11602_v60, %v11696_v50  ;;  %v11965_v50 = vld [vmem:[#allocation13 + $0x1d] ss:$0 sm:$0xff] }
0x11ec   :  { %v5481_v42 = vmul.f32 %v11845_v11, %v5480_v57  ;;  %v5158_v37 = vpop.xlane.xlu0 %5157  ;;  %v5222_v3 = vpop.xlane.xlu1 %5221  ;;  %v5478_v14 = vsel %vm11880_vm6, %v11798_v12, %v5474_v51  ;;  %v5500_v0 = vmul.f32 %v5448_v47, %v5276_v40  ;;  %v5501_v52 = vmul.f32 %v5458_v36, %v5277_v22 }
0x11ed   :  { %8635 = vrsqrt.f32 %v11861_v54  ;;  %v11895_v26 = vmul.f32 0.03125, %v5158_v37  ;;  %v5503_v28 = vmul.f32 %v5478_v14, %v5279_v20  ;;  %v5251_v23 = vmul.f32 0.03125, %v5222_v3 }
0x11ee   :  { %v5482_v56 = vmul.f32 0.5, %v5481_v42  ;;  %v5498_v42 = vmul.f32 %v5428_v53, %v12720_v43  ;;  %v5499_v6 = vmul.f32 %v5438_v9, %v12721_v25  ;;  %v5284_v14 = vmul.f32 %v11935_v58, %v11935_v58 }
0x11ef   :  { %v11897_v63 = vpop.eup %8633  ;;  %v5283_v7 = vmul.f32 %v11895_v26, %v11895_v26  ;;  %v5521_v59 = vmul.f32 %v11941_v1, %v5503_v28  ;;  %v5520_v32 = vmul.f32 %v11941_v1, %v5502_v2  ;;  %v5518_v22 = vmul.f32 %v11941_v1, %v5500_v0 }
0x11f0   :  { %v5483_v46 = vsub.f32 1.5, %v5482_v56  ;;  %v5370_v45 = vmul.f32 %v11897_v63, %v11831_v55  ;;  %v5516_v47 = vmul.f32 %v11941_v1, %v5498_v42  ;;  %v5519_v4 = vmul.f32 %v11941_v1, %v5501_v52 }
0x11f1   :  { %v5299_v61 = vsub.f32 %v5251_v23, %v5283_v7  ;;  %v5539_v12 = vadd.f32 %v11965_v50, %v5521_v59  ;;  %v5517_v28 = vmul.f32 %v11941_v1, %v5499_v6  ;;  %vm5376_vm15 = vweird.f32 %v11897_v63 }
0x11f2   :  { %v5484_v17 = vmul.f32 %v11845_v11, %v5483_v46  ;;  %v5371_v15 = vmul.f32 %v11897_v63, %v5370_v45  ;;  %v5154_v51 = vpop.xlane.xlu2 %5153  ;;  %vm5385_vm0 = vweird.f32 %v11861_v54  ;;  %v5514_v59 = vmul.f32 %v11941_v1, %v11814_v30 }
0x11f3   :  { %v11937_v57 = vpop.eup %8635  ;;  %v11955_v21 = vadd.f32 1e-05, %v5299_v61  ;;  %v11970_v31 = vmul.f32 0.03125, %v5154_v51  ;;  %v5536_v61 = vadd.f32 %v11965_v50, %v5518_v22  ;;  %vm5375_vm2 = vweird.f32 %v11831_v55 }
0x11f4   :  { %v5488_v5 = vsel %vm5487_vm13, %v11845_v11, %v5484_v17  ;;  %v5380_v44 = vmul.f32 %v11937_v57, %v11861_v54  ;;  %v5224_v37 = vpop.xlane.xlu0 %5223  ;;  %v5156_v3 = vpop.xlane.xlu1 %5155  ;;  %v5372_v11 = vmul.f32 0.5, %v5371_v15  ;;  %v5538_v15 = vadd.f32 %v11965_v50, %v5520_v32  ;;  %vm12005_vm3 = vmor %vm5375_vm2, %vm5376_vm15 }
0x11f5   :  { %v5504_v35 = vmul.f32 %v5488_v5, %v5280_v29  ;;  %v5252_v56 = vmul.f32 0.03125, %v5224_v37  ;;  %8637 = vrsqrt.f32 %v11955_v21  ;;  %v11962_v60 = vmul.f32 0.03125, %v5156_v3 }
0x11f6   :  { %v5381_v53 = vmul.f32 %v11937_v57, %v5380_v44  ;;  %v5373_v34 = vsub.f32 1.5, %v5372_v11  ;;  %vm5386_vm14 = vweird.f32 %v11937_v57  ;;  %v5281_v43 = vmul.f32 %v11970_v31, %v11970_v31 }
0x11f7   :  { %v5522_v62 = vmul.f32 %v11941_v1, %v5504_v35  ;;  %v5300_v9 = vsub.f32 %v5252_v56, %v5284_v14  ;;  %v5282_v7 = vmul.f32 %v11962_v60, %v11962_v60  ;;  %v5537_v44 = vadd.f32 %v11965_v50, %v5519_v4  ;;  %vm11992_vm1 = vmor %vm5385_vm0, %vm5386_vm14 }
0x11f8   :  { %v5382_v40 = vmul.f32 0.5, %v5381_v53  ;;  %v5374_v37 = vmul.f32 %v11897_v63, %v5373_v34  ;;  %v5535_v11 = vadd.f32 %v11965_v50, %v5517_v28  ;;  %v5270_v14 = vsub.f32 %v11642_v41, %v11825_v8 }
0x11f9   :  { %v5540_v20 = vadd.f32 %v11965_v50, %v5522_v62  ;;  %v11975_v45 = vadd.f32 1e-05, %v5300_v9  ;;  %v5547_v35 = vpack.c.bf16 %v5538_v15, %v5537_v44  ;;  %v5515_v30 = vmul.f32 %v11941_v1, %v11829_v38 }
0x11fa   :  { %v5383_v46 = vsub.f32 1.5, %v5382_v40  ;;  %v5220_v36 = vpop.xlane.xlu2 %5219  ;;  %v5546_v32 = vpack.c.bf16 %v5536_v61, %v5535_v11  ;;  %v5534_v40 = vadd.f32 %v11965_v50, %v5516_v47  ;;  %v5269_v41 = vsub.f32 %v11635_v16, %v11791_v10 }
0x11fb   :  { %v5250_v23 = vmul.f32 0.03125, %v5220_v36  ;;  %v5548_v17 = vpack.c.bf16 %v5540_v20, %v5539_v12  ;;  %8639 = vrsqrt.f32 %v11975_v45  ;;  %v8638_v2 = vpop.eup %8637  ;;  %v5533_v12 = vadd.f32 %v11965_v50, %v5515_v30 }
0x11fc   :  { %v5384_v51 = vmul.f32 %v11937_v57, %v5383_v46  ;;  %v5218_v29 = vpop.xlane.xlu0 %5217  ;;  %v5350_v3 = vmul.f32 %v8638_v2, %v11955_v21  ;;  %vm5356_vm4 = vweird.f32 %v8638_v2  ;;  %vm5355_vm5 = vweird.f32 %v11955_v21 }
0x11fd   :  { %v5298_v42 = vsub.f32 %v5250_v23, %v5282_v7  ;;  %v5249_v5 = vmul.f32 0.03125, %v5218_v29  ;;  %5549 = vmatpush.bf16.msra.mxu1 %v5548_v17  ;;  %vm12028_vm6 = vmor %vm5355_vm5, %vm5356_vm4  ;;  %v5545_v34 = vpack.c.bf16 %v5534_v40, %v5533_v12  ;;  %v5532_v46 = vadd.f32 %v11965_v50, %v5514_v59 }
0x11fe   :  { %v5388_v52 = vsel %vm11992_vm1, %v11937_v57, %v5384_v51  ;;  %v5351_v54 = vmul.f32 %v8638_v2, %v5350_v3  ;;  %v5378_v57 = vsel %vm12005_vm3, %v11897_v63, %v5374_v37  ;;  %v5513_v63 = vmul.f32 %v11941_v1, %v11678_v39 }
0x11ff   :  { %v11996_v6 = vadd.f32 1e-05, %v5298_v42  ;;  %v5297_v0 = vsub.f32 %v5249_v5, %v5281_v43  ;;  %v5494_v9 = vmul.f32 %v5388_v52, %v5270_v14  ;;  %v5493_v20 = vmul.f32 %v5378_v57, %v5269_v41  ;;  %v8694_v41 = vld [vmem:[#allocation8] sm:$0xff] }
0x1200   :  { %v5352_v62 = vmul.f32 0.5, %v5351_v54  ;;  %v5267_v28 = vsub.f32 %v11651_v27, %v11895_v26  ;;  %v5531_v17 = vadd.f32 %v11965_v50, %v5513_v63  ;;  %vm5365_vm8 = vweird.f32 %v11975_v45 }
0x1201   :  { %8641 = vrsqrt.f32 %v11996_v6  ;;  %v12012_v56 = vadd.f32 1e-05, %v5297_v0  ;;  %5550 = vmatpush.bf16.msra.mxu1 %v5547_v35  ;;  %v8640_v55 = vpop.eup %8639  ;;  %v5512_v36 = vmul.f32 %v11941_v1, %v5494_v9  ;;  %v5511_v15 = vmul.f32 %v11941_v1, %v5493_v20  ;;  %v8698_v9 = vld [vmem:[#allocation8 + $0x20] sm:$0xff] }
0x1202   :  { %v5360_v8 = vmul.f32 %v8640_v55, %v11975_v45  ;;  %v5353_v22 = vsub.f32 1.5, %v5352_v62  ;;  %vm5366_vm7 = vweird.f32 %v8640_v55  ;;  %v5544_v27 = vpack.c.bf16 %v5532_v46, %v5531_v17  ;;  %v8355_v17 = vld [vmem:[#allocation10 + $0x158] sm:$0xff] }
0x1203   :  { %8643 = vrsqrt.f32 %v12012_v56  ;;  %v5530_v26 = vadd.f32 %v11965_v50, %v5512_v36  ;;  %vm5367_vm9 = vmor %vm5365_vm8, %vm5366_vm7  ;;  %v5529_v37 = vadd.f32 %v11965_v50, %v5511_v15  ;;  %vm5345_vm11 = vweird.f32 %v11996_v6  ;;  %v8358_v36 = vld [vmem:[#allocation10 + $0x170] sm:$0xff] }
0x1204   :  { %v5361_v38 = vmul.f32 %v8640_v55, %v5360_v8  ;;  %v5354_v4 = vmul.f32 %v8638_v2, %v5353_v22  ;;  %vm5335_vm14 = vweird.f32 %v12012_v56  ;;  %v8695_v8 = vld [vmem:[#allocation8 + $0x8] sm:$0xff]  ;;  %v8354_v15 = vld [vmem:[#allocation10 + $0x150] sm:$0xff] }
0x1205   :  { %5551 = vmatpush.bf16.msra.mxu1 %v5546_v32  ;;  %v5543_v45 = vpack.c.bf16 %v5530_v26, %v5529_v37  ;;  %v8699_v22 = vld [vmem:[#allocation8 + $0x28] sm:$0xff]  ;;  %v8366_v26 = vld [vmem:[#allocation11 + $0x3f0] sm:$0xff] }
0x1206   :  { %v5362_v16 = vmul.f32 0.5, %v5361_v38  ;;  %v5358_v39 = vsel %vm12028_vm6, %v8638_v2, %v5354_v4  ;;  %v5268_v2 = vsub.f32 %v11655_v49, %v11935_v58  ;;  %v5266_v58 = vsub.f32 %v11667_v33, %v11962_v60  ;;  %v8700_v38 = vld [vmem:[#allocation8 + $0x30] sm:$0xff] }
0x1207   :  { %v8642_v47 = vpop.eup %8641  ;;  %v5491_v61 = vmul.f32 %v5358_v39, %v5267_v28  ;;  %v8357_v39 = vld [vmem:[#allocation10 + $0x168] sm:$0xff] }
0x1208   :  { %v5340_v7 = vmul.f32 %v8642_v47, %v11996_v6  ;;  %v5363_v23 = vsub.f32 1.5, %v5362_v16  ;;  %vm5346_vm10 = vweird.f32 %v8642_v47  ;;  %v5265_v6 = vsub.f32 %v11663_v24, %v11970_v31  ;;  %v8696_v24 = vld [vmem:[#allocation8 + $0x10] sm:$0xff]  ;;  %v8697_v31 = vld [vmem:[#allocation8 + $0x18] sm:$0xff] }
0x1209   :  { %v8644_v21 = vpop.eup %8643  ;;  %5552 = vmatpush.bf16.msra.mxu1 %v5545_v34  ;;  %v5509_v35 = vmul.f32 %v11941_v1, %v5491_v61  ;;  %vm5347_vm13 = vmor %vm5345_vm11, %vm5346_vm10  ;;  %v8359_v34 = vld [vmem:[#allocation10 + $0x178] sm:$0xff]  ;;  %v8352_v61 = vld [vmem:[#allocation10 + $0x140] sm:$0xff] }
0x120a   :  { %v5341_v51 = vmul.f32 %v8642_v47, %v5340_v7  ;;  %v5330_v29 = vmul.f32 %v8644_v21, %v12012_v56  ;;  %v5364_v43 = vmul.f32 %v8640_v55, %v5363_v23  ;;  %vm5336_vm12 = vweird.f32 %v8644_v21  ;;  %5721 = vmatpush.bf16.msrb.mxu2 %v8359_v34  ;;  %v8356_v7 = vld [vmem:[#allocation10 + $0x160] sm:$0xff] }
0x120b   :  { %v5527_v53 = vadd.f32 %v11965_v50, %v5509_v35  ;;  %vm5337_vm15 = vmor %vm5335_vm14, %vm5336_vm12 }
0x120c   :  { %v5342_v42 = vmul.f32 0.5, %v5341_v51  ;;  %v5331_v5 = vmul.f32 %v8644_v21, %v5330_v29  ;;  %v5368_v44 = vsel %vm5367_vm9, %v8640_v55, %v5364_v43  ;;  %v8353_v29 = vld [vmem:[#allocation10 + $0x148] sm:$0xff] }
0x120d   :  { %5553 = vmatpush.bf16.msra.mxu1 %v5544_v27  ;;  %v5492_v0 = vmul.f32 %v5368_v44, %v5268_v2 }
0x120e   :  { %v5343_v3 = vsub.f32 1.5, %v5342_v42  ;;  %v5332_v25 = vmul.f32 0.5, %v5331_v5  ;;  %5722 = vmatpush.bf16.msrb.mxu2 %v8358_v36 }
0x120f   :  { %v5510_v49 = vmul.f32 %v11941_v1, %v5492_v0 }
0x1210   :  { %v5344_v59 = vmul.f32 %v8642_v47, %v5343_v3  ;;  %v5333_v52 = vsub.f32 1.5, %v5332_v25 }
0x1211   :  { %5554 = vmatpush.bf16.msra.mxu1 %v5543_v45  ;;  %v5528_v14 = vadd.f32 %v11965_v50, %v5510_v49  ;;  %v8365_v49 = vld [vmem:[#allocation11 + $0x3e8] sm:$0xff] }
0x1212   :  { %v5348_v54 = vsel %vm5347_vm13, %v8642_v47, %v5344_v59  ;;  %v5334_v11 = vmul.f32 %v8644_v21, %v5333_v52  ;;  %5723 = vmatpush.bf16.msrb.mxu2 %v8357_v39 }
0x1213   :  { %v5490_v30 = vmul.f32 %v5348_v54, %v5266_v58  ;;  %v5542_v57 = vpack.c.bf16 %v5528_v14, %v5527_v53  ;;  %v12729_v14 = vld [vmem:[#allocation31_spill] sm:$0xff] }
0x1214   :  { %v5338_v55 = vsel %vm5337_vm15, %v8644_v21, %v5334_v11  ;;  %v8367_v21 = vld [vmem:[#allocation11 + $0x3f8] sm:$0xff]  ;;  %v12728_v11 = vld [vmem:[#allocation30_spill] sm:$0xff] }
0x1215   :  { %v5489_v62 = vmul.f32 %v5338_v55, %v5265_v6  ;;  %v5508_v33 = vmul.f32 %v11941_v1, %v5490_v30  ;;  %5555 = vmatpush.bf16.msra.mxu1 %v5542_v57  ;;  %5861 = vmatpush.bf16.msra.mxu3 %v8367_v21  ;;  %v8362_v21 = vld [vmem:[#allocation11 + $0x3d0] sm:$0xff] }
0x1216   :  { %5724 = vmatpush.bf16.msrb.mxu2 %v8356_v7 }
0x1217   :  { %v5507_v60 = vmul.f32 %v11941_v1, %v5489_v62  ;;  %v5526_v32 = vadd.f32 %v11965_v50, %v5508_v33  ;;  %v8701_v1 = vld [vmem:[#allocation8 + $0x38] sm:$0xff] }
0x1218   :  { %v12730_v62 = vld [vmem:[#allocation29_spill] sm:$0xff] }
0x1219   :  { %v5525_v56 = vadd.f32 %v11965_v50, %v5507_v60  ;;  %5862 = vmatpush.bf16.msra.mxu3 %v8366_v26  ;;  %v12731_v60 = vld [vmem:[#allocation38_spill] sm:$0xff] }
0x121a   :  { %5725 = vmatpush.bf16.msrb.mxu2 %v8355_v17  ;;  %v8360_v26 = vld [vmem:[#allocation11 + $0x3c0] sm:$0xff] }
0x121b   :  { %v5541_v40 = vpack.c.bf16 %v5526_v32, %v5525_v56  ;;  %v8364_v32 = vld [vmem:[#allocation11 + $0x3e0] sm:$0xff] }
0x121d   :  { %5556 = vmatpush.bf16.msra.mxu1 %v5541_v40  ;;  %5863 = vmatpush.bf16.msra.mxu3 %v8365_v49 }
0x121e   :  { %5726 = vmatpush.bf16.msrb.mxu2 %v8354_v15  ;;  %v8361_v15 = vld [vmem:[#allocation11 + $0x3c8] sm:$0xff] }
0x1220   :  { %5557 = vmatmul.bf16.vlgmr.msra.gmra.mxu1 %v8694_v41 }
0x1221   :  { %5864 = vmatpush.bf16.msra.mxu3 %v8364_v32 }
0x1222   :  { %5727 = vmatpush.bf16.msrb.mxu2 %v8353_v29 }
0x1226   :  { %5728 = vmatpush.bf16.msrb.mxu2 %v8352_v61  ;;  %v12739_v61 = vld [vmem:[#allocation25_spill] sm:$0xff] }
0x1230   :  { %5562 = vmatmul.bf16.gmra.mxu1 %v8695_v8 }
0x1240   :  { %5567 = vmatmul.bf16.gmra.mxu1 %v8696_v24  ;;  %v12732_v24 = vld [vmem:[#allocation36_spill] sm:$0xff] }
0x1250   :  { %5572 = vmatmul.bf16.gmra.mxu1 %v8697_v31 }
0x1260   :  { %5577 = vmatmul.bf16.gmra.mxu1 %v8698_v9  ;;  %v12733_v9 = vld [vmem:[#allocation22_spill] sm:$0xff] }
0x1270   :  { %5582 = vmatmul.bf16.gmra.mxu1 %v8699_v22 }
0x1280   :  { %5587 = vmatmul.bf16.gmra.mxu1 %v8700_v38 }
0x1290   :  { %5592 = vmatmul.bf16.gmra.mxu1 %v8701_v1 }
0x129d   :  { %v5558_v12 = vpop.f32.mrf.mxu1 }
0x129e   :  { %5598 = vrot.lane.b32.xlu1 %v5558_v12, %s8915_s6 }
0x12a5   :  { %v5560_v50 = vpop.f32.mrf.mxu1 }
0x12a6   :  { %5600 = vrot.lane.b32.xlu0 %v5560_v50, %s8915_s6  ;;  %v12734_v50 = vld [vmem:[#allocation21_spill] sm:$0xff] }
0x12ad   :  { %v5563_v63 = vpop.f32.mrf.mxu1 }
0x12ae   :  { %5602 = vrot.lane.b32.xlu2 %v5563_v63, %s8915_s6 }
0x12b5   :  { %v5565_v20 = vpop.f32.mrf.mxu1 }
0x12b6   :  { %5604 = vrot.lane.b32.xlu0 %v5565_v20, %s8915_s6  ;;  %v12735_v20 = vld [vmem:[#allocation26_spill] sm:$0xff] }
0x12bd   :  { %v5568_v4 = vpop.f32.mrf.mxu1 }
0x12be   :  { %5606 = vrot.lane.b32.xlu1 %v5568_v4, %s8915_s6 }
0x12c5   :  { %v5570_v47 = vpop.f32.mrf.mxu1 }
0x12c6   :  { %5608 = vrot.lane.b32.xlu2 %v5570_v47, %s8915_s6 }
0x12cd   :  { %v5573_v10 = vpop.f32.mrf.mxu1 }
0x12ce   :  { %5610 = vrot.lane.b32.xlu0 %v5573_v10, %s8915_s6  ;;  %v8363_v10 = vld [vmem:[#allocation11 + $0x3d8] sm:$0xff] }
0x12cf   :  { %5865 = vmatpush.bf16.msra.mxu3 %v8363_v10 }
0x12d3   :  { %5866 = vmatpush.bf16.msra.mxu3 %v8362_v21 }
0x12d5   :  { %v5575_v16 = vpop.f32.mrf.mxu1 }
0x12d6   :  { %5612 = vrot.lane.b32.xlu1 %v5575_v16, %s8915_s6 }
0x12d7   :  { %5867 = vmatpush.bf16.msra.mxu3 %v8361_v15  ;;  %v8375_v15 = vld [vmem:[#allocation11 + $0x438] sm:$0xff] }
0x12d8   :  { %6001 = vmatpush.bf16.msra.mxu0 %v8375_v15 }
0x12db   :  { %5868 = vmatpush.bf16.msra.mxu3 %v8360_v26 }
0x12dd   :  { %v5578_v46 = vpop.f32.mrf.mxu1 }
0x12de   :  { %5614 = vrot.lane.b32.xlu2 %v5578_v46, %s8915_s6  ;;  %v12736_v46 = vld [vmem:[#allocation23_spill] sm:$0xff] }
0x12e5   :  { %v5580_v28 = vpop.f32.mrf.mxu1 }
0x12e6   :  { %5616 = vrot.lane.b32.xlu0 %v5580_v28, %s8915_s6  ;;  %v12737_v28 = vld [vmem:[#allocation24_spill] sm:$0xff] }
0x12ed   :  { %v5583_v23 = vpop.f32.mrf.mxu1 }
0x12ee   :  { %5618 = vrot.lane.b32.xlu1 %v5583_v23, %s8915_s6 }
0x12f5   :  { %v5585_v51 = vpop.f32.mrf.mxu1 }
0x12f6   :  { %5620 = vrot.lane.b32.xlu2 %v5585_v51, %s8915_s6  ;;  %v12738_v51 = vld [vmem:[#allocation20_spill] sm:$0xff] }
0x12fd   :  { %v5588_v43 = vpop.f32.mrf.mxu1 }
0x12fe   :  { %5622 = vrot.lane.b32.xlu0 %v5588_v43, %s8915_s6 }
0x1305   :  { %v5590_v27 = vpop.f32.mrf.mxu1 }
0x1306   :  { %5624 = vrot.lane.b32.xlu1 %v5590_v27, %s8915_s6 }
0x1308   :  { %v5603_v0 = vpop.permute.xlu2 %5602 }
0x1309   :  { %v5632_v45 = vadd.f32 %v5603_v0, %v11404_v18 }
0x130d   :  { %v5593_v2 = vpop.f32.mrf.mxu1 }
0x130e   :  { %5626 = vrot.lane.b32.xlu2 %v5593_v2, %s8915_s6 }
0x1310   :  { %v5599_v5 = vpop.permute.xlu1 %5598 }
0x1311   :  { %v5630_v37 = vadd.f32 %v5599_v5, %v11421_v19 }
0x1315   :  { %v5595_v42 = vpop.f32.mrf.mxu1 }
0x1316   :  { %5628 = vrot.lane.b32.xlu0 %v5595_v42, %s8915_s6  ;;  %v12093_v42 = vld [vmem:[#allocation13 + $0x1e] ss:$0 sm:$0xff] }
0x1318   :  { %v5601_v44 = vpop.permute.xlu0 %5600 }
0x1319   :  { %v5631_v3 = vadd.f32 %v5601_v44, %v11418_v48 }
0x131b   :  { %v5663_v25 = vpack.c.bf16 %v5631_v3, %v5630_v37 }
0x131d   :  { %5729 = vmatmul.bf16.vlgmr.msrb.gmra.mxu2 %v5663_v25 }
0x1320   :  { %v5609_v54 = vpop.permute.xlu2 %5608 }
0x1321   :  { %v5635_v6 = vadd.f32 %v5609_v54, %v12729_v14 }
0x1328   :  { %v5605_v35 = vpop.permute.xlu0 %5604 }
0x1329   :  { %v5633_v59 = vadd.f32 %v5605_v35, %v11407_v13 }
0x132b   :  { %v5664_v52 = vpack.c.bf16 %v5633_v59, %v5632_v45 }
0x132d   :  { %5734 = vmatmul.bf16.gmra.mxu2 %v5664_v52 }
0x1330   :  { %v5607_v58 = vpop.permute.xlu1 %5606 }
0x1331   :  { %v5634_v53 = vadd.f32 %v5607_v58, %v12728_v11 }
0x1333   :  { %v5665_v30 = vpack.c.bf16 %v5635_v6, %v5634_v53 }
0x1338   :  { %v5615_v41 = vpop.permute.xlu2 %5614 }
0x1339   :  { %v5638_v31 = vadd.f32 %v5615_v41, %v12732_v24 }
0x133d   :  { %5739 = vmatmul.bf16.gmra.mxu2 %v5665_v30 }
0x1340   :  { %v5611_v55 = vpop.permute.xlu0 %5610 }
0x1341   :  { %v5636_v33 = vadd.f32 %v5611_v55, %v12730_v62 }
0x1348   :  { %v5613_v57 = vpop.permute.xlu1 %5612 }
0x1349   :  { %v5637_v56 = vadd.f32 %v5613_v57, %v12731_v60 }
0x134b   :  { %v5666_v40 = vpack.c.bf16 %v5637_v56, %v5636_v33 }
0x134d   :  { %5744 = vmatmul.bf16.gmra.mxu2 %v5666_v40 }
0x1350   :  { %v5621_v12 = vpop.permute.xlu2 %5620 }
0x1351   :  { %v5641_v4 = vadd.f32 %v5621_v12, %v12735_v20 }
0x1358   :  { %v5617_v8 = vpop.permute.xlu0 %5616 }
0x1359   :  { %v5639_v22 = vadd.f32 %v5617_v8, %v12733_v9 }
0x135b   :  { %v5667_v38 = vpack.c.bf16 %v5639_v22, %v5638_v31 }
0x135d   :  { %5749 = vmatmul.bf16.gmra.mxu2 %v5667_v38 }
0x1360   :  { %v5619_v1 = vpop.permute.xlu1 %5618 }
0x1361   :  { %v5640_v63 = vadd.f32 %v5619_v1, %v12734_v50 }
0x1363   :  { %v5668_v47 = vpack.c.bf16 %v5641_v4, %v5640_v63 }
0x1368   :  { %v5627_v23 = vpop.permute.xlu2 %5626 }
0x1369   :  { %v5644_v29 = vadd.f32 %v5627_v23, %v12738_v51 }
0x136d   :  { %5754 = vmatmul.bf16.gmra.mxu2 %v5668_v47 }
0x1370   :  { %v5623_v16 = vpop.permute.xlu0 %5622 }
0x1371   :  { %v5642_v36 = vadd.f32 %v5623_v16, %v12736_v46 }
0x1378   :  { %v5625_v34 = vpop.permute.xlu1 %5624 }
0x1379   :  { %v5643_v39 = vadd.f32 %v5625_v34, %v12737_v28 }
0x137b   :  { %v5669_v7 = vpack.c.bf16 %v5643_v39, %v5642_v36 }
0x137d   :  { %5759 = vmatmul.bf16.gmra.mxu2 %v5669_v7 }
0x1388   :  { %v5629_v17 = vpop.permute.xlu0 %5628 }
0x1389   :  { %v5645_v43 = vadd.f32 %v5629_v17, %v12739_v61 }
0x138b   :  { %v5670_v27 = vpack.c.bf16 %v5645_v43, %v5644_v29  ;;  %v8374_v29 = vld [vmem:[#allocation11 + $0x430] sm:$0xff] }
0x138c   :  { %6002 = vmatpush.bf16.msra.mxu0 %v8374_v29 }
0x138d   :  { %5764 = vmatmul.bf16.gmra.mxu2 %v5670_v27  ;;  %v8373_v27 = vld [vmem:[#allocation11 + $0x428] sm:$0xff] }
0x1390   :  { %6003 = vmatpush.bf16.msra.mxu0 %v8373_v27 }
0x13a0   :  { %v5730_v2 = vpop.f32.mrf.mxu2 }
0x13a1   :  { %v5731_v5 = vadd.f32 %v12093_v42, %v5730_v2  ;;  %v8372_v2 = vld [vmem:[#allocation11 + $0x420] sm:$0xff] }
0x13a2   :  { %6004 = vmatpush.bf16.msra.mxu0 %v8372_v2 }
0x13a3   :  { %v5770_v3 = vmax.f32 %v5731_v5, 0.0 }
0x13a8   :  { %v5732_v44 = vpop.f32.mrf.mxu2 }
0x13a9   :  { %v5733_v37 = vadd.f32 %v12093_v42, %v5732_v44 }
0x13ab   :  { %v5771_v25 = vmax.f32 %v5733_v37, 0.0 }
0x13ad   :  { %v5803_v0 = vpack.c.bf16 %v5771_v25, %v5770_v3 }
0x13af   :  { %5869 = vmatmul.bf16.vlgmr.msra.gmra.mxu3 %v5803_v0 }
0x13b0   :  { %v5735_v35 = vpop.f32.mrf.mxu2 }
0x13b1   :  { %v5736_v45 = vadd.f32 %v12093_v42, %v5735_v35  ;;  %v8371_v35 = vld [vmem:[#allocation11 + $0x418] sm:$0xff] }
0x13b2   :  { %6005 = vmatpush.bf16.msra.mxu0 %v8371_v35 }
0x13b3   :  { %v5772_v49 = vmax.f32 %v5736_v45, 0.0  ;;  %v8370_v45 = vld [vmem:[#allocation11 + $0x410] sm:$0xff] }
0x13b6   :  { %6006 = vmatpush.bf16.msra.mxu0 %v8370_v45 }
0x13b8   :  { %v5737_v59 = vpop.f32.mrf.mxu2 }
0x13b9   :  { %v5738_v52 = vadd.f32 %v12093_v42, %v5737_v59 }
0x13bb   :  { %v5773_v58 = vmax.f32 %v5738_v52, 0.0 }
0x13bd   :  { %v5804_v54 = vpack.c.bf16 %v5773_v58, %v5772_v49  ;;  %v8369_v58 = vld [vmem:[#allocation11 + $0x408] sm:$0xff] }
0x13be   :  { %6007 = vmatpush.bf16.msra.mxu0 %v8369_v58 }
0x13bf   :  { %5874 = vmatmul.bf16.gmra.mxu3 %v5804_v54 }
0x13c0   :  { %v5740_v53 = vpop.f32.mrf.mxu2 }
0x13c1   :  { %v5741_v6 = vadd.f32 %v12093_v42, %v5740_v53 }
0x13c3   :  { %v5774_v57 = vmax.f32 %v5741_v6, 0.0 }
0x13c8   :  { %v5742_v30 = vpop.f32.mrf.mxu2 }
0x13c9   :  { %v5743_v55 = vadd.f32 %v12093_v42, %v5742_v30  ;;  %v8368_v30 = vld [vmem:[#allocation11 + $0x400] sm:$0xff] }
0x13ca   :  { %6008 = vmatpush.bf16.msra.mxu0 %v8368_v30  ;;  %v8380_v30 = vld [vmem:[#allocation11 + $0x460] sm:$0xff] }
0x13cb   :  { %v5775_v33 = vmax.f32 %v5743_v55, 0.0 }
0x13cd   :  { %v5805_v56 = vpack.c.bf16 %v5775_v33, %v5774_v57  ;;  %v12111_v57 = vld [vmem:[#allocation13 + $0x1f] ss:$0 sm:$0xff] }
0x13cf   :  { %5879 = vmatmul.bf16.gmra.mxu3 %v5805_v56 }
0x13d0   :  { %v5745_v32 = vpop.f32.mrf.mxu2 }
0x13d1   :  { %v5746_v40 = vadd.f32 %v12093_v42, %v5745_v32 }
0x13d3   :  { %v5776_v31 = vmax.f32 %v5746_v40, 0.0 }
0x13d8   :  { %v5747_v41 = vpop.f32.mrf.mxu2 }
0x13d9   :  { %v5748_v8 = vadd.f32 %v12093_v42, %v5747_v41 }
0x13db   :  { %v5777_v22 = vmax.f32 %v5748_v8, 0.0 }
0x13dd   :  { %v5806_v38 = vpack.c.bf16 %v5777_v22, %v5776_v31 }
0x13df   :  { %5884 = vmatmul.bf16.gmra.mxu3 %v5806_v38 }
0x13e0   :  { %v5750_v1 = vpop.f32.mrf.mxu2 }
0x13e1   :  { %v5751_v12 = vadd.f32 %v12093_v42, %v5750_v1 }
0x13e3   :  { %v5778_v47 = vmax.f32 %v5751_v12, 0.0 }
0x13e8   :  { %v5752_v63 = vpop.f32.mrf.mxu2 }
0x13e9   :  { %v5753_v4 = vadd.f32 %v12093_v42, %v5752_v63 }
0x13eb   :  { %v5779_v10 = vmax.f32 %v5753_v4, 0.0 }
0x13ed   :  { %v5807_v16 = vpack.c.bf16 %v5779_v10, %v5778_v47 }
0x13ef   :  { %5889 = vmatmul.bf16.gmra.mxu3 %v5807_v16 }
0x13f0   :  { %v5755_v34 = vpop.f32.mrf.mxu2 }
0x13f1   :  { %v5756_v36 = vadd.f32 %v12093_v42, %v5755_v34 }
0x13f3   :  { %v5780_v21 = vmax.f32 %v5756_v36, 0.0 }
0x13f8   :  { %v5757_v39 = vpop.f32.mrf.mxu2 }
0x13f9   :  { %v5758_v7 = vadd.f32 %v12093_v42, %v5757_v39 }
0x13fb   :  { %v5781_v23 = vmax.f32 %v5758_v7, 0.0 }
0x13fd   :  { %v5808_v17 = vpack.c.bf16 %v5781_v23, %v5780_v21 }
0x13ff   :  { %5894 = vmatmul.bf16.gmra.mxu3 %v5808_v17 }
0x1400   :  { %v5760_v43 = vpop.f32.mrf.mxu2 }
0x1401   :  { %v5761_v26 = vadd.f32 %v12093_v42, %v5760_v43 }
0x1403   :  { %v5782_v37 = vmax.f32 %v5761_v26, 0.0 }
0x1408   :  { %v5762_v5 = vpop.f32.mrf.mxu2 }
0x1409   :  { %v5763_v44 = vadd.f32 %v12093_v42, %v5762_v5 }
0x140b   :  { %v5783_v3 = vmax.f32 %v5763_v44, 0.0 }
0x140d   :  { %v5809_v25 = vpack.c.bf16 %v5783_v3, %v5782_v37 }
0x140f   :  { %5899 = vmatmul.bf16.gmra.mxu3 %v5809_v25 }
0x1410   :  { %v5765_v0 = vpop.f32.mrf.mxu2 }
0x1411   :  { %v5766_v59 = vadd.f32 %v12093_v42, %v5765_v0 }
0x1413   :  { %v5784_v54 = vmax.f32 %v5766_v59, 0.0 }
0x1418   :  { %v5767_v52 = vpop.f32.mrf.mxu2 }
0x1419   :  { %v5768_v49 = vadd.f32 %v12093_v42, %v5767_v52 }
0x141b   :  { %v5785_v53 = vmax.f32 %v5768_v49, 0.0  ;;  %v8383_v49 = vld [vmem:[#allocation11 + $0x478] sm:$0xff] }
0x141c   :  { %6141 = vmatpush.bf16.msrb.mxu1 %v8383_v49 }
0x141d   :  { %v5810_v6 = vpack.c.bf16 %v5785_v53, %v5784_v54  ;;  %v8382_v54 = vld [vmem:[#allocation11 + $0x470] sm:$0xff] }
0x141f   :  { %5904 = vmatmul.bf16.gmra.mxu3 %v5810_v6  ;;  %v8381_v6 = vld [vmem:[#allocation11 + $0x468] sm:$0xff] }
0x1420   :  { %6142 = vmatpush.bf16.msrb.mxu1 %v8382_v54 }
0x1424   :  { %6143 = vmatpush.bf16.msrb.mxu1 %v8381_v6 }
0x1428   :  { %6144 = vmatpush.bf16.msrb.mxu1 %v8380_v30 }
0x1432   :  { %v5870_v55 = vpop.f32.mrf.mxu3 }
0x1433   :  { %v5871_v33 = vadd.f32 %v12111_v57, %v5870_v55 }
0x1435   :  { %v5910_v40 = vmax.f32 %v5871_v33, 0.0 }
0x143a   :  { %v5872_v56 = vpop.f32.mrf.mxu3 }
0x143b   :  { %v5873_v32 = vadd.f32 %v12111_v57, %v5872_v56 }
0x143d   :  { %v5911_v41 = vmax.f32 %v5873_v32, 0.0 }
0x143f   :  { %v5943_v8 = vpack.c.bf16 %v5911_v41, %v5910_v40  ;;  %v8379_v41 = vld [vmem:[#allocation11 + $0x458] sm:$0xff] }
0x1440   :  { %6145 = vmatpush.bf16.msrb.mxu1 %v8379_v41 }
0x1441   :  { %6009 = vmatmul.bf16.vlgmr.msra.gmra.mxu0 %v5943_v8 }
0x1442   :  { %v5875_v42 = vpop.f32.mrf.mxu3 }
0x1443   :  { %v5876_v31 = vadd.f32 %v12111_v57, %v5875_v42  ;;  %v8378_v42 = vld [vmem:[#allocation11 + $0x450] sm:$0xff] }
0x1444   :  { %6146 = vmatpush.bf16.msrb.mxu1 %v8378_v42 }
0x1445   :  { %v5912_v1 = vmax.f32 %v5876_v31, 0.0 }
0x144a   :  { %v5877_v22 = vpop.f32.mrf.mxu3 }
0x144b   :  { %v5878_v38 = vadd.f32 %v12111_v57, %v5877_v22  ;;  %v8377_v22 = vld [vmem:[#allocation11 + $0x448] sm:$0xff] }
0x144c   :  { %6147 = vmatpush.bf16.msrb.mxu1 %v8377_v22 }
0x144d   :  { %v5913_v12 = vmax.f32 %v5878_v38, 0.0 }
0x144f   :  { %v5944_v63 = vpack.c.bf16 %v5913_v12, %v5912_v1  ;;  %v8376_v12 = vld [vmem:[#allocation11 + $0x440] sm:$0xff] }
0x1450   :  { %6148 = vmatpush.bf16.msrb.mxu1 %v8376_v12 }
0x1451   :  { %6014 = vmatmul.bf16.gmra.mxu0 %v5944_v63 }
0x1452   :  { %v5880_v4 = vpop.f32.mrf.mxu3 }
0x1453   :  { %v5881_v47 = vadd.f32 %v12111_v57, %v5880_v4 }
0x1455   :  { %v5914_v34 = vmax.f32 %v5881_v47, 0.0 }
0x145a   :  { %v5882_v10 = vpop.f32.mrf.mxu3 }
0x145b   :  { %v5883_v16 = vadd.f32 %v12111_v57, %v5882_v10 }
0x145d   :  { %v5915_v36 = vmax.f32 %v5883_v16, 0.0 }
0x145f   :  { %v5945_v39 = vpack.c.bf16 %v5915_v36, %v5914_v34  ;;  %v8477_v34 = vld [vmem:[#allocation13 + $0x20] ss:$0 sm:$0xff] }
0x1461   :  { %6019 = vmatmul.bf16.gmra.mxu0 %v5945_v39 }
0x1462   :  { %v5885_v7 = vpop.f32.mrf.mxu3 }
0x1463   :  { %v5886_v21 = vadd.f32 %v12111_v57, %v5885_v7 }
0x1465   :  { %v5916_v15 = vmax.f32 %v5886_v21, 0.0 }
0x146a   :  { %v5887_v23 = vpop.f32.mrf.mxu3 }
0x146b   :  { %v5888_v17 = vadd.f32 %v12111_v57, %v5887_v23 }
0x146d   :  { %v5917_v29 = vmax.f32 %v5888_v17, 0.0 }
0x146f   :  { %v5946_v43 = vpack.c.bf16 %v5917_v29, %v5916_v15 }
0x1471   :  { %6024 = vmatmul.bf16.gmra.mxu0 %v5946_v43 }
0x1472   :  { %v5890_v27 = vpop.f32.mrf.mxu3 }
0x1473   :  { %v5891_v26 = vadd.f32 %v12111_v57, %v5890_v27 }
0x1475   :  { %v5918_v44 = vmax.f32 %v5891_v26, 0.0 }
0x147a   :  { %v5892_v2 = vpop.f32.mrf.mxu3 }
0x147b   :  { %v5893_v5 = vadd.f32 %v12111_v57, %v5892_v2 }
0x147d   :  { %v5919_v37 = vmax.f32 %v5893_v5, 0.0 }
0x147f   :  { %v5947_v3 = vpack.c.bf16 %v5919_v37, %v5918_v44 }
0x1481   :  { %6029 = vmatmul.bf16.gmra.mxu0 %v5947_v3 }
0x1482   :  { %v5895_v25 = vpop.f32.mrf.mxu3 }
0x1483   :  { %v5896_v0 = vadd.f32 %v12111_v57, %v5895_v25 }
0x1485   :  { %v5920_v59 = vmax.f32 %v5896_v0, 0.0 }
0x148a   :  { %v5897_v35 = vpop.f32.mrf.mxu3 }
0x148b   :  { %v5898_v45 = vadd.f32 %v12111_v57, %v5897_v35 }
0x148d   :  { %v5921_v52 = vmax.f32 %v5898_v45, 0.0 }
0x148f   :  { %v5948_v58 = vpack.c.bf16 %v5921_v52, %v5920_v59 }
0x1491   :  { %6034 = vmatmul.bf16.gmra.mxu0 %v5948_v58 }
0x1492   :  { %v5900_v53 = vpop.f32.mrf.mxu3 }
0x1493   :  { %v5901_v55 = vadd.f32 %v12111_v57, %v5900_v53 }
0x1495   :  { %v5922_v32 = vmax.f32 %v5901_v55, 0.0 }
0x149a   :  { %v5902_v33 = vpop.f32.mrf.mxu3 }
0x149b   :  { %v5903_v56 = vadd.f32 %v12111_v57, %v5902_v33 }
0x149d   :  { %v5923_v40 = vmax.f32 %v5903_v56, 0.0 }
0x149f   :  { %v5949_v8 = vpack.c.bf16 %v5923_v40, %v5922_v32 }
0x14a1   :  { %6039 = vmatmul.bf16.gmra.mxu0 %v5949_v8 }
0x14a2   :  { %v5905_v31 = vpop.f32.mrf.mxu3 }
0x14a3   :  { %v5906_v38 = vadd.f32 %v12111_v57, %v5905_v31 }
0x14a5   :  { %v5924_v4 = vmax.f32 %v5906_v38, 0.0 }
0x14aa   :  { %v5907_v1 = vpop.f32.mrf.mxu3 }
0x14ab   :  { %v5908_v63 = vadd.f32 %v12111_v57, %v5907_v1 }
0x14ad   :  { %v5925_v47 = vmax.f32 %v5908_v63, 0.0 }
0x14af   :  { %v5950_v10 = vpack.c.bf16 %v5925_v47, %v5924_v4 }
0x14b1   :  { %6044 = vmatmul.bf16.gmra.mxu0 %v5950_v10 }
0x14be   :  { %v6010_v16 = vpop.f32.mrf.mxu0 }
0x14bf   :  { %v6011_v36 = vadd.f32 %v8477_v34, %v6010_v16 }
0x14c1   :  { %v6050_v21 = vmax.f32 %v6011_v36, 0.0 }
0x14c6   :  { %v6012_v39 = vpop.f32.mrf.mxu0 }
0x14c7   :  { %v6013_v7 = vadd.f32 %v8477_v34, %v6012_v39 }
0x14c9   :  { %v6051_v23 = vmax.f32 %v6013_v7, 0.0 }
0x14cb   :  { %v6083_v17 = vpack.c.bf16 %v6051_v23, %v6050_v21 }
0x14cd   :  { %6149 = vmatmul.bf16.vlgmr.msrb.gmra.mxu1 %v6083_v17 }
0x14ce   :  { %v6015_v15 = vpop.f32.mrf.mxu0 }
0x14cf   :  { %v6016_v29 = vadd.f32 %v8477_v34, %v6015_v15 }
0x14d1   :  { %v6052_v26 = vmax.f32 %v6016_v29, 0.0 }
0x14d6   :  { %v6017_v43 = vpop.f32.mrf.mxu0 }
0x14d7   :  { %v6018_v27 = vadd.f32 %v8477_v34, %v6017_v43  ;;  %v12129_v43 = vld [vmem:[#allocation13 + $0x21] ss:$0 sm:$0xff] }
0x14d9   :  { %v6053_v57 = vmax.f32 %v6018_v27, 0.0 }
0x14db   :  { %v6084_v2 = vpack.c.bf16 %v6053_v57, %v6052_v26 }
0x14dd   :  { %6154 = vmatmul.bf16.gmra.mxu1 %v6084_v2 }
0x14de   :  { %v6020_v5 = vpop.f32.mrf.mxu0 }
0x14df   :  { %v6021_v44 = vadd.f32 %v8477_v34, %v6020_v5 }
0x14e1   :  { %v6054_v25 = vmax.f32 %v6021_v44, 0.0 }
0x14e6   :  { %v6022_v37 = vpop.f32.mrf.mxu0 }
0x14e7   :  { %v6023_v3 = vadd.f32 %v8477_v34, %v6022_v37 }
0x14e9   :  { %v6055_v0 = vmax.f32 %v6023_v3, 0.0 }
0x14eb   :  { %v6085_v35 = vpack.c.bf16 %v6055_v0, %v6054_v25 }
0x14ed   :  { %6159 = vmatmul.bf16.gmra.mxu1 %v6085_v35 }
0x14ee   :  { %v6025_v45 = vpop.f32.mrf.mxu0 }
0x14ef   :  { %v6026_v59 = vadd.f32 %v8477_v34, %v6025_v45 }
0x14f1   :  { %v6056_v58 = vmax.f32 %v6026_v59, 0.0 }
0x14f6   :  { %v6027_v52 = vpop.f32.mrf.mxu0 }
0x14f7   :  { %v6028_v49 = vadd.f32 %v8477_v34, %v6027_v52 }
0x14f9   :  { %v6057_v54 = vmax.f32 %v6028_v49, 0.0 }
0x14fb   :  { %v6086_v53 = vpack.c.bf16 %v6057_v54, %v6056_v58 }
0x14fd   :  { %6164 = vmatmul.bf16.gmra.mxu1 %v6086_v53 }
0x14fe   :  { %v6030_v6 = vpop.f32.mrf.mxu0 }
0x14ff   :  { %v6031_v30 = vadd.f32 %v8477_v34, %v6030_v6 }
0x1501   :  { %v6058_v56 = vmax.f32 %v6031_v30, 0.0 }
0x1506   :  { %v6032_v55 = vpop.f32.mrf.mxu0 }
0x1507   :  { %v6033_v33 = vadd.f32 %v8477_v34, %v6032_v55 }
0x1509   :  { %v6059_v32 = vmax.f32 %v6033_v33, 0.0 }
0x150b   :  { %v6087_v40 = vpack.c.bf16 %v6059_v32, %v6058_v56 }
0x150d   :  { %6169 = vmatmul.bf16.gmra.mxu1 %v6087_v40 }
0x150e   :  { %v6035_v41 = vpop.f32.mrf.mxu0 }
0x150f   :  { %v6036_v8 = vadd.f32 %v8477_v34, %v6035_v41 }
0x1511   :  { %v6060_v22 = vmax.f32 %v6036_v8, 0.0 }
0x1516   :  { %v6037_v42 = vpop.f32.mrf.mxu0 }
0x1517   :  { %v6038_v31 = vadd.f32 %v8477_v34, %v6037_v42 }
0x1519   :  { %v6061_v38 = vmax.f32 %v6038_v31, 0.0 }
0x151b   :  { %v6088_v1 = vpack.c.bf16 %v6061_v38, %v6060_v22 }
0x151d   :  { %6174 = vmatmul.bf16.gmra.mxu1 %v6088_v1 }
0x151e   :  { %v6040_v12 = vpop.f32.mrf.mxu0 }
0x151f   :  { %v6041_v63 = vadd.f32 %v8477_v34, %v6040_v12 }
0x1521   :  { %v6062_v10 = vmax.f32 %v6041_v63, 0.0 }
0x1526   :  { %v6042_v4 = vpop.f32.mrf.mxu0 }
0x1527   :  { %v6043_v47 = vadd.f32 %v8477_v34, %v6042_v4 }
0x1529   :  { %v6063_v16 = vmax.f32 %v6043_v47, 0.0 }
0x152b   :  { %v6089_v36 = vpack.c.bf16 %v6063_v16, %v6062_v10 }
0x152d   :  { %6179 = vmatmul.bf16.gmra.mxu1 %v6089_v36  ;;  %v8391_v36 = vld [vmem:[#allocation10 + $0x1b8] sm:$0xff] }
0x152e   :  { %v6045_v39 = vpop.f32.mrf.mxu0  ;;  %6669 = vmatpush.bf16.msra.mxu2 %v8391_v36 }
0x152f   :  { %v6046_v7 = vadd.f32 %v8477_v34, %v6045_v39 }
0x1531   :  { %v6064_v17 = vmax.f32 %v6046_v7, 0.0  ;;  %v8390_v7 = vld [vmem:[#allocation10 + $0x1b0] sm:$0xff] }
0x1532   :  { %6670 = vmatpush.bf16.msra.mxu2 %v8390_v7 }
0x1536   :  { %v6047_v21 = vpop.f32.mrf.mxu0 }
0x1537   :  { %v6048_v23 = vadd.f32 %v8477_v34, %v6047_v21 }
0x1539   :  { %v6065_v15 = vmax.f32 %v6048_v23, 0.0 }
0x153b   :  { %v6090_v29 = vpack.c.bf16 %v6065_v15, %v6064_v17  ;;  %v8389_v17 = vld [vmem:[#allocation10 + $0x1a8] sm:$0xff] }
0x153c   :  { %6671 = vmatpush.bf16.msra.mxu2 %v8389_v17 }
0x153d   :  { %6184 = vmatmul.bf16.gmra.mxu1 %v6090_v29  ;;  %v8388_v29 = vld [vmem:[#allocation10 + $0x1a0] sm:$0xff] }
0x1540   :  { %6672 = vmatpush.bf16.msra.mxu2 %v8388_v29 }
0x154a   :  { %v6150_v27 = vpop.f32.mrf.mxu1 }
0x154b   :  { %v12132_v26 = vadd.f32 %v12129_v43, %v6150_v27 }
0x154d   :  { %6190 = vadd.xlane.f32.xlu1 %v12132_v26  ;;  %v6238_v57 = vmul.f32 %v12132_v26, %v12132_v26 }
0x154f   :  { %6254 = vadd.xlane.f32.xlu0 %v6238_v57 }
0x1552   :  { %v6152_v2 = vpop.f32.mrf.mxu1 }
0x1553   :  { %v12138_v5 = vadd.f32 %v12129_v43, %v6152_v2  ;;  %v8387_v2 = vld [vmem:[#allocation10 + $0x198] sm:$0xff] }
0x1554   :  { %6673 = vmatpush.bf16.msra.mxu2 %v8387_v2 }
0x1555   :  { %6192 = vadd.xlane.f32.xlu2 %v12138_v5  ;;  %v6239_v34 = vmul.f32 %v12138_v5, %v12138_v5 }
0x1557   :  { %6256 = vadd.xlane.f32.xlu1 %v6239_v34 }
0x155a   :  { %v6155_v44 = vpop.f32.mrf.mxu1 }
0x155b   :  { %v12144_v37 = vadd.f32 %v12129_v43, %v6155_v44 }
0x155d   :  { %6194 = vadd.xlane.f32.xlu2 %v12144_v37  ;;  %v6240_v3 = vmul.f32 %v12144_v37, %v12144_v37 }
0x155f   :  { %6258 = vadd.xlane.f32.xlu1 %v6240_v3 }
0x1562   :  { %v6157_v25 = vpop.f32.mrf.mxu1 }
0x1563   :  { %v12150_v0 = vadd.f32 %v12129_v43, %v6157_v25 }
0x1565   :  { %6196 = vadd.xlane.f32.xlu0 %v12150_v0  ;;  %v6241_v35 = vmul.f32 %v12150_v0, %v12150_v0 }
0x1567   :  { %6260 = vadd.xlane.f32.xlu2 %v6241_v35  ;;  %v8386_v35 = vld [vmem:[#allocation10 + $0x190] sm:$0xff] }
0x1568   :  { %6674 = vmatpush.bf16.msra.mxu2 %v8386_v35 }
0x156a   :  { %v6160_v45 = vpop.f32.mrf.mxu1 }
0x156b   :  { %v12156_v59 = vadd.f32 %v12129_v43, %v6160_v45 }
0x156d   :  { %6198 = vadd.xlane.f32.xlu0 %v12156_v59  ;;  %v6242_v52 = vmul.f32 %v12156_v59, %v12156_v59 }
0x156f   :  { %6262 = vadd.xlane.f32.xlu2 %v6242_v52 }
0x1572   :  { %v6162_v49 = vpop.f32.mrf.mxu1 }
0x1573   :  { %v12162_v58 = vadd.f32 %v12129_v43, %v6162_v49 }
0x1575   :  { %6200 = vadd.xlane.f32.xlu1 %v12162_v58  ;;  %v6243_v54 = vmul.f32 %v12162_v58, %v12162_v58 }
0x1577   :  { %6264 = vadd.xlane.f32.xlu0 %v6243_v54 }
0x157a   :  { %v6165_v53 = vpop.f32.mrf.mxu1 }
0x157b   :  { %v12168_v6 = vadd.f32 %v12129_v43, %v6165_v53 }
0x157d   :  { %6202 = vadd.xlane.f32.xlu1 %v12168_v6  ;;  %v6244_v30 = vmul.f32 %v12168_v6, %v12168_v6 }
0x157f   :  { %6266 = vadd.xlane.f32.xlu0 %v6244_v30  ;;  %v8385_v30 = vld [vmem:[#allocation10 + $0x188] sm:$0xff] }
0x1580   :  { %6675 = vmatpush.bf16.msra.mxu2 %v8385_v30 }
0x1582   :  { %v6167_v55 = vpop.f32.mrf.mxu1 }
0x1583   :  { %v12174_v33 = vadd.f32 %v12129_v43, %v6167_v55 }
0x1585   :  { %6204 = vadd.xlane.f32.xlu2 %v12174_v33  ;;  %v6245_v56 = vmul.f32 %v12174_v33, %v12174_v33 }
0x1587   :  { %6268 = vadd.xlane.f32.xlu1 %v6245_v56 }
0x158a   :  { %v6170_v32 = vpop.f32.mrf.mxu1 }
0x158b   :  { %v12180_v40 = vadd.f32 %v12129_v43, %v6170_v32 }
0x158d   :  { %6206 = vadd.xlane.f32.xlu2 %v12180_v40  ;;  %v6246_v41 = vmul.f32 %v12180_v40, %v12180_v40 }
0x158f   :  { %6270 = vadd.xlane.f32.xlu1 %v6246_v41 }
0x1592   :  { %v6172_v8 = vpop.f32.mrf.mxu1 }
0x1593   :  { %v12186_v42 = vadd.f32 %v12129_v43, %v6172_v8  ;;  %v8384_v8 = vld [vmem:[#allocation10 + $0x180] sm:$0xff] }
0x1594   :  { %6676 = vmatpush.bf16.msra.mxu2 %v8384_v8 }
0x1595   :  { %6208 = vadd.xlane.f32.xlu0 %v12186_v42  ;;  %v6247_v31 = vmul.f32 %v12186_v42, %v12186_v42 }
0x1597   :  { %6272 = vadd.xlane.f32.xlu2 %v6247_v31 }
0x159a   :  { %v6175_v22 = vpop.f32.mrf.mxu1 }
0x159b   :  { %v12192_v38 = vadd.f32 %v12129_v43, %v6175_v22 }
0x159d   :  { %6210 = vadd.xlane.f32.xlu0 %v12192_v38  ;;  %v6248_v1 = vmul.f32 %v12192_v38, %v12192_v38 }
0x159f   :  { %6274 = vadd.xlane.f32.xlu2 %v6248_v1 }
0x15a2   :  { %v6177_v12 = vpop.f32.mrf.mxu1 }
0x15a3   :  { %v12198_v63 = vadd.f32 %v12129_v43, %v6177_v12 }
0x15a5   :  { %6212 = vadd.xlane.f32.xlu1 %v12198_v63  ;;  %v6249_v4 = vmul.f32 %v12198_v63, %v12198_v63 }
0x15a7   :  { %6276 = vadd.xlane.f32.xlu0 %v6249_v4 }
0x15aa   :  { %v6180_v47 = vpop.f32.mrf.mxu1 }
0x15ab   :  { %v12204_v10 = vadd.f32 %v12129_v43, %v6180_v47 }
0x15ad   :  { %6214 = vadd.xlane.f32.xlu1 %v12204_v10  ;;  %v6250_v16 = vmul.f32 %v12204_v10, %v12204_v10 }
0x15af   :  { %6278 = vadd.xlane.f32.xlu0 %v6250_v16 }
0x15b2   :  { %v6182_v39 = vpop.f32.mrf.mxu1 }
0x15b3   :  { %v12210_v21 = vadd.f32 %v12129_v43, %v6182_v39 }
0x15b5   :  { %6216 = vadd.xlane.f32.xlu2 %v12210_v21  ;;  %v6251_v23 = vmul.f32 %v12210_v21, %v12210_v21 }
0x15b7   :  { %6280 = vadd.xlane.f32.xlu1 %v6251_v23 }
0x15ba   :  { %v6185_v15 = vpop.f32.mrf.mxu1 }
0x15bb   :  { %v12216_v27 = vadd.f32 %v12129_v43, %v6185_v15 }
0x15bd   :  { %6218 = vadd.xlane.f32.xlu2 %v12216_v27  ;;  %v6252_v57 = vmul.f32 %v12216_v27, %v12216_v27 }
0x15bf   :  { %6282 = vadd.xlane.f32.xlu1 %v6252_v57 }
0x15c0   :  { %v6191_v34 = vpop.xlane.xlu1 %6190 }
0x15c1   :  { %v6222_v44 = vmul.f32 0.03125, %v6191_v34 }
0x15c2   :  { %v6187_v3 = vpop.f32.mrf.mxu1  ;;  %v6255_v25 = vpop.xlane.xlu0 %6254 }
0x15c3   :  { %v6318_v45 = vmul.f32 %v6222_v44, %v6222_v44  ;;  %v12222_v52 = vadd.f32 %v12129_v43, %v6187_v3  ;;  %v6286_v49 = vmul.f32 0.03125, %v6255_v25 }
0x15c5   :  { %v6334_v54 = vsub.f32 %v6286_v49, %v6318_v45  ;;  %6220 = vadd.xlane.f32.xlu0 %v12222_v52  ;;  %v6253_v53 = vmul.f32 %v12222_v52, %v12222_v52 }
0x15c7   :  { %v6350_v55 = vadd.f32 1e-05, %v6334_v54  ;;  %6284 = vadd.xlane.f32.xlu2 %v6253_v53 }
0x15c8   :  { %v6193_v56 = vpop.xlane.xlu2 %6192 }
0x15c9   :  { %8645 = vrsqrt.f32 %v6350_v55  ;;  %v6223_v32 = vmul.f32 0.03125, %v6193_v56  ;;  %vm6372_vm1 = vweird.f32 %v6350_v55  ;;  %v6302_v56 = vsub.f32 %v12132_v26, %v6222_v44  ;;  %v12241_v26 = vld [vmem:[#allocation13 + $0x23] ss:$0 sm:$0xff] }
0x15ca   :  { %v6257_v41 = vpop.xlane.xlu1 %6256 }
0x15cb   :  { %v6319_v31 = vmul.f32 %v6223_v32, %v6223_v32  ;;  %v6287_v43 = vmul.f32 0.03125, %v6257_v41 }
0x15cd   :  { %v6335_v22 = vsub.f32 %v6287_v43, %v6319_v31  ;;  %v12236_v31 = vld [vmem:[#allocation13 + $0x22] ss:$0 sm:$0xff] }
0x15cf   :  { %v8646_v1 = vpop.eup %8645  ;;  %v6351_v12 = vadd.f32 1e-05, %v6335_v22 }
0x15d0   :  { %v6367_v4 = vmul.f32 %v8646_v1, %v6350_v55  ;;  %v6195_v47 = vpop.xlane.xlu2 %6194  ;;  %vm6373_vm0 = vweird.f32 %v8646_v1 }
0x15d1   :  { %8647 = vrsqrt.f32 %v6351_v12  ;;  %v12227_v16 = vmul.f32 0.03125, %v6195_v47  ;;  %vm6374_vm2 = vmor %vm6372_vm1, %vm6373_vm0  ;;  %vm6382_vm4 = vweird.f32 %v6351_v12 }
0x15d2   :  { %v6368_v36 = vmul.f32 %v8646_v1, %v6367_v4  ;;  %v6259_v39 = vpop.xlane.xlu1 %6258 }
0x15d3   :  { %v6320_v7 = vmul.f32 %v12227_v16, %v12227_v16  ;;  %v6288_v23 = vmul.f32 0.03125, %v6259_v39 }
0x15d4   :  { %v6369_v17 = vmul.f32 0.5, %v6368_v36 }
0x15d5   :  { %v6336_v15 = vsub.f32 %v6288_v23, %v6320_v7 }
0x15d6   :  { %v6370_v29 = vsub.f32 1.5, %v6369_v17 }
0x15d7   :  { %v8648_v57 = vpop.eup %8647  ;;  %v6352_v2 = vadd.f32 1e-05, %v6336_v15 }
0x15d8   :  { %v6371_v34 = vmul.f32 %v8646_v1, %v6370_v29  ;;  %v6377_v3 = vmul.f32 %v8648_v57, %v6351_v12  ;;  %v6197_v25 = vpop.xlane.xlu0 %6196  ;;  %vm6383_vm3 = vweird.f32 %v8648_v57 }
0x15d9   :  { %8649 = vrsqrt.f32 %v6352_v2  ;;  %v12231_v35 = vmul.f32 0.03125, %v6197_v25  ;;  %vm6384_vm5 = vmor %vm6382_vm4, %vm6383_vm3  ;;  %vm6392_vm7 = vweird.f32 %v6352_v2 }
0x15da   :  { %v6378_v45 = vmul.f32 %v8648_v57, %v6377_v3  ;;  %v6261_v49 = vpop.xlane.xlu2 %6260  ;;  %v6375_v54 = vsel %vm6374_vm2, %v8646_v1, %v6371_v34  ;;  %v6303_v1 = vsub.f32 %v12138_v5, %v6223_v32 }
0x15db   :  { %v6321_v53 = vmul.f32 %v12231_v35, %v12231_v35  ;;  %v6289_v30 = vmul.f32 0.03125, %v6261_v49  ;;  %v6526_v43 = vmul.f32 %v6375_v54, %v6302_v56 }
0x15dc   :  { %v6379_v41 = vmul.f32 0.5, %v6378_v45 }
0x15dd   :  { %v6337_v8 = vsub.f32 %v6289_v30, %v6321_v53  ;;  %v6544_v44 = vmul.f32 %v12236_v31, %v6526_v43 }
0x15de   :  { %v6380_v22 = vsub.f32 1.5, %v6379_v41 }
0x15df   :  { %v8650_v55 = vpop.eup %8649  ;;  %v6353_v4 = vadd.f32 1e-05, %v6337_v8  ;;  %v6562_v32 = vadd.f32 %v12241_v26, %v6544_v44  ;;  %v6304_v44 = vsub.f32 %v12144_v37, %v12227_v16 }
0x15e0   :  { %v6381_v47 = vmul.f32 %v8648_v57, %v6380_v22  ;;  %v6387_v36 = vmul.f32 %v8650_v55, %v6352_v2  ;;  %v6199_v39 = vpop.xlane.xlu0 %6198  ;;  %vm6393_vm6 = vweird.f32 %v8650_v55 }
0x15e1   :  { %8651 = vrsqrt.f32 %v6353_v4  ;;  %v12239_v7 = vmul.f32 0.03125, %v6199_v39  ;;  %vm6394_vm8 = vmor %vm6392_vm7, %vm6393_vm6  ;;  %vm6402_vm10 = vweird.f32 %v6353_v4 }
0x15e2   :  { %v6385_v23 = vsel %vm6384_vm5, %v8648_v57, %v6381_v47  ;;  %v6388_v17 = vmul.f32 %v8650_v55, %v6387_v36  ;;  %v6263_v15 = vpop.xlane.xlu2 %6262  ;;  %v6578_v47 = vadd.f32 %v6562_v32, %v11421_v19 }
0x15e3   :  { %v6527_v29 = vmul.f32 %v6385_v23, %v6303_v1  ;;  %v6322_v34 = vmul.f32 %v12239_v7, %v12239_v7  ;;  %v6290_v12 = vmul.f32 0.03125, %v6263_v15 }
0x15e4   :  { %v6389_v3 = vmul.f32 0.5, %v6388_v17 }
0x15e5   :  { %v6545_v25 = vmul.f32 %v12236_v31, %v6527_v29  ;;  %v6338_v5 = vsub.f32 %v6290_v12, %v6322_v34 }
0x15e6   :  { %v6390_v45 = vsub.f32 1.5, %v6389_v3  ;;  %v6305_v3 = vsub.f32 %v12150_v0, %v12231_v35 }
0x15e7   :  { %v8652_v49 = vpop.eup %8651  ;;  %v6563_v54 = vadd.f32 %v12241_v26, %v6545_v25  ;;  %v6354_v53 = vadd.f32 1e-05, %v6338_v5 }
0x15e8   :  { %v6391_v57 = vmul.f32 %v8650_v55, %v6390_v45  ;;  %v6397_v30 = vmul.f32 %v8652_v49, %v6353_v4  ;;  %v6201_v56 = vpop.xlane.xlu1 %6200  ;;  %vm6403_vm9 = vweird.f32 %v8652_v49 }
0x15e9   :  { %8653 = vrsqrt.f32 %v6354_v53  ;;  %v12249_v41 = vmul.f32 0.03125, %v6201_v56  ;;  %v6579_v8 = vadd.f32 %v6563_v54, %v11418_v48  ;;  %vm6404_vm11 = vmor %vm6402_vm10, %vm6403_vm9  ;;  %vm6412_vm13 = vweird.f32 %v6354_v53 }
0x15ea   :  { %v6398_v43 = vmul.f32 %v8652_v49, %v6397_v30  ;;  %v6265_v22 = vpop.xlane.xlu0 %6264  ;;  %v6395_v36 = vsel %vm6394_vm8, %v8650_v55, %v6391_v57 }
0x15eb   :  { %v6323_v39 = vmul.f32 %v12249_v41, %v12249_v41  ;;  %v6291_v1 = vmul.f32 0.03125, %v6265_v22  ;;  %v6611_v2 = vpack.c.bf16 %v6579_v8, %v6578_v47  ;;  %v6528_v15 = vmul.f32 %v6395_v36, %v6304_v44 }
0x15ec   :  { %v6399_v23 = vmul.f32 0.5, %v6398_v43 }
0x15ed   :  { %v6339_v17 = vsub.f32 %v6291_v1, %v6323_v39  ;;  %6677 = vmatmul.bf16.vlgmr.msra.gmra.mxu2 %v6611_v2  ;;  %v6546_v32 = vmul.f32 %v12236_v31, %v6528_v15 }
0x15ee   :  { %v6400_v29 = vsub.f32 1.5, %v6399_v23 }
0x15ef   :  { %v8654_v48 = vpop.eup %8653  ;;  %v6355_v34 = vadd.f32 1e-05, %v6339_v17  ;;  %v6564_v0 = vadd.f32 %v12241_v26, %v6546_v32  ;;  %v6307_v32 = vsub.f32 %v12162_v58, %v12249_v41 }
0x15f0   :  { %v6401_v12 = vmul.f32 %v8652_v49, %v6400_v29  ;;  %v6407_v19 = vmul.f32 %v8654_v48, %v6354_v53  ;;  %v6203_v55 = vpop.xlane.xlu1 %6202  ;;  %vm6413_vm12 = vweird.f32 %v8654_v48 }
0x15f1   :  { %8655 = vrsqrt.f32 %v6355_v34  ;;  %v12259_v25 = vmul.f32 0.03125, %v6203_v55  ;;  %vm6414_vm14 = vmor %vm6412_vm13, %vm6413_vm12  ;;  %v6580_v2 = vadd.f32 %v6564_v0, %v11404_v18  ;;  %vm6422_vm0 = vweird.f32 %v6355_v34 }
0x15f2   :  { %v6405_v37 = vsel %vm6404_vm11, %v8652_v49, %v6401_v12  ;;  %v6408_v16 = vmul.f32 %v8654_v48, %v6407_v19  ;;  %v6267_v5 = vpop.xlane.xlu0 %6266  ;;  %v6306_v12 = vsub.f32 %v12156_v59, %v12239_v7 }
0x15f3   :  { %v6529_v45 = vmul.f32 %v6405_v37, %v6305_v3  ;;  %v6324_v54 = vmul.f32 %v12259_v25, %v12259_v25  ;;  %v6292_v57 = vmul.f32 0.03125, %v6267_v5 }
0x15f4   :  { %v6409_v4 = vmul.f32 0.5, %v6408_v16 }
0x15f5   :  { %v6340_v30 = vsub.f32 %v6292_v57, %v6324_v54  ;;  %v6547_v56 = vmul.f32 %v12236_v31, %v6529_v45 }
0x15f6   :  { %v6410_v8 = vsub.f32 1.5, %v6409_v4 }
0x15f7   :  { %v8656_v35 = vpop.eup %8655  ;;  %v6356_v43 = vadd.f32 1e-05, %v6340_v30  ;;  %v6565_v49 = vadd.f32 %v12241_v26, %v6547_v56 }
0x15f8   :  { %v6411_v22 = vmul.f32 %v8654_v48, %v6410_v8  ;;  %v6417_v47 = vmul.f32 %v8656_v35, %v6355_v34  ;;  %v6205_v36 = vpop.xlane.xlu2 %6204  ;;  %vm6423_vm15 = vweird.f32 %v8656_v35 }
0x15f9   :  { %8657 = vrsqrt.f32 %v6356_v43  ;;  %v12267_v39 = vmul.f32 0.03125, %v6205_v36  ;;  %v6581_v1 = vadd.f32 %v6565_v49, %v11407_v13  ;;  %vm6424_vm1 = vmor %vm6422_vm0, %vm6423_vm15  ;;  %vm6432_vm3 = vweird.f32 %v6356_v43 }
0x15fa   :  { %v6418_v44 = vmul.f32 %v8656_v35, %v6417_v47  ;;  %v6269_v23 = vpop.xlane.xlu1 %6268  ;;  %v6415_v17 = vsel %vm6414_vm14, %v8654_v48, %v6411_v22 }
0x15fb   :  { %v6325_v15 = vmul.f32 %v12267_v39, %v12267_v39  ;;  %v6293_v29 = vmul.f32 0.03125, %v6269_v23  ;;  %v6612_v53 = vpack.c.bf16 %v6581_v1, %v6580_v2  ;;  %v6530_v3 = vmul.f32 %v6415_v17, %v6306_v12 }
0x15fc   :  { %v6419_v19 = vmul.f32 0.5, %v6418_v44 }
0x15fd   :  { %v6341_v55 = vsub.f32 %v6293_v29, %v6325_v15  ;;  %6682 = vmatmul.bf16.gmra.mxu2 %v6612_v53  ;;  %v6548_v57 = vmul.f32 %v12236_v31, %v6530_v3  ;;  %v6308_v53 = vsub.f32 %v12168_v6, %v12259_v25 }
0x15fe   :  { %v6420_v37 = vsub.f32 1.5, %v6419_v19 }
0x15ff   :  { %v8658_v13 = vpop.eup %8657  ;;  %v6357_v16 = vadd.f32 1e-05, %v6341_v55  ;;  %v6566_v58 = vadd.f32 %v12241_v26, %v6548_v57 }
0x1600   :  { %v6421_v5 = vmul.f32 %v8656_v35, %v6420_v37  ;;  %v6427_v18 = vmul.f32 %v8658_v13, %v6356_v43  ;;  %v6207_v48 = vpop.xlane.xlu2 %6206  ;;  %vm6433_vm2 = vweird.f32 %v8658_v13 }
0x1601   :  { %8659 = vrsqrt.f32 %v6357_v16  ;;  %v12277_v45 = vmul.f32 0.03125, %v6207_v48  ;;  %vm6434_vm4 = vmor %vm6432_vm3, %vm6433_vm2  ;;  %v6582_v15 = vadd.f32 %v6566_v58, %v12728_v11  ;;  %vm6442_vm6 = vweird.f32 %v6357_v16 }
0x1602   :  { %v6425_v59 = vsel %vm6424_vm1, %v8656_v35, %v6421_v5  ;;  %v6428_v7 = vmul.f32 %v8658_v13, %v6427_v18  ;;  %v6271_v54 = vpop.xlane.xlu1 %6270 }
0x1603   :  { %v6531_v4 = vmul.f32 %v6425_v59, %v6307_v32  ;;  %v6326_v30 = vmul.f32 %v12277_v45, %v12277_v45  ;;  %v6294_v56 = vmul.f32 0.03125, %v6271_v54  ;;  %v6309_v32 = vsub.f32 %v12174_v33, %v12267_v39 }
0x1604   :  { %v6429_v34 = vmul.f32 0.5, %v6428_v7 }
0x1605   :  { %v6342_v8 = vsub.f32 %v6294_v56, %v6326_v30  ;;  %v6549_v0 = vmul.f32 %v12236_v31, %v6531_v4 }
0x1606   :  { %v6430_v49 = vsub.f32 1.5, %v6429_v34 }
0x1607   :  { %v8660_v41 = vpop.eup %8659  ;;  %v6358_v22 = vadd.f32 1e-05, %v6342_v8  ;;  %v6567_v35 = vadd.f32 %v12241_v26, %v6549_v0 }
0x1608   :  { %v6431_v47 = vmul.f32 %v8658_v13, %v6430_v49  ;;  %v6437_v36 = vmul.f32 %v8660_v41, %v6357_v16  ;;  %v6209_v1 = vpop.xlane.xlu0 %6208  ;;  %vm6443_vm5 = vweird.f32 %v8660_v41 }
0x1609   :  { %8661 = vrsqrt.f32 %v6358_v22  ;;  %v12285_v44 = vmul.f32 0.03125, %v6209_v1  ;;  %v6583_v23 = vadd.f32 %v6567_v35, %v12729_v14  ;;  %vm6444_vm7 = vmor %vm6442_vm6, %vm6443_vm5  ;;  %vm6452_vm9 = vweird.f32 %v6358_v22 }
0x160a   :  { %v6438_v2 = vmul.f32 %v8660_v41, %v6437_v36  ;;  %v6273_v17 = vpop.xlane.xlu2 %6272  ;;  %v6435_v29 = vsel %vm6434_vm4, %v8658_v13, %v6431_v47 }
0x160b   :  { %v6327_v12 = vmul.f32 %v12285_v44, %v12285_v44  ;;  %v6295_v19 = vmul.f32 0.03125, %v6273_v17  ;;  %v6613_v43 = vpack.c.bf16 %v6583_v23, %v6582_v15  ;;  %v6532_v37 = vmul.f32 %v6435_v29, %v6308_v53 }
0x160c   :  { %v6439_v55 = vmul.f32 0.5, %v6438_v2 }
0x160d   :  { %v6343_v3 = vsub.f32 %v6295_v19, %v6327_v12  ;;  %6687 = vmatmul.bf16.gmra.mxu2 %v6613_v43  ;;  %v6550_v54 = vmul.f32 %v12236_v31, %v6532_v37  ;;  %v6310_v12 = vsub.f32 %v12180_v40, %v12277_v45 }
0x160e   :  { %v6440_v5 = vsub.f32 1.5, %v6439_v55 }
0x160f   :  { %v8662_v14 = vpop.eup %8661  ;;  %v6359_v18 = vadd.f32 1e-05, %v6343_v3  ;;  %v6568_v33 = vadd.f32 %v12241_v26, %v6550_v54 }
0x1610   :  { %v6441_v48 = vmul.f32 %v8660_v41, %v6440_v5  ;;  %v6447_v11 = vmul.f32 %v8662_v14, %v6358_v22  ;;  %v6211_v13 = vpop.xlane.xlu0 %6210  ;;  %vm6453_vm8 = vweird.f32 %v8662_v14 }
0x1611   :  { %8663 = vrsqrt.f32 %v6359_v18  ;;  %v12295_v59 = vmul.f32 0.03125, %v6211_v13  ;;  %vm6454_vm10 = vmor %vm6452_vm9, %vm6453_vm8  ;;  %v6584_v2 = vadd.f32 %v6568_v33, %v12730_v62  ;;  %vm6462_vm12 = vweird.f32 %v6359_v18 }
0x1612   :  { %v6445_v6 = vsel %vm6444_vm7, %v8660_v41, %v6441_v48  ;;  %v6448_v25 = vmul.f32 %v8662_v14, %v6447_v11  ;;  %v6275_v7 = vpop.xlane.xlu2 %6274 }
0x1613   :  { %v6533_v57 = vmul.f32 %v6445_v6, %v6309_v32  ;;  %v6328_v4 = vmul.f32 %v12295_v59, %v12295_v59  ;;  %v6296_v30 = vmul.f32 0.03125, %v6275_v7 }
0x1614   :  { %v6449_v16 = vmul.f32 0.5, %v6448_v25 }
0x1615   :  { %v6344_v56 = vsub.f32 %v6296_v30, %v6328_v4  ;;  %v6551_v34 = vmul.f32 %v12236_v31, %v6533_v57 }
0x1616   :  { %v6450_v8 = vsub.f32 1.5, %v6449_v16 }
0x1617   :  { %v8664_v39 = vpop.eup %8663  ;;  %v6360_v0 = vadd.f32 1e-05, %v6344_v56  ;;  %v6569_v49 = vadd.f32 %v12241_v26, %v6551_v34 }
0x1618   :  { %v6451_v58 = vmul.f32 %v8662_v14, %v6450_v8  ;;  %v6457_v41 = vmul.f32 %v8664_v39, %v6359_v18  ;;  %v6213_v35 = vpop.xlane.xlu1 %6212  ;;  %vm6463_vm11 = vweird.f32 %v8664_v39 }
0x1619   :  { %8665 = vrsqrt.f32 %v6360_v0  ;;  %v12303_v47 = vmul.f32 0.03125, %v6213_v35  ;;  %v6585_v36 = vadd.f32 %v6569_v49, %v12731_v60  ;;  %vm6464_vm13 = vmor %vm6462_vm12, %vm6463_vm11  ;;  %vm6472_vm15 = vweird.f32 %v6360_v0 }
0x161a   :  { %v6458_v1 = vmul.f32 %v8664_v39, %v6457_v41  ;;  %v6277_v23 = vpop.xlane.xlu0 %6276  ;;  %v6455_v17 = vsel %vm6454_vm10, %v8662_v14, %v6451_v58  ;;  %v6311_v14 = vsub.f32 %v12186_v42, %v12285_v44 }
0x161b   :  { %v6329_v15 = vmul.f32 %v12303_v47, %v12303_v47  ;;  %v6297_v29 = vmul.f32 0.03125, %v6277_v23  ;;  %v6614_v22 = vpack.c.bf16 %v6585_v36, %v6584_v2  ;;  %v6534_v55 = vmul.f32 %v6455_v17, %v6310_v12 }
0x161c   :  { %v6459_v19 = vmul.f32 0.5, %v6458_v1  ;;  %v6312_v1 = vsub.f32 %v12192_v38, %v12295_v59 }
0x161d   :  { %v6345_v53 = vsub.f32 %v6297_v29, %v6329_v15  ;;  %6692 = vmatmul.bf16.gmra.mxu2 %v6614_v22  ;;  %v6552_v13 = vmul.f32 %v12236_v31, %v6534_v55  ;;  %v6313_v22 = vsub.f32 %v12198_v63, %v12303_v47 }
0x161e   :  { %v6460_v43 = vsub.f32 1.5, %v6459_v19 }
0x161f   :  { %v8666_v60 = vpop.eup %8665  ;;  %v6361_v3 = vadd.f32 1e-05, %v6345_v53  ;;  %v6570_v42 = vadd.f32 %v12241_v26, %v6552_v13 }
0x1620   :  { %v6461_v37 = vmul.f32 %v8664_v39, %v6460_v43  ;;  %v6467_v62 = vmul.f32 %v8666_v60, %v6360_v0  ;;  %v6215_v5 = vpop.xlane.xlu1 %6214  ;;  %vm6473_vm14 = vweird.f32 %v8666_v60 }
0x1621   :  { %8667 = vrsqrt.f32 %v6361_v3  ;;  %v12313_v48 = vmul.f32 0.03125, %v6215_v5  ;;  %vm6474_vm0 = vmor %vm6472_vm15, %vm6473_vm14  ;;  %v6586_v58 = vadd.f32 %v6570_v42, %v12732_v24  ;;  %vm6482_vm2 = vweird.f32 %v6361_v3 }
0x1622   :  { %v6465_v40 = vsel %vm6464_vm13, %v8664_v39, %v6461_v37  ;;  %v6468_v45 = vmul.f32 %v8666_v60, %v6467_v62  ;;  %v6279_v11 = vpop.xlane.xlu0 %6278 }
0x1623   :  { %v6535_v32 = vmul.f32 %v6465_v40, %v6311_v14  ;;  %v6330_v6 = vmul.f32 %v12313_v48, %v12313_v48  ;;  %v6298_v25 = vmul.f32 0.03125, %v6279_v11 }
0x1624   :  { %v6469_v18 = vmul.f32 0.5, %v6468_v45 }
0x1625   :  { %v6346_v7 = vsub.f32 %v6298_v25, %v6330_v6  ;;  %v6553_v54 = vmul.f32 %v12236_v31, %v6535_v32 }
0x1626   :  { %v6470_v57 = vsub.f32 1.5, %v6469_v18 }
0x1627   :  { %v8668_v44 = vpop.eup %8667  ;;  %v6362_v4 = vadd.f32 1e-05, %v6346_v7  ;;  %v6571_v30 = vadd.f32 %v12241_v26, %v6553_v54 }
0x1628   :  { %v6471_v16 = vmul.f32 %v8666_v60, %v6470_v57  ;;  %v6477_v56 = vmul.f32 %v8668_v44, %v6361_v3  ;;  %v6217_v34 = vpop.xlane.xlu2 %6216  ;;  %vm6483_vm1 = vweird.f32 %v8668_v44  ;;  %v8399_v3 = vld [vmem:[#allocation11 + $0x4b8] sm:$0xff] }
0x1629   :  { %8669 = vrsqrt.f32 %v6362_v4  ;;  %v12321_v8 = vmul.f32 0.03125, %v6217_v34  ;;  %v6587_v33 = vadd.f32 %v6571_v30, %v12733_v9  ;;  %vm6484_vm3 = vmor %vm6482_vm2, %vm6483_vm1  ;;  %6809 = vmatpush.bf16.msrb.mxu3 %v8399_v3  ;;  %vm6492_vm5 = vweird.f32 %v6362_v4 }
0x162a   :  { %v6478_v39 = vmul.f32 %v8668_v44, %v6477_v56  ;;  %v6281_v49 = vpop.xlane.xlu1 %6280  ;;  %v6475_v41 = vsel %vm6474_vm0, %v8666_v60, %v6471_v16  ;;  %v6314_v30 = vsub.f32 %v12204_v10, %v12313_v48 }
0x162b   :  { %v6331_v35 = vmul.f32 %v12321_v8, %v12321_v8  ;;  %v6299_v36 = vmul.f32 0.03125, %v6281_v49  ;;  %v6615_v0 = vpack.c.bf16 %v6587_v33, %v6586_v58  ;;  %v6536_v17 = vmul.f32 %v6475_v41, %v6312_v1 }
0x162c   :  { %v6479_v23 = vmul.f32 0.5, %v6478_v39  ;;  %v6315_v10 = vsub.f32 %v12210_v21, %v12321_v8 }
0x162d   :  { %v6347_v2 = vsub.f32 %v6299_v36, %v6331_v35  ;;  %6697 = vmatmul.bf16.gmra.mxu2 %v6615_v0  ;;  %v6554_v43 = vmul.f32 %v12236_v31, %v6536_v17  ;;  %v8397_v36 = vld [vmem:[#allocation11 + $0x4a8] sm:$0xff]  ;;  %v8396_v17 = vld [vmem:[#allocation11 + $0x4a0] sm:$0xff] }
0x162e   :  { %v6480_v15 = vsub.f32 1.5, %v6479_v23 }
0x162f   :  { %v8670_v9 = vpop.eup %8669  ;;  %v6363_v29 = vadd.f32 1e-05, %v6347_v2  ;;  %v6572_v47 = vadd.f32 %v12241_v26, %v6554_v43 }
0x1630   :  { %v6481_v12 = vmul.f32 %v8668_v44, %v6480_v15  ;;  %v6487_v24 = vmul.f32 %v8670_v9, %v6362_v4  ;;  %v6219_v19 = vpop.xlane.xlu2 %6218  ;;  %vm6493_vm4 = vweird.f32 %v8670_v9 }
0x1631   :  { %8671 = vrsqrt.f32 %v6363_v29  ;;  %v12331_v53 = vmul.f32 0.03125, %v6219_v19  ;;  %vm6494_vm6 = vmor %vm6492_vm5, %vm6493_vm4  ;;  %vm6502_vm8 = vweird.f32 %v6363_v29 }
0x1632   :  { %v6485_v38 = vsel %vm6484_vm3, %v8668_v44, %v6481_v12  ;;  %v6488_v59 = vmul.f32 %v8670_v9, %v6487_v24  ;;  %v6283_v55 = vpop.xlane.xlu1 %6282  ;;  %v6588_v44 = vadd.f32 %v6572_v47, %v12734_v50 }
0x1633   :  { %v6537_v60 = vmul.f32 %v6485_v38, %v6313_v22  ;;  %v6332_v37 = vmul.f32 %v12331_v53, %v12331_v53  ;;  %v6300_v62 = vmul.f32 0.03125, %v6283_v55  ;;  %v6316_v55 = vsub.f32 %v12216_v27, %v12331_v53 }
0x1634   :  { %v6489_v5 = vmul.f32 0.5, %v6488_v59 }
0x1635   :  { %v6348_v14 = vsub.f32 %v6300_v62, %v6332_v37  ;;  %v6555_v40 = vmul.f32 %v12236_v31, %v6537_v60 }
0x1636   :  { %v6490_v63 = vsub.f32 1.5, %v6489_v5  ;;  %v8395_v5 = vld [vmem:[#allocation11 + $0x498] sm:$0xff] }
0x1637   :  { %v8672_v45 = vpop.eup %8671  ;;  %v6364_v11 = vadd.f32 1e-05, %v6348_v14  ;;  %v6573_v13 = vadd.f32 %v12241_v26, %v6555_v40 }
0x1638   :  { %v6491_v32 = vmul.f32 %v8670_v9, %v6490_v63  ;;  %v6497_v6 = vmul.f32 %v8672_v45, %v6363_v29  ;;  %v6221_v25 = vpop.xlane.xlu0 %6220  ;;  %vm6503_vm7 = vweird.f32 %v8672_v45  ;;  %v8394_v63 = vld [vmem:[#allocation11 + $0x490] sm:$0xff] }
0x1639   :  { %8673 = vrsqrt.f32 %v6364_v11  ;;  %v12339_v18 = vmul.f32 0.03125, %v6221_v25  ;;  %v6589_v7 = vadd.f32 %v6573_v13, %v12735_v20  ;;  %v8398_v20 = vld [vmem:[#allocation11 + $0x4b0] sm:$0xff]  ;;  %vm6504_vm9 = vmor %vm6502_vm8, %vm6503_vm7  ;;  %vm6512_vm11 = vweird.f32 %v6364_v11  ;;  %v12365_v25 = vld [vmem:[#allocation13 + $0x24] ss:$0 sm:$0xff] }
0x163a   :  { %v6495_v54 = vsel %vm6494_vm6, %v8670_v9, %v6491_v32  ;;  %v6498_v57 = vmul.f32 %v8672_v45, %v6497_v6  ;;  %v6285_v42 = vpop.xlane.xlu2 %6284  ;;  %6810 = vmatpush.bf16.msrb.mxu3 %v8398_v20  ;;  %v8392_v32 = vld [vmem:[#allocation11 + $0x480] sm:$0xff] }
0x163b   :  { %v6333_v16 = vmul.f32 %v12339_v18, %v12339_v18  ;;  %v6301_v4 = vmul.f32 0.03125, %v6285_v42  ;;  %v6616_v34 = vpack.c.bf16 %v6589_v7, %v6588_v44  ;;  %v6538_v33 = vmul.f32 %v6495_v54, %v6314_v30 }
0x163c   :  { %v6499_v56 = vmul.f32 0.5, %v6498_v57  ;;  %v6317_v14 = vsub.f32 %v12222_v52, %v12339_v18 }
0x163d   :  { %v6349_v39 = vsub.f32 %v6301_v4, %v6333_v16  ;;  %6702 = vmatmul.bf16.gmra.mxu2 %v6616_v34  ;;  %v6556_v48 = vmul.f32 %v12236_v31, %v6538_v33 }
0x163e   :  { %v6500_v49 = vsub.f32 1.5, %v6499_v56  ;;  %6811 = vmatpush.bf16.msrb.mxu3 %v8397_v36 }
0x163f   :  { %v8674_v58 = vpop.eup %8673  ;;  %v6365_v41 = vadd.f32 1e-05, %v6349_v39  ;;  %v6574_v9 = vadd.f32 %v12241_v26, %v6556_v48 }
0x1640   :  { %v6501_v35 = vmul.f32 %v8672_v45, %v6500_v49  ;;  %v6507_v50 = vmul.f32 %v8674_v58, %v6364_v11  ;;  %vm6513_vm10 = vweird.f32 %v8674_v58 }
0x1641   :  { %8675 = vrsqrt.f32 %v6365_v41  ;;  %vm6514_vm12 = vmor %vm6512_vm11, %vm6513_vm10  ;;  %v6590_v19 = vadd.f32 %v6574_v9, %v12736_v46  ;;  %vm6522_vm14 = vweird.f32 %v6365_v41 }
0x1642   :  { %v6505_v1 = vsel %vm6504_vm9, %v8672_v45, %v6501_v35  ;;  %v6508_v23 = vmul.f32 %v8674_v58, %v6507_v50  ;;  %6812 = vmatpush.bf16.msrb.mxu3 %v8396_v17  ;;  %v8393_v45 = vld [vmem:[#allocation11 + $0x488] sm:$0xff] }
0x1643   :  { %v6539_v0 = vmul.f32 %v6505_v1, %v6315_v10 }
0x1644   :  { %v6509_v2 = vmul.f32 0.5, %v6508_v23 }
0x1645   :  { %v6557_v15 = vmul.f32 %v12236_v31, %v6539_v0 }
0x1646   :  { %v6510_v29 = vsub.f32 1.5, %v6509_v2  ;;  %6813 = vmatpush.bf16.msrb.mxu3 %v8395_v5 }
0x1647   :  { %v8676_v12 = vpop.eup %8675  ;;  %v6575_v24 = vadd.f32 %v12241_v26, %v6557_v15 }
0x1648   :  { %v6511_v21 = vmul.f32 %v8674_v58, %v6510_v29  ;;  %v6517_v8 = vmul.f32 %v8676_v12, %v6365_v41  ;;  %vm6523_vm13 = vweird.f32 %v8676_v12 }
0x1649   :  { %v6591_v22 = vadd.f32 %v6575_v24, %v12737_v28  ;;  %vm6524_vm15 = vmor %vm6522_vm14, %vm6523_vm13 }
0x164a   :  { %v6515_v38 = vsel %vm6514_vm12, %v8674_v58, %v6511_v21  ;;  %v6518_v59 = vmul.f32 %v8676_v12, %v6517_v8  ;;  %6814 = vmatpush.bf16.msrb.mxu3 %v8394_v63  ;;  %v8403_v63 = vld [vmem:[#allocation11 + $0x4d8] sm:$0xff] }
0x164b   :  { %v6617_v43 = vpack.c.bf16 %v6591_v22, %v6590_v19  ;;  %v6540_v37 = vmul.f32 %v6515_v38, %v6316_v55  ;;  %v8406_v55 = vld [vmem:[#allocation11 + $0x4f0] sm:$0xff] }
0x164c   :  { %v6519_v60 = vmul.f32 0.5, %v6518_v59  ;;  %v8407_v59 = vld [vmem:[#allocation11 + $0x4f8] sm:$0xff] }
0x164d   :  { %6707 = vmatmul.bf16.gmra.mxu2 %v6617_v43  ;;  %v6558_v46 = vmul.f32 %v12236_v31, %v6540_v37  ;;  %6949 = vmatpush.bf16.msrb.mxu0 %v8407_v59  ;;  %v8415_v59 = vld [vmem:[#allocation11 + $0x538] sm:$0xff] }
0x164e   :  { %v6520_v62 = vsub.f32 1.5, %v6519_v60  ;;  %6815 = vmatpush.bf16.msrb.mxu3 %v8393_v45  ;;  %v8405_v60 = vld [vmem:[#allocation11 + $0x4e8] sm:$0xff]  ;;  %7089 = vmatpush.bf16.msra.mxu1 %v8415_v59 }
0x164f   :  { %v6576_v53 = vadd.f32 %v12241_v26, %v6558_v46 }
0x1650   :  { %v6521_v3 = vmul.f32 %v8676_v12, %v6520_v62  ;;  %v8404_v62 = vld [vmem:[#allocation11 + $0x4e0] sm:$0xff] }
0x1651   :  { %v6592_v11 = vadd.f32 %v6576_v53, %v12738_v51  ;;  %6950 = vmatpush.bf16.msrb.mxu0 %v8406_v55 }
0x1652   :  { %v6525_v28 = vsel %vm6524_vm15, %v8676_v12, %v6521_v3  ;;  %6816 = vmatpush.bf16.msrb.mxu3 %v8392_v32 }
0x1653   :  { %v6541_v40 = vmul.f32 %v6525_v28, %v6317_v14 }
0x1655   :  { %v6559_v27 = vmul.f32 %v12236_v31, %v6541_v40  ;;  %6951 = vmatpush.bf16.msrb.mxu0 %v8405_v60 }
0x1657   :  { %v6577_v47 = vadd.f32 %v12241_v26, %v6559_v27  ;;  %v8402_v27 = vld [vmem:[#allocation11 + $0x4d0] sm:$0xff] }
0x1659   :  { %v6593_v13 = vadd.f32 %v6577_v47, %v12739_v61  ;;  %6952 = vmatpush.bf16.msrb.mxu0 %v8404_v62  ;;  %v8412_v62 = vld [vmem:[#allocation11 + $0x520] sm:$0xff] }
0x165b   :  { %v6618_v52 = vpack.c.bf16 %v6593_v13, %v6592_v11  ;;  %v8401_v11 = vld [vmem:[#allocation11 + $0x4c8] sm:$0xff] }
0x165d   :  { %6712 = vmatmul.bf16.gmra.mxu2 %v6618_v52  ;;  %6953 = vmatpush.bf16.msrb.mxu0 %v8403_v63 }
0x1661   :  { %6954 = vmatpush.bf16.msrb.mxu0 %v8402_v27  ;;  %v8410_v27 = vld [vmem:[#allocation11 + $0x510] sm:$0xff] }
0x1665   :  { %6955 = vmatpush.bf16.msrb.mxu0 %v8401_v11  ;;  %v8408_v11 = vld [vmem:[#allocation11 + $0x500] sm:$0xff] }
0x1670   :  { %v6678_v6 = vpop.f32.mrf.mxu2 }
0x1671   :  { %v6679_v31 = vadd.f32 %v12365_v25, %v6678_v6  ;;  %v8400_v6 = vld [vmem:[#allocation11 + $0x4c0] sm:$0xff] }
0x1672   :  { %6956 = vmatpush.bf16.msrb.mxu0 %v8400_v6 }
0x1673   :  { %v6718_v54 = vmax.f32 %v6679_v31, 0.0 }
0x1678   :  { %v6680_v18 = vpop.f32.mrf.mxu2 }
0x1679   :  { %v6681_v7 = vadd.f32 %v12365_v25, %v6680_v18  ;;  %v12383_v18 = vld [vmem:[#allocation13 + $0x25] ss:$0 sm:$0xff] }
0x167b   :  { %v6719_v26 = vmax.f32 %v6681_v7, 0.0 }
0x167d   :  { %v6751_v57 = vpack.c.bf16 %v6719_v26, %v6718_v54 }
0x167f   :  { %6817 = vmatmul.bf16.vlgmr.msrb.gmra.mxu3 %v6751_v57 }
0x1680   :  { %v6683_v51 = vpop.f32.mrf.mxu2 }
0x1681   :  { %v6684_v61 = vadd.f32 %v12365_v25, %v6683_v51 }
0x1683   :  { %v6720_v30 = vmax.f32 %v6684_v61, 0.0 }
0x1688   :  { %v6685_v42 = vpop.f32.mrf.mxu2 }
0x1689   :  { %v6686_v44 = vadd.f32 %v12365_v25, %v6685_v42 }
0x168b   :  { %v6721_v16 = vmax.f32 %v6686_v44, 0.0 }
0x168d   :  { %v6752_v4 = vpack.c.bf16 %v6721_v16, %v6720_v30 }
0x168f   :  { %6822 = vmatmul.bf16.gmra.mxu3 %v6752_v4 }
0x1690   :  { %v6688_v56 = vpop.f32.mrf.mxu2 }
0x1691   :  { %v6689_v34 = vadd.f32 %v12365_v25, %v6688_v56 }
0x1693   :  { %v6722_v49 = vmax.f32 %v6689_v34, 0.0 }
0x1698   :  { %v6690_v33 = vpop.f32.mrf.mxu2 }
0x1699   :  { %v6691_v39 = vadd.f32 %v12365_v25, %v6690_v33 }
0x169b   :  { %v6723_v20 = vmax.f32 %v6691_v39, 0.0 }
0x169d   :  { %v6753_v58 = vpack.c.bf16 %v6723_v20, %v6722_v49 }
0x169f   :  { %6827 = vmatmul.bf16.gmra.mxu3 %v6753_v58 }
0x16a0   :  { %v6693_v41 = vpop.f32.mrf.mxu2 }
0x16a1   :  { %v6694_v35 = vadd.f32 %v12365_v25, %v6693_v41 }
0x16a3   :  { %v6724_v10 = vmax.f32 %v6694_v35, 0.0 }
0x16a8   :  { %v6695_v50 = vpop.f32.mrf.mxu2 }
0x16a9   :  { %v6696_v36 = vadd.f32 %v12365_v25, %v6695_v50 }
0x16ab   :  { %v6725_v48 = vmax.f32 %v6696_v36, 0.0 }
0x16ad   :  { %v6754_v1 = vpack.c.bf16 %v6725_v48, %v6724_v10 }
0x16af   :  { %6832 = vmatmul.bf16.gmra.mxu3 %v6754_v1 }
0x16b0   :  { %v6698_v23 = vpop.f32.mrf.mxu2 }
0x16b1   :  { %v6699_v0 = vadd.f32 %v12365_v25, %v6698_v23 }
0x16b3   :  { %v6726_v15 = vmax.f32 %v6699_v0, 0.0 }
0x16b8   :  { %v6700_v2 = vpop.f32.mrf.mxu2 }
0x16b9   :  { %v6701_v17 = vadd.f32 %v12365_v25, %v6700_v2 }
0x16bb   :  { %v6727_v9 = vmax.f32 %v6701_v17, 0.0 }
0x16bd   :  { %v6755_v29 = vpack.c.bf16 %v6727_v9, %v6726_v15 }
0x16bf   :  { %6837 = vmatmul.bf16.gmra.mxu3 %v6755_v29 }
0x16c0   :  { %v6703_v12 = vpop.f32.mrf.mxu2 }
0x16c1   :  { %v6704_v24 = vadd.f32 %v12365_v25, %v6703_v12 }
0x16c3   :  { %v6728_v19 = vmax.f32 %v6704_v24, 0.0 }
0x16c8   :  { %v6705_v21 = vpop.f32.mrf.mxu2 }
0x16c9   :  { %v6706_v8 = vadd.f32 %v12365_v25, %v6705_v21 }
0x16cb   :  { %v6729_v22 = vmax.f32 %v6706_v8, 0.0 }
0x16cd   :  { %v6756_v38 = vpack.c.bf16 %v6729_v22, %v6728_v19 }
0x16cf   :  { %6842 = vmatmul.bf16.gmra.mxu3 %v6756_v38 }
0x16d0   :  { %v6708_v43 = vpop.f32.mrf.mxu2 }
0x16d1   :  { %v6709_v37 = vadd.f32 %v12365_v25, %v6708_v43  ;;  %v8414_v43 = vld [vmem:[#allocation11 + $0x530] sm:$0xff] }
0x16d2   :  { %7090 = vmatpush.bf16.msra.mxu1 %v8414_v43 }
0x16d3   :  { %v6730_v14 = vmax.f32 %v6709_v37, 0.0  ;;  %v8413_v37 = vld [vmem:[#allocation11 + $0x528] sm:$0xff] }
0x16d6   :  { %7091 = vmatpush.bf16.msra.mxu1 %v8413_v37 }
0x16d8   :  { %v6710_v3 = vpop.f32.mrf.mxu2 }
0x16d9   :  { %v6711_v5 = vadd.f32 %v12365_v25, %v6710_v3 }
0x16da   :  { %7092 = vmatpush.bf16.msra.mxu1 %v8412_v62 }
0x16db   :  { %v6731_v46 = vmax.f32 %v6711_v5, 0.0 }
0x16dd   :  { %v6757_v28 = vpack.c.bf16 %v6731_v46, %v6730_v14 }
0x16df   :  { %6847 = vmatmul.bf16.gmra.mxu3 %v6757_v28 }
0x16e0   :  { %v6713_v40 = vpop.f32.mrf.mxu2 }
0x16e1   :  { %v6714_v53 = vadd.f32 %v12365_v25, %v6713_v40  ;;  %v8411_v40 = vld [vmem:[#allocation11 + $0x518] sm:$0xff] }
0x16e2   :  { %7093 = vmatpush.bf16.msra.mxu1 %v8411_v40 }
0x16e3   :  { %v6732_v13 = vmax.f32 %v6714_v53, 0.0 }
0x16e6   :  { %7094 = vmatpush.bf16.msra.mxu1 %v8410_v27 }
0x16e8   :  { %v6715_v47 = vpop.f32.mrf.mxu2 }
0x16e9   :  { %v6716_v45 = vadd.f32 %v12365_v25, %v6715_v47  ;;  %v8409_v47 = vld [vmem:[#allocation11 + $0x508] sm:$0xff] }
0x16ea   :  { %7095 = vmatpush.bf16.msra.mxu1 %v8409_v47 }
0x16eb   :  { %v6733_v52 = vmax.f32 %v6716_v45, 0.0 }
0x16ed   :  { %v6758_v32 = vpack.c.bf16 %v6733_v52, %v6732_v13 }
0x16ee   :  { %7096 = vmatpush.bf16.msra.mxu1 %v8408_v11 }
0x16ef   :  { %6852 = vmatmul.bf16.gmra.mxu3 %v6758_v32 }
0x1702   :  { %v6818_v31 = vpop.f32.mrf.mxu3 }
0x1703   :  { %v6819_v7 = vadd.f32 %v12383_v18, %v6818_v31 }
0x1705   :  { %v6858_v57 = vmax.f32 %v6819_v7, 0.0 }
0x170a   :  { %v6820_v54 = vpop.f32.mrf.mxu3 }
0x170b   :  { %v6821_v26 = vadd.f32 %v12383_v18, %v6820_v54  ;;  %v8483_v54 = vld [vmem:[#allocation13 + $0x26] ss:$0 sm:$0xff] }
0x170d   :  { %v6859_v51 = vmax.f32 %v6821_v26, 0.0 }
0x170f   :  { %v6891_v61 = vpack.c.bf16 %v6859_v51, %v6858_v57 }
0x1711   :  { %6957 = vmatmul.bf16.vlgmr.msrb.gmra.mxu0 %v6891_v61 }
0x1712   :  { %v6823_v25 = vpop.f32.mrf.mxu3 }
0x1713   :  { %v6824_v42 = vadd.f32 %v12383_v18, %v6823_v25 }
0x1715   :  { %v6860_v16 = vmax.f32 %v6824_v42, 0.0 }
0x171a   :  { %v6825_v44 = vpop.f32.mrf.mxu3 }
0x171b   :  { %v6826_v30 = vadd.f32 %v12383_v18, %v6825_v44 }
0x171d   :  { %v6861_v4 = vmax.f32 %v6826_v30, 0.0 }
0x171f   :  { %v6892_v56 = vpack.c.bf16 %v6861_v4, %v6860_v16 }
0x1721   :  { %6962 = vmatmul.bf16.gmra.mxu0 %v6892_v56 }
0x1722   :  { %v6828_v34 = vpop.f32.mrf.mxu3 }
0x1723   :  { %v6829_v33 = vadd.f32 %v12383_v18, %v6828_v34 }
0x1725   :  { %v6862_v20 = vmax.f32 %v6829_v33, 0.0 }
0x172a   :  { %v6830_v39 = vpop.f32.mrf.mxu3 }
0x172b   :  { %v6831_v49 = vadd.f32 %v12383_v18, %v6830_v39 }
0x172d   :  { %v6863_v58 = vmax.f32 %v6831_v49, 0.0 }
0x172f   :  { %v6893_v41 = vpack.c.bf16 %v6863_v58, %v6862_v20 }
0x1731   :  { %6967 = vmatmul.bf16.gmra.mxu0 %v6893_v41 }
0x1732   :  { %v6833_v35 = vpop.f32.mrf.mxu3 }
0x1733   :  { %v6834_v50 = vadd.f32 %v12383_v18, %v6833_v35 }
0x1735   :  { %v6864_v48 = vmax.f32 %v6834_v50, 0.0 }
0x173a   :  { %v6835_v36 = vpop.f32.mrf.mxu3 }
0x173b   :  { %v6836_v10 = vadd.f32 %v12383_v18, %v6835_v36 }
0x173d   :  { %v6865_v1 = vmax.f32 %v6836_v10, 0.0 }
0x173f   :  { %v6894_v23 = vpack.c.bf16 %v6865_v1, %v6864_v48 }
0x1741   :  { %6972 = vmatmul.bf16.gmra.mxu0 %v6894_v23 }
0x1742   :  { %v6838_v0 = vpop.f32.mrf.mxu3 }
0x1743   :  { %v6839_v2 = vadd.f32 %v12383_v18, %v6838_v0 }
0x1745   :  { %v6866_v9 = vmax.f32 %v6839_v2, 0.0 }
0x174a   :  { %v6840_v17 = vpop.f32.mrf.mxu3 }
0x174b   :  { %v6841_v15 = vadd.f32 %v12383_v18, %v6840_v17 }
0x174d   :  { %v6867_v29 = vmax.f32 %v6841_v15, 0.0 }
0x174f   :  { %v6895_v12 = vpack.c.bf16 %v6867_v29, %v6866_v9 }
0x1751   :  { %6977 = vmatmul.bf16.gmra.mxu0 %v6895_v12 }
0x1752   :  { %v6843_v24 = vpop.f32.mrf.mxu3 }
0x1753   :  { %v6844_v21 = vadd.f32 %v12383_v18, %v6843_v24 }
0x1755   :  { %v6868_v22 = vmax.f32 %v6844_v21, 0.0 }
0x175a   :  { %v6845_v8 = vpop.f32.mrf.mxu3 }
0x175b   :  { %v6846_v19 = vadd.f32 %v12383_v18, %v6845_v8 }
0x175d   :  { %v6869_v38 = vmax.f32 %v6846_v19, 0.0 }
0x175f   :  { %v6896_v55 = vpack.c.bf16 %v6869_v38, %v6868_v22 }
0x1761   :  { %6982 = vmatmul.bf16.gmra.mxu0 %v6896_v55 }
0x1762   :  { %v6848_v60 = vpop.f32.mrf.mxu3 }
0x1763   :  { %v6849_v3 = vadd.f32 %v12383_v18, %v6848_v60 }
0x1765   :  { %v6870_v46 = vmax.f32 %v6849_v3, 0.0 }
0x176a   :  { %v6850_v5 = vpop.f32.mrf.mxu3 }
0x176b   :  { %v6851_v14 = vadd.f32 %v12383_v18, %v6850_v5 }
0x176d   :  { %v6871_v28 = vmax.f32 %v6851_v14, 0.0 }
0x176f   :  { %v6897_v63 = vpack.c.bf16 %v6871_v28, %v6870_v46 }
0x1771   :  { %6987 = vmatmul.bf16.gmra.mxu0 %v6897_v63 }
0x1772   :  { %v6853_v53 = vpop.f32.mrf.mxu3 }
0x1773   :  { %v6854_v45 = vadd.f32 %v12383_v18, %v6853_v53 }
0x1775   :  { %v6872_v32 = vmax.f32 %v6854_v45, 0.0  ;;  %v8484_v45 = vld [vmem:[#allocation13 + $0x27] ss:$0 sm:$0xff] }
0x177a   :  { %v6855_v13 = vpop.f32.mrf.mxu3 }
0x177b   :  { %v6856_v52 = vadd.f32 %v12383_v18, %v6855_v13 }
0x177d   :  { %v6873_v6 = vmax.f32 %v6856_v52, 0.0 }
0x177f   :  { %v6898_v31 = vpack.c.bf16 %v6873_v6, %v6872_v32 }
0x1781   :  { %6992 = vmatmul.bf16.gmra.mxu0 %v6898_v31 }
0x178e   :  { %v6958_v7 = vpop.f32.mrf.mxu0 }
0x178f   :  { %v6959_v26 = vadd.f32 %v8483_v54, %v6958_v7 }
0x1791   :  { %v6998_v61 = vmax.f32 %v6959_v26, 0.0 }
0x1796   :  { %v6960_v57 = vpop.f32.mrf.mxu0 }
0x1797   :  { %v6961_v51 = vadd.f32 %v8483_v54, %v6960_v57 }
0x1799   :  { %v6999_v25 = vmax.f32 %v6961_v51, 0.0 }
0x179b   :  { %v7031_v42 = vpack.c.bf16 %v6999_v25, %v6998_v61 }
0x179d   :  { %7097 = vmatmul.bf16.vlgmr.msra.gmra.mxu1 %v7031_v42 }
0x179e   :  { %v6963_v44 = vpop.f32.mrf.mxu0 }
0x179f   :  { %v6964_v30 = vadd.f32 %v8483_v54, %v6963_v44 }
0x17a1   :  { %v7000_v56 = vmax.f32 %v6964_v30, 0.0 }
0x17a6   :  { %v6965_v16 = vpop.f32.mrf.mxu0 }
0x17a7   :  { %v6966_v4 = vadd.f32 %v8483_v54, %v6965_v16 }
0x17a9   :  { %v7001_v18 = vmax.f32 %v6966_v4, 0.0 }
0x17ab   :  { %v7032_v34 = vpack.c.bf16 %v7001_v18, %v7000_v56 }
0x17ad   :  { %7102 = vmatmul.bf16.gmra.mxu1 %v7032_v34 }
0x17ae   :  { %v6968_v33 = vpop.f32.mrf.mxu0 }
0x17af   :  { %v6969_v39 = vadd.f32 %v8483_v54, %v6968_v33 }
0x17b1   :  { %v7002_v58 = vmax.f32 %v6969_v39, 0.0 }
0x17b6   :  { %v6970_v49 = vpop.f32.mrf.mxu0 }
0x17b7   :  { %v6971_v20 = vadd.f32 %v8483_v54, %v6970_v49 }
0x17b9   :  { %v7003_v41 = vmax.f32 %v6971_v20, 0.0 }
0x17bb   :  { %v7033_v35 = vpack.c.bf16 %v7003_v41, %v7002_v58 }
0x17bd   :  { %7107 = vmatmul.bf16.gmra.mxu1 %v7033_v35 }
0x17be   :  { %v6973_v50 = vpop.f32.mrf.mxu0 }
0x17bf   :  { %v6974_v36 = vadd.f32 %v8483_v54, %v6973_v50 }
0x17c1   :  { %v7004_v1 = vmax.f32 %v6974_v36, 0.0 }
0x17c6   :  { %v6975_v10 = vpop.f32.mrf.mxu0 }
0x17c7   :  { %v6976_v48 = vadd.f32 %v8483_v54, %v6975_v10 }
0x17c9   :  { %v7005_v23 = vmax.f32 %v6976_v48, 0.0 }
0x17cb   :  { %v7034_v0 = vpack.c.bf16 %v7005_v23, %v7004_v1 }
0x17cd   :  { %7112 = vmatmul.bf16.gmra.mxu1 %v7034_v0 }
0x17ce   :  { %v6978_v2 = vpop.f32.mrf.mxu0 }
0x17cf   :  { %v6979_v17 = vadd.f32 %v8483_v54, %v6978_v2 }
0x17d1   :  { %v7006_v29 = vmax.f32 %v6979_v17, 0.0 }
0x17d6   :  { %v6980_v15 = vpop.f32.mrf.mxu0 }
0x17d7   :  { %v6981_v9 = vadd.f32 %v8483_v54, %v6980_v15 }
0x17d9   :  { %v7007_v12 = vmax.f32 %v6981_v9, 0.0 }
0x17db   :  { %v7035_v24 = vpack.c.bf16 %v7007_v12, %v7006_v29 }
0x17dd   :  { %7117 = vmatmul.bf16.gmra.mxu1 %v7035_v24 }
0x17de   :  { %v6983_v21 = vpop.f32.mrf.mxu0 }
0x17df   :  { %v6984_v8 = vadd.f32 %v8483_v54, %v6983_v21 }
0x17e1   :  { %v7008_v38 = vmax.f32 %v6984_v8, 0.0 }
0x17e6   :  { %v6985_v19 = vpop.f32.mrf.mxu0 }
0x17e7   :  { %v6986_v22 = vadd.f32 %v8483_v54, %v6985_v19 }
0x17e9   :  { %v7009_v59 = vmax.f32 %v6986_v22, 0.0 }
0x17eb   :  { %v7036_v55 = vpack.c.bf16 %v7009_v59, %v7008_v38 }
0x17ed   :  { %7122 = vmatmul.bf16.gmra.mxu1 %v7036_v55 }
0x17ee   :  { %v6988_v43 = vpop.f32.mrf.mxu0 }
0x17ef   :  { %v6989_v60 = vadd.f32 %v8483_v54, %v6988_v43 }
0x17f1   :  { %v7010_v3 = vmax.f32 %v6989_v60, 0.0 }
0x17f6   :  { %v6990_v37 = vpop.f32.mrf.mxu0 }
0x17f7   :  { %v6991_v62 = vadd.f32 %v8483_v54, %v6990_v37 }
0x17f9   :  { %v7011_v5 = vmax.f32 %v6991_v62, 0.0 }
0x17fb   :  { %v7037_v14 = vpack.c.bf16 %v7011_v5, %v7010_v3 }
0x17fd   :  { %7127 = vmatmul.bf16.gmra.mxu1 %v7037_v14 }
0x17fe   :  { %v6993_v46 = vpop.f32.mrf.mxu0 }
0x17ff   :  { %v6994_v28 = vadd.f32 %v8483_v54, %v6993_v46 }
0x1801   :  { %v7012_v27 = vmax.f32 %v6994_v28, 0.0 }
0x1806   :  { %v6995_v40 = vpop.f32.mrf.mxu0 }
0x1807   :  { %v6996_v63 = vadd.f32 %v8483_v54, %v6995_v40 }
0x1809   :  { %v7013_v53 = vmax.f32 %v6996_v63, 0.0 }
0x180b   :  { %v7038_v47 = vpack.c.bf16 %v7013_v53, %v7012_v27 }
0x180d   :  { %7132 = vmatmul.bf16.gmra.mxu1 %v7038_v47 }
0x181a   :  { %v7098_v11 = vpop.f32.mrf.mxu1 }
0x181b   :  { %v7099_v13 = vadd.f32 %v8484_v45, %v7098_v11 }
0x181d   :  { %7138 = vst [vmem:[#allocation14] sm:$0xff] %v7099_v13 }
0x1822   :  { %v7100_v52 = vpop.f32.mrf.mxu1 }
0x1823   :  { %v7101_v32 = vadd.f32 %v8484_v45, %v7100_v52 }
0x1825   :  { %7139 = vst [vmem:[#allocation14 + $0x8] sm:$0xff] %v7101_v32 }
0x182a   :  { %v7103_v6 = vpop.f32.mrf.mxu1 }
0x182b   :  { %v7104_v31 = vadd.f32 %v8484_v45, %v7103_v6 }
0x182d   :  { %7140 = vst [vmem:[#allocation14 + $0x10] sm:$0xff] %v7104_v31 }
0x1832   :  { %v7105_v7 = vpop.f32.mrf.mxu1 }
0x1833   :  { %v7106_v26 = vadd.f32 %v8484_v45, %v7105_v7 }
0x1835   :  { %7141 = vst [vmem:[#allocation14 + $0x18] sm:$0xff] %v7106_v26 }
0x183a   :  { %v7108_v57 = vpop.f32.mrf.mxu1 }
0x183b   :  { %v7109_v51 = vadd.f32 %v8484_v45, %v7108_v57 }
0x183d   :  { %7142 = vst [vmem:[#allocation14 + $0x20] sm:$0xff] %v7109_v51 }
0x1842   :  { %v7110_v54 = vpop.f32.mrf.mxu1 }
0x1843   :  { %v7111_v61 = vadd.f32 %v8484_v45, %v7110_v54 }
0x1845   :  { %7143 = vst [vmem:[#allocation14 + $0x28] sm:$0xff] %v7111_v61 }
0x184a   :  { %v7113_v25 = vpop.f32.mrf.mxu1 }
0x184b   :  { %v7114_v42 = vadd.f32 %v8484_v45, %v7113_v25 }
0x184d   :  { %7144 = vst [vmem:[#allocation14 + $0x30] sm:$0xff] %v7114_v42 }
0x1852   :  { %v7115_v44 = vpop.f32.mrf.mxu1 }
0x1853   :  { %v7116_v30 = vadd.f32 %v8484_v45, %v7115_v44 }
0x1855   :  { %7145 = vst [vmem:[#allocation14 + $0x38] sm:$0xff] %v7116_v30 }
0x185a   :  { %v7118_v16 = vpop.f32.mrf.mxu1 }
0x185b   :  { %v7119_v4 = vadd.f32 %v8484_v45, %v7118_v16 }
0x185d   :  { %7146 = vst [vmem:[#allocation14 + $0x40] sm:$0xff] %v7119_v4 }
0x1862   :  { %v7120_v56 = vpop.f32.mrf.mxu1 }
0x1863   :  { %v7121_v18 = vadd.f32 %v8484_v45, %v7120_v56 }
0x1865   :  { %7147 = vst [vmem:[#allocation14 + $0x48] sm:$0xff] %v7121_v18 }
0x186a   :  { %v7123_v34 = vpop.f32.mrf.mxu1 }
0x186b   :  { %v7124_v33 = vadd.f32 %v8484_v45, %v7123_v34 }
0x186d   :  { %7148 = vst [vmem:[#allocation14 + $0x50] sm:$0xff] %v7124_v33 }
0x1872   :  { %v7125_v39 = vpop.f32.mrf.mxu1 }
0x1873   :  { %v7126_v49 = vadd.f32 %v8484_v45, %v7125_v39 }
0x1875   :  { %7149 = vst [vmem:[#allocation14 + $0x58] sm:$0xff] %v7126_v49 }
0x187a   :  { %v7128_v20 = vpop.f32.mrf.mxu1 }
0x187b   :  { %v7129_v58 = vadd.f32 %v8484_v45, %v7128_v20 }
0x187d   :  { %7150 = vst [vmem:[#allocation14 + $0x60] sm:$0xff] %v7129_v58 }
0x1882   :  { %v7130_v41 = vpop.f32.mrf.mxu1 }
0x1883   :  { %v7131_v35 = vadd.f32 %v8484_v45, %v7130_v41 }
0x1885   :  { %7151 = vst [vmem:[#allocation14 + $0x68] sm:$0xff] %v7131_v35 }
0x188a   :  { %v7133_v50 = vpop.f32.mrf.mxu1 }
0x188b   :  { %v7134_v36 = vadd.f32 %v8484_v45, %v7133_v50 }
0x188d   :  { %7152 = vst [vmem:[#allocation14 + $0x70] sm:$0xff] %v7134_v36 }
0x1892   :  { %v7135_v10 = vpop.f32.mrf.mxu1 }
0x1893   :  { %v7136_v48 = vadd.f32 %v8484_v45, %v7135_v10 }
0x1895   :  { %7153 = vst [vmem:[#allocation14 + $0x78] sm:$0xff] %v7136_v48 }
0x1896   :  { %7166 = dma.vmem_to_hbm [thread:$0]  %s7159_s14, 2048, %s7161_s16, [#allocation4], %s8905_s29, %s8905_s29, %s8906_s30  }
0x1897   :  { %8902 = dma.done.wait [#allocation4], 2048  }
0x1898   :  { %8903 = vsyncadd [#allocation4], 4294965248 }
0x1899   :  { %7171 = vsyncpa [#allocation3], 1 }
0x189a   :  { %7172 = vsyncpa [#allocation6], 1 }
0x189b   :  { %7173 = vsyncpa [#allocation9], 1 }
0x189c   :  { %7174 = vsyncpa [#allocation12], 1 }
0x189d   :  { %7175 = vsyncpa [#allocation4], 1 }

</bundles_post_ra>
